<compile_context>
chip_gen: v6e
topology: v6e:2x2x1
jax: 0.10.0
libtpu: 0.0.40
codegen_flags: <defaults>
</compile_context>

<pallas_src>
import functools

import numpy as np
import jax
import jax.numpy as jnp
from jax.experimental import pallas as pl
from jax.experimental.pallas import tpu as pltpu

LEAK = 0.2                      # LeakyReLU(0.2)
EPS = 1e-5                      # nn.InstanceNorm2d default eps
VMEM_LIMIT = 32 * 1024 * 1024   # explicit scoped-VMEM budget (safe on v5e/v6e/v7x)


def _round_up(x, m):
    return ((x + m - 1) // m) * m


# --------------------------- tiled matmul kernel -----------------------------

def _matmul_kernel_factory(apply_lrelu):
    def kernel(a_ref, w_ref, b_ref, o_ref, acc_ref):
        @pl.when(pl.program_id(2) == 0)
        def _init():
            acc_ref[...] = jnp.zeros_like(acc_ref)

        acc_ref[...] += jnp.dot(a_ref[...], w_ref[...],
                                preferred_element_type=jnp.float32)

        @pl.when(pl.program_id(2) == pl.num_programs(2) - 1)
        def _finalize():
            y = acc_ref[...] + b_ref[...]            # bias only in finalize
            if apply_lrelu:
                y = jnp.where(y >= 0.0, y, LEAK * y)  # fused LeakyReLU epilogue
            o_ref[...] = y
    return kernel


def _matmul_bias_act(a, w, b, apply_lrelu):
    """(M,K) @ (K,Co) + b [+ LeakyReLU], bf16 MXU inputs, f32 accumulator."""
    M, K = a.shape
    _, Co = w.shape

    Cop = _round_up(Co, 128)                       # lane-dense output stores
    tn = 256 if Cop % 256 == 0 else 128            # 256-wide MXU on v6e/v7x
    tk = min(512, _round_up(K, 128))
    Kp = _round_up(K, tk)
    tm = min(512, _round_up(M, 8))
    Mp = _round_up(M, tm)

    ap = jnp.pad(a, ((0, Mp - M), (0, Kp - K))).astype(jnp.bfloat16)
    wp = jnp.pad(w, ((0, Kp - K), (0, Cop - Co))).astype(jnp.bfloat16)
    bp = jnp.pad(b.astype(jnp.float32), (0, Cop - Co)).reshape(1, Cop)

    grid = (Mp // tm, Cop // tn, Kp // tk)
    out = pl.pallas_call(
        _matmul_kernel_factory(apply_lrelu),
        out_shape=jax.ShapeDtypeStruct((Mp, Cop), jnp.float32),
        grid=grid,
        in_specs=[
            pl.BlockSpec((tm, tk), lambda i, j, k: (i, k)),
            pl.BlockSpec((tk, tn), lambda i, j, k: (k, j)),
            pl.BlockSpec((1, tn), lambda i, j, k: (0, j)),
        ],
        out_specs=pl.BlockSpec((tm, tn), lambda i, j, k: (i, j)),
        scratch_shapes=[pltpu.VMEM((tm, tn), jnp.float32)],
        compiler_params=pltpu.CompilerParams(
            dimension_semantics=("parallel", "parallel", "arbitrary"),
            vmem_limit_bytes=VMEM_LIMIT),
    )(ap, wp, bp)
    return out[:M, :Co]


# ------------------------------- convolution ---------------------------------

def _im2col(x_nhwc, kh, kw, stride, pad):
    N, H, W, C = x_nhwc.shape
    xp = jnp.pad(x_nhwc, ((0, 0), (pad, pad), (pad, pad), (0, 0)))
    OH = (H + 2 * pad - kh) // stride + 1
    OW = (W + 2 * pad - kw) // stride + 1
    taps = []
    for i in range(kh):
        for j in range(kw):
            taps.append(xp[:, i:i + stride * OH:stride, j:j + stride * OW:stride, :])
    cols = jnp.stack(taps, axis=3)                  # (N, OH, OW, kh*kw, C)
    return cols, OH, OW


def _conv2d(x_nhwc, w_oihw, b, stride, pad, apply_lrelu=False):
    Co, Ci, kh, kw = w_oihw.shape
    N = x_nhwc.shape[0]
    cols, OH, OW = _im2col(x_nhwc, kh, kw, stride, pad)
    M = N * OH * OW
    a = cols.reshape(M, kh * kw * Ci)
    # PyTorch weight (Co, Ci, kh, kw) -> (kh, kw, Ci, Co) -> (kh*kw*Ci, Co)
    wk = jnp.transpose(w_oihw, (2, 3, 1, 0)).reshape(kh * kw * Ci, Co)
    y = _matmul_bias_act(a, wk, b, apply_lrelu)     # tiled Pallas MXU matmul
    return y.reshape(N, OH, OW, Co)


# ----------------------- InstanceNorm + LeakyReLU (tiled) --------------------

def _in_stats_kernel(x_ref, sum_ref, ssq_ref):
    @pl.when(pl.program_id(1) == 0)
    def _init():
        sum_ref[...] = jnp.zeros_like(sum_ref)
        ssq_ref[...] = jnp.zeros_like(ssq_ref)
    x = x_ref[0]                                              # (th, C)
    sum_ref[...] += jnp.sum(x, axis=0, keepdims=True)[None]   # (1, 1, C)
    ssq_ref[...] += jnp.sum(x * x, axis=0, keepdims=True)[None]


def _in_apply_kernel(x_ref, sum_ref, ssq_ref, o_ref, *, hw):
    inv_hw = 1.0 / hw
    mean = sum_ref[0] * inv_hw                                # (1, C)
    var = jnp.maximum(ssq_ref[0] * inv_hw - mean * mean, 0.0)  # biased var
    rstd = jax.lax.rsqrt(var + EPS)
    x = x_ref[0]                                              # (th, C)
    y = (x - mean) * rstd
    o_ref[0] = jnp.where(y >= 0.0, y, LEAK * y)


def _instnorm_lrelu(x_nhwc):
    N, H, W, C = x_nhwc.shape
    HW = H * W
    th = min(1024, _round_up(HW, 8))
    HWp = _round_up(HW, th)
    n_t = HWp // th
    x = x_nhwc.reshape(N, HW, C)
    if HWp != HW:
        x = jnp.pad(x, ((0, 0), (0, HWp - HW), (0, 0)))       # zero pad: no stat bias

    ssum, ssq = pl.pallas_call(
        _in_stats_kernel,
        out_shape=(jax.ShapeDtypeStruct((N, 1, C), jnp.float32),
                   jax.ShapeDtypeStruct((N, 1, C), jnp.float32)),
        grid=(N, n_t),
        in_specs=[pl.BlockSpec((1, th, C), lambda n, t: (n, t, 0))],
        out_specs=(pl.BlockSpec((1, 1, C), lambda n, t: (n, 0, 0)),
                   pl.BlockSpec((1, 1, C), lambda n, t: (n, 0, 0))),
        compiler_params=pltpu.CompilerParams(
            dimension_semantics=("parallel", "arbitrary"),
            vmem_limit_bytes=VMEM_LIMIT),
    )(x)

    y = pl.pallas_call(
        functools.partial(_in_apply_kernel, hw=float(HW)),
        out_shape=jax.ShapeDtypeStruct((N, HWp, C), jnp.float32),
        grid=(N, n_t),
        in_specs=[pl.BlockSpec((1, th, C), lambda n, t: (n, t, 0)),
                  pl.BlockSpec((1, 1, C), lambda n, t: (n, 0, 0)),
                  pl.BlockSpec((1, 1, C), lambda n, t: (n, 0, 0))],
        out_specs=pl.BlockSpec((1, th, C), lambda n, t: (n, t, 0)),
        compiler_params=pltpu.CompilerParams(
            dimension_semantics=("parallel", "parallel"),
            vmem_limit_bytes=VMEM_LIMIT),
    )(x, ssum, ssq)
    return y[:, :HW, :].reshape(N, H, W, C)


# ------------------- AvgPool2d(3, s=2, p=1, count_include_pad=False) ---------

def _avgpool_kernel(p_ref, rc_ref, o_ref):
    # p_ref: (1, 4, OH+1, OW+1, C) stride-2 phase planes of the padded input.
    p = p_ref[0]
    oh = o_ref.shape[1]
    ow = o_ref.shape[2]
    p00, p01, p10, p11 = p[0], p[1], p[2], p[3]
    s = (p00[:oh, :ow] + p00[:oh, 1:ow + 1]
         + p00[1:oh + 1, :ow] + p00[1:oh + 1, 1:ow + 1]
         + p01[:oh, :ow] + p01[1:oh + 1, :ow]
         + p10[:oh, :ow] + p10[:oh, 1:ow + 1]
         + p11[:oh, :ow])
    o_ref[0] = s * rc_ref[...]          # multiply by precomputed 1/count


def _avgpool_3x3_s2(x_nhwc):
    N, H, W, C = x_nhwc.shape
    OH = (H - 1) // 2 + 1
    OW = (W - 1) // 2 + 1
    Hp, Wp = 2 * OH + 2, 2 * OW + 2
    xp = jnp.pad(x_nhwc, ((0, 0), (1, Hp - H - 1), (1, Wp - W - 1), (0, 0)))
    # phase planes xp[a::2, b::2] -> each (OH+1, OW+1); ~1x input bytes total.
    phases = jnp.stack(
        [xp[:, a::2, b::2, :] for (a, b) in ((0, 0), (0, 1), (1, 0), (1, 1))],
        axis=1)                                           # (N, 4, OH+1, OW+1, C)

    def _valid(o, size):                                  # non-pad taps per axis
        return min(o * 2 + 2, size) - max(o * 2 - 1, 0)

    cnt_h = np.array([_valid(o, H) for o in range(OH)], np.float32)
    cnt_w = np.array([_valid(o, W) for o in range(OW)], np.float32)
    rc = 1.0 / (cnt_h[:, None] * cnt_w[None, :])
    rc = jnp.asarray(np.broadcast_to(rc[:, :, None], (OH, OW, C)).copy())

    return pl.pallas_call(
        _avgpool_kernel,
        out_shape=jax.ShapeDtypeStruct((N, OH, OW, C), jnp.float32),
        grid=(N,),
        in_specs=[pl.BlockSpec((1, 4, OH + 1, OW + 1, C),
                               lambda n: (n, 0, 0, 0, 0)),
                  pl.BlockSpec((OH, OW, C), lambda n: (0, 0, 0))],
        out_specs=pl.BlockSpec((1, OH, OW, C), lambda n: (n, 0, 0, 0)),
        compiler_params=pltpu.CompilerParams(
            dimension_semantics=("parallel",),
            vmem_limit_bytes=VMEM_LIMIT),
    )(phases, rc)


# ------------------------------ model definition -----------------------------

def _init_nlayer_params(key, input_nc, ndf, n_layers):
    """Parameter shapes exactly as NLayerDiscriminator.__init__ (kw=4, padw=2)."""
    kw = 4
    dims = [(input_nc, ndf)]
    nf = ndf
    for _ in range(1, n_layers):
        nf_prev, nf = nf, min(nf * 2, 512)
        dims.append((nf_prev, nf))
    nf_prev, nf = nf, min(nf * 2, 512)
    dims.append((nf_prev, nf))
    dims.append((nf, 1))
    params = []
    for (cin, cout) in dims:
        key, k_w, k_b = jax.random.split(key, 3)
        params.append({
            'w': 0.02 * jax.random.normal(k_w, (cout, cin, kw, kw), jnp.float32),
            'b': 0.02 * jax.random.normal(k_b, (cout,), jnp.float32),
        })
    return params


def _nlayer_disc_forward(params, x_nhwc, n_layers):
    # layer 0: Conv(s=2) + LeakyReLU (fused into the matmul epilogue, no norm)
    y = _conv2d(x_nhwc, params[0]['w'], params[0]['b'],
                stride=2, pad=2, apply_lrelu=True)
    # layers 1..n_layers-1: Conv(s=2) + InstanceNorm + LeakyReLU
    # layer n_layers      : Conv(s=1) + InstanceNorm + LeakyReLU
    for n in range(1, n_layers + 1):
        stride = 2 if n <= n_layers - 1 else 1
        y = _conv2d(y, params[n]['w'], params[n]['b'],
                    stride=stride, pad=2, apply_lrelu=False)
        y = _instnorm_lrelu(y)
    # final Conv(nf -> 1, s=1); use_sigmoid=False -> no sigmoid
    p = params[n_layers + 1]
    y = _conv2d(y, p['w'], p['b'], stride=1, pad=2, apply_lrelu=False)
    return y


def multiscale_discriminator_forward(params_list, x_nchw, n_layers=3):
    """MultiscaleDiscriminator.forward (getIntermFeat=False, use_sigmoid=False)."""
    num_D = len(params_list)
    x = jnp.transpose(x_nchw, (0, 2, 3, 1)).astype(jnp.float32)   # NCHW -> NHWC
    result = []
    for i in range(num_D):
        params = params_list[num_D - 1 - i]
        y = _nlayer_disc_forward(params, x, n_layers)
        result.append([jnp.transpose(y, (0, 3, 1, 2))])           # back to NCHW
        if i != num_D - 1:
            x = _avgpool_3x3_s2(x)
    return result


# ----------------------------------- main -------------------------------------

if __name__ == "__main__":
    key = jax.random.PRNGKey(0)
    input_nc, ndf, n_layers, num_D = 3, 16, 3, 3
    N, H, W = 2, 16, 16

    key, xk = jax.random.split(key)
    x = jax.random.normal(xk, (N, input_nc, H, W), jnp.float32)

    params_list = []
    for _ in range(num_D):
        key, sub = jax.random.split(key)
        params_list.append(_init_nlayer_params(sub, input_nc, ndf, n_layers))

    fwd = jax.jit(functools.partial(multiscale_discriminator_forward,
                                    n_layers=n_layers))
    out = fwd(params_list, x)
    out = jax.block_until_ready(out)

    # sanity: 3 scales, each a single 1-channel NCHW prediction map
    assert len(out) == num_D
    for scale in out:
        assert scale[0].ndim == 4 and scale[0].shape[0] == N and scale[0].shape[1] == 1

    print("KERNEL_OK")
</pallas_src>

<mosaic_0001>
module attributes {stable_mosaic.version = 11 : i64} {
  func.func @kernel(%arg0: i32, %arg1: i32, %arg2: i32, %arg3: memref<168x128xbf16, #tpu.memory_space<vmem>>, %arg4: memref<128x128xbf16, #tpu.memory_space<vmem>>, %arg5: memref<1x128xf32, #tpu.memory_space<vmem>>, %arg6: memref<168x128xf32, #tpu.memory_space<vmem>>, %arg7: memref<168x128xf32, #tpu.memory_space<vmem>>) attributes {dimension_semantics = [#tpu.dimension_semantics<parallel>, #tpu.dimension_semantics<parallel>, #tpu.dimension_semantics<arbitrary>], iteration_bounds = array<i64: 1, 1, 1>, scalar_prefetch = 0 : i64, scratch_operands = 1 : i64, tpu.core_type = #tpu.core_type<tc>, window_params = [{transform_indices = @transform_0, window_bounds = array<i64: 168, 128>}, {transform_indices = @transform_1, window_bounds = array<i64: 128, 128>}, {transform_indices = @transform_2, window_bounds = array<i64: 1, 128>}, {transform_indices = @transform_3, window_bounds = array<i64: 168, 128>}]} {
    %c0_i32 = arith.constant 0 : i32
    %0 = arith.cmpi eq, %arg2, %c0_i32 : i32
    %1 = arith.extui %0 : i1 to i32
    %c0_i32_0 = arith.constant 0 : i32
    %2 = arith.cmpi ne, %1, %c0_i32_0 : i32
    scf.if %2 {
      %cst_10 = arith.constant 0.000000e+00 : f32
      %12 = vector.broadcast %cst_10 : f32 to vector<168x128xf32>
      %c0_11 = arith.constant 0 : index
      %c0_12 = arith.constant 0 : index
      %13 = vector.load %arg7[%c0_11, %c0_12] : memref<168x128xf32, #tpu.memory_space<vmem>>, vector<168x128xf32>
      tpu.vector_store %arg7[%c0_11, %c0_12], %12 {strides = array<i32>} : memref<168x128xf32, #tpu.memory_space<vmem>>, vector<168x128xf32>,
    } else {
    }
    %c0 = arith.constant 0 : index
    %c0_1 = arith.constant 0 : index
    %3 = vector.load %arg7[%c0, %c0_1] : memref<168x128xf32, #tpu.memory_space<vmem>>, vector<168x128xf32>
    %c0_2 = arith.constant 0 : index
    %c0_3 = arith.constant 0 : index
    %4 = vector.load %arg3[%c0_2, %c0_3] : memref<168x128xbf16, #tpu.memory_space<vmem>>, vector<168x128xbf16>
    %c0_4 = arith.constant 0 : index
    %c0_5 = arith.constant 0 : index
    %5 = vector.load %arg4[%c0_4, %c0_5] : memref<128x128xbf16, #tpu.memory_space<vmem>>, vector<128x128xbf16>
    %cst = arith.constant dense<0.000000e+00> : vector<168x128xf32>
    %6 = tpu.matmul %4, %5, %cst {dimension_numbers = #tpu.dot_dimension_numbers<[1], [0], [0], [1], [0, 0, 1, 1], [], []>} : vector<168x128xbf16>, vector<128x128xbf16>, vector<168x128xf32> -> vector<168x128xf32>
    %7 = arith.addf %3, %6 : vector<168x128xf32>
    %c0_6 = arith.constant 0 : index
    %c0_7 = arith.constant 0 : index
    %8 = vector.load %arg7[%c0_6, %c0_7] : memref<168x128xf32, #tpu.memory_space<vmem>>, vector<168x128xf32>
    tpu.vector_store %arg7[%c0_6, %c0_7], %7 {strides = array<i32>} : memref<168x128xf32, #tpu.memory_space<vmem>>, vector<168x128xf32>,
    %c0_i32_8 = arith.constant 0 : i32
    %9 = arith.cmpi eq, %arg2, %c0_i32_8 : i32
    %10 = arith.extui %9 : i1 to i32
    %c0_i32_9 = arith.constant 0 : i32
    %11 = arith.cmpi ne, %10, %c0_i32_9 : i32
    scf.if %11 {
      %c0_10 = arith.constant 0 : index
      %c0_11 = arith.constant 0 : index
      %12 = vector.load %arg7[%c0_10, %c0_11] : memref<168x128xf32, #tpu.memory_space<vmem>>, vector<168x128xf32>
      %c0_12 = arith.constant 0 : index
      %c0_13 = arith.constant 0 : index
      %13 = vector.load %arg5[%c0_12, %c0_13] : memref<1x128xf32, #tpu.memory_space<vmem>>, vector<1x128xf32>
      %14 = vector.broadcast %13 : vector<1x128xf32> to vector<168x128xf32>
      %15 = arith.addf %12, %14 : vector<168x128xf32>
      %cst_14 = arith.constant 0.000000e+00 : f32
      %16 = vector.broadcast %cst_14 : f32 to vector<168x128xf32>
      %17 = arith.cmpf oge, %15, %16 : vector<168x128xf32>
      %cst_15 = arith.constant 2.000000e-01 : f32
      %18 = vector.broadcast %cst_15 : f32 to vector<168x128xf32>
      %19 = arith.mulf %18, %15 : vector<168x128xf32>
      %20 = arith.select %17, %15, %19 : vector<168x128xi1>, vector<168x128xf32>
      %c0_16 = arith.constant 0 : index
      %c0_17 = arith.constant 0 : index
      %21 = vector.load %arg6[%c0_16, %c0_17] : memref<168x128xf32, #tpu.memory_space<vmem>>, vector<168x128xf32>
      tpu.vector_store %arg6[%c0_16, %c0_17], %20 {strides = array<i32>} : memref<168x128xf32, #tpu.memory_space<vmem>>, vector<168x128xf32>,
    } else {
    }
    return
  }
  func.func @transform_0(%arg0: i32, %arg1: i32, %arg2: i32) -> (i32, i32) {
    %c0_i32 = arith.constant 0 : i32
    return %arg0, %arg2 : i32, i32
  }
  func.func @transform_1(%arg0: i32, %arg1: i32, %arg2: i32) -> (i32, i32) {
    %c0_i32 = arith.constant 0 : i32
    return %arg2, %arg1 : i32, i32
  }
  func.func @transform_2(%arg0: i32, %arg1: i32, %arg2: i32) -> (i32, i32) {
    %c0_i32 = arith.constant 0 : i32
    %c0_i32_0 = arith.constant 0 : i32
    return %c0_i32, %arg1 : i32, i32
  }
  func.func @transform_3(%arg0: i32, %arg1: i32, %arg2: i32) -> (i32, i32) {
    %c0_i32 = arith.constant 0 : i32
    return %arg0, %arg1 : i32, i32
  }
}

module attributes {stable_mosaic.version = 11 : i64} {
  func.func @_in_apply_kernel(%arg0: i32, %arg1: i32, %arg2: memref<1x32x32xf32, #tpu.memory_space<vmem>>, %arg3: memref<1x1x32xf32, #tpu.memory_space<vmem>>, %arg4: memref<1x1x32xf32, #tpu.memory_space<vmem>>, %arg5: memref<1x32x32xf32, #tpu.memory_space<vmem>>) attributes {dimension_semantics = [#tpu.dimension_semantics<parallel>, #tpu.dimension_semantics<parallel>], iteration_bounds = array<i64: 2, 1>, scalar_prefetch = 0 : i64, scratch_operands = 0 : i64, tpu.core_type = #tpu.core_type<tc>, window_params = [{transform_indices = @transform_0, window_bounds = array<i64: 1, 32, 32>}, {transform_indices = @transform_1, window_bounds = array<i64: 1, 1, 32>}, {transform_indices = @transform_2, window_bounds = array<i64: 1, 1, 32>}, {transform_indices = @transform_3, window_bounds = array<i64: 1, 32, 32>}]} {
    %c0 = arith.constant 0 : index
    %c0_0 = arith.constant 0 : index
    %c0_1 = arith.constant 0 : index
    %0 = vector.load %arg3[%c0, %c0_0, %c0_1] : memref<1x1x32xf32, #tpu.memory_space<vmem>>, vector<1x1x32xf32>
    %1 = vector.shape_cast %0 : vector<1x1x32xf32> to vector<1x32xf32>
    %cst = arith.constant 4.000000e-02 : f32
    %2 = vector.broadcast %cst : f32 to vector<1x32xf32>
    %3 = arith.mulf %1, %2 : vector<1x32xf32>
    %c0_2 = arith.constant 0 : index
    %c0_3 = arith.constant 0 : index
    %c0_4 = arith.constant 0 : index
    %4 = vector.load %arg4[%c0_2, %c0_3, %c0_4] : memref<1x1x32xf32, #tpu.memory_space<vmem>>, vector<1x1x32xf32>
    %5 = vector.shape_cast %4 : vector<1x1x32xf32> to vector<1x32xf32>
    %cst_5 = arith.constant 4.000000e-02 : f32
    %6 = vector.broadcast %cst_5 : f32 to vector<1x32xf32>
    %7 = arith.mulf %5, %6 : vector<1x32xf32>
    %8 = arith.mulf %3, %3 : vector<1x32xf32>
    %9 = arith.subf %7, %8 : vector<1x32xf32>
    %cst_6 = arith.constant 0.000000e+00 : f32
    %10 = vector.broadcast %cst_6 : f32 to vector<1x32xf32>
    %11 = arith.maximumf %9, %10 : vector<1x32xf32>
    %cst_7 = arith.constant 9.99999974E-6 : f32
    %12 = vector.broadcast %cst_7 : f32 to vector<1x32xf32>
    %13 = arith.addf %11, %12 : vector<1x32xf32>
    %14 = math.rsqrt %13 : vector<1x32xf32>
    %c0_8 = arith.constant 0 : index
    %c0_9 = arith.constant 0 : index
    %c0_10 = arith.constant 0 : index
    %15 = vector.load %arg2[%c0_8, %c0_9, %c0_10] : memref<1x32x32xf32, #tpu.memory_space<vmem>>, vector<1x32x32xf32>
    %16 = vector.shape_cast %15 : vector<1x32x32xf32> to vector<32x32xf32>
    %17 = vector.broadcast %3 : vector<1x32xf32> to vector<32x32xf32>
    %18 = arith.subf %16, %17 : vector<32x32xf32>
    %19 = vector.broadcast %14 : vector<1x32xf32> to vector<32x32xf32>
    %20 = arith.mulf %18, %19 : vector<32x32xf32>
    %cst_11 = arith.constant 0.000000e+00 : f32
    %21 = vector.broadcast %cst_11 : f32 to vector<32x32xf32>
    %22 = arith.cmpf oge, %20, %21 : vector<32x32xf32>
    %cst_12 = arith.constant 2.000000e-01 : f32
    %23 = vector.broadcast %cst_12 : f32 to vector<32x32xf32>
    %24 = arith.mulf %23, %20 : vector<32x32xf32>
    %25 = arith.select %22, %20, %24 : vector<32x32xi1>, vector<32x32xf32>
    %c0_13 = arith.constant 0 : index
    %c0_14 = arith.constant 0 : index
    %c0_15 = arith.constant 0 : index
    %26 = vector.load %arg5[%c0_13, %c0_14, %c0_15] : memref<1x32x32xf32, #tpu.memory_space<vmem>>, vector<1x32x32xf32>
    %27 = vector.shape_cast %26 : vector<1x32x32xf32> to vector<32x32xf32>
    %28 = vector.shape_cast %25 : vector<32x32xf32> to vector<1x32x32xf32>
    tpu.vector_store %arg5[%c0_13, %c0_14, %c0_15], %28 {strides = array<i32>} : memref<1x32x32xf32, #tpu.memory_space<vmem>>, vector<1x32x32xf32>,
    return
  }
  func.func @transform_0(%arg0: i32, %arg1: i32) -> (i32, i32, i32) {
    %c0_i32 = arith.constant 0 : i32
    %c0_i32_0 = arith.constant 0 : i32
    return %arg0, %arg1, %c0_i32 : i32, i32, i32
  }
  func.func @transform_1(%arg0: i32, %arg1: i32) -> (i32, i32, i32) {
    %c0_i32 = arith.constant 0 : i32
    %c0_i32_0 = arith.constant 0 : i32
    %c0_i32_1 = arith.constant 0 : i32
    return %arg0, %c0_i32, %c0_i32_0 : i32, i32, i32
  }
  func.func @transform_2(%arg0: i32, %arg1: i32) -> (i32, i32, i32) {
    %c0_i32 = arith.constant 0 : i32
    %c0_i32_0 = arith.constant 0 : i32
    %c0_i32_1 = arith.constant 0 : i32
    return %arg0, %c0_i32, %c0_i32_0 : i32, i32, i32
  }
  func.func @transform_3(%arg0: i32, %arg1: i32) -> (i32, i32, i32) {
    %c0_i32 = arith.constant 0 : i32
    %c0_i32_0 = arith.constant 0 : i32
    return %arg0, %arg1, %c0_i32 : i32, i32, i32
  }
}

module attributes {stable_mosaic.version = 11 : i64} {
  func.func @kernel(%arg0: i32, %arg1: i32, %arg2: i32, %arg3: memref<56x256xbf16, #tpu.memory_space<vmem>>, %arg4: memref<256x128xbf16, #tpu.memory_space<vmem>>, %arg5: memref<1x128xf32, #tpu.memory_space<vmem>>, %arg6: memref<56x128xf32, #tpu.memory_space<vmem>>, %arg7: memref<56x128xf32, #tpu.memory_space<vmem>>) attributes {dimension_semantics = [#tpu.dimension_semantics<parallel>, #tpu.dimension_semantics<parallel>, #tpu.dimension_semantics<arbitrary>], iteration_bounds = array<i64: 1, 1, 1>, scalar_prefetch = 0 : i64, scratch_operands = 1 : i64, tpu.core_type = #tpu.core_type<tc>, window_params = [{transform_indices = @transform_0, window_bounds = array<i64: 56, 256>}, {transform_indices = @transform_1, window_bounds = array<i64: 256, 128>}, {transform_indices = @transform_2, window_bounds = array<i64: 1, 128>}, {transform_indices = @transform_3, window_bounds = array<i64: 56, 128>}]} {
    %c0_i32 = arith.constant 0 : i32
    %0 = arith.cmpi eq, %arg2, %c0_i32 : i32
    %1 = arith.extui %0 : i1 to i32
    %c0_i32_0 = arith.constant 0 : i32
    %2 = arith.cmpi ne, %1, %c0_i32_0 : i32
    scf.if %2 {
      %cst_10 = arith.constant 0.000000e+00 : f32
      %12 = vector.broadcast %cst_10 : f32 to vector<56x128xf32>
      %c0_11 = arith.constant 0 : index
      %c0_12 = arith.constant 0 : index
      %13 = vector.load %arg7[%c0_11, %c0_12] : memref<56x128xf32, #tpu.memory_space<vmem>>, vector<56x128xf32>
      tpu.vector_store %arg7[%c0_11, %c0_12], %12 {strides = array<i32>} : memref<56x128xf32, #tpu.memory_space<vmem>>, vector<56x128xf32>,
    } else {
    }
    %c0 = arith.constant 0 : index
    %c0_1 = arith.constant 0 : index
    %3 = vector.load %arg7[%c0, %c0_1] : memref<56x128xf32, #tpu.memory_space<vmem>>, vector<56x128xf32>
    %c0_2 = arith.constant 0 : index
    %c0_3 = arith.constant 0 : index
    %4 = vector.load %arg3[%c0_2, %c0_3] : memref<56x256xbf16, #tpu.memory_space<vmem>>, vector<56x256xbf16>
    %c0_4 = arith.constant 0 : index
    %c0_5 = arith.constant 0 : index
    %5 = vector.load %arg4[%c0_4, %c0_5] : memref<256x128xbf16, #tpu.memory_space<vmem>>, vector<256x128xbf16>
    %cst = arith.constant dense<0.000000e+00> : vector<56x128xf32>
    %6 = tpu.matmul %4, %5, %cst {dimension_numbers = #tpu.dot_dimension_numbers<[1], [0], [0], [1], [0, 0, 1, 1], [], []>} : vector<56x256xbf16>, vector<256x128xbf16>, vector<56x128xf32> -> vector<56x128xf32>
    %7 = arith.addf %3, %6 : vector<56x128xf32>
    %c0_6 = arith.constant 0 : index
    %c0_7 = arith.constant 0 : index
    %8 = vector.load %arg7[%c0_6, %c0_7] : memref<56x128xf32, #tpu.memory_space<vmem>>, vector<56x128xf32>
    tpu.vector_store %arg7[%c0_6, %c0_7], %7 {strides = array<i32>} : memref<56x128xf32, #tpu.memory_space<vmem>>, vector<56x128xf32>,
    %c0_i32_8 = arith.constant 0 : i32
    %9 = arith.cmpi eq, %arg2, %c0_i32_8 : i32
    %10 = arith.extui %9 : i1 to i32
    %c0_i32_9 = arith.constant 0 : i32
    %11 = arith.cmpi ne, %10, %c0_i32_9 : i32
    scf.if %11 {
      %c0_10 = arith.constant 0 : index
      %c0_11 = arith.constant 0 : index
      %12 = vector.load %arg7[%c0_10, %c0_11] : memref<56x128xf32, #tpu.memory_space<vmem>>, vector<56x128xf32>
      %c0_12 = arith.constant 0 : index
      %c0_13 = arith.constant 0 : index
      %13 = vector.load %arg5[%c0_12, %c0_13] : memref<1x128xf32, #tpu.memory_space<vmem>>, vector<1x128xf32>
      %14 = vector.broadcast %13 : vector<1x128xf32> to vector<56x128xf32>
      %15 = arith.addf %12, %14 : vector<56x128xf32>
      %c0_14 = arith.constant 0 : index
      %c0_15 = arith.constant 0 : index
      %16 = vector.load %arg6[%c0_14, %c0_15] : memref<56x128xf32, #tpu.memory_space<vmem>>, vector<56x128xf32>
      tpu.vector_store %arg6[%c0_14, %c0_15], %15 {strides = array<i32>} : memref<56x128xf32, #tpu.memory_space<vmem>>, vector<56x128xf32>,
    } else {
    }
    return
  }
  func.func @transform_0(%arg0: i32, %arg1: i32, %arg2: i32) -> (i32, i32) {
    %c0_i32 = arith.constant 0 : i32
    return %arg0, %arg2 : i32, i32
  }
  func.func @transform_1(%arg0: i32, %arg1: i32, %arg2: i32) -> (i32, i32) {
    %c0_i32 = arith.constant 0 : i32
    return %arg2, %arg1 : i32, i32
  }
  func.func @transform_2(%arg0: i32, %arg1: i32, %arg2: i32) -> (i32, i32) {
    %c0_i32 = arith.constant 0 : i32
    %c0_i32_0 = arith.constant 0 : i32
    return %c0_i32, %arg1 : i32, i32
  }
  func.func @transform_3(%arg0: i32, %arg1: i32, %arg2: i32) -> (i32, i32) {
    %c0_i32 = arith.constant 0 : i32
    return %arg0, %arg1 : i32, i32
  }
}

module attributes {stable_mosaic.version = 11 : i64} {
  func.func @_in_stats_kernel(%arg0: i32, %arg1: i32, %arg2: memref<1x32x32xf32, #tpu.memory_space<vmem>>, %arg3: memref<1x1x32xf32, #tpu.memory_space<vmem>>, %arg4: memref<1x1x32xf32, #tpu.memory_space<vmem>>) attributes {dimension_semantics = [#tpu.dimension_semantics<parallel>, #tpu.dimension_semantics<arbitrary>], iteration_bounds = array<i64: 2, 1>, scalar_prefetch = 0 : i64, scratch_operands = 0 : i64, tpu.core_type = #tpu.core_type<tc>, window_params = [{transform_indices = @transform_0, window_bounds = array<i64: 1, 32, 32>}, {transform_indices = @transform_1, window_bounds = array<i64: 1, 1, 32>}, {transform_indices = @transform_2, window_bounds = array<i64: 1, 1, 32>}]} {
    %c0_i32 = arith.constant 0 : i32
    %0 = arith.cmpi eq, %arg1, %c0_i32 : i32
    %1 = arith.extui %0 : i1 to i32
    %c0_i32_0 = arith.constant 0 : i32
    %2 = arith.cmpi ne, %1, %c0_i32_0 : i32
    scf.if %2 {
      %cst_16 = arith.constant 0.000000e+00 : f32
      %18 = vector.broadcast %cst_16 : f32 to vector<1x1x32xf32>
      %c0_17 = arith.constant 0 : index
      %c0_18 = arith.constant 0 : index
      %c0_19 = arith.constant 0 : index
      %19 = vector.load %arg3[%c0_17, %c0_18, %c0_19] : memref<1x1x32xf32, #tpu.memory_space<vmem>>, vector<1x1x32xf32>
      tpu.vector_store %arg3[%c0_17, %c0_18, %c0_19], %18 {strides = array<i32>} : memref<1x1x32xf32, #tpu.memory_space<vmem>>, vector<1x1x32xf32>,
      %cst_20 = arith.constant 0.000000e+00 : f32
      %20 = vector.broadcast %cst_20 : f32 to vector<1x1x32xf32>
      %c0_21 = arith.constant 0 : index
      %c0_22 = arith.constant 0 : index
      %c0_23 = arith.constant 0 : index
      %21 = vector.load %arg4[%c0_21, %c0_22, %c0_23] : memref<1x1x32xf32, #tpu.memory_space<vmem>>, vector<1x1x32xf32>
      tpu.vector_store %arg4[%c0_21, %c0_22, %c0_23], %20 {strides = array<i32>} : memref<1x1x32xf32, #tpu.memory_space<vmem>>, vector<1x1x32xf32>,
    } else {
    }
    %c0 = arith.constant 0 : index
    %c0_1 = arith.constant 0 : index
    %c0_2 = arith.constant 0 : index
    %3 = vector.load %arg2[%c0, %c0_1, %c0_2] : memref<1x32x32xf32, #tpu.memory_space<vmem>>, vector<1x32x32xf32>
    %4 = vector.shape_cast %3 : vector<1x32x32xf32> to vector<32x32xf32>
    %c0_3 = arith.constant 0 : index
    %c0_4 = arith.constant 0 : index
    %c0_5 = arith.constant 0 : index
    %5 = vector.load %arg3[%c0_3, %c0_4, %c0_5] : memref<1x1x32xf32, #tpu.memory_space<vmem>>, vector<1x1x32xf32>
    %cst = arith.constant dense<0.000000e+00> : vector<32xf32>
    %6 = vector.multi_reduction <add>, %4, %cst [0] : vector<32x32xf32> to vector<32xf32>
    %7 = vector.shape_cast %6 : vector<32xf32> to vector<1x32xf32>
    %8 = vector.shape_cast %7 : vector<1x32xf32> to vector<1x1x32xf32>
    %9 = arith.addf %5, %8 : vector<1x1x32xf32>
    %c0_6 = arith.constant 0 : index
    %c0_7 = arith.constant 0 : index
    %c0_8 = arith.constant 0 : index
    %10 = vector.load %arg3[%c0_6, %c0_7, %c0_8] : memref<1x1x32xf32, #tpu.memory_space<vmem>>, vector<1x1x32xf32>
    tpu.vector_store %arg3[%c0_6, %c0_7, %c0_8], %9 {strides = array<i32>} : memref<1x1x32xf32, #tpu.memory_space<vmem>>, vector<1x1x32xf32>,
    %c0_9 = arith.constant 0 : index
    %c0_10 = arith.constant 0 : index
    %c0_11 = arith.constant 0 : index
    %11 = vector.load %arg4[%c0_9, %c0_10, %c0_11] : memref<1x1x32xf32, #tpu.memory_space<vmem>>, vector<1x1x32xf32>
    %12 = arith.mulf %4, %4 : vector<32x32xf32>
    %cst_12 = arith.constant dense<0.000000e+00> : vector<32xf32>
    %13 = vector.multi_reduction <add>, %12, %cst_12 [0] : vector<32x32xf32> to vector<32xf32>
    %14 = vector.shape_cast %13 : vector<32xf32> to vector<1x32xf32>
    %15 = vector.shape_cast %14 : vector<1x32xf32> to vector<1x1x32xf32>
    %16 = arith.addf %11, %15 : vector<1x1x32xf32>
    %c0_13 = arith.constant 0 : index
    %c0_14 = arith.constant 0 : index
    %c0_15 = arith.constant 0 : index
    %17 = vector.load %arg4[%c0_13, %c0_14, %c0_15] : memref<1x1x32xf32, #tpu.memory_space<vmem>>, vector<1x1x32xf32>
    tpu.vector_store %arg4[%c0_13, %c0_14, %c0_15], %16 {strides = array<i32>} : memref<1x1x32xf32, #tpu.memory_space<vmem>>, vector<1x1x32xf32>,
    return
  }
  func.func @transform_0(%arg0: i32, %arg1: i32) -> (i32, i32, i32) {
    %c0_i32 = arith.constant 0 : i32
    %c0_i32_0 = arith.constant 0 : i32
    return %arg0, %arg1, %c0_i32 : i32, i32, i32
  }
  func.func @transform_1(%arg0: i32, %arg1: i32) -> (i32, i32, i32) {
    %c0_i32 = arith.constant 0 : i32
    %c0_i32_0 = arith.constant 0 : i32
    %c0_i32_1 = arith.constant 0 : i32
    return %arg0, %c0_i32, %c0_i32_0 : i32, i32, i32
  }
  func.func @transform_2(%arg0: i32, %arg1: i32) -> (i32, i32, i32) {
    %c0_i32 = arith.constant 0 : i32
    %c0_i32_0 = arith.constant 0 : i32
    %c0_i32_1 = arith.constant 0 : i32
    return %arg0, %c0_i32, %c0_i32_0 : i32, i32, i32
  }
}

module attributes {stable_mosaic.version = 11 : i64} {
  func.func @kernel(%arg0: i32, %arg1: i32, %arg2: i32, %arg3: memref<24x512xbf16, #tpu.memory_space<vmem>>, %arg4: memref<512x128xbf16, #tpu.memory_space<vmem>>, %arg5: memref<1x128xf32, #tpu.memory_space<vmem>>, %arg6: memref<24x128xf32, #tpu.memory_space<vmem>>, %arg7: memref<24x128xf32, #tpu.memory_space<vmem>>) attributes {dimension_semantics = [#tpu.dimension_semantics<parallel>, #tpu.dimension_semantics<parallel>, #tpu.dimension_semantics<arbitrary>], iteration_bounds = array<i64: 1, 1, 1>, scalar_prefetch = 0 : i64, scratch_operands = 1 : i64, tpu.core_type = #tpu.core_type<tc>, window_params = [{transform_indices = @transform_0, window_bounds = array<i64: 24, 512>}, {transform_indices = @transform_1, window_bounds = array<i64: 512, 128>}, {transform_indices = @transform_2, window_bounds = array<i64: 1, 128>}, {transform_indices = @transform_3, window_bounds = array<i64: 24, 128>}]} {
    %c0_i32 = arith.constant 0 : i32
    %0 = arith.cmpi eq, %arg2, %c0_i32 : i32
    %1 = arith.extui %0 : i1 to i32
    %c0_i32_0 = arith.constant 0 : i32
    %2 = arith.cmpi ne, %1, %c0_i32_0 : i32
    scf.if %2 {
      %cst_10 = arith.constant 0.000000e+00 : f32
      %12 = vector.broadcast %cst_10 : f32 to vector<24x128xf32>
      %c0_11 = arith.constant 0 : index
      %c0_12 = arith.constant 0 : index
      %13 = vector.load %arg7[%c0_11, %c0_12] : memref<24x128xf32, #tpu.memory_space<vmem>>, vector<24x128xf32>
      tpu.vector_store %arg7[%c0_11, %c0_12], %12 {strides = array<i32>} : memref<24x128xf32, #tpu.memory_space<vmem>>, vector<24x128xf32>,
    } else {
    }
    %c0 = arith.constant 0 : index
    %c0_1 = arith.constant 0 : index
    %3 = vector.load %arg7[%c0, %c0_1] : memref<24x128xf32, #tpu.memory_space<vmem>>, vector<24x128xf32>
    %c0_2 = arith.constant 0 : index
    %c0_3 = arith.constant 0 : index
    %4 = vector.load %arg3[%c0_2, %c0_3] : memref<24x512xbf16, #tpu.memory_space<vmem>>, vector<24x512xbf16>
    %c0_4 = arith.constant 0 : index
    %c0_5 = arith.constant 0 : index
    %5 = vector.load %arg4[%c0_4, %c0_5] : memref<512x128xbf16, #tpu.memory_space<vmem>>, vector<512x128xbf16>
    %cst = arith.constant dense<0.000000e+00> : vector<24x128xf32>
    %6 = tpu.matmul %4, %5, %cst {dimension_numbers = #tpu.dot_dimension_numbers<[1], [0], [0], [1], [0, 0, 1, 1], [], []>} : vector<24x512xbf16>, vector<512x128xbf16>, vector<24x128xf32> -> vector<24x128xf32>
    %7 = arith.addf %3, %6 : vector<24x128xf32>
    %c0_6 = arith.constant 0 : index
    %c0_7 = arith.constant 0 : index
    %8 = vector.load %arg7[%c0_6, %c0_7] : memref<24x128xf32, #tpu.memory_space<vmem>>, vector<24x128xf32>
    tpu.vector_store %arg7[%c0_6, %c0_7], %7 {strides = array<i32>} : memref<24x128xf32, #tpu.memory_space<vmem>>, vector<24x128xf32>,
    %c0_i32_8 = arith.constant 0 : i32
    %9 = arith.cmpi eq, %arg2, %c0_i32_8 : i32
    %10 = arith.extui %9 : i1 to i32
    %c0_i32_9 = arith.constant 0 : i32
    %11 = arith.cmpi ne, %10, %c0_i32_9 : i32
    scf.if %11 {
      %c0_10 = arith.constant 0 : index
      %c0_11 = arith.constant 0 : index
      %12 = vector.load %arg7[%c0_10, %c0_11] : memref<24x128xf32, #tpu.memory_space<vmem>>, vector<24x128xf32>
      %c0_12 = arith.constant 0 : index
      %c0_13 = arith.constant 0 : index
      %13 = vector.load %arg5[%c0_12, %c0_13] : memref<1x128xf32, #tpu.memory_space<vmem>>, vector<1x128xf32>
      %14 = vector.broadcast %13 : vector<1x128xf32> to vector<24x128xf32>
      %15 = arith.addf %12, %14 : vector<24x128xf32>
      %c0_14 = arith.constant 0 : index
      %c0_15 = arith.constant 0 : index
      %16 = vector.load %arg6[%c0_14, %c0_15] : memref<24x128xf32, #tpu.memory_space<vmem>>, vector<24x128xf32>
      tpu.vector_store %arg6[%c0_14, %c0_15], %15 {strides = array<i32>} : memref<24x128xf32, #tpu.memory_space<vmem>>, vector<24x128xf32>,
    } else {
    }
    return
  }
  func.func @transform_0(%arg0: i32, %arg1: i32, %arg2: i32) -> (i32, i32) {
    %c0_i32 = arith.constant 0 : i32
    return %arg0, %arg2 : i32, i32
  }
  func.func @transform_1(%arg0: i32, %arg1: i32, %arg2: i32) -> (i32, i32) {
    %c0_i32 = arith.constant 0 : i32
    return %arg2, %arg1 : i32, i32
  }
  func.func @transform_2(%arg0: i32, %arg1: i32, %arg2: i32) -> (i32, i32) {
    %c0_i32 = arith.constant 0 : i32
    %c0_i32_0 = arith.constant 0 : i32
    return %c0_i32, %arg1 : i32, i32
  }
  func.func @transform_3(%arg0: i32, %arg1: i32, %arg2: i32) -> (i32, i32) {
    %c0_i32 = arith.constant 0 : i32
    return %arg0, %arg1 : i32, i32
  }
}

module attributes {stable_mosaic.version = 11 : i64} {
  func.func @_in_stats_kernel(%arg0: i32, %arg1: i32, %arg2: memref<1x16x64xf32, #tpu.memory_space<vmem>>, %arg3: memref<1x1x64xf32, #tpu.memory_space<vmem>>, %arg4: memref<1x1x64xf32, #tpu.memory_space<vmem>>) attributes {dimension_semantics = [#tpu.dimension_semantics<parallel>, #tpu.dimension_semantics<arbitrary>], iteration_bounds = array<i64: 2, 1>, scalar_prefetch = 0 : i64, scratch_operands = 0 : i64, tpu.core_type = #tpu.core_type<tc>, window_params = [{transform_indices = @transform_0, window_bounds = array<i64: 1, 16, 64>}, {transform_indices = @transform_1, window_bounds = array<i64: 1, 1, 64>}, {transform_indices = @transform_2, window_bounds = array<i64: 1, 1, 64>}]} {
    %c0_i32 = arith.constant 0 : i32
    %0 = arith.cmpi eq, %arg1, %c0_i32 : i32
    %1 = arith.extui %0 : i1 to i32
    %c0_i32_0 = arith.constant 0 : i32
    %2 = arith.cmpi ne, %1, %c0_i32_0 : i32
    scf.if %2 {
      %cst_16 = arith.constant 0.000000e+00 : f32
      %18 = vector.broadcast %cst_16 : f32 to vector<1x1x64xf32>
      %c0_17 = arith.constant 0 : index
      %c0_18 = arith.constant 0 : index
      %c0_19 = arith.constant 0 : index
      %19 = vector.load %arg3[%c0_17, %c0_18, %c0_19] : memref<1x1x64xf32, #tpu.memory_space<vmem>>, vector<1x1x64xf32>
      tpu.vector_store %arg3[%c0_17, %c0_18, %c0_19], %18 {strides = array<i32>} : memref<1x1x64xf32, #tpu.memory_space<vmem>>, vector<1x1x64xf32>,
      %cst_20 = arith.constant 0.000000e+00 : f32
      %20 = vector.broadcast %cst_20 : f32 to vector<1x1x64xf32>
      %c0_21 = arith.constant 0 : index
      %c0_22 = arith.constant 0 : index
      %c0_23 = arith.constant 0 : index
      %21 = vector.load %arg4[%c0_21, %c0_22, %c0_23] : memref<1x1x64xf32, #tpu.memory_space<vmem>>, vector<1x1x64xf32>
      tpu.vector_store %arg4[%c0_21, %c0_22, %c0_23], %20 {strides = array<i32>} : memref<1x1x64xf32, #tpu.memory_space<vmem>>, vector<1x1x64xf32>,
    } else {
    }
    %c0 = arith.constant 0 : index
    %c0_1 = arith.constant 0 : index
    %c0_2 = arith.constant 0 : index
    %3 = vector.load %arg2[%c0, %c0_1, %c0_2] : memref<1x16x64xf32, #tpu.memory_space<vmem>>, vector<1x16x64xf32>
    %4 = vector.shape_cast %3 : vector<1x16x64xf32> to vector<16x64xf32>
    %c0_3 = arith.constant 0 : index
    %c0_4 = arith.constant 0 : index
    %c0_5 = arith.constant 0 : index
    %5 = vector.load %arg3[%c0_3, %c0_4, %c0_5] : memref<1x1x64xf32, #tpu.memory_space<vmem>>, vector<1x1x64xf32>
    %cst = arith.constant dense<0.000000e+00> : vector<64xf32>
    %6 = vector.multi_reduction <add>, %4, %cst [0] : vector<16x64xf32> to vector<64xf32>
    %7 = vector.shape_cast %6 : vector<64xf32> to vector<1x64xf32>
    %8 = vector.shape_cast %7 : vector<1x64xf32> to vector<1x1x64xf32>
    %9 = arith.addf %5, %8 : vector<1x1x64xf32>
    %c0_6 = arith.constant 0 : index
    %c0_7 = arith.constant 0 : index
    %c0_8 = arith.constant 0 : index
    %10 = vector.load %arg3[%c0_6, %c0_7, %c0_8] : memref<1x1x64xf32, #tpu.memory_space<vmem>>, vector<1x1x64xf32>
    tpu.vector_store %arg3[%c0_6, %c0_7, %c0_8], %9 {strides = array<i32>} : memref<1x1x64xf32, #tpu.memory_space<vmem>>, vector<1x1x64xf32>,
    %c0_9 = arith.constant 0 : index
    %c0_10 = arith.constant 0 : index
    %c0_11 = arith.constant 0 : index
    %11 = vector.load %arg4[%c0_9, %c0_10, %c0_11] : memref<1x1x64xf32, #tpu.memory_space<vmem>>, vector<1x1x64xf32>
    %12 = arith.mulf %4, %4 : vector<16x64xf32>
    %cst_12 = arith.constant dense<0.000000e+00> : vector<64xf32>
    %13 = vector.multi_reduction <add>, %12, %cst_12 [0] : vector<16x64xf32> to vector<64xf32>
    %14 = vector.shape_cast %13 : vector<64xf32> to vector<1x64xf32>
    %15 = vector.shape_cast %14 : vector<1x64xf32> to vector<1x1x64xf32>
    %16 = arith.addf %11, %15 : vector<1x1x64xf32>
    %c0_13 = arith.constant 0 : index
    %c0_14 = arith.constant 0 : index
    %c0_15 = arith.constant 0 : index
    %17 = vector.load %arg4[%c0_13, %c0_14, %c0_15] : memref<1x1x64xf32, #tpu.memory_space<vmem>>, vector<1x1x64xf32>
    tpu.vector_store %arg4[%c0_13, %c0_14, %c0_15], %16 {strides = array<i32>} : memref<1x1x64xf32, #tpu.memory_space<vmem>>, vector<1x1x64xf32>,
    return
  }
  func.func @transform_0(%arg0: i32, %arg1: i32) -> (i32, i32, i32) {
    %c0_i32 = arith.constant 0 : i32
    %c0_i32_0 = arith.constant 0 : i32
    return %arg0, %arg1, %c0_i32 : i32, i32, i32
  }
  func.func @transform_1(%arg0: i32, %arg1: i32) -> (i32, i32, i32) {
    %c0_i32 = arith.constant 0 : i32
    %c0_i32_0 = arith.constant 0 : i32
    %c0_i32_1 = arith.constant 0 : i32
    return %arg0, %c0_i32, %c0_i32_0 : i32, i32, i32
  }
  func.func @transform_2(%arg0: i32, %arg1: i32) -> (i32, i32, i32) {
    %c0_i32 = arith.constant 0 : i32
    %c0_i32_0 = arith.constant 0 : i32
    %c0_i32_1 = arith.constant 0 : i32
    return %arg0, %c0_i32, %c0_i32_0 : i32, i32, i32
  }
}

module attributes {stable_mosaic.version = 11 : i64} {
  func.func @_in_apply_kernel(%arg0: i32, %arg1: i32, %arg2: memref<1x16x64xf32, #tpu.memory_space<vmem>>, %arg3: memref<1x1x64xf32, #tpu.memory_space<vmem>>, %arg4: memref<1x1x64xf32, #tpu.memory_space<vmem>>, %arg5: memref<1x16x64xf32, #tpu.memory_space<vmem>>) attributes {dimension_semantics = [#tpu.dimension_semantics<parallel>, #tpu.dimension_semantics<parallel>], iteration_bounds = array<i64: 2, 1>, scalar_prefetch = 0 : i64, scratch_operands = 0 : i64, tpu.core_type = #tpu.core_type<tc>, window_params = [{transform_indices = @transform_0, window_bounds = array<i64: 1, 16, 64>}, {transform_indices = @transform_1, window_bounds = array<i64: 1, 1, 64>}, {transform_indices = @transform_2, window_bounds = array<i64: 1, 1, 64>}, {transform_indices = @transform_3, window_bounds = array<i64: 1, 16, 64>}]} {
    %c0 = arith.constant 0 : index
    %c0_0 = arith.constant 0 : index
    %c0_1 = arith.constant 0 : index
    %0 = vector.load %arg3[%c0, %c0_0, %c0_1] : memref<1x1x64xf32, #tpu.memory_space<vmem>>, vector<1x1x64xf32>
    %1 = vector.shape_cast %0 : vector<1x1x64xf32> to vector<1x64xf32>
    %cst = arith.constant 0.111111112 : f32
    %2 = vector.broadcast %cst : f32 to vector<1x64xf32>
    %3 = arith.mulf %1, %2 : vector<1x64xf32>
    %c0_2 = arith.constant 0 : index
    %c0_3 = arith.constant 0 : index
    %c0_4 = arith.constant 0 : index
    %4 = vector.load %arg4[%c0_2, %c0_3, %c0_4] : memref<1x1x64xf32, #tpu.memory_space<vmem>>, vector<1x1x64xf32>
    %5 = vector.shape_cast %4 : vector<1x1x64xf32> to vector<1x64xf32>
    %cst_5 = arith.constant 0.111111112 : f32
    %6 = vector.broadcast %cst_5 : f32 to vector<1x64xf32>
    %7 = arith.mulf %5, %6 : vector<1x64xf32>
    %8 = arith.mulf %3, %3 : vector<1x64xf32>
    %9 = arith.subf %7, %8 : vector<1x64xf32>
    %cst_6 = arith.constant 0.000000e+00 : f32
    %10 = vector.broadcast %cst_6 : f32 to vector<1x64xf32>
    %11 = arith.maximumf %9, %10 : vector<1x64xf32>
    %cst_7 = arith.constant 9.99999974E-6 : f32
    %12 = vector.broadcast %cst_7 : f32 to vector<1x64xf32>
    %13 = arith.addf %11, %12 : vector<1x64xf32>
    %14 = math.rsqrt %13 : vector<1x64xf32>
    %c0_8 = arith.constant 0 : index
    %c0_9 = arith.constant 0 : index
    %c0_10 = arith.constant 0 : index
    %15 = vector.load %arg2[%c0_8, %c0_9, %c0_10] : memref<1x16x64xf32, #tpu.memory_space<vmem>>, vector<1x16x64xf32>
    %16 = vector.shape_cast %15 : vector<1x16x64xf32> to vector<16x64xf32>
    %17 = vector.broadcast %3 : vector<1x64xf32> to vector<16x64xf32>
    %18 = arith.subf %16, %17 : vector<16x64xf32>
    %19 = vector.broadcast %14 : vector<1x64xf32> to vector<16x64xf32>
    %20 = arith.mulf %18, %19 : vector<16x64xf32>
    %cst_11 = arith.constant 0.000000e+00 : f32
    %21 = vector.broadcast %cst_11 : f32 to vector<16x64xf32>
    %22 = arith.cmpf oge, %20, %21 : vector<16x64xf32>
    %cst_12 = arith.constant 2.000000e-01 : f32
    %23 = vector.broadcast %cst_12 : f32 to vector<16x64xf32>
    %24 = arith.mulf %23, %20 : vector<16x64xf32>
    %25 = arith.select %22, %20, %24 : vector<16x64xi1>, vector<16x64xf32>
    %c0_13 = arith.constant 0 : index
    %c0_14 = arith.constant 0 : index
    %c0_15 = arith.constant 0 : index
    %26 = vector.load %arg5[%c0_13, %c0_14, %c0_15] : memref<1x16x64xf32, #tpu.memory_space<vmem>>, vector<1x16x64xf32>
    %27 = vector.shape_cast %26 : vector<1x16x64xf32> to vector<16x64xf32>
    %28 = vector.shape_cast %25 : vector<16x64xf32> to vector<1x16x64xf32>
    tpu.vector_store %arg5[%c0_13, %c0_14, %c0_15], %28 {strides = array<i32>} : memref<1x16x64xf32, #tpu.memory_space<vmem>>, vector<1x16x64xf32>,
    return
  }
  func.func @transform_0(%arg0: i32, %arg1: i32) -> (i32, i32, i32) {
    %c0_i32 = arith.constant 0 : i32
    %c0_i32_0 = arith.constant 0 : i32
    return %arg0, %arg1, %c0_i32 : i32, i32, i32
  }
  func.func @transform_1(%arg0: i32, %arg1: i32) -> (i32, i32, i32) {
    %c0_i32 = arith.constant 0 : i32
    %c0_i32_0 = arith.constant 0 : i32
    %c0_i32_1 = arith.constant 0 : i32
    return %arg0, %c0_i32, %c0_i32_0 : i32, i32, i32
  }
  func.func @transform_2(%arg0: i32, %arg1: i32) -> (i32, i32, i32) {
    %c0_i32 = arith.constant 0 : i32
    %c0_i32_0 = arith.constant 0 : i32
    %c0_i32_1 = arith.constant 0 : i32
    return %arg0, %c0_i32, %c0_i32_0 : i32, i32, i32
  }
  func.func @transform_3(%arg0: i32, %arg1: i32) -> (i32, i32, i32) {
    %c0_i32 = arith.constant 0 : i32
    %c0_i32_0 = arith.constant 0 : i32
    return %arg0, %arg1, %c0_i32 : i32, i32, i32
  }
}

module attributes {stable_mosaic.version = 11 : i64} {
  func.func @kernel(%arg0: i32, %arg1: i32, %arg2: i32, %arg3: memref<32x512xbf16, #tpu.memory_space<vmem>>, %arg4: memref<512x128xbf16, #tpu.memory_space<vmem>>, %arg5: memref<1x128xf32, #tpu.memory_space<vmem>>, %arg6: memref<32x128xf32, #tpu.memory_space<vmem>>, %arg7: memref<32x128xf32, #tpu.memory_space<vmem>>) attributes {dimension_semantics = [#tpu.dimension_semantics<parallel>, #tpu.dimension_semantics<parallel>, #tpu.dimension_semantics<arbitrary>], iteration_bounds = array<i64: 1, 1, 2>, scalar_prefetch = 0 : i64, scratch_operands = 1 : i64, tpu.core_type = #tpu.core_type<tc>, window_params = [{transform_indices = @transform_0, window_bounds = array<i64: 32, 512>}, {transform_indices = @transform_1, window_bounds = array<i64: 512, 128>}, {transform_indices = @transform_2, window_bounds = array<i64: 1, 128>}, {transform_indices = @transform_3, window_bounds = array<i64: 32, 128>}]} {
    %c0_i32 = arith.constant 0 : i32
    %0 = arith.cmpi eq, %arg2, %c0_i32 : i32
    %1 = arith.extui %0 : i1 to i32
    %c0_i32_0 = arith.constant 0 : i32
    %2 = arith.cmpi ne, %1, %c0_i32_0 : i32
    scf.if %2 {
      %cst_9 = arith.constant 0.000000e+00 : f32
      %12 = vector.broadcast %cst_9 : f32 to vector<32x128xf32>
      %c0_10 = arith.constant 0 : index
      %c0_11 = arith.constant 0 : index
      %13 = vector.load %arg7[%c0_10, %c0_11] : memref<32x128xf32, #tpu.memory_space<vmem>>, vector<32x128xf32>
      tpu.vector_store %arg7[%c0_10, %c0_11], %12 {strides = array<i32>} : memref<32x128xf32, #tpu.memory_space<vmem>>, vector<32x128xf32>,
    } else {
    }
    %c0 = arith.constant 0 : index
    %c0_1 = arith.constant 0 : index
    %3 = vector.load %arg7[%c0, %c0_1] : memref<32x128xf32, #tpu.memory_space<vmem>>, vector<32x128xf32>
    %c0_2 = arith.constant 0 : index
    %c0_3 = arith.constant 0 : index
    %4 = vector.load %arg3[%c0_2, %c0_3] : memref<32x512xbf16, #tpu.memory_space<vmem>>, vector<32x512xbf16>
    %c0_4 = arith.constant 0 : index
    %c0_5 = arith.constant 0 : index
    %5 = vector.load %arg4[%c0_4, %c0_5] : memref<512x128xbf16, #tpu.memory_space<vmem>>, vector<512x128xbf16>
    %cst = arith.constant dense<0.000000e+00> : vector<32x128xf32>
    %6 = tpu.matmul %4, %5, %cst {dimension_numbers = #tpu.dot_dimension_numbers<[1], [0], [0], [1], [0, 0, 1, 1], [], []>} : vector<32x512xbf16>, vector<512x128xbf16>, vector<32x128xf32> -> vector<32x128xf32>
    %7 = arith.addf %3, %6 : vector<32x128xf32>
    %c0_6 = arith.constant 0 : index
    %c0_7 = arith.constant 0 : index
    %8 = vector.load %arg7[%c0_6, %c0_7] : memref<32x128xf32, #tpu.memory_space<vmem>>, vector<32x128xf32>
    tpu.vector_store %arg7[%c0_6, %c0_7], %7 {strides = array<i32>} : memref<32x128xf32, #tpu.memory_space<vmem>>, vector<32x128xf32>,
    %c1_i32 = arith.constant 1 : i32
    %9 = arith.cmpi eq, %arg2, %c1_i32 : i32
    %10 = arith.extui %9 : i1 to i32
    %c0_i32_8 = arith.constant 0 : i32
    %11 = arith.cmpi ne, %10, %c0_i32_8 : i32
    scf.if %11 {
      %c0_9 = arith.constant 0 : index
      %c0_10 = arith.constant 0 : index
      %12 = vector.load %arg7[%c0_9, %c0_10] : memref<32x128xf32, #tpu.memory_space<vmem>>, vector<32x128xf32>
      %c0_11 = arith.constant 0 : index
      %c0_12 = arith.constant 0 : index
      %13 = vector.load %arg5[%c0_11, %c0_12] : memref<1x128xf32, #tpu.memory_space<vmem>>, vector<1x128xf32>
      %14 = vector.broadcast %13 : vector<1x128xf32> to vector<32x128xf32>
      %15 = arith.addf %12, %14 : vector<32x128xf32>
      %c0_13 = arith.constant 0 : index
      %c0_14 = arith.constant 0 : index
      %16 = vector.load %arg6[%c0_13, %c0_14] : memref<32x128xf32, #tpu.memory_space<vmem>>, vector<32x128xf32>
      tpu.vector_store %arg6[%c0_13, %c0_14], %15 {strides = array<i32>} : memref<32x128xf32, #tpu.memory_space<vmem>>, vector<32x128xf32>,
    } else {
    }
    return
  }
  func.func @transform_0(%arg0: i32, %arg1: i32, %arg2: i32) -> (i32, i32) {
    %c0_i32 = arith.constant 0 : i32
    return %arg0, %arg2 : i32, i32
  }
  func.func @transform_1(%arg0: i32, %arg1: i32, %arg2: i32) -> (i32, i32) {
    %c0_i32 = arith.constant 0 : i32
    return %arg2, %arg1 : i32, i32
  }
  func.func @transform_2(%arg0: i32, %arg1: i32, %arg2: i32) -> (i32, i32) {
    %c0_i32 = arith.constant 0 : i32
    %c0_i32_0 = arith.constant 0 : i32
    return %c0_i32, %arg1 : i32, i32
  }
  func.func @transform_3(%arg0: i32, %arg1: i32, %arg2: i32) -> (i32, i32) {
    %c0_i32 = arith.constant 0 : i32
    return %arg0, %arg1 : i32, i32
  }
}

module attributes {stable_mosaic.version = 11 : i64} {
  func.func @_in_stats_kernel(%arg0: i32, %arg1: i32, %arg2: memref<1x16x128xf32, #tpu.memory_space<vmem>>, %arg3: memref<1x1x128xf32, #tpu.memory_space<vmem>>, %arg4: memref<1x1x128xf32, #tpu.memory_space<vmem>>) attributes {dimension_semantics = [#tpu.dimension_semantics<parallel>, #tpu.dimension_semantics<arbitrary>], iteration_bounds = array<i64: 2, 1>, scalar_prefetch = 0 : i64, scratch_operands = 0 : i64, tpu.core_type = #tpu.core_type<tc>, window_params = [{transform_indices = @transform_0, window_bounds = array<i64: 1, 16, 128>}, {transform_indices = @transform_1, window_bounds = array<i64: 1, 1, 128>}, {transform_indices = @transform_2, window_bounds = array<i64: 1, 1, 128>}]} {
    %c0_i32 = arith.constant 0 : i32
    %0 = arith.cmpi eq, %arg1, %c0_i32 : i32
    %1 = arith.extui %0 : i1 to i32
    %c0_i32_0 = arith.constant 0 : i32
    %2 = arith.cmpi ne, %1, %c0_i32_0 : i32
    scf.if %2 {
      %cst_16 = arith.constant 0.000000e+00 : f32
      %18 = vector.broadcast %cst_16 : f32 to vector<1x1x128xf32>
      %c0_17 = arith.constant 0 : index
      %c0_18 = arith.constant 0 : index
      %c0_19 = arith.constant 0 : index
      %19 = vector.load %arg3[%c0_17, %c0_18, %c0_19] : memref<1x1x128xf32, #tpu.memory_space<vmem>>, vector<1x1x128xf32>
      tpu.vector_store %arg3[%c0_17, %c0_18, %c0_19], %18 {strides = array<i32>} : memref<1x1x128xf32, #tpu.memory_space<vmem>>, vector<1x1x128xf32>,
      %cst_20 = arith.constant 0.000000e+00 : f32
      %20 = vector.broadcast %cst_20 : f32 to vector<1x1x128xf32>
      %c0_21 = arith.constant 0 : index
      %c0_22 = arith.constant 0 : index
      %c0_23 = arith.constant 0 : index
      %21 = vector.load %arg4[%c0_21, %c0_22, %c0_23] : memref<1x1x128xf32, #tpu.memory_space<vmem>>, vector<1x1x128xf32>
      tpu.vector_store %arg4[%c0_21, %c0_22, %c0_23], %20 {strides = array<i32>} : memref<1x1x128xf32, #tpu.memory_space<vmem>>, vector<1x1x128xf32>,
    } else {
    }
    %c0 = arith.constant 0 : index
    %c0_1 = arith.constant 0 : index
    %c0_2 = arith.constant 0 : index
    %3 = vector.load %arg2[%c0, %c0_1, %c0_2] : memref<1x16x128xf32, #tpu.memory_space<vmem>>, vector<1x16x128xf32>
    %4 = vector.shape_cast %3 : vector<1x16x128xf32> to vector<16x128xf32>
    %c0_3 = arith.constant 0 : index
    %c0_4 = arith.constant 0 : index
    %c0_5 = arith.constant 0 : index
    %5 = vector.load %arg3[%c0_3, %c0_4, %c0_5] : memref<1x1x128xf32, #tpu.memory_space<vmem>>, vector<1x1x128xf32>
    %cst = arith.constant dense<0.000000e+00> : vector<128xf32>
    %6 = vector.multi_reduction <add>, %4, %cst [0] : vector<16x128xf32> to vector<128xf32>
    %7 = vector.shape_cast %6 : vector<128xf32> to vector<1x128xf32>
    %8 = vector.shape_cast %7 : vector<1x128xf32> to vector<1x1x128xf32>
    %9 = arith.addf %5, %8 : vector<1x1x128xf32>
    %c0_6 = arith.constant 0 : index
    %c0_7 = arith.constant 0 : index
    %c0_8 = arith.constant 0 : index
    %10 = vector.load %arg3[%c0_6, %c0_7, %c0_8] : memref<1x1x128xf32, #tpu.memory_space<vmem>>, vector<1x1x128xf32>
    tpu.vector_store %arg3[%c0_6, %c0_7, %c0_8], %9 {strides = array<i32>} : memref<1x1x128xf32, #tpu.memory_space<vmem>>, vector<1x1x128xf32>,
    %c0_9 = arith.constant 0 : index
    %c0_10 = arith.constant 0 : index
    %c0_11 = arith.constant 0 : index
    %11 = vector.load %arg4[%c0_9, %c0_10, %c0_11] : memref<1x1x128xf32, #tpu.memory_space<vmem>>, vector<1x1x128xf32>
    %12 = arith.mulf %4, %4 : vector<16x128xf32>
    %cst_12 = arith.constant dense<0.000000e+00> : vector<128xf32>
    %13 = vector.multi_reduction <add>, %12, %cst_12 [0] : vector<16x128xf32> to vector<128xf32>
    %14 = vector.shape_cast %13 : vector<128xf32> to vector<1x128xf32>
    %15 = vector.shape_cast %14 : vector<1x128xf32> to vector<1x1x128xf32>
    %16 = arith.addf %11, %15 : vector<1x1x128xf32>
    %c0_13 = arith.constant 0 : index
    %c0_14 = arith.constant 0 : index
    %c0_15 = arith.constant 0 : index
    %17 = vector.load %arg4[%c0_13, %c0_14, %c0_15] : memref<1x1x128xf32, #tpu.memory_space<vmem>>, vector<1x1x128xf32>
    tpu.vector_store %arg4[%c0_13, %c0_14, %c0_15], %16 {strides = array<i32>} : memref<1x1x128xf32, #tpu.memory_space<vmem>>, vector<1x1x128xf32>,
    return
  }
  func.func @transform_0(%arg0: i32, %arg1: i32) -> (i32, i32, i32) {
    %c0_i32 = arith.constant 0 : i32
    %c0_i32_0 = arith.constant 0 : i32
    return %arg0, %arg1, %c0_i32 : i32, i32, i32
  }
  func.func @transform_1(%arg0: i32, %arg1: i32) -> (i32, i32, i32) {
    %c0_i32 = arith.constant 0 : i32
    %c0_i32_0 = arith.constant 0 : i32
    %c0_i32_1 = arith.constant 0 : i32
    return %arg0, %c0_i32, %c0_i32_0 : i32, i32, i32
  }
  func.func @transform_2(%arg0: i32, %arg1: i32) -> (i32, i32, i32) {
    %c0_i32 = arith.constant 0 : i32
    %c0_i32_0 = arith.constant 0 : i32
    %c0_i32_1 = arith.constant 0 : i32
    return %arg0, %c0_i32, %c0_i32_0 : i32, i32, i32
  }
}

module attributes {stable_mosaic.version = 11 : i64} {
  func.func @_in_apply_kernel(%arg0: i32, %arg1: i32, %arg2: memref<1x16x128xf32, #tpu.memory_space<vmem>>, %arg3: memref<1x1x128xf32, #tpu.memory_space<vmem>>, %arg4: memref<1x1x128xf32, #tpu.memory_space<vmem>>, %arg5: memref<1x16x128xf32, #tpu.memory_space<vmem>>) attributes {dimension_semantics = [#tpu.dimension_semantics<parallel>, #tpu.dimension_semantics<parallel>], iteration_bounds = array<i64: 2, 1>, scalar_prefetch = 0 : i64, scratch_operands = 0 : i64, tpu.core_type = #tpu.core_type<tc>, window_params = [{transform_indices = @transform_0, window_bounds = array<i64: 1, 16, 128>}, {transform_indices = @transform_1, window_bounds = array<i64: 1, 1, 128>}, {transform_indices = @transform_2, window_bounds = array<i64: 1, 1, 128>}, {transform_indices = @transform_3, window_bounds = array<i64: 1, 16, 128>}]} {
    %c0 = arith.constant 0 : index
    %c0_0 = arith.constant 0 : index
    %c0_1 = arith.constant 0 : index
    %0 = vector.load %arg3[%c0, %c0_0, %c0_1] : memref<1x1x128xf32, #tpu.memory_space<vmem>>, vector<1x1x128xf32>
    %1 = vector.shape_cast %0 : vector<1x1x128xf32> to vector<1x128xf32>
    %cst = arith.constant 6.250000e-02 : f32
    %2 = vector.broadcast %cst : f32 to vector<1x128xf32>
    %3 = arith.mulf %1, %2 : vector<1x128xf32>
    %c0_2 = arith.constant 0 : index
    %c0_3 = arith.constant 0 : index
    %c0_4 = arith.constant 0 : index
    %4 = vector.load %arg4[%c0_2, %c0_3, %c0_4] : memref<1x1x128xf32, #tpu.memory_space<vmem>>, vector<1x1x128xf32>
    %5 = vector.shape_cast %4 : vector<1x1x128xf32> to vector<1x128xf32>
    %cst_5 = arith.constant 6.250000e-02 : f32
    %6 = vector.broadcast %cst_5 : f32 to vector<1x128xf32>
    %7 = arith.mulf %5, %6 : vector<1x128xf32>
    %8 = arith.mulf %3, %3 : vector<1x128xf32>
    %9 = arith.subf %7, %8 : vector<1x128xf32>
    %cst_6 = arith.constant 0.000000e+00 : f32
    %10 = vector.broadcast %cst_6 : f32 to vector<1x128xf32>
    %11 = arith.maximumf %9, %10 : vector<1x128xf32>
    %cst_7 = arith.constant 9.99999974E-6 : f32
    %12 = vector.broadcast %cst_7 : f32 to vector<1x128xf32>
    %13 = arith.addf %11, %12 : vector<1x128xf32>
    %14 = math.rsqrt %13 : vector<1x128xf32>
    %c0_8 = arith.constant 0 : index
    %c0_9 = arith.constant 0 : index
    %c0_10 = arith.constant 0 : index
    %15 = vector.load %arg2[%c0_8, %c0_9, %c0_10] : memref<1x16x128xf32, #tpu.memory_space<vmem>>, vector<1x16x128xf32>
    %16 = vector.shape_cast %15 : vector<1x16x128xf32> to vector<16x128xf32>
    %17 = vector.broadcast %3 : vector<1x128xf32> to vector<16x128xf32>
    %18 = arith.subf %16, %17 : vector<16x128xf32>
    %19 = vector.broadcast %14 : vector<1x128xf32> to vector<16x128xf32>
    %20 = arith.mulf %18, %19 : vector<16x128xf32>
    %cst_11 = arith.constant 0.000000e+00 : f32
    %21 = vector.broadcast %cst_11 : f32 to vector<16x128xf32>
    %22 = arith.cmpf oge, %20, %21 : vector<16x128xf32>
    %cst_12 = arith.constant 2.000000e-01 : f32
    %23 = vector.broadcast %cst_12 : f32 to vector<16x128xf32>
    %24 = arith.mulf %23, %20 : vector<16x128xf32>
    %25 = arith.select %22, %20, %24 : vector<16x128xi1>, vector<16x128xf32>
    %c0_13 = arith.constant 0 : index
    %c0_14 = arith.constant 0 : index
    %c0_15 = arith.constant 0 : index
    %26 = vector.load %arg5[%c0_13, %c0_14, %c0_15] : memref<1x16x128xf32, #tpu.memory_space<vmem>>, vector<1x16x128xf32>
    %27 = vector.shape_cast %26 : vector<1x16x128xf32> to vector<16x128xf32>
    %28 = vector.shape_cast %25 : vector<16x128xf32> to vector<1x16x128xf32>
    tpu.vector_store %arg5[%c0_13, %c0_14, %c0_15], %28 {strides = array<i32>} : memref<1x16x128xf32, #tpu.memory_space<vmem>>, vector<1x16x128xf32>,
    return
  }
  func.func @transform_0(%arg0: i32, %arg1: i32) -> (i32, i32, i32) {
    %c0_i32 = arith.constant 0 : i32
    %c0_i32_0 = arith.constant 0 : i32
    return %arg0, %arg1, %c0_i32 : i32, i32, i32
  }
  func.func @transform_1(%arg0: i32, %arg1: i32) -> (i32, i32, i32) {
    %c0_i32 = arith.constant 0 : i32
    %c0_i32_0 = arith.constant 0 : i32
    %c0_i32_1 = arith.constant 0 : i32
    return %arg0, %c0_i32, %c0_i32_0 : i32, i32, i32
  }
  func.func @transform_2(%arg0: i32, %arg1: i32) -> (i32, i32, i32) {
    %c0_i32 = arith.constant 0 : i32
    %c0_i32_0 = arith.constant 0 : i32
    %c0_i32_1 = arith.constant 0 : i32
    return %arg0, %c0_i32, %c0_i32_0 : i32, i32, i32
  }
  func.func @transform_3(%arg0: i32, %arg1: i32) -> (i32, i32, i32) {
    %c0_i32 = arith.constant 0 : i32
    %c0_i32_0 = arith.constant 0 : i32
    return %arg0, %arg1, %c0_i32 : i32, i32, i32
  }
}

module attributes {stable_mosaic.version = 11 : i64} {
  func.func @kernel(%arg0: i32, %arg1: i32, %arg2: i32, %arg3: memref<56x512xbf16, #tpu.memory_space<vmem>>, %arg4: memref<512x128xbf16, #tpu.memory_space<vmem>>, %arg5: memref<1x128xf32, #tpu.memory_space<vmem>>, %arg6: memref<56x128xf32, #tpu.memory_space<vmem>>, %arg7: memref<56x128xf32, #tpu.memory_space<vmem>>) attributes {dimension_semantics = [#tpu.dimension_semantics<parallel>, #tpu.dimension_semantics<parallel>, #tpu.dimension_semantics<arbitrary>], iteration_bounds = array<i64: 1, 1, 4>, scalar_prefetch = 0 : i64, scratch_operands = 1 : i64, tpu.core_type = #tpu.core_type<tc>, window_params = [{transform_indices = @transform_0, window_bounds = array<i64: 56, 512>}, {transform_indices = @transform_1, window_bounds = array<i64: 512, 128>}, {transform_indices = @transform_2, window_bounds = array<i64: 1, 128>}, {transform_indices = @transform_3, window_bounds = array<i64: 56, 128>}]} {
    %c0_i32 = arith.constant 0 : i32
    %0 = arith.cmpi eq, %arg2, %c0_i32 : i32
    %1 = arith.extui %0 : i1 to i32
    %c0_i32_0 = arith.constant 0 : i32
    %2 = arith.cmpi ne, %1, %c0_i32_0 : i32
    scf.if %2 {
      %cst_9 = arith.constant 0.000000e+00 : f32
      %12 = vector.broadcast %cst_9 : f32 to vector<56x128xf32>
      %c0_10 = arith.constant 0 : index
      %c0_11 = arith.constant 0 : index
      %13 = vector.load %arg7[%c0_10, %c0_11] : memref<56x128xf32, #tpu.memory_space<vmem>>, vector<56x128xf32>
      tpu.vector_store %arg7[%c0_10, %c0_11], %12 {strides = array<i32>} : memref<56x128xf32, #tpu.memory_space<vmem>>, vector<56x128xf32>,
    } else {
    }
    %c0 = arith.constant 0 : index
    %c0_1 = arith.constant 0 : index
    %3 = vector.load %arg7[%c0, %c0_1] : memref<56x128xf32, #tpu.memory_space<vmem>>, vector<56x128xf32>
    %c0_2 = arith.constant 0 : index
    %c0_3 = arith.constant 0 : index
    %4 = vector.load %arg3[%c0_2, %c0_3] : memref<56x512xbf16, #tpu.memory_space<vmem>>, vector<56x512xbf16>
    %c0_4 = arith.constant 0 : index
    %c0_5 = arith.constant 0 : index
    %5 = vector.load %arg4[%c0_4, %c0_5] : memref<512x128xbf16, #tpu.memory_space<vmem>>, vector<512x128xbf16>
    %cst = arith.constant dense<0.000000e+00> : vector<56x128xf32>
    %6 = tpu.matmul %4, %5, %cst {dimension_numbers = #tpu.dot_dimension_numbers<[1], [0], [0], [1], [0, 0, 1, 1], [], []>} : vector<56x512xbf16>, vector<512x128xbf16>, vector<56x128xf32> -> vector<56x128xf32>
    %7 = arith.addf %3, %6 : vector<56x128xf32>
    %c0_6 = arith.constant 0 : index
    %c0_7 = arith.constant 0 : index
    %8 = vector.load %arg7[%c0_6, %c0_7] : memref<56x128xf32, #tpu.memory_space<vmem>>, vector<56x128xf32>
    tpu.vector_store %arg7[%c0_6, %c0_7], %7 {strides = array<i32>} : memref<56x128xf32, #tpu.memory_space<vmem>>, vector<56x128xf32>,
    %c3_i32 = arith.constant 3 : i32
    %9 = arith.cmpi eq, %arg2, %c3_i32 : i32
    %10 = arith.extui %9 : i1 to i32
    %c0_i32_8 = arith.constant 0 : i32
    %11 = arith.cmpi ne, %10, %c0_i32_8 : i32
    scf.if %11 {
      %c0_9 = arith.constant 0 : index
      %c0_10 = arith.constant 0 : index
      %12 = vector.load %arg7[%c0_9, %c0_10] : memref<56x128xf32, #tpu.memory_space<vmem>>, vector<56x128xf32>
      %c0_11 = arith.constant 0 : index
      %c0_12 = arith.constant 0 : index
      %13 = vector.load %arg5[%c0_11, %c0_12] : memref<1x128xf32, #tpu.memory_space<vmem>>, vector<1x128xf32>
      %14 = vector.broadcast %13 : vector<1x128xf32> to vector<56x128xf32>
      %15 = arith.addf %12, %14 : vector<56x128xf32>
      %c0_13 = arith.constant 0 : index
      %c0_14 = arith.constant 0 : index
      %16 = vector.load %arg6[%c0_13, %c0_14] : memref<56x128xf32, #tpu.memory_space<vmem>>, vector<56x128xf32>
      tpu.vector_store %arg6[%c0_13, %c0_14], %15 {strides = array<i32>} : memref<56x128xf32, #tpu.memory_space<vmem>>, vector<56x128xf32>,
    } else {
    }
    return
  }
  func.func @transform_0(%arg0: i32, %arg1: i32, %arg2: i32) -> (i32, i32) {
    %c0_i32 = arith.constant 0 : i32
    return %arg0, %arg2 : i32, i32
  }
  func.func @transform_1(%arg0: i32, %arg1: i32, %arg2: i32) -> (i32, i32) {
    %c0_i32 = arith.constant 0 : i32
    return %arg2, %arg1 : i32, i32
  }
  func.func @transform_2(%arg0: i32, %arg1: i32, %arg2: i32) -> (i32, i32) {
    %c0_i32 = arith.constant 0 : i32
    %c0_i32_0 = arith.constant 0 : i32
    return %c0_i32, %arg1 : i32, i32
  }
  func.func @transform_3(%arg0: i32, %arg1: i32, %arg2: i32) -> (i32, i32) {
    %c0_i32 = arith.constant 0 : i32
    return %arg0, %arg1 : i32, i32
  }
}

module attributes {stable_mosaic.version = 11 : i64} {
  func.func @_avgpool_kernel(%arg0: i32, %arg1: memref<1x4x9x9x3xf32, #tpu.memory_space<vmem>>, %arg2: memref<8x8x3xf32, #tpu.memory_space<vmem>>, %arg3: memref<1x8x8x3xf32, #tpu.memory_space<vmem>>) attributes {dimension_semantics = [#tpu.dimension_semantics<parallel>], iteration_bounds = array<i64: 2>, scalar_prefetch = 0 : i64, scratch_operands = 0 : i64, tpu.core_type = #tpu.core_type<tc>, window_params = [{transform_indices = @transform_0, window_bounds = array<i64: 1, 4, 9, 9, 3>}, {pipeline_mode = #tpu.pipeline_mode<synchronous>, transform_indices = @transform_1, window_bounds = array<i64: 8, 8, 3>}, {transform_indices = @transform_2, window_bounds = array<i64: 1, 8, 8, 3>}]} {
    %c0 = arith.constant 0 : index
    %c0_0 = arith.constant 0 : index
    %c0_1 = arith.constant 0 : index
    %c0_2 = arith.constant 0 : index
    %c0_3 = arith.constant 0 : index
    %0 = vector.load %arg1[%c0, %c0_0, %c0_1, %c0_2, %c0_3] : memref<1x4x9x9x3xf32, #tpu.memory_space<vmem>>, vector<1x4x9x9x3xf32>
    %1 = vector.shape_cast %0 : vector<1x4x9x9x3xf32> to vector<4x9x9x3xf32>
    %2 = vector.extract_strided_slice %1 {offsets = [0, 0, 0, 0], sizes = [1, 9, 9, 3], strides = [1, 1, 1, 1]} : vector<4x9x9x3xf32> to vector<1x9x9x3xf32>
    %3 = vector.shape_cast %2 : vector<1x9x9x3xf32> to vector<9x9x3xf32>
    %4 = vector.extract_strided_slice %1 {offsets = [1, 0, 0, 0], sizes = [1, 9, 9, 3], strides = [1, 1, 1, 1]} : vector<4x9x9x3xf32> to vector<1x9x9x3xf32>
    %5 = vector.shape_cast %4 : vector<1x9x9x3xf32> to vector<9x9x3xf32>
    %6 = vector.extract_strided_slice %1 {offsets = [2, 0, 0, 0], sizes = [1, 9, 9, 3], strides = [1, 1, 1, 1]} : vector<4x9x9x3xf32> to vector<1x9x9x3xf32>
    %7 = vector.shape_cast %6 : vector<1x9x9x3xf32> to vector<9x9x3xf32>
    %8 = vector.extract_strided_slice %1 {offsets = [3, 0, 0, 0], sizes = [1, 9, 9, 3], strides = [1, 1, 1, 1]} : vector<4x9x9x3xf32> to vector<1x9x9x3xf32>
    %9 = vector.shape_cast %8 : vector<1x9x9x3xf32> to vector<9x9x3xf32>
    %10 = vector.extract_strided_slice %3 {offsets = [0, 0, 0], sizes = [8, 8, 3], strides = [1, 1, 1]} : vector<9x9x3xf32> to vector<8x8x3xf32>
    %11 = vector.extract_strided_slice %3 {offsets = [0, 1, 0], sizes = [8, 8, 3], strides = [1, 1, 1]} : vector<9x9x3xf32> to vector<8x8x3xf32>
    %12 = arith.addf %10, %11 : vector<8x8x3xf32>
    %13 = vector.extract_strided_slice %3 {offsets = [1, 0, 0], sizes = [8, 8, 3], strides = [1, 1, 1]} : vector<9x9x3xf32> to vector<8x8x3xf32>
    %14 = arith.addf %12, %13 : vector<8x8x3xf32>
    %15 = vector.extract_strided_slice %3 {offsets = [1, 1, 0], sizes = [8, 8, 3], strides = [1, 1, 1]} : vector<9x9x3xf32> to vector<8x8x3xf32>
    %16 = arith.addf %14, %15 : vector<8x8x3xf32>
    %17 = vector.extract_strided_slice %5 {offsets = [0, 0, 0], sizes = [8, 8, 3], strides = [1, 1, 1]} : vector<9x9x3xf32> to vector<8x8x3xf32>
    %18 = arith.addf %16, %17 : vector<8x8x3xf32>
    %19 = vector.extract_strided_slice %5 {offsets = [1, 0, 0], sizes = [8, 8, 3], strides = [1, 1, 1]} : vector<9x9x3xf32> to vector<8x8x3xf32>
    %20 = arith.addf %18, %19 : vector<8x8x3xf32>
    %21 = vector.extract_strided_slice %7 {offsets = [0, 0, 0], sizes = [8, 8, 3], strides = [1, 1, 1]} : vector<9x9x3xf32> to vector<8x8x3xf32>
    %22 = arith.addf %20, %21 : vector<8x8x3xf32>
    %23 = vector.extract_strided_slice %7 {offsets = [0, 1, 0], sizes = [8, 8, 3], strides = [1, 1, 1]} : vector<9x9x3xf32> to vector<8x8x3xf32>
    %24 = arith.addf %22, %23 : vector<8x8x3xf32>
    %25 = vector.extract_strided_slice %9 {offsets = [0, 0, 0], sizes = [8, 8, 3], strides = [1, 1, 1]} : vector<9x9x3xf32> to vector<8x8x3xf32>
    %26 = arith.addf %24, %25 : vector<8x8x3xf32>
    %c0_4 = arith.constant 0 : index
    %c0_5 = arith.constant 0 : index
    %c0_6 = arith.constant 0 : index
    %27 = vector.load %arg2[%c0_4, %c0_5, %c0_6] : memref<8x8x3xf32, #tpu.memory_space<vmem>>, vector<8x8x3xf32>
    %28 = arith.mulf %26, %27 : vector<8x8x3xf32>
    %c0_7 = arith.constant 0 : index
    %c0_8 = arith.constant 0 : index
    %c0_9 = arith.constant 0 : index
    %c0_10 = arith.constant 0 : index
    %29 = vector.load %arg3[%c0_7, %c0_8, %c0_9, %c0_10] : memref<1x8x8x3xf32, #tpu.memory_space<vmem>>, vector<1x8x8x3xf32>
    %30 = vector.shape_cast %29 : vector<1x8x8x3xf32> to vector<8x8x3xf32>
    %31 = vector.shape_cast %28 : vector<8x8x3xf32> to vector<1x8x8x3xf32>
    tpu.vector_store %arg3[%c0_7, %c0_8, %c0_9, %c0_10], %31 {strides = array<i32>} : memref<1x8x8x3xf32, #tpu.memory_space<vmem>>, vector<1x8x8x3xf32>,
    return
  }
  func.func @transform_0(%arg0: i32) -> (i32, i32, i32, i32, i32) {
    %c0_i32 = arith.constant 0 : i32
    %c0_i32_0 = arith.constant 0 : i32
    %c0_i32_1 = arith.constant 0 : i32
    %c0_i32_2 = arith.constant 0 : i32
    %c0_i32_3 = arith.constant 0 : i32
    return %arg0, %c0_i32, %c0_i32_0, %c0_i32_1, %c0_i32_2 : i32, i32, i32, i32, i32
  }
  func.func @transform_1(%arg0: i32) -> (i32, i32, i32) {
    %c0_i32 = arith.constant 0 : i32
    %c0_i32_0 = arith.constant 0 : i32
    %c0_i32_1 = arith.constant 0 : i32
    %c0_i32_2 = arith.constant 0 : i32
    return %c0_i32, %c0_i32_0, %c0_i32_1 : i32, i32, i32
  }
  func.func @transform_2(%arg0: i32) -> (i32, i32, i32, i32) {
    %c0_i32 = arith.constant 0 : i32
    %c0_i32_0 = arith.constant 0 : i32
    %c0_i32_1 = arith.constant 0 : i32
    %c0_i32_2 = arith.constant 0 : i32
    return %arg0, %c0_i32, %c0_i32_0, %c0_i32_1 : i32, i32, i32, i32
  }
}

module attributes {stable_mosaic.version = 11 : i64} {
  func.func @kernel(%arg0: i32, %arg1: i32, %arg2: i32, %arg3: memref<56x128xbf16, #tpu.memory_space<vmem>>, %arg4: memref<128x128xbf16, #tpu.memory_space<vmem>>, %arg5: memref<1x128xf32, #tpu.memory_space<vmem>>, %arg6: memref<56x128xf32, #tpu.memory_space<vmem>>, %arg7: memref<56x128xf32, #tpu.memory_space<vmem>>) attributes {dimension_semantics = [#tpu.dimension_semantics<parallel>, #tpu.dimension_semantics<parallel>, #tpu.dimension_semantics<arbitrary>], iteration_bounds = array<i64: 1, 1, 1>, scalar_prefetch = 0 : i64, scratch_operands = 1 : i64, tpu.core_type = #tpu.core_type<tc>, window_params = [{transform_indices = @transform_0, window_bounds = array<i64: 56, 128>}, {transform_indices = @transform_1, window_bounds = array<i64: 128, 128>}, {transform_indices = @transform_2, window_bounds = array<i64: 1, 128>}, {transform_indices = @transform_3, window_bounds = array<i64: 56, 128>}]} {
    %c0_i32 = arith.constant 0 : i32
    %0 = arith.cmpi eq, %arg2, %c0_i32 : i32
    %1 = arith.extui %0 : i1 to i32
    %c0_i32_0 = arith.constant 0 : i32
    %2 = arith.cmpi ne, %1, %c0_i32_0 : i32
    scf.if %2 {
      %cst_10 = arith.constant 0.000000e+00 : f32
      %12 = vector.broadcast %cst_10 : f32 to vector<56x128xf32>
      %c0_11 = arith.constant 0 : index
      %c0_12 = arith.constant 0 : index
      %13 = vector.load %arg7[%c0_11, %c0_12] : memref<56x128xf32, #tpu.memory_space<vmem>>, vector<56x128xf32>
      tpu.vector_store %arg7[%c0_11, %c0_12], %12 {strides = array<i32>} : memref<56x128xf32, #tpu.memory_space<vmem>>, vector<56x128xf32>,
    } else {
    }
    %c0 = arith.constant 0 : index
    %c0_1 = arith.constant 0 : index
    %3 = vector.load %arg7[%c0, %c0_1] : memref<56x128xf32, #tpu.memory_space<vmem>>, vector<56x128xf32>
    %c0_2 = arith.constant 0 : index
    %c0_3 = arith.constant 0 : index
    %4 = vector.load %arg3[%c0_2, %c0_3] : memref<56x128xbf16, #tpu.memory_space<vmem>>, vector<56x128xbf16>
    %c0_4 = arith.constant 0 : index
    %c0_5 = arith.constant 0 : index
    %5 = vector.load %arg4[%c0_4, %c0_5] : memref<128x128xbf16, #tpu.memory_space<vmem>>, vector<128x128xbf16>
    %cst = arith.constant dense<0.000000e+00> : vector<56x128xf32>
    %6 = tpu.matmul %4, %5, %cst {dimension_numbers = #tpu.dot_dimension_numbers<[1], [0], [0], [1], [0, 0, 1, 1], [], []>} : vector<56x128xbf16>, vector<128x128xbf16>, vector<56x128xf32> -> vector<56x128xf32>
    %7 = arith.addf %3, %6 : vector<56x128xf32>
    %c0_6 = arith.constant 0 : index
    %c0_7 = arith.constant 0 : index
    %8 = vector.load %arg7[%c0_6, %c0_7] : memref<56x128xf32, #tpu.memory_space<vmem>>, vector<56x128xf32>
    tpu.vector_store %arg7[%c0_6, %c0_7], %7 {strides = array<i32>} : memref<56x128xf32, #tpu.memory_space<vmem>>, vector<56x128xf32>,
    %c0_i32_8 = arith.constant 0 : i32
    %9 = arith.cmpi eq, %arg2, %c0_i32_8 : i32
    %10 = arith.extui %9 : i1 to i32
    %c0_i32_9 = arith.constant 0 : i32
    %11 = arith.cmpi ne, %10, %c0_i32_9 : i32
    scf.if %11 {
      %c0_10 = arith.constant 0 : index
      %c0_11 = arith.constant 0 : index
      %12 = vector.load %arg7[%c0_10, %c0_11] : memref<56x128xf32, #tpu.memory_space<vmem>>, vector<56x128xf32>
      %c0_12 = arith.constant 0 : index
      %c0_13 = arith.constant 0 : index
      %13 = vector.load %arg5[%c0_12, %c0_13] : memref<1x128xf32, #tpu.memory_space<vmem>>, vector<1x128xf32>
      %14 = vector.broadcast %13 : vector<1x128xf32> to vector<56x128xf32>
      %15 = arith.addf %12, %14 : vector<56x128xf32>
      %cst_14 = arith.constant 0.000000e+00 : f32
      %16 = vector.broadcast %cst_14 : f32 to vector<56x128xf32>
      %17 = arith.cmpf oge, %15, %16 : vector<56x128xf32>
      %cst_15 = arith.constant 2.000000e-01 : f32
      %18 = vector.broadcast %cst_15 : f32 to vector<56x128xf32>
      %19 = arith.mulf %18, %15 : vector<56x128xf32>
      %20 = arith.select %17, %15, %19 : vector<56x128xi1>, vector<56x128xf32>
      %c0_16 = arith.constant 0 : index
      %c0_17 = arith.constant 0 : index
      %21 = vector.load %arg6[%c0_16, %c0_17] : memref<56x128xf32, #tpu.memory_space<vmem>>, vector<56x128xf32>
      tpu.vector_store %arg6[%c0_16, %c0_17], %20 {strides = array<i32>} : memref<56x128xf32, #tpu.memory_space<vmem>>, vector<56x128xf32>,
    } else {
    }
    return
  }
  func.func @transform_0(%arg0: i32, %arg1: i32, %arg2: i32) -> (i32, i32) {
    %c0_i32 = arith.constant 0 : i32
    return %arg0, %arg2 : i32, i32
  }
  func.func @transform_1(%arg0: i32, %arg1: i32, %arg2: i32) -> (i32, i32) {
    %c0_i32 = arith.constant 0 : i32
    return %arg2, %arg1 : i32, i32
  }
  func.func @transform_2(%arg0: i32, %arg1: i32, %arg2: i32) -> (i32, i32) {
    %c0_i32 = arith.constant 0 : i32
    %c0_i32_0 = arith.constant 0 : i32
    return %c0_i32, %arg1 : i32, i32
  }
  func.func @transform_3(%arg0: i32, %arg1: i32, %arg2: i32) -> (i32, i32) {
    %c0_i32 = arith.constant 0 : i32
    return %arg0, %arg1 : i32, i32
  }
}

module attributes {stable_mosaic.version = 11 : i64} {
  func.func @kernel(%arg0: i32, %arg1: i32, %arg2: i32, %arg3: memref<24x256xbf16, #tpu.memory_space<vmem>>, %arg4: memref<256x128xbf16, #tpu.memory_space<vmem>>, %arg5: memref<1x128xf32, #tpu.memory_space<vmem>>, %arg6: memref<24x128xf32, #tpu.memory_space<vmem>>, %arg7: memref<24x128xf32, #tpu.memory_space<vmem>>) attributes {dimension_semantics = [#tpu.dimension_semantics<parallel>, #tpu.dimension_semantics<parallel>, #tpu.dimension_semantics<arbitrary>], iteration_bounds = array<i64: 1, 1, 1>, scalar_prefetch = 0 : i64, scratch_operands = 1 : i64, tpu.core_type = #tpu.core_type<tc>, window_params = [{transform_indices = @transform_0, window_bounds = array<i64: 24, 256>}, {transform_indices = @transform_1, window_bounds = array<i64: 256, 128>}, {transform_indices = @transform_2, window_bounds = array<i64: 1, 128>}, {transform_indices = @transform_3, window_bounds = array<i64: 24, 128>}]} {
    %c0_i32 = arith.constant 0 : i32
    %0 = arith.cmpi eq, %arg2, %c0_i32 : i32
    %1 = arith.extui %0 : i1 to i32
    %c0_i32_0 = arith.constant 0 : i32
    %2 = arith.cmpi ne, %1, %c0_i32_0 : i32
    scf.if %2 {
      %cst_10 = arith.constant 0.000000e+00 : f32
      %12 = vector.broadcast %cst_10 : f32 to vector<24x128xf32>
      %c0_11 = arith.constant 0 : index
      %c0_12 = arith.constant 0 : index
      %13 = vector.load %arg7[%c0_11, %c0_12] : memref<24x128xf32, #tpu.memory_space<vmem>>, vector<24x128xf32>
      tpu.vector_store %arg7[%c0_11, %c0_12], %12 {strides = array<i32>} : memref<24x128xf32, #tpu.memory_space<vmem>>, vector<24x128xf32>,
    } else {
    }
    %c0 = arith.constant 0 : index
    %c0_1 = arith.constant 0 : index
    %3 = vector.load %arg7[%c0, %c0_1] : memref<24x128xf32, #tpu.memory_space<vmem>>, vector<24x128xf32>
    %c0_2 = arith.constant 0 : index
    %c0_3 = arith.constant 0 : index
    %4 = vector.load %arg3[%c0_2, %c0_3] : memref<24x256xbf16, #tpu.memory_space<vmem>>, vector<24x256xbf16>
    %c0_4 = arith.constant 0 : index
    %c0_5 = arith.constant 0 : index
    %5 = vector.load %arg4[%c0_4, %c0_5] : memref<256x128xbf16, #tpu.memory_space<vmem>>, vector<256x128xbf16>
    %cst = arith.constant dense<0.000000e+00> : vector<24x128xf32>
    %6 = tpu.matmul %4, %5, %cst {dimension_numbers = #tpu.dot_dimension_numbers<[1], [0], [0], [1], [0, 0, 1, 1], [], []>} : vector<24x256xbf16>, vector<256x128xbf16>, vector<24x128xf32> -> vector<24x128xf32>
    %7 = arith.addf %3, %6 : vector<24x128xf32>
    %c0_6 = arith.constant 0 : index
    %c0_7 = arith.constant 0 : index
    %8 = vector.load %arg7[%c0_6, %c0_7] : memref<24x128xf32, #tpu.memory_space<vmem>>, vector<24x128xf32>
    tpu.vector_store %arg7[%c0_6, %c0_7], %7 {strides = array<i32>} : memref<24x128xf32, #tpu.memory_space<vmem>>, vector<24x128xf32>,
    %c0_i32_8 = arith.constant 0 : i32
    %9 = arith.cmpi eq, %arg2, %c0_i32_8 : i32
    %10 = arith.extui %9 : i1 to i32
    %c0_i32_9 = arith.constant 0 : i32
    %11 = arith.cmpi ne, %10, %c0_i32_9 : i32
    scf.if %11 {
      %c0_10 = arith.constant 0 : index
      %c0_11 = arith.constant 0 : index
      %12 = vector.load %arg7[%c0_10, %c0_11] : memref<24x128xf32, #tpu.memory_space<vmem>>, vector<24x128xf32>
      %c0_12 = arith.constant 0 : index
      %c0_13 = arith.constant 0 : index
      %13 = vector.load %arg5[%c0_12, %c0_13] : memref<1x128xf32, #tpu.memory_space<vmem>>, vector<1x128xf32>
      %14 = vector.broadcast %13 : vector<1x128xf32> to vector<24x128xf32>
      %15 = arith.addf %12, %14 : vector<24x128xf32>
      %c0_14 = arith.constant 0 : index
      %c0_15 = arith.constant 0 : index
      %16 = vector.load %arg6[%c0_14, %c0_15] : memref<24x128xf32, #tpu.memory_space<vmem>>, vector<24x128xf32>
      tpu.vector_store %arg6[%c0_14, %c0_15], %15 {strides = array<i32>} : memref<24x128xf32, #tpu.memory_space<vmem>>, vector<24x128xf32>,
    } else {
    }
    return
  }
  func.func @transform_0(%arg0: i32, %arg1: i32, %arg2: i32) -> (i32, i32) {
    %c0_i32 = arith.constant 0 : i32
    return %arg0, %arg2 : i32, i32
  }
  func.func @transform_1(%arg0: i32, %arg1: i32, %arg2: i32) -> (i32, i32) {
    %c0_i32 = arith.constant 0 : i32
    return %arg2, %arg1 : i32, i32
  }
  func.func @transform_2(%arg0: i32, %arg1: i32, %arg2: i32) -> (i32, i32) {
    %c0_i32 = arith.constant 0 : i32
    %c0_i32_0 = arith.constant 0 : i32
    return %c0_i32, %arg1 : i32, i32
  }
  func.func @transform_3(%arg0: i32, %arg1: i32, %arg2: i32) -> (i32, i32) {
    %c0_i32 = arith.constant 0 : i32
    return %arg0, %arg1 : i32, i32
  }
}

module attributes {stable_mosaic.version = 11 : i64} {
  func.func @_in_stats_kernel(%arg0: i32, %arg1: i32, %arg2: memref<1x16x32xf32, #tpu.memory_space<vmem>>, %arg3: memref<1x1x32xf32, #tpu.memory_space<vmem>>, %arg4: memref<1x1x32xf32, #tpu.memory_space<vmem>>) attributes {dimension_semantics = [#tpu.dimension_semantics<parallel>, #tpu.dimension_semantics<arbitrary>], iteration_bounds = array<i64: 2, 1>, scalar_prefetch = 0 : i64, scratch_operands = 0 : i64, tpu.core_type = #tpu.core_type<tc>, window_params = [{transform_indices = @transform_0, window_bounds = array<i64: 1, 16, 32>}, {transform_indices = @transform_1, window_bounds = array<i64: 1, 1, 32>}, {transform_indices = @transform_2, window_bounds = array<i64: 1, 1, 32>}]} {
    %c0_i32 = arith.constant 0 : i32
    %0 = arith.cmpi eq, %arg1, %c0_i32 : i32
    %1 = arith.extui %0 : i1 to i32
    %c0_i32_0 = arith.constant 0 : i32
    %2 = arith.cmpi ne, %1, %c0_i32_0 : i32
    scf.if %2 {
      %cst_16 = arith.constant 0.000000e+00 : f32
      %18 = vector.broadcast %cst_16 : f32 to vector<1x1x32xf32>
      %c0_17 = arith.constant 0 : index
      %c0_18 = arith.constant 0 : index
      %c0_19 = arith.constant 0 : index
      %19 = vector.load %arg3[%c0_17, %c0_18, %c0_19] : memref<1x1x32xf32, #tpu.memory_space<vmem>>, vector<1x1x32xf32>
      tpu.vector_store %arg3[%c0_17, %c0_18, %c0_19], %18 {strides = array<i32>} : memref<1x1x32xf32, #tpu.memory_space<vmem>>, vector<1x1x32xf32>,
      %cst_20 = arith.constant 0.000000e+00 : f32
      %20 = vector.broadcast %cst_20 : f32 to vector<1x1x32xf32>
      %c0_21 = arith.constant 0 : index
      %c0_22 = arith.constant 0 : index
      %c0_23 = arith.constant 0 : index
      %21 = vector.load %arg4[%c0_21, %c0_22, %c0_23] : memref<1x1x32xf32, #tpu.memory_space<vmem>>, vector<1x1x32xf32>
      tpu.vector_store %arg4[%c0_21, %c0_22, %c0_23], %20 {strides = array<i32>} : memref<1x1x32xf32, #tpu.memory_space<vmem>>, vector<1x1x32xf32>,
    } else {
    }
    %c0 = arith.constant 0 : index
    %c0_1 = arith.constant 0 : index
    %c0_2 = arith.constant 0 : index
    %3 = vector.load %arg2[%c0, %c0_1, %c0_2] : memref<1x16x32xf32, #tpu.memory_space<vmem>>, vector<1x16x32xf32>
    %4 = vector.shape_cast %3 : vector<1x16x32xf32> to vector<16x32xf32>
    %c0_3 = arith.constant 0 : index
    %c0_4 = arith.constant 0 : index
    %c0_5 = arith.constant 0 : index
    %5 = vector.load %arg3[%c0_3, %c0_4, %c0_5] : memref<1x1x32xf32, #tpu.memory_space<vmem>>, vector<1x1x32xf32>
    %cst = arith.constant dense<0.000000e+00> : vector<32xf32>
    %6 = vector.multi_reduction <add>, %4, %cst [0] : vector<16x32xf32> to vector<32xf32>
    %7 = vector.shape_cast %6 : vector<32xf32> to vector<1x32xf32>
    %8 = vector.shape_cast %7 : vector<1x32xf32> to vector<1x1x32xf32>
    %9 = arith.addf %5, %8 : vector<1x1x32xf32>
    %c0_6 = arith.constant 0 : index
    %c0_7 = arith.constant 0 : index
    %c0_8 = arith.constant 0 : index
    %10 = vector.load %arg3[%c0_6, %c0_7, %c0_8] : memref<1x1x32xf32, #tpu.memory_space<vmem>>, vector<1x1x32xf32>
    tpu.vector_store %arg3[%c0_6, %c0_7, %c0_8], %9 {strides = array<i32>} : memref<1x1x32xf32, #tpu.memory_space<vmem>>, vector<1x1x32xf32>,
    %c0_9 = arith.constant 0 : index
    %c0_10 = arith.constant 0 : index
    %c0_11 = arith.constant 0 : index
    %11 = vector.load %arg4[%c0_9, %c0_10, %c0_11] : memref<1x1x32xf32, #tpu.memory_space<vmem>>, vector<1x1x32xf32>
    %12 = arith.mulf %4, %4 : vector<16x32xf32>
    %cst_12 = arith.constant dense<0.000000e+00> : vector<32xf32>
    %13 = vector.multi_reduction <add>, %12, %cst_12 [0] : vector<16x32xf32> to vector<32xf32>
    %14 = vector.shape_cast %13 : vector<32xf32> to vector<1x32xf32>
    %15 = vector.shape_cast %14 : vector<1x32xf32> to vector<1x1x32xf32>
    %16 = arith.addf %11, %15 : vector<1x1x32xf32>
    %c0_13 = arith.constant 0 : index
    %c0_14 = arith.constant 0 : index
    %c0_15 = arith.constant 0 : index
    %17 = vector.load %arg4[%c0_13, %c0_14, %c0_15] : memref<1x1x32xf32, #tpu.memory_space<vmem>>, vector<1x1x32xf32>
    tpu.vector_store %arg4[%c0_13, %c0_14, %c0_15], %16 {strides = array<i32>} : memref<1x1x32xf32, #tpu.memory_space<vmem>>, vector<1x1x32xf32>,
    return
  }
  func.func @transform_0(%arg0: i32, %arg1: i32) -> (i32, i32, i32) {
    %c0_i32 = arith.constant 0 : i32
    %c0_i32_0 = arith.constant 0 : i32
    return %arg0, %arg1, %c0_i32 : i32, i32, i32
  }
  func.func @transform_1(%arg0: i32, %arg1: i32) -> (i32, i32, i32) {
    %c0_i32 = arith.constant 0 : i32
    %c0_i32_0 = arith.constant 0 : i32
    %c0_i32_1 = arith.constant 0 : i32
    return %arg0, %c0_i32, %c0_i32_0 : i32, i32, i32
  }
  func.func @transform_2(%arg0: i32, %arg1: i32) -> (i32, i32, i32) {
    %c0_i32 = arith.constant 0 : i32
    %c0_i32_0 = arith.constant 0 : i32
    %c0_i32_1 = arith.constant 0 : i32
    return %arg0, %c0_i32, %c0_i32_0 : i32, i32, i32
  }
}

module attributes {stable_mosaic.version = 11 : i64} {
  func.func @_in_apply_kernel(%arg0: i32, %arg1: i32, %arg2: memref<1x16x32xf32, #tpu.memory_space<vmem>>, %arg3: memref<1x1x32xf32, #tpu.memory_space<vmem>>, %arg4: memref<1x1x32xf32, #tpu.memory_space<vmem>>, %arg5: memref<1x16x32xf32, #tpu.memory_space<vmem>>) attributes {dimension_semantics = [#tpu.dimension_semantics<parallel>, #tpu.dimension_semantics<parallel>], iteration_bounds = array<i64: 2, 1>, scalar_prefetch = 0 : i64, scratch_operands = 0 : i64, tpu.core_type = #tpu.core_type<tc>, window_params = [{transform_indices = @transform_0, window_bounds = array<i64: 1, 16, 32>}, {transform_indices = @transform_1, window_bounds = array<i64: 1, 1, 32>}, {transform_indices = @transform_2, window_bounds = array<i64: 1, 1, 32>}, {transform_indices = @transform_3, window_bounds = array<i64: 1, 16, 32>}]} {
    %c0 = arith.constant 0 : index
    %c0_0 = arith.constant 0 : index
    %c0_1 = arith.constant 0 : index
    %0 = vector.load %arg3[%c0, %c0_0, %c0_1] : memref<1x1x32xf32, #tpu.memory_space<vmem>>, vector<1x1x32xf32>
    %1 = vector.shape_cast %0 : vector<1x1x32xf32> to vector<1x32xf32>
    %cst = arith.constant 0.111111112 : f32
    %2 = vector.broadcast %cst : f32 to vector<1x32xf32>
    %3 = arith.mulf %1, %2 : vector<1x32xf32>
    %c0_2 = arith.constant 0 : index
    %c0_3 = arith.constant 0 : index
    %c0_4 = arith.constant 0 : index
    %4 = vector.load %arg4[%c0_2, %c0_3, %c0_4] : memref<1x1x32xf32, #tpu.memory_space<vmem>>, vector<1x1x32xf32>
    %5 = vector.shape_cast %4 : vector<1x1x32xf32> to vector<1x32xf32>
    %cst_5 = arith.constant 0.111111112 : f32
    %6 = vector.broadcast %cst_5 : f32 to vector<1x32xf32>
    %7 = arith.mulf %5, %6 : vector<1x32xf32>
    %8 = arith.mulf %3, %3 : vector<1x32xf32>
    %9 = arith.subf %7, %8 : vector<1x32xf32>
    %cst_6 = arith.constant 0.000000e+00 : f32
    %10 = vector.broadcast %cst_6 : f32 to vector<1x32xf32>
    %11 = arith.maximumf %9, %10 : vector<1x32xf32>
    %cst_7 = arith.constant 9.99999974E-6 : f32
    %12 = vector.broadcast %cst_7 : f32 to vector<1x32xf32>
    %13 = arith.addf %11, %12 : vector<1x32xf32>
    %14 = math.rsqrt %13 : vector<1x32xf32>
    %c0_8 = arith.constant 0 : index
    %c0_9 = arith.constant 0 : index
    %c0_10 = arith.constant 0 : index
    %15 = vector.load %arg2[%c0_8, %c0_9, %c0_10] : memref<1x16x32xf32, #tpu.memory_space<vmem>>, vector<1x16x32xf32>
    %16 = vector.shape_cast %15 : vector<1x16x32xf32> to vector<16x32xf32>
    %17 = vector.broadcast %3 : vector<1x32xf32> to vector<16x32xf32>
    %18 = arith.subf %16, %17 : vector<16x32xf32>
    %19 = vector.broadcast %14 : vector<1x32xf32> to vector<16x32xf32>
    %20 = arith.mulf %18, %19 : vector<16x32xf32>
    %cst_11 = arith.constant 0.000000e+00 : f32
    %21 = vector.broadcast %cst_11 : f32 to vector<16x32xf32>
    %22 = arith.cmpf oge, %20, %21 : vector<16x32xf32>
    %cst_12 = arith.constant 2.000000e-01 : f32
    %23 = vector.broadcast %cst_12 : f32 to vector<16x32xf32>
    %24 = arith.mulf %23, %20 : vector<16x32xf32>
    %25 = arith.select %22, %20, %24 : vector<16x32xi1>, vector<16x32xf32>
    %c0_13 = arith.constant 0 : index
    %c0_14 = arith.constant 0 : index
    %c0_15 = arith.constant 0 : index
    %26 = vector.load %arg5[%c0_13, %c0_14, %c0_15] : memref<1x16x32xf32, #tpu.memory_space<vmem>>, vector<1x16x32xf32>
    %27 = vector.shape_cast %26 : vector<1x16x32xf32> to vector<16x32xf32>
    %28 = vector.shape_cast %25 : vector<16x32xf32> to vector<1x16x32xf32>
    tpu.vector_store %arg5[%c0_13, %c0_14, %c0_15], %28 {strides = array<i32>} : memref<1x16x32xf32, #tpu.memory_space<vmem>>, vector<1x16x32xf32>,
    return
  }
  func.func @transform_0(%arg0: i32, %arg1: i32) -> (i32, i32, i32) {
    %c0_i32 = arith.constant 0 : i32
    %c0_i32_0 = arith.constant 0 : i32
    return %arg0, %arg1, %c0_i32 : i32, i32, i32
  }
  func.func @transform_1(%arg0: i32, %arg1: i32) -> (i32, i32, i32) {
    %c0_i32 = arith.constant 0 : i32
    %c0_i32_0 = arith.constant 0 : i32
    %c0_i32_1 = arith.constant 0 : i32
    return %arg0, %c0_i32, %c0_i32_0 : i32, i32, i32
  }
  func.func @transform_2(%arg0: i32, %arg1: i32) -> (i32, i32, i32) {
    %c0_i32 = arith.constant 0 : i32
    %c0_i32_0 = arith.constant 0 : i32
    %c0_i32_1 = arith.constant 0 : i32
    return %arg0, %c0_i32, %c0_i32_0 : i32, i32, i32
  }
  func.func @transform_3(%arg0: i32, %arg1: i32) -> (i32, i32, i32) {
    %c0_i32 = arith.constant 0 : i32
    %c0_i32_0 = arith.constant 0 : i32
    return %arg0, %arg1, %c0_i32 : i32, i32, i32
  }
}

module attributes {stable_mosaic.version = 11 : i64} {
  func.func @kernel(%arg0: i32, %arg1: i32, %arg2: i32, %arg3: memref<8x512xbf16, #tpu.memory_space<vmem>>, %arg4: memref<512x128xbf16, #tpu.memory_space<vmem>>, %arg5: memref<1x128xf32, #tpu.memory_space<vmem>>, %arg6: memref<8x128xf32, #tpu.memory_space<vmem>>, %arg7: memref<8x128xf32, #tpu.memory_space<vmem>>) attributes {dimension_semantics = [#tpu.dimension_semantics<parallel>, #tpu.dimension_semantics<parallel>, #tpu.dimension_semantics<arbitrary>], iteration_bounds = array<i64: 1, 1, 1>, scalar_prefetch = 0 : i64, scratch_operands = 1 : i64, tpu.core_type = #tpu.core_type<tc>, window_params = [{transform_indices = @transform_0, window_bounds = array<i64: 8, 512>}, {transform_indices = @transform_1, window_bounds = array<i64: 512, 128>}, {transform_indices = @transform_2, window_bounds = array<i64: 1, 128>}, {transform_indices = @transform_3, window_bounds = array<i64: 8, 128>}]} {
    %c0_i32 = arith.constant 0 : i32
    %0 = arith.cmpi eq, %arg2, %c0_i32 : i32
    %1 = arith.extui %0 : i1 to i32
    %c0_i32_0 = arith.constant 0 : i32
    %2 = arith.cmpi ne, %1, %c0_i32_0 : i32
    scf.if %2 {
      %cst_10 = arith.constant 0.000000e+00 : f32
      %12 = vector.broadcast %cst_10 : f32 to vector<8x128xf32>
      %c0_11 = arith.constant 0 : index
      %c0_12 = arith.constant 0 : index
      %13 = vector.load %arg7[%c0_11, %c0_12] : memref<8x128xf32, #tpu.memory_space<vmem>>, vector<8x128xf32>
      tpu.vector_store %arg7[%c0_11, %c0_12], %12 {strides = array<i32>} : memref<8x128xf32, #tpu.memory_space<vmem>>, vector<8x128xf32>,
    } else {
    }
    %c0 = arith.constant 0 : index
    %c0_1 = arith.constant 0 : index
    %3 = vector.load %arg7[%c0, %c0_1] : memref<8x128xf32, #tpu.memory_space<vmem>>, vector<8x128xf32>
    %c0_2 = arith.constant 0 : index
    %c0_3 = arith.constant 0 : index
    %4 = vector.load %arg3[%c0_2, %c0_3] : memref<8x512xbf16, #tpu.memory_space<vmem>>, vector<8x512xbf16>
    %c0_4 = arith.constant 0 : index
    %c0_5 = arith.constant 0 : index
    %5 = vector.load %arg4[%c0_4, %c0_5] : memref<512x128xbf16, #tpu.memory_space<vmem>>, vector<512x128xbf16>
    %cst = arith.constant dense<0.000000e+00> : vector<8x128xf32>
    %6 = tpu.matmul %4, %5, %cst {dimension_numbers = #tpu.dot_dimension_numbers<[1], [0], [0], [1], [0, 0, 1, 1], [], []>} : vector<8x512xbf16>, vector<512x128xbf16>, vector<8x128xf32> -> vector<8x128xf32>
    %7 = arith.addf %3, %6 : vector<8x128xf32>
    %c0_6 = arith.constant 0 : index
    %c0_7 = arith.constant 0 : index
    %8 = vector.load %arg7[%c0_6, %c0_7] : memref<8x128xf32, #tpu.memory_space<vmem>>, vector<8x128xf32>
    tpu.vector_store %arg7[%c0_6, %c0_7], %7 {strides = array<i32>} : memref<8x128xf32, #tpu.memory_space<vmem>>, vector<8x128xf32>,
    %c0_i32_8 = arith.constant 0 : i32
    %9 = arith.cmpi eq, %arg2, %c0_i32_8 : i32
    %10 = arith.extui %9 : i1 to i32
    %c0_i32_9 = arith.constant 0 : i32
    %11 = arith.cmpi ne, %10, %c0_i32_9 : i32
    scf.if %11 {
      %c0_10 = arith.constant 0 : index
      %c0_11 = arith.constant 0 : index
      %12 = vector.load %arg7[%c0_10, %c0_11] : memref<8x128xf32, #tpu.memory_space<vmem>>, vector<8x128xf32>
      %c0_12 = arith.constant 0 : index
      %c0_13 = arith.constant 0 : index
      %13 = vector.load %arg5[%c0_12, %c0_13] : memref<1x128xf32, #tpu.memory_space<vmem>>, vector<1x128xf32>
      %14 = vector.broadcast %13 : vector<1x128xf32> to vector<8x128xf32>
      %15 = arith.addf %12, %14 : vector<8x128xf32>
      %c0_14 = arith.constant 0 : index
      %c0_15 = arith.constant 0 : index
      %16 = vector.load %arg6[%c0_14, %c0_15] : memref<8x128xf32, #tpu.memory_space<vmem>>, vector<8x128xf32>
      tpu.vector_store %arg6[%c0_14, %c0_15], %15 {strides = array<i32>} : memref<8x128xf32, #tpu.memory_space<vmem>>, vector<8x128xf32>,
    } else {
    }
    return
  }
  func.func @transform_0(%arg0: i32, %arg1: i32, %arg2: i32) -> (i32, i32) {
    %c0_i32 = arith.constant 0 : i32
    return %arg0, %arg2 : i32, i32
  }
  func.func @transform_1(%arg0: i32, %arg1: i32, %arg2: i32) -> (i32, i32) {
    %c0_i32 = arith.constant 0 : i32
    return %arg2, %arg1 : i32, i32
  }
  func.func @transform_2(%arg0: i32, %arg1: i32, %arg2: i32) -> (i32, i32) {
    %c0_i32 = arith.constant 0 : i32
    %c0_i32_0 = arith.constant 0 : i32
    return %c0_i32, %arg1 : i32, i32
  }
  func.func @transform_3(%arg0: i32, %arg1: i32, %arg2: i32) -> (i32, i32) {
    %c0_i32 = arith.constant 0 : i32
    return %arg0, %arg1 : i32, i32
  }
}

module attributes {stable_mosaic.version = 11 : i64} {
  func.func @_in_stats_kernel(%arg0: i32, %arg1: i32, %arg2: memref<1x8x64xf32, #tpu.memory_space<vmem>>, %arg3: memref<1x1x64xf32, #tpu.memory_space<vmem>>, %arg4: memref<1x1x64xf32, #tpu.memory_space<vmem>>) attributes {dimension_semantics = [#tpu.dimension_semantics<parallel>, #tpu.dimension_semantics<arbitrary>], iteration_bounds = array<i64: 2, 1>, scalar_prefetch = 0 : i64, scratch_operands = 0 : i64, tpu.core_type = #tpu.core_type<tc>, window_params = [{transform_indices = @transform_0, window_bounds = array<i64: 1, 8, 64>}, {transform_indices = @transform_1, window_bounds = array<i64: 1, 1, 64>}, {transform_indices = @transform_2, window_bounds = array<i64: 1, 1, 64>}]} {
    %c0_i32 = arith.constant 0 : i32
    %0 = arith.cmpi eq, %arg1, %c0_i32 : i32
    %1 = arith.extui %0 : i1 to i32
    %c0_i32_0 = arith.constant 0 : i32
    %2 = arith.cmpi ne, %1, %c0_i32_0 : i32
    scf.if %2 {
      %cst_16 = arith.constant 0.000000e+00 : f32
      %18 = vector.broadcast %cst_16 : f32 to vector<1x1x64xf32>
      %c0_17 = arith.constant 0 : index
      %c0_18 = arith.constant 0 : index
      %c0_19 = arith.constant 0 : index
      %19 = vector.load %arg3[%c0_17, %c0_18, %c0_19] : memref<1x1x64xf32, #tpu.memory_space<vmem>>, vector<1x1x64xf32>
      tpu.vector_store %arg3[%c0_17, %c0_18, %c0_19], %18 {strides = array<i32>} : memref<1x1x64xf32, #tpu.memory_space<vmem>>, vector<1x1x64xf32>,
      %cst_20 = arith.constant 0.000000e+00 : f32
      %20 = vector.broadcast %cst_20 : f32 to vector<1x1x64xf32>
      %c0_21 = arith.constant 0 : index
      %c0_22 = arith.constant 0 : index
      %c0_23 = arith.constant 0 : index
      %21 = vector.load %arg4[%c0_21, %c0_22, %c0_23] : memref<1x1x64xf32, #tpu.memory_space<vmem>>, vector<1x1x64xf32>
      tpu.vector_store %arg4[%c0_21, %c0_22, %c0_23], %20 {strides = array<i32>} : memref<1x1x64xf32, #tpu.memory_space<vmem>>, vector<1x1x64xf32>,
    } else {
    }
    %c0 = arith.constant 0 : index
    %c0_1 = arith.constant 0 : index
    %c0_2 = arith.constant 0 : index
    %3 = vector.load %arg2[%c0, %c0_1, %c0_2] : memref<1x8x64xf32, #tpu.memory_space<vmem>>, vector<1x8x64xf32>
    %4 = vector.shape_cast %3 : vector<1x8x64xf32> to vector<8x64xf32>
    %c0_3 = arith.constant 0 : index
    %c0_4 = arith.constant 0 : index
    %c0_5 = arith.constant 0 : index
    %5 = vector.load %arg3[%c0_3, %c0_4, %c0_5] : memref<1x1x64xf32, #tpu.memory_space<vmem>>, vector<1x1x64xf32>
    %cst = arith.constant dense<0.000000e+00> : vector<64xf32>
    %6 = vector.multi_reduction <add>, %4, %cst [0] : vector<8x64xf32> to vector<64xf32>
    %7 = vector.shape_cast %6 : vector<64xf32> to vector<1x64xf32>
    %8 = vector.shape_cast %7 : vector<1x64xf32> to vector<1x1x64xf32>
    %9 = arith.addf %5, %8 : vector<1x1x64xf32>
    %c0_6 = arith.constant 0 : index
    %c0_7 = arith.constant 0 : index
    %c0_8 = arith.constant 0 : index
    %10 = vector.load %arg3[%c0_6, %c0_7, %c0_8] : memref<1x1x64xf32, #tpu.memory_space<vmem>>, vector<1x1x64xf32>
    tpu.vector_store %arg3[%c0_6, %c0_7, %c0_8], %9 {strides = array<i32>} : memref<1x1x64xf32, #tpu.memory_space<vmem>>, vector<1x1x64xf32>,
    %c0_9 = arith.constant 0 : index
    %c0_10 = arith.constant 0 : index
    %c0_11 = arith.constant 0 : index
    %11 = vector.load %arg4[%c0_9, %c0_10, %c0_11] : memref<1x1x64xf32, #tpu.memory_space<vmem>>, vector<1x1x64xf32>
    %12 = arith.mulf %4, %4 : vector<8x64xf32>
    %cst_12 = arith.constant dense<0.000000e+00> : vector<64xf32>
    %13 = vector.multi_reduction <add>, %12, %cst_12 [0] : vector<8x64xf32> to vector<64xf32>
    %14 = vector.shape_cast %13 : vector<64xf32> to vector<1x64xf32>
    %15 = vector.shape_cast %14 : vector<1x64xf32> to vector<1x1x64xf32>
    %16 = arith.addf %11, %15 : vector<1x1x64xf32>
    %c0_13 = arith.constant 0 : index
    %c0_14 = arith.constant 0 : index
    %c0_15 = arith.constant 0 : index
    %17 = vector.load %arg4[%c0_13, %c0_14, %c0_15] : memref<1x1x64xf32, #tpu.memory_space<vmem>>, vector<1x1x64xf32>
    tpu.vector_store %arg4[%c0_13, %c0_14, %c0_15], %16 {strides = array<i32>} : memref<1x1x64xf32, #tpu.memory_space<vmem>>, vector<1x1x64xf32>,
    return
  }
  func.func @transform_0(%arg0: i32, %arg1: i32) -> (i32, i32, i32) {
    %c0_i32 = arith.constant 0 : i32
    %c0_i32_0 = arith.constant 0 : i32
    return %arg0, %arg1, %c0_i32 : i32, i32, i32
  }
  func.func @transform_1(%arg0: i32, %arg1: i32) -> (i32, i32, i32) {
    %c0_i32 = arith.constant 0 : i32
    %c0_i32_0 = arith.constant 0 : i32
    %c0_i32_1 = arith.constant 0 : i32
    return %arg0, %c0_i32, %c0_i32_0 : i32, i32, i32
  }
  func.func @transform_2(%arg0: i32, %arg1: i32) -> (i32, i32, i32) {
    %c0_i32 = arith.constant 0 : i32
    %c0_i32_0 = arith.constant 0 : i32
    %c0_i32_1 = arith.constant 0 : i32
    return %arg0, %c0_i32, %c0_i32_0 : i32, i32, i32
  }
}

module attributes {stable_mosaic.version = 11 : i64} {
  func.func @_in_apply_kernel(%arg0: i32, %arg1: i32, %arg2: memref<1x8x64xf32, #tpu.memory_space<vmem>>, %arg3: memref<1x1x64xf32, #tpu.memory_space<vmem>>, %arg4: memref<1x1x64xf32, #tpu.memory_space<vmem>>, %arg5: memref<1x8x64xf32, #tpu.memory_space<vmem>>) attributes {dimension_semantics = [#tpu.dimension_semantics<parallel>, #tpu.dimension_semantics<parallel>], iteration_bounds = array<i64: 2, 1>, scalar_prefetch = 0 : i64, scratch_operands = 0 : i64, tpu.core_type = #tpu.core_type<tc>, window_params = [{transform_indices = @transform_0, window_bounds = array<i64: 1, 8, 64>}, {transform_indices = @transform_1, window_bounds = array<i64: 1, 1, 64>}, {transform_indices = @transform_2, window_bounds = array<i64: 1, 1, 64>}, {transform_indices = @transform_3, window_bounds = array<i64: 1, 8, 64>}]} {
    %c0 = arith.constant 0 : index
    %c0_0 = arith.constant 0 : index
    %c0_1 = arith.constant 0 : index
    %0 = vector.load %arg3[%c0, %c0_0, %c0_1] : memref<1x1x64xf32, #tpu.memory_space<vmem>>, vector<1x1x64xf32>
    %1 = vector.shape_cast %0 : vector<1x1x64xf32> to vector<1x64xf32>
    %cst = arith.constant 2.500000e-01 : f32
    %2 = vector.broadcast %cst : f32 to vector<1x64xf32>
    %3 = arith.mulf %1, %2 : vector<1x64xf32>
    %c0_2 = arith.constant 0 : index
    %c0_3 = arith.constant 0 : index
    %c0_4 = arith.constant 0 : index
    %4 = vector.load %arg4[%c0_2, %c0_3, %c0_4] : memref<1x1x64xf32, #tpu.memory_space<vmem>>, vector<1x1x64xf32>
    %5 = vector.shape_cast %4 : vector<1x1x64xf32> to vector<1x64xf32>
    %cst_5 = arith.constant 2.500000e-01 : f32
    %6 = vector.broadcast %cst_5 : f32 to vector<1x64xf32>
    %7 = arith.mulf %5, %6 : vector<1x64xf32>
    %8 = arith.mulf %3, %3 : vector<1x64xf32>
    %9 = arith.subf %7, %8 : vector<1x64xf32>
    %cst_6 = arith.constant 0.000000e+00 : f32
    %10 = vector.broadcast %cst_6 : f32 to vector<1x64xf32>
    %11 = arith.maximumf %9, %10 : vector<1x64xf32>
    %cst_7 = arith.constant 9.99999974E-6 : f32
    %12 = vector.broadcast %cst_7 : f32 to vector<1x64xf32>
    %13 = arith.addf %11, %12 : vector<1x64xf32>
    %14 = math.rsqrt %13 : vector<1x64xf32>
    %c0_8 = arith.constant 0 : index
    %c0_9 = arith.constant 0 : index
    %c0_10 = arith.constant 0 : index
    %15 = vector.load %arg2[%c0_8, %c0_9, %c0_10] : memref<1x8x64xf32, #tpu.memory_space<vmem>>, vector<1x8x64xf32>
    %16 = vector.shape_cast %15 : vector<1x8x64xf32> to vector<8x64xf32>
    %17 = vector.broadcast %3 : vector<1x64xf32> to vector<8x64xf32>
    %18 = arith.subf %16, %17 : vector<8x64xf32>
    %19 = vector.broadcast %14 : vector<1x64xf32> to vector<8x64xf32>
    %20 = arith.mulf %18, %19 : vector<8x64xf32>
    %cst_11 = arith.constant 0.000000e+00 : f32
    %21 = vector.broadcast %cst_11 : f32 to vector<8x64xf32>
    %22 = arith.cmpf oge, %20, %21 : vector<8x64xf32>
    %cst_12 = arith.constant 2.000000e-01 : f32
    %23 = vector.broadcast %cst_12 : f32 to vector<8x64xf32>
    %24 = arith.mulf %23, %20 : vector<8x64xf32>
    %25 = arith.select %22, %20, %24 : vector<8x64xi1>, vector<8x64xf32>
    %c0_13 = arith.constant 0 : index
    %c0_14 = arith.constant 0 : index
    %c0_15 = arith.constant 0 : index
    %26 = vector.load %arg5[%c0_13, %c0_14, %c0_15] : memref<1x8x64xf32, #tpu.memory_space<vmem>>, vector<1x8x64xf32>
    %27 = vector.shape_cast %26 : vector<1x8x64xf32> to vector<8x64xf32>
    %28 = vector.shape_cast %25 : vector<8x64xf32> to vector<1x8x64xf32>
    tpu.vector_store %arg5[%c0_13, %c0_14, %c0_15], %28 {strides = array<i32>} : memref<1x8x64xf32, #tpu.memory_space<vmem>>, vector<1x8x64xf32>,
    return
  }
  func.func @transform_0(%arg0: i32, %arg1: i32) -> (i32, i32, i32) {
    %c0_i32 = arith.constant 0 : i32
    %c0_i32_0 = arith.constant 0 : i32
    return %arg0, %arg1, %c0_i32 : i32, i32, i32
  }
  func.func @transform_1(%arg0: i32, %arg1: i32) -> (i32, i32, i32) {
    %c0_i32 = arith.constant 0 : i32
    %c0_i32_0 = arith.constant 0 : i32
    %c0_i32_1 = arith.constant 0 : i32
    return %arg0, %c0_i32, %c0_i32_0 : i32, i32, i32
  }
  func.func @transform_2(%arg0: i32, %arg1: i32) -> (i32, i32, i32) {
    %c0_i32 = arith.constant 0 : i32
    %c0_i32_0 = arith.constant 0 : i32
    %c0_i32_1 = arith.constant 0 : i32
    return %arg0, %c0_i32, %c0_i32_0 : i32, i32, i32
  }
  func.func @transform_3(%arg0: i32, %arg1: i32) -> (i32, i32, i32) {
    %c0_i32 = arith.constant 0 : i32
    %c0_i32_0 = arith.constant 0 : i32
    return %arg0, %arg1, %c0_i32 : i32, i32, i32
  }
}

module attributes {stable_mosaic.version = 11 : i64} {
  func.func @kernel(%arg0: i32, %arg1: i32, %arg2: i32, %arg3: memref<24x512xbf16, #tpu.memory_space<vmem>>, %arg4: memref<512x128xbf16, #tpu.memory_space<vmem>>, %arg5: memref<1x128xf32, #tpu.memory_space<vmem>>, %arg6: memref<24x128xf32, #tpu.memory_space<vmem>>, %arg7: memref<24x128xf32, #tpu.memory_space<vmem>>) attributes {dimension_semantics = [#tpu.dimension_semantics<parallel>, #tpu.dimension_semantics<parallel>, #tpu.dimension_semantics<arbitrary>], iteration_bounds = array<i64: 1, 1, 2>, scalar_prefetch = 0 : i64, scratch_operands = 1 : i64, tpu.core_type = #tpu.core_type<tc>, window_params = [{transform_indices = @transform_0, window_bounds = array<i64: 24, 512>}, {transform_indices = @transform_1, window_bounds = array<i64: 512, 128>}, {transform_indices = @transform_2, window_bounds = array<i64: 1, 128>}, {transform_indices = @transform_3, window_bounds = array<i64: 24, 128>}]} {
    %c0_i32 = arith.constant 0 : i32
    %0 = arith.cmpi eq, %arg2, %c0_i32 : i32
    %1 = arith.extui %0 : i1 to i32
    %c0_i32_0 = arith.constant 0 : i32
    %2 = arith.cmpi ne, %1, %c0_i32_0 : i32
    scf.if %2 {
      %cst_9 = arith.constant 0.000000e+00 : f32
      %12 = vector.broadcast %cst_9 : f32 to vector<24x128xf32>
      %c0_10 = arith.constant 0 : index
      %c0_11 = arith.constant 0 : index
      %13 = vector.load %arg7[%c0_10, %c0_11] : memref<24x128xf32, #tpu.memory_space<vmem>>, vector<24x128xf32>
      tpu.vector_store %arg7[%c0_10, %c0_11], %12 {strides = array<i32>} : memref<24x128xf32, #tpu.memory_space<vmem>>, vector<24x128xf32>,
    } else {
    }
    %c0 = arith.constant 0 : index
    %c0_1 = arith.constant 0 : index
    %3 = vector.load %arg7[%c0, %c0_1] : memref<24x128xf32, #tpu.memory_space<vmem>>, vector<24x128xf32>
    %c0_2 = arith.constant 0 : index
    %c0_3 = arith.constant 0 : index
    %4 = vector.load %arg3[%c0_2, %c0_3] : memref<24x512xbf16, #tpu.memory_space<vmem>>, vector<24x512xbf16>
    %c0_4 = arith.constant 0 : index
    %c0_5 = arith.constant 0 : index
    %5 = vector.load %arg4[%c0_4, %c0_5] : memref<512x128xbf16, #tpu.memory_space<vmem>>, vector<512x128xbf16>
    %cst = arith.constant dense<0.000000e+00> : vector<24x128xf32>
    %6 = tpu.matmul %4, %5, %cst {dimension_numbers = #tpu.dot_dimension_numbers<[1], [0], [0], [1], [0, 0, 1, 1], [], []>} : vector<24x512xbf16>, vector<512x128xbf16>, vector<24x128xf32> -> vector<24x128xf32>
    %7 = arith.addf %3, %6 : vector<24x128xf32>
    %c0_6 = arith.constant 0 : index
    %c0_7 = arith.constant 0 : index
    %8 = vector.load %arg7[%c0_6, %c0_7] : memref<24x128xf32, #tpu.memory_space<vmem>>, vector<24x128xf32>
    tpu.vector_store %arg7[%c0_6, %c0_7], %7 {strides = array<i32>} : memref<24x128xf32, #tpu.memory_space<vmem>>, vector<24x128xf32>,
    %c1_i32 = arith.constant 1 : i32
    %9 = arith.cmpi eq, %arg2, %c1_i32 : i32
    %10 = arith.extui %9 : i1 to i32
    %c0_i32_8 = arith.constant 0 : i32
    %11 = arith.cmpi ne, %10, %c0_i32_8 : i32
    scf.if %11 {
      %c0_9 = arith.constant 0 : index
      %c0_10 = arith.constant 0 : index
      %12 = vector.load %arg7[%c0_9, %c0_10] : memref<24x128xf32, #tpu.memory_space<vmem>>, vector<24x128xf32>
      %c0_11 = arith.constant 0 : index
      %c0_12 = arith.constant 0 : index
      %13 = vector.load %arg5[%c0_11, %c0_12] : memref<1x128xf32, #tpu.memory_space<vmem>>, vector<1x128xf32>
      %14 = vector.broadcast %13 : vector<1x128xf32> to vector<24x128xf32>
      %15 = arith.addf %12, %14 : vector<24x128xf32>
      %c0_13 = arith.constant 0 : index
      %c0_14 = arith.constant 0 : index
      %16 = vector.load %arg6[%c0_13, %c0_14] : memref<24x128xf32, #tpu.memory_space<vmem>>, vector<24x128xf32>
      tpu.vector_store %arg6[%c0_13, %c0_14], %15 {strides = array<i32>} : memref<24x128xf32, #tpu.memory_space<vmem>>, vector<24x128xf32>,
    } else {
    }
    return
  }
  func.func @transform_0(%arg0: i32, %arg1: i32, %arg2: i32) -> (i32, i32) {
    %c0_i32 = arith.constant 0 : i32
    return %arg0, %arg2 : i32, i32
  }
  func.func @transform_1(%arg0: i32, %arg1: i32, %arg2: i32) -> (i32, i32) {
    %c0_i32 = arith.constant 0 : i32
    return %arg2, %arg1 : i32, i32
  }
  func.func @transform_2(%arg0: i32, %arg1: i32, %arg2: i32) -> (i32, i32) {
    %c0_i32 = arith.constant 0 : i32
    %c0_i32_0 = arith.constant 0 : i32
    return %c0_i32, %arg1 : i32, i32
  }
  func.func @transform_3(%arg0: i32, %arg1: i32, %arg2: i32) -> (i32, i32) {
    %c0_i32 = arith.constant 0 : i32
    return %arg0, %arg1 : i32, i32
  }
}

module attributes {stable_mosaic.version = 11 : i64} {
  func.func @_in_apply_kernel(%arg0: i32, %arg1: i32, %arg2: memref<1x16x128xf32, #tpu.memory_space<vmem>>, %arg3: memref<1x1x128xf32, #tpu.memory_space<vmem>>, %arg4: memref<1x1x128xf32, #tpu.memory_space<vmem>>, %arg5: memref<1x16x128xf32, #tpu.memory_space<vmem>>) attributes {dimension_semantics = [#tpu.dimension_semantics<parallel>, #tpu.dimension_semantics<parallel>], iteration_bounds = array<i64: 2, 1>, scalar_prefetch = 0 : i64, scratch_operands = 0 : i64, tpu.core_type = #tpu.core_type<tc>, window_params = [{transform_indices = @transform_0, window_bounds = array<i64: 1, 16, 128>}, {transform_indices = @transform_1, window_bounds = array<i64: 1, 1, 128>}, {transform_indices = @transform_2, window_bounds = array<i64: 1, 1, 128>}, {transform_indices = @transform_3, window_bounds = array<i64: 1, 16, 128>}]} {
    %c0 = arith.constant 0 : index
    %c0_0 = arith.constant 0 : index
    %c0_1 = arith.constant 0 : index
    %0 = vector.load %arg3[%c0, %c0_0, %c0_1] : memref<1x1x128xf32, #tpu.memory_space<vmem>>, vector<1x1x128xf32>
    %1 = vector.shape_cast %0 : vector<1x1x128xf32> to vector<1x128xf32>
    %cst = arith.constant 0.111111112 : f32
    %2 = vector.broadcast %cst : f32 to vector<1x128xf32>
    %3 = arith.mulf %1, %2 : vector<1x128xf32>
    %c0_2 = arith.constant 0 : index
    %c0_3 = arith.constant 0 : index
    %c0_4 = arith.constant 0 : index
    %4 = vector.load %arg4[%c0_2, %c0_3, %c0_4] : memref<1x1x128xf32, #tpu.memory_space<vmem>>, vector<1x1x128xf32>
    %5 = vector.shape_cast %4 : vector<1x1x128xf32> to vector<1x128xf32>
    %cst_5 = arith.constant 0.111111112 : f32
    %6 = vector.broadcast %cst_5 : f32 to vector<1x128xf32>
    %7 = arith.mulf %5, %6 : vector<1x128xf32>
    %8 = arith.mulf %3, %3 : vector<1x128xf32>
    %9 = arith.subf %7, %8 : vector<1x128xf32>
    %cst_6 = arith.constant 0.000000e+00 : f32
    %10 = vector.broadcast %cst_6 : f32 to vector<1x128xf32>
    %11 = arith.maximumf %9, %10 : vector<1x128xf32>
    %cst_7 = arith.constant 9.99999974E-6 : f32
    %12 = vector.broadcast %cst_7 : f32 to vector<1x128xf32>
    %13 = arith.addf %11, %12 : vector<1x128xf32>
    %14 = math.rsqrt %13 : vector<1x128xf32>
    %c0_8 = arith.constant 0 : index
    %c0_9 = arith.constant 0 : index
    %c0_10 = arith.constant 0 : index
    %15 = vector.load %arg2[%c0_8, %c0_9, %c0_10] : memref<1x16x128xf32, #tpu.memory_space<vmem>>, vector<1x16x128xf32>
    %16 = vector.shape_cast %15 : vector<1x16x128xf32> to vector<16x128xf32>
    %17 = vector.broadcast %3 : vector<1x128xf32> to vector<16x128xf32>
    %18 = arith.subf %16, %17 : vector<16x128xf32>
    %19 = vector.broadcast %14 : vector<1x128xf32> to vector<16x128xf32>
    %20 = arith.mulf %18, %19 : vector<16x128xf32>
    %cst_11 = arith.constant 0.000000e+00 : f32
    %21 = vector.broadcast %cst_11 : f32 to vector<16x128xf32>
    %22 = arith.cmpf oge, %20, %21 : vector<16x128xf32>
    %cst_12 = arith.constant 2.000000e-01 : f32
    %23 = vector.broadcast %cst_12 : f32 to vector<16x128xf32>
    %24 = arith.mulf %23, %20 : vector<16x128xf32>
    %25 = arith.select %22, %20, %24 : vector<16x128xi1>, vector<16x128xf32>
    %c0_13 = arith.constant 0 : index
    %c0_14 = arith.constant 0 : index
    %c0_15 = arith.constant 0 : index
    %26 = vector.load %arg5[%c0_13, %c0_14, %c0_15] : memref<1x16x128xf32, #tpu.memory_space<vmem>>, vector<1x16x128xf32>
    %27 = vector.shape_cast %26 : vector<1x16x128xf32> to vector<16x128xf32>
    %28 = vector.shape_cast %25 : vector<16x128xf32> to vector<1x16x128xf32>
    tpu.vector_store %arg5[%c0_13, %c0_14, %c0_15], %28 {strides = array<i32>} : memref<1x16x128xf32, #tpu.memory_space<vmem>>, vector<1x16x128xf32>,
    return
  }
  func.func @transform_0(%arg0: i32, %arg1: i32) -> (i32, i32, i32) {
    %c0_i32 = arith.constant 0 : i32
    %c0_i32_0 = arith.constant 0 : i32
    return %arg0, %arg1, %c0_i32 : i32, i32, i32
  }
  func.func @transform_1(%arg0: i32, %arg1: i32) -> (i32, i32, i32) {
    %c0_i32 = arith.constant 0 : i32
    %c0_i32_0 = arith.constant 0 : i32
    %c0_i32_1 = arith.constant 0 : i32
    return %arg0, %c0_i32, %c0_i32_0 : i32, i32, i32
  }
  func.func @transform_2(%arg0: i32, %arg1: i32) -> (i32, i32, i32) {
    %c0_i32 = arith.constant 0 : i32
    %c0_i32_0 = arith.constant 0 : i32
    %c0_i32_1 = arith.constant 0 : i32
    return %arg0, %c0_i32, %c0_i32_0 : i32, i32, i32
  }
  func.func @transform_3(%arg0: i32, %arg1: i32) -> (i32, i32, i32) {
    %c0_i32 = arith.constant 0 : i32
    %c0_i32_0 = arith.constant 0 : i32
    return %arg0, %arg1, %c0_i32 : i32, i32, i32
  }
}

module attributes {stable_mosaic.version = 11 : i64} {
  func.func @kernel(%arg0: i32, %arg1: i32, %arg2: i32, %arg3: memref<32x512xbf16, #tpu.memory_space<vmem>>, %arg4: memref<512x128xbf16, #tpu.memory_space<vmem>>, %arg5: memref<1x128xf32, #tpu.memory_space<vmem>>, %arg6: memref<32x128xf32, #tpu.memory_space<vmem>>, %arg7: memref<32x128xf32, #tpu.memory_space<vmem>>) attributes {dimension_semantics = [#tpu.dimension_semantics<parallel>, #tpu.dimension_semantics<parallel>, #tpu.dimension_semantics<arbitrary>], iteration_bounds = array<i64: 1, 1, 4>, scalar_prefetch = 0 : i64, scratch_operands = 1 : i64, tpu.core_type = #tpu.core_type<tc>, window_params = [{transform_indices = @transform_0, window_bounds = array<i64: 32, 512>}, {transform_indices = @transform_1, window_bounds = array<i64: 512, 128>}, {transform_indices = @transform_2, window_bounds = array<i64: 1, 128>}, {transform_indices = @transform_3, window_bounds = array<i64: 32, 128>}]} {
    %c0_i32 = arith.constant 0 : i32
    %0 = arith.cmpi eq, %arg2, %c0_i32 : i32
    %1 = arith.extui %0 : i1 to i32
    %c0_i32_0 = arith.constant 0 : i32
    %2 = arith.cmpi ne, %1, %c0_i32_0 : i32
    scf.if %2 {
      %cst_9 = arith.constant 0.000000e+00 : f32
      %12 = vector.broadcast %cst_9 : f32 to vector<32x128xf32>
      %c0_10 = arith.constant 0 : index
      %c0_11 = arith.constant 0 : index
      %13 = vector.load %arg7[%c0_10, %c0_11] : memref<32x128xf32, #tpu.memory_space<vmem>>, vector<32x128xf32>
      tpu.vector_store %arg7[%c0_10, %c0_11], %12 {strides = array<i32>} : memref<32x128xf32, #tpu.memory_space<vmem>>, vector<32x128xf32>,
    } else {
    }
    %c0 = arith.constant 0 : index
    %c0_1 = arith.constant 0 : index
    %3 = vector.load %arg7[%c0, %c0_1] : memref<32x128xf32, #tpu.memory_space<vmem>>, vector<32x128xf32>
    %c0_2 = arith.constant 0 : index
    %c0_3 = arith.constant 0 : index
    %4 = vector.load %arg3[%c0_2, %c0_3] : memref<32x512xbf16, #tpu.memory_space<vmem>>, vector<32x512xbf16>
    %c0_4 = arith.constant 0 : index
    %c0_5 = arith.constant 0 : index
    %5 = vector.load %arg4[%c0_4, %c0_5] : memref<512x128xbf16, #tpu.memory_space<vmem>>, vector<512x128xbf16>
    %cst = arith.constant dense<0.000000e+00> : vector<32x128xf32>
    %6 = tpu.matmul %4, %5, %cst {dimension_numbers = #tpu.dot_dimension_numbers<[1], [0], [0], [1], [0, 0, 1, 1], [], []>} : vector<32x512xbf16>, vector<512x128xbf16>, vector<32x128xf32> -> vector<32x128xf32>
    %7 = arith.addf %3, %6 : vector<32x128xf32>
    %c0_6 = arith.constant 0 : index
    %c0_7 = arith.constant 0 : index
    %8 = vector.load %arg7[%c0_6, %c0_7] : memref<32x128xf32, #tpu.memory_space<vmem>>, vector<32x128xf32>
    tpu.vector_store %arg7[%c0_6, %c0_7], %7 {strides = array<i32>} : memref<32x128xf32, #tpu.memory_space<vmem>>, vector<32x128xf32>,
    %c3_i32 = arith.constant 3 : i32
    %9 = arith.cmpi eq, %arg2, %c3_i32 : i32
    %10 = arith.extui %9 : i1 to i32
    %c0_i32_8 = arith.constant 0 : i32
    %11 = arith.cmpi ne, %10, %c0_i32_8 : i32
    scf.if %11 {
      %c0_9 = arith.constant 0 : index
      %c0_10 = arith.constant 0 : index
      %12 = vector.load %arg7[%c0_9, %c0_10] : memref<32x128xf32, #tpu.memory_space<vmem>>, vector<32x128xf32>
      %c0_11 = arith.constant 0 : index
      %c0_12 = arith.constant 0 : index
      %13 = vector.load %arg5[%c0_11, %c0_12] : memref<1x128xf32, #tpu.memory_space<vmem>>, vector<1x128xf32>
      %14 = vector.broadcast %13 : vector<1x128xf32> to vector<32x128xf32>
      %15 = arith.addf %12, %14 : vector<32x128xf32>
      %c0_13 = arith.constant 0 : index
      %c0_14 = arith.constant 0 : index
      %16 = vector.load %arg6[%c0_13, %c0_14] : memref<32x128xf32, #tpu.memory_space<vmem>>, vector<32x128xf32>
      tpu.vector_store %arg6[%c0_13, %c0_14], %15 {strides = array<i32>} : memref<32x128xf32, #tpu.memory_space<vmem>>, vector<32x128xf32>,
    } else {
    }
    return
  }
  func.func @transform_0(%arg0: i32, %arg1: i32, %arg2: i32) -> (i32, i32) {
    %c0_i32 = arith.constant 0 : i32
    return %arg0, %arg2 : i32, i32
  }
  func.func @transform_1(%arg0: i32, %arg1: i32, %arg2: i32) -> (i32, i32) {
    %c0_i32 = arith.constant 0 : i32
    return %arg2, %arg1 : i32, i32
  }
  func.func @transform_2(%arg0: i32, %arg1: i32, %arg2: i32) -> (i32, i32) {
    %c0_i32 = arith.constant 0 : i32
    %c0_i32_0 = arith.constant 0 : i32
    return %c0_i32, %arg1 : i32, i32
  }
  func.func @transform_3(%arg0: i32, %arg1: i32, %arg2: i32) -> (i32, i32) {
    %c0_i32 = arith.constant 0 : i32
    return %arg0, %arg1 : i32, i32
  }
}

module attributes {stable_mosaic.version = 11 : i64} {
  func.func @_avgpool_kernel(%arg0: i32, %arg1: memref<1x4x5x5x3xf32, #tpu.memory_space<vmem>>, %arg2: memref<4x4x3xf32, #tpu.memory_space<vmem>>, %arg3: memref<1x4x4x3xf32, #tpu.memory_space<vmem>>) attributes {dimension_semantics = [#tpu.dimension_semantics<parallel>], iteration_bounds = array<i64: 2>, scalar_prefetch = 0 : i64, scratch_operands = 0 : i64, tpu.core_type = #tpu.core_type<tc>, window_params = [{transform_indices = @transform_0, window_bounds = array<i64: 1, 4, 5, 5, 3>}, {pipeline_mode = #tpu.pipeline_mode<synchronous>, transform_indices = @transform_1, window_bounds = array<i64: 4, 4, 3>}, {transform_indices = @transform_2, window_bounds = array<i64: 1, 4, 4, 3>}]} {
    %c0 = arith.constant 0 : index
    %c0_0 = arith.constant 0 : index
    %c0_1 = arith.constant 0 : index
    %c0_2 = arith.constant 0 : index
    %c0_3 = arith.constant 0 : index
    %0 = vector.load %arg1[%c0, %c0_0, %c0_1, %c0_2, %c0_3] : memref<1x4x5x5x3xf32, #tpu.memory_space<vmem>>, vector<1x4x5x5x3xf32>
    %1 = vector.shape_cast %0 : vector<1x4x5x5x3xf32> to vector<4x5x5x3xf32>
    %2 = vector.extract_strided_slice %1 {offsets = [0, 0, 0, 0], sizes = [1, 5, 5, 3], strides = [1, 1, 1, 1]} : vector<4x5x5x3xf32> to vector<1x5x5x3xf32>
    %3 = vector.shape_cast %2 : vector<1x5x5x3xf32> to vector<5x5x3xf32>
    %4 = vector.extract_strided_slice %1 {offsets = [1, 0, 0, 0], sizes = [1, 5, 5, 3], strides = [1, 1, 1, 1]} : vector<4x5x5x3xf32> to vector<1x5x5x3xf32>
    %5 = vector.shape_cast %4 : vector<1x5x5x3xf32> to vector<5x5x3xf32>
    %6 = vector.extract_strided_slice %1 {offsets = [2, 0, 0, 0], sizes = [1, 5, 5, 3], strides = [1, 1, 1, 1]} : vector<4x5x5x3xf32> to vector<1x5x5x3xf32>
    %7 = vector.shape_cast %6 : vector<1x5x5x3xf32> to vector<5x5x3xf32>
    %8 = vector.extract_strided_slice %1 {offsets = [3, 0, 0, 0], sizes = [1, 5, 5, 3], strides = [1, 1, 1, 1]} : vector<4x5x5x3xf32> to vector<1x5x5x3xf32>
    %9 = vector.shape_cast %8 : vector<1x5x5x3xf32> to vector<5x5x3xf32>
    %10 = vector.extract_strided_slice %3 {offsets = [0, 0, 0], sizes = [4, 4, 3], strides = [1, 1, 1]} : vector<5x5x3xf32> to vector<4x4x3xf32>
    %11 = vector.extract_strided_slice %3 {offsets = [0, 1, 0], sizes = [4, 4, 3], strides = [1, 1, 1]} : vector<5x5x3xf32> to vector<4x4x3xf32>
    %12 = arith.addf %10, %11 : vector<4x4x3xf32>
    %13 = vector.extract_strided_slice %3 {offsets = [1, 0, 0], sizes = [4, 4, 3], strides = [1, 1, 1]} : vector<5x5x3xf32> to vector<4x4x3xf32>
    %14 = arith.addf %12, %13 : vector<4x4x3xf32>
    %15 = vector.extract_strided_slice %3 {offsets = [1, 1, 0], sizes = [4, 4, 3], strides = [1, 1, 1]} : vector<5x5x3xf32> to vector<4x4x3xf32>
    %16 = arith.addf %14, %15 : vector<4x4x3xf32>
    %17 = vector.extract_strided_slice %5 {offsets = [0, 0, 0], sizes = [4, 4, 3], strides = [1, 1, 1]} : vector<5x5x3xf32> to vector<4x4x3xf32>
    %18 = arith.addf %16, %17 : vector<4x4x3xf32>
    %19 = vector.extract_strided_slice %5 {offsets = [1, 0, 0], sizes = [4, 4, 3], strides = [1, 1, 1]} : vector<5x5x3xf32> to vector<4x4x3xf32>
    %20 = arith.addf %18, %19 : vector<4x4x3xf32>
    %21 = vector.extract_strided_slice %7 {offsets = [0, 0, 0], sizes = [4, 4, 3], strides = [1, 1, 1]} : vector<5x5x3xf32> to vector<4x4x3xf32>
    %22 = arith.addf %20, %21 : vector<4x4x3xf32>
    %23 = vector.extract_strided_slice %7 {offsets = [0, 1, 0], sizes = [4, 4, 3], strides = [1, 1, 1]} : vector<5x5x3xf32> to vector<4x4x3xf32>
    %24 = arith.addf %22, %23 : vector<4x4x3xf32>
    %25 = vector.extract_strided_slice %9 {offsets = [0, 0, 0], sizes = [4, 4, 3], strides = [1, 1, 1]} : vector<5x5x3xf32> to vector<4x4x3xf32>
    %26 = arith.addf %24, %25 : vector<4x4x3xf32>
    %c0_4 = arith.constant 0 : index
    %c0_5 = arith.constant 0 : index
    %c0_6 = arith.constant 0 : index
    %27 = vector.load %arg2[%c0_4, %c0_5, %c0_6] : memref<4x4x3xf32, #tpu.memory_space<vmem>>, vector<4x4x3xf32>
    %28 = arith.mulf %26, %27 : vector<4x4x3xf32>
    %c0_7 = arith.constant 0 : index
    %c0_8 = arith.constant 0 : index
    %c0_9 = arith.constant 0 : index
    %c0_10 = arith.constant 0 : index
    %29 = vector.load %arg3[%c0_7, %c0_8, %c0_9, %c0_10] : memref<1x4x4x3xf32, #tpu.memory_space<vmem>>, vector<1x4x4x3xf32>
    %30 = vector.shape_cast %29 : vector<1x4x4x3xf32> to vector<4x4x3xf32>
    %31 = vector.shape_cast %28 : vector<4x4x3xf32> to vector<1x4x4x3xf32>
    tpu.vector_store %arg3[%c0_7, %c0_8, %c0_9, %c0_10], %31 {strides = array<i32>} : memref<1x4x4x3xf32, #tpu.memory_space<vmem>>, vector<1x4x4x3xf32>,
    return
  }
  func.func @transform_0(%arg0: i32) -> (i32, i32, i32, i32, i32) {
    %c0_i32 = arith.constant 0 : i32
    %c0_i32_0 = arith.constant 0 : i32
    %c0_i32_1 = arith.constant 0 : i32
    %c0_i32_2 = arith.constant 0 : i32
    %c0_i32_3 = arith.constant 0 : i32
    return %arg0, %c0_i32, %c0_i32_0, %c0_i32_1, %c0_i32_2 : i32, i32, i32, i32, i32
  }
  func.func @transform_1(%arg0: i32) -> (i32, i32, i32) {
    %c0_i32 = arith.constant 0 : i32
    %c0_i32_0 = arith.constant 0 : i32
    %c0_i32_1 = arith.constant 0 : i32
    %c0_i32_2 = arith.constant 0 : i32
    return %c0_i32, %c0_i32_0, %c0_i32_1 : i32, i32, i32
  }
  func.func @transform_2(%arg0: i32) -> (i32, i32, i32, i32) {
    %c0_i32 = arith.constant 0 : i32
    %c0_i32_0 = arith.constant 0 : i32
    %c0_i32_1 = arith.constant 0 : i32
    %c0_i32_2 = arith.constant 0 : i32
    return %arg0, %c0_i32, %c0_i32_0, %c0_i32_1 : i32, i32, i32, i32
  }
}

module attributes {stable_mosaic.version = 11 : i64} {
  func.func @kernel(%arg0: i32, %arg1: i32, %arg2: i32, %arg3: memref<24x128xbf16, #tpu.memory_space<vmem>>, %arg4: memref<128x128xbf16, #tpu.memory_space<vmem>>, %arg5: memref<1x128xf32, #tpu.memory_space<vmem>>, %arg6: memref<24x128xf32, #tpu.memory_space<vmem>>, %arg7: memref<24x128xf32, #tpu.memory_space<vmem>>) attributes {dimension_semantics = [#tpu.dimension_semantics<parallel>, #tpu.dimension_semantics<parallel>, #tpu.dimension_semantics<arbitrary>], iteration_bounds = array<i64: 1, 1, 1>, scalar_prefetch = 0 : i64, scratch_operands = 1 : i64, tpu.core_type = #tpu.core_type<tc>, window_params = [{transform_indices = @transform_0, window_bounds = array<i64: 24, 128>}, {transform_indices = @transform_1, window_bounds = array<i64: 128, 128>}, {transform_indices = @transform_2, window_bounds = array<i64: 1, 128>}, {transform_indices = @transform_3, window_bounds = array<i64: 24, 128>}]} {
    %c0_i32 = arith.constant 0 : i32
    %0 = arith.cmpi eq, %arg2, %c0_i32 : i32
    %1 = arith.extui %0 : i1 to i32
    %c0_i32_0 = arith.constant 0 : i32
    %2 = arith.cmpi ne, %1, %c0_i32_0 : i32
    scf.if %2 {
      %cst_10 = arith.constant 0.000000e+00 : f32
      %12 = vector.broadcast %cst_10 : f32 to vector<24x128xf32>
      %c0_11 = arith.constant 0 : index
      %c0_12 = arith.constant 0 : index
      %13 = vector.load %arg7[%c0_11, %c0_12] : memref<24x128xf32, #tpu.memory_space<vmem>>, vector<24x128xf32>
      tpu.vector_store %arg7[%c0_11, %c0_12], %12 {strides = array<i32>} : memref<24x128xf32, #tpu.memory_space<vmem>>, vector<24x128xf32>,
    } else {
    }
    %c0 = arith.constant 0 : index
    %c0_1 = arith.constant 0 : index
    %3 = vector.load %arg7[%c0, %c0_1] : memref<24x128xf32, #tpu.memory_space<vmem>>, vector<24x128xf32>
    %c0_2 = arith.constant 0 : index
    %c0_3 = arith.constant 0 : index
    %4 = vector.load %arg3[%c0_2, %c0_3] : memref<24x128xbf16, #tpu.memory_space<vmem>>, vector<24x128xbf16>
    %c0_4 = arith.constant 0 : index
    %c0_5 = arith.constant 0 : index
    %5 = vector.load %arg4[%c0_4, %c0_5] : memref<128x128xbf16, #tpu.memory_space<vmem>>, vector<128x128xbf16>
    %cst = arith.constant dense<0.000000e+00> : vector<24x128xf32>
    %6 = tpu.matmul %4, %5, %cst {dimension_numbers = #tpu.dot_dimension_numbers<[1], [0], [0], [1], [0, 0, 1, 1], [], []>} : vector<24x128xbf16>, vector<128x128xbf16>, vector<24x128xf32> -> vector<24x128xf32>
    %7 = arith.addf %3, %6 : vector<24x128xf32>
    %c0_6 = arith.constant 0 : index
    %c0_7 = arith.constant 0 : index
    %8 = vector.load %arg7[%c0_6, %c0_7] : memref<24x128xf32, #tpu.memory_space<vmem>>, vector<24x128xf32>
    tpu.vector_store %arg7[%c0_6, %c0_7], %7 {strides = array<i32>} : memref<24x128xf32, #tpu.memory_space<vmem>>, vector<24x128xf32>,
    %c0_i32_8 = arith.constant 0 : i32
    %9 = arith.cmpi eq, %arg2, %c0_i32_8 : i32
    %10 = arith.extui %9 : i1 to i32
    %c0_i32_9 = arith.constant 0 : i32
    %11 = arith.cmpi ne, %10, %c0_i32_9 : i32
    scf.if %11 {
      %c0_10 = arith.constant 0 : index
      %c0_11 = arith.constant 0 : index
      %12 = vector.load %arg7[%c0_10, %c0_11] : memref<24x128xf32, #tpu.memory_space<vmem>>, vector<24x128xf32>
      %c0_12 = arith.constant 0 : index
      %c0_13 = arith.constant 0 : index
      %13 = vector.load %arg5[%c0_12, %c0_13] : memref<1x128xf32, #tpu.memory_space<vmem>>, vector<1x128xf32>
      %14 = vector.broadcast %13 : vector<1x128xf32> to vector<24x128xf32>
      %15 = arith.addf %12, %14 : vector<24x128xf32>
      %cst_14 = arith.constant 0.000000e+00 : f32
      %16 = vector.broadcast %cst_14 : f32 to vector<24x128xf32>
      %17 = arith.cmpf oge, %15, %16 : vector<24x128xf32>
      %cst_15 = arith.constant 2.000000e-01 : f32
      %18 = vector.broadcast %cst_15 : f32 to vector<24x128xf32>
      %19 = arith.mulf %18, %15 : vector<24x128xf32>
      %20 = arith.select %17, %15, %19 : vector<24x128xi1>, vector<24x128xf32>
      %c0_16 = arith.constant 0 : index
      %c0_17 = arith.constant 0 : index
      %21 = vector.load %arg6[%c0_16, %c0_17] : memref<24x128xf32, #tpu.memory_space<vmem>>, vector<24x128xf32>
      tpu.vector_store %arg6[%c0_16, %c0_17], %20 {strides = array<i32>} : memref<24x128xf32, #tpu.memory_space<vmem>>, vector<24x128xf32>,
    } else {
    }
    return
  }
  func.func @transform_0(%arg0: i32, %arg1: i32, %arg2: i32) -> (i32, i32) {
    %c0_i32 = arith.constant 0 : i32
    return %arg0, %arg2 : i32, i32
  }
  func.func @transform_1(%arg0: i32, %arg1: i32, %arg2: i32) -> (i32, i32) {
    %c0_i32 = arith.constant 0 : i32
    return %arg2, %arg1 : i32, i32
  }
  func.func @transform_2(%arg0: i32, %arg1: i32, %arg2: i32) -> (i32, i32) {
    %c0_i32 = arith.constant 0 : i32
    %c0_i32_0 = arith.constant 0 : i32
    return %c0_i32, %arg1 : i32, i32
  }
  func.func @transform_3(%arg0: i32, %arg1: i32, %arg2: i32) -> (i32, i32) {
    %c0_i32 = arith.constant 0 : i32
    return %arg0, %arg1 : i32, i32
  }
}

module attributes {stable_mosaic.version = 11 : i64} {
  func.func @_in_apply_kernel(%arg0: i32, %arg1: i32, %arg2: memref<1x8x32xf32, #tpu.memory_space<vmem>>, %arg3: memref<1x1x32xf32, #tpu.memory_space<vmem>>, %arg4: memref<1x1x32xf32, #tpu.memory_space<vmem>>, %arg5: memref<1x8x32xf32, #tpu.memory_space<vmem>>) attributes {dimension_semantics = [#tpu.dimension_semantics<parallel>, #tpu.dimension_semantics<parallel>], iteration_bounds = array<i64: 2, 1>, scalar_prefetch = 0 : i64, scratch_operands = 0 : i64, tpu.core_type = #tpu.core_type<tc>, window_params = [{transform_indices = @transform_0, window_bounds = array<i64: 1, 8, 32>}, {transform_indices = @transform_1, window_bounds = array<i64: 1, 1, 32>}, {transform_indices = @transform_2, window_bounds = array<i64: 1, 1, 32>}, {transform_indices = @transform_3, window_bounds = array<i64: 1, 8, 32>}]} {
    %c0 = arith.constant 0 : index
    %c0_0 = arith.constant 0 : index
    %c0_1 = arith.constant 0 : index
    %0 = vector.load %arg3[%c0, %c0_0, %c0_1] : memref<1x1x32xf32, #tpu.memory_space<vmem>>, vector<1x1x32xf32>
    %1 = vector.shape_cast %0 : vector<1x1x32xf32> to vector<1x32xf32>
    %cst = arith.constant 2.500000e-01 : f32
    %2 = vector.broadcast %cst : f32 to vector<1x32xf32>
    %3 = arith.mulf %1, %2 : vector<1x32xf32>
    %c0_2 = arith.constant 0 : index
    %c0_3 = arith.constant 0 : index
    %c0_4 = arith.constant 0 : index
    %4 = vector.load %arg4[%c0_2, %c0_3, %c0_4] : memref<1x1x32xf32, #tpu.memory_space<vmem>>, vector<1x1x32xf32>
    %5 = vector.shape_cast %4 : vector<1x1x32xf32> to vector<1x32xf32>
    %cst_5 = arith.constant 2.500000e-01 : f32
    %6 = vector.broadcast %cst_5 : f32 to vector<1x32xf32>
    %7 = arith.mulf %5, %6 : vector<1x32xf32>
    %8 = arith.mulf %3, %3 : vector<1x32xf32>
    %9 = arith.subf %7, %8 : vector<1x32xf32>
    %cst_6 = arith.constant 0.000000e+00 : f32
    %10 = vector.broadcast %cst_6 : f32 to vector<1x32xf32>
    %11 = arith.maximumf %9, %10 : vector<1x32xf32>
    %cst_7 = arith.constant 9.99999974E-6 : f32
    %12 = vector.broadcast %cst_7 : f32 to vector<1x32xf32>
    %13 = arith.addf %11, %12 : vector<1x32xf32>
    %14 = math.rsqrt %13 : vector<1x32xf32>
    %c0_8 = arith.constant 0 : index
    %c0_9 = arith.constant 0 : index
    %c0_10 = arith.constant 0 : index
    %15 = vector.load %arg2[%c0_8, %c0_9, %c0_10] : memref<1x8x32xf32, #tpu.memory_space<vmem>>, vector<1x8x32xf32>
    %16 = vector.shape_cast %15 : vector<1x8x32xf32> to vector<8x32xf32>
    %17 = vector.broadcast %3 : vector<1x32xf32> to vector<8x32xf32>
    %18 = arith.subf %16, %17 : vector<8x32xf32>
    %19 = vector.broadcast %14 : vector<1x32xf32> to vector<8x32xf32>
    %20 = arith.mulf %18, %19 : vector<8x32xf32>
    %cst_11 = arith.constant 0.000000e+00 : f32
    %21 = vector.broadcast %cst_11 : f32 to vector<8x32xf32>
    %22 = arith.cmpf oge, %20, %21 : vector<8x32xf32>
    %cst_12 = arith.constant 2.000000e-01 : f32
    %23 = vector.broadcast %cst_12 : f32 to vector<8x32xf32>
    %24 = arith.mulf %23, %20 : vector<8x32xf32>
    %25 = arith.select %22, %20, %24 : vector<8x32xi1>, vector<8x32xf32>
    %c0_13 = arith.constant 0 : index
    %c0_14 = arith.constant 0 : index
    %c0_15 = arith.constant 0 : index
    %26 = vector.load %arg5[%c0_13, %c0_14, %c0_15] : memref<1x8x32xf32, #tpu.memory_space<vmem>>, vector<1x8x32xf32>
    %27 = vector.shape_cast %26 : vector<1x8x32xf32> to vector<8x32xf32>
    %28 = vector.shape_cast %25 : vector<8x32xf32> to vector<1x8x32xf32>
    tpu.vector_store %arg5[%c0_13, %c0_14, %c0_15], %28 {strides = array<i32>} : memref<1x8x32xf32, #tpu.memory_space<vmem>>, vector<1x8x32xf32>,
    return
  }
  func.func @transform_0(%arg0: i32, %arg1: i32) -> (i32, i32, i32) {
    %c0_i32 = arith.constant 0 : i32
    %c0_i32_0 = arith.constant 0 : i32
    return %arg0, %arg1, %c0_i32 : i32, i32, i32
  }
  func.func @transform_1(%arg0: i32, %arg1: i32) -> (i32, i32, i32) {
    %c0_i32 = arith.constant 0 : i32
    %c0_i32_0 = arith.constant 0 : i32
    %c0_i32_1 = arith.constant 0 : i32
    return %arg0, %c0_i32, %c0_i32_0 : i32, i32, i32
  }
  func.func @transform_2(%arg0: i32, %arg1: i32) -> (i32, i32, i32) {
    %c0_i32 = arith.constant 0 : i32
    %c0_i32_0 = arith.constant 0 : i32
    %c0_i32_1 = arith.constant 0 : i32
    return %arg0, %c0_i32, %c0_i32_0 : i32, i32, i32
  }
  func.func @transform_3(%arg0: i32, %arg1: i32) -> (i32, i32, i32) {
    %c0_i32 = arith.constant 0 : i32
    %c0_i32_0 = arith.constant 0 : i32
    return %arg0, %arg1, %c0_i32 : i32, i32, i32
  }
}

module attributes {stable_mosaic.version = 11 : i64} {
  func.func @_in_stats_kernel(%arg0: i32, %arg1: i32, %arg2: memref<1x8x32xf32, #tpu.memory_space<vmem>>, %arg3: memref<1x1x32xf32, #tpu.memory_space<vmem>>, %arg4: memref<1x1x32xf32, #tpu.memory_space<vmem>>) attributes {dimension_semantics = [#tpu.dimension_semantics<parallel>, #tpu.dimension_semantics<arbitrary>], iteration_bounds = array<i64: 2, 1>, scalar_prefetch = 0 : i64, scratch_operands = 0 : i64, tpu.core_type = #tpu.core_type<tc>, window_params = [{transform_indices = @transform_0, window_bounds = array<i64: 1, 8, 32>}, {transform_indices = @transform_1, window_bounds = array<i64: 1, 1, 32>}, {transform_indices = @transform_2, window_bounds = array<i64: 1, 1, 32>}]} {
    %c0_i32 = arith.constant 0 : i32
    %0 = arith.cmpi eq, %arg1, %c0_i32 : i32
    %1 = arith.extui %0 : i1 to i32
    %c0_i32_0 = arith.constant 0 : i32
    %2 = arith.cmpi ne, %1, %c0_i32_0 : i32
    scf.if %2 {
      %cst_16 = arith.constant 0.000000e+00 : f32
      %18 = vector.broadcast %cst_16 : f32 to vector<1x1x32xf32>
      %c0_17 = arith.constant 0 : index
      %c0_18 = arith.constant 0 : index
      %c0_19 = arith.constant 0 : index
      %19 = vector.load %arg3[%c0_17, %c0_18, %c0_19] : memref<1x1x32xf32, #tpu.memory_space<vmem>>, vector<1x1x32xf32>
      tpu.vector_store %arg3[%c0_17, %c0_18, %c0_19], %18 {strides = array<i32>} : memref<1x1x32xf32, #tpu.memory_space<vmem>>, vector<1x1x32xf32>,
      %cst_20 = arith.constant 0.000000e+00 : f32
      %20 = vector.broadcast %cst_20 : f32 to vector<1x1x32xf32>
      %c0_21 = arith.constant 0 : index
      %c0_22 = arith.constant 0 : index
      %c0_23 = arith.constant 0 : index
      %21 = vector.load %arg4[%c0_21, %c0_22, %c0_23] : memref<1x1x32xf32, #tpu.memory_space<vmem>>, vector<1x1x32xf32>
      tpu.vector_store %arg4[%c0_21, %c0_22, %c0_23], %20 {strides = array<i32>} : memref<1x1x32xf32, #tpu.memory_space<vmem>>, vector<1x1x32xf32>,
    } else {
    }
    %c0 = arith.constant 0 : index
    %c0_1 = arith.constant 0 : index
    %c0_2 = arith.constant 0 : index
    %3 = vector.load %arg2[%c0, %c0_1, %c0_2] : memref<1x8x32xf32, #tpu.memory_space<vmem>>, vector<1x8x32xf32>
    %4 = vector.shape_cast %3 : vector<1x8x32xf32> to vector<8x32xf32>
    %c0_3 = arith.constant 0 : index
    %c0_4 = arith.constant 0 : index
    %c0_5 = arith.constant 0 : index
    %5 = vector.load %arg3[%c0_3, %c0_4, %c0_5] : memref<1x1x32xf32, #tpu.memory_space<vmem>>, vector<1x1x32xf32>
    %cst = arith.constant dense<0.000000e+00> : vector<32xf32>
    %6 = vector.multi_reduction <add>, %4, %cst [0] : vector<8x32xf32> to vector<32xf32>
    %7 = vector.shape_cast %6 : vector<32xf32> to vector<1x32xf32>
    %8 = vector.shape_cast %7 : vector<1x32xf32> to vector<1x1x32xf32>
    %9 = arith.addf %5, %8 : vector<1x1x32xf32>
    %c0_6 = arith.constant 0 : index
    %c0_7 = arith.constant 0 : index
    %c0_8 = arith.constant 0 : index
    %10 = vector.load %arg3[%c0_6, %c0_7, %c0_8] : memref<1x1x32xf32, #tpu.memory_space<vmem>>, vector<1x1x32xf32>
    tpu.vector_store %arg3[%c0_6, %c0_7, %c0_8], %9 {strides = array<i32>} : memref<1x1x32xf32, #tpu.memory_space<vmem>>, vector<1x1x32xf32>,
    %c0_9 = arith.constant 0 : index
    %c0_10 = arith.constant 0 : index
    %c0_11 = arith.constant 0 : index
    %11 = vector.load %arg4[%c0_9, %c0_10, %c0_11] : memref<1x1x32xf32, #tpu.memory_space<vmem>>, vector<1x1x32xf32>
    %12 = arith.mulf %4, %4 : vector<8x32xf32>
    %cst_12 = arith.constant dense<0.000000e+00> : vector<32xf32>
    %13 = vector.multi_reduction <add>, %12, %cst_12 [0] : vector<8x32xf32> to vector<32xf32>
    %14 = vector.shape_cast %13 : vector<32xf32> to vector<1x32xf32>
    %15 = vector.shape_cast %14 : vector<1x32xf32> to vector<1x1x32xf32>
    %16 = arith.addf %11, %15 : vector<1x1x32xf32>
    %c0_13 = arith.constant 0 : index
    %c0_14 = arith.constant 0 : index
    %c0_15 = arith.constant 0 : index
    %17 = vector.load %arg4[%c0_13, %c0_14, %c0_15] : memref<1x1x32xf32, #tpu.memory_space<vmem>>, vector<1x1x32xf32>
    tpu.vector_store %arg4[%c0_13, %c0_14, %c0_15], %16 {strides = array<i32>} : memref<1x1x32xf32, #tpu.memory_space<vmem>>, vector<1x1x32xf32>,
    return
  }
  func.func @transform_0(%arg0: i32, %arg1: i32) -> (i32, i32, i32) {
    %c0_i32 = arith.constant 0 : i32
    %c0_i32_0 = arith.constant 0 : i32
    return %arg0, %arg1, %c0_i32 : i32, i32, i32
  }
  func.func @transform_1(%arg0: i32, %arg1: i32) -> (i32, i32, i32) {
    %c0_i32 = arith.constant 0 : i32
    %c0_i32_0 = arith.constant 0 : i32
    %c0_i32_1 = arith.constant 0 : i32
    return %arg0, %c0_i32, %c0_i32_0 : i32, i32, i32
  }
  func.func @transform_2(%arg0: i32, %arg1: i32) -> (i32, i32, i32) {
    %c0_i32 = arith.constant 0 : i32
    %c0_i32_0 = arith.constant 0 : i32
    %c0_i32_1 = arith.constant 0 : i32
    return %arg0, %c0_i32, %c0_i32_0 : i32, i32, i32
  }
}

module attributes {stable_mosaic.version = 11 : i64} {
  func.func @kernel(%arg0: i32, %arg1: i32, %arg2: i32, %arg3: memref<8x256xbf16, #tpu.memory_space<vmem>>, %arg4: memref<256x128xbf16, #tpu.memory_space<vmem>>, %arg5: memref<1x128xf32, #tpu.memory_space<vmem>>, %arg6: memref<8x128xf32, #tpu.memory_space<vmem>>, %arg7: memref<8x128xf32, #tpu.memory_space<vmem>>) attributes {dimension_semantics = [#tpu.dimension_semantics<parallel>, #tpu.dimension_semantics<parallel>, #tpu.dimension_semantics<arbitrary>], iteration_bounds = array<i64: 1, 1, 1>, scalar_prefetch = 0 : i64, scratch_operands = 1 : i64, tpu.core_type = #tpu.core_type<tc>, window_params = [{transform_indices = @transform_0, window_bounds = array<i64: 8, 256>}, {transform_indices = @transform_1, window_bounds = array<i64: 256, 128>}, {transform_indices = @transform_2, window_bounds = array<i64: 1, 128>}, {transform_indices = @transform_3, window_bounds = array<i64: 8, 128>}]} {
    %c0_i32 = arith.constant 0 : i32
    %0 = arith.cmpi eq, %arg2, %c0_i32 : i32
    %1 = arith.extui %0 : i1 to i32
    %c0_i32_0 = arith.constant 0 : i32
    %2 = arith.cmpi ne, %1, %c0_i32_0 : i32
    scf.if %2 {
      %cst_10 = arith.constant 0.000000e+00 : f32
      %12 = vector.broadcast %cst_10 : f32 to vector<8x128xf32>
      %c0_11 = arith.constant 0 : index
      %c0_12 = arith.constant 0 : index
      %13 = vector.load %arg7[%c0_11, %c0_12] : memref<8x128xf32, #tpu.memory_space<vmem>>, vector<8x128xf32>
      tpu.vector_store %arg7[%c0_11, %c0_12], %12 {strides = array<i32>} : memref<8x128xf32, #tpu.memory_space<vmem>>, vector<8x128xf32>,
    } else {
    }
    %c0 = arith.constant 0 : index
    %c0_1 = arith.constant 0 : index
    %3 = vector.load %arg7[%c0, %c0_1] : memref<8x128xf32, #tpu.memory_space<vmem>>, vector<8x128xf32>
    %c0_2 = arith.constant 0 : index
    %c0_3 = arith.constant 0 : index
    %4 = vector.load %arg3[%c0_2, %c0_3] : memref<8x256xbf16, #tpu.memory_space<vmem>>, vector<8x256xbf16>
    %c0_4 = arith.constant 0 : index
    %c0_5 = arith.constant 0 : index
    %5 = vector.load %arg4[%c0_4, %c0_5] : memref<256x128xbf16, #tpu.memory_space<vmem>>, vector<256x128xbf16>
    %cst = arith.constant dense<0.000000e+00> : vector<8x128xf32>
    %6 = tpu.matmul %4, %5, %cst {dimension_numbers = #tpu.dot_dimension_numbers<[1], [0], [0], [1], [0, 0, 1, 1], [], []>} : vector<8x256xbf16>, vector<256x128xbf16>, vector<8x128xf32> -> vector<8x128xf32>
    %7 = arith.addf %3, %6 : vector<8x128xf32>
    %c0_6 = arith.constant 0 : index
    %c0_7 = arith.constant 0 : index
    %8 = vector.load %arg7[%c0_6, %c0_7] : memref<8x128xf32, #tpu.memory_space<vmem>>, vector<8x128xf32>
    tpu.vector_store %arg7[%c0_6, %c0_7], %7 {strides = array<i32>} : memref<8x128xf32, #tpu.memory_space<vmem>>, vector<8x128xf32>,
    %c0_i32_8 = arith.constant 0 : i32
    %9 = arith.cmpi eq, %arg2, %c0_i32_8 : i32
    %10 = arith.extui %9 : i1 to i32
    %c0_i32_9 = arith.constant 0 : i32
    %11 = arith.cmpi ne, %10, %c0_i32_9 : i32
    scf.if %11 {
      %c0_10 = arith.constant 0 : index
      %c0_11 = arith.constant 0 : index
      %12 = vector.load %arg7[%c0_10, %c0_11] : memref<8x128xf32, #tpu.memory_space<vmem>>, vector<8x128xf32>
      %c0_12 = arith.constant 0 : index
      %c0_13 = arith.constant 0 : index
      %13 = vector.load %arg5[%c0_12, %c0_13] : memref<1x128xf32, #tpu.memory_space<vmem>>, vector<1x128xf32>
      %14 = vector.broadcast %13 : vector<1x128xf32> to vector<8x128xf32>
      %15 = arith.addf %12, %14 : vector<8x128xf32>
      %c0_14 = arith.constant 0 : index
      %c0_15 = arith.constant 0 : index
      %16 = vector.load %arg6[%c0_14, %c0_15] : memref<8x128xf32, #tpu.memory_space<vmem>>, vector<8x128xf32>
      tpu.vector_store %arg6[%c0_14, %c0_15], %15 {strides = array<i32>} : memref<8x128xf32, #tpu.memory_space<vmem>>, vector<8x128xf32>,
    } else {
    }
    return
  }
  func.func @transform_0(%arg0: i32, %arg1: i32, %arg2: i32) -> (i32, i32) {
    %c0_i32 = arith.constant 0 : i32
    return %arg0, %arg2 : i32, i32
  }
  func.func @transform_1(%arg0: i32, %arg1: i32, %arg2: i32) -> (i32, i32) {
    %c0_i32 = arith.constant 0 : i32
    return %arg2, %arg1 : i32, i32
  }
  func.func @transform_2(%arg0: i32, %arg1: i32, %arg2: i32) -> (i32, i32) {
    %c0_i32 = arith.constant 0 : i32
    %c0_i32_0 = arith.constant 0 : i32
    return %c0_i32, %arg1 : i32, i32
  }
  func.func @transform_3(%arg0: i32, %arg1: i32, %arg2: i32) -> (i32, i32) {
    %c0_i32 = arith.constant 0 : i32
    return %arg0, %arg1 : i32, i32
  }
}

</mosaic_0001>

<bundles_post_ra>
// kernel: multiscale_discriminator_forward.35
= control target key start
LH: loop header
LB: loop body
LE: loop exit
PB: predicated region body
PF: predicated region fallthrough
CT: control target
= control target key end

     0   :  { %v648_v0 = vmov 0.0   ;;  %vm649_vm0 = vmmov 0   ;;  %s854_s1 = inlined_call_operand.vmem [shape: bf16[128,128], index: 1, kind: input, shape index: {}]   ;;  %s855_s0 = inlined_call_operand.vmem [shape: bf16[168,128], index: 0, kind: input, shape index: {}]   ;;  %s856_s2 = inlined_call_operand.vmem [shape: f32[1,128], index: 2, kind: input, shape index: {}]   ;;  %s857_s3 = inlined_call_operand.vmem [shape: f32[168,128], index: 3, kind: output, shape index: {}]  }
   0x1   :  { %551 = vmatprep.subr.bf16.mxu0 %v648_v0  ;;  %v629_v1 = vld [vmem:[%s854_s1 + $0x38] sm:$0xff]   ;;  %611 = vmatprep.subr.bf16.mxu1 %v648_v0  ;;  %v630_v2 = vld [vmem:[%s854_s1 + $0x30] sm:$0xff]   ;;  %v631_v3 = vld [vmem:[%s854_s1 + $0x28] sm:$0xff]  }
   0x2   :  { %567 = vmatprep.mubr.msk.bf16.mxu0 %vm649_vm0, %v648_v0  ;;  %591 = vmatprep.mubr.msk.bf16.mxu1 %vm649_vm0, %v648_v0  ;;  %v632_v4 = vld [vmem:[%s854_s1 + $0x20] sm:$0xff]   ;;  %v633_v5 = vld [vmem:[%s854_s1 + $0x18] sm:$0xff]   ;;  %v634_v6 = vld [vmem:[%s854_s1 + $0x10] sm:$0xff]  }
   0x3   :  { %552 = vmatpush3.bf16.msra.mxu0 %v629_v1  ;;  %619 = vmatpush3.bf16.msra.mxu1 %v629_v1  ;;  %v635_v7 = vld [vmem:[%s854_s1 + $0x8] sm:$0xff]   ;;  %v636_v8 = vld [vmem:[%s854_s1] sm:$0xff]   ;;  %v638_v10 = vld [vmem:[%s855_s0 + $0x30] sm:$0xff]  }
   0x4   :  { %553 = vmatprep.subr.bf16.mxu0 %v648_v0  ;;  %612 = vmatprep.subr.bf16.mxu1 %v648_v0  ;;  %v637_v9 = vld [vmem:[%s855_s0] sm:$0xff]   ;;  %v639_v11 = vld [vmem:[%s855_s0 + $0x8] sm:$0xff]   ;;  %v640_v12 = vld [vmem:[%s855_s0 + $0x38] sm:$0xff]  }
   0x5   :  { %v641_v13 = vld [vmem:[%s855_s0 + $0x10] sm:$0xff]   ;;  %v642_v14 = vld [vmem:[%s855_s0 + $0x40] sm:$0xff]   ;;  %v643_v15 = vld [vmem:[%s855_s0 + $0x18] sm:$0xff]  }
   0x6   :  { %v644_v16 = vld [vmem:[%s855_s0 + $0x48] sm:$0xff]   ;;  %v645_v17 = vld [vmem:[%s855_s0 + $0x20] sm:$0xff]   ;;  %v646_v18 = vld [vmem:[%s855_s0 + $0x50] ss:$0 sps:$4 sm:$0xff]  }
   0x7   :  { %554 = vmatpush3.bf16.msra.mxu0 %v630_v2  ;;  %620 = vmatpush3.bf16.msra.mxu1 %v630_v2  ;;  %v647_v19 = vld [vmem:[%s855_s0 + $0x28] sm:$0xff]   ;;  %v768_v20 = vld [vmem:[%s856_s2] ss:$0 sm:$0xff] }
   0x8   :  { %555 = vmatprep.subr.bf16.mxu0 %v648_v0  ;;  %613 = vmatprep.subr.bf16.mxu1 %v648_v0 }
   0xb   :  { %556 = vmatpush3.bf16.msra.mxu0 %v631_v3  ;;  %621 = vmatpush3.bf16.msra.mxu1 %v631_v3 }
   0xc   :  { %557 = vmatprep.subr.bf16.mxu0 %v648_v0  ;;  %614 = vmatprep.subr.bf16.mxu1 %v648_v0 }
   0xf   :  { %558 = vmatpush3.bf16.msra.mxu0 %v632_v4  ;;  %622 = vmatpush3.bf16.msra.mxu1 %v632_v4 }
  0x10   :  { %559 = vmatprep.subr.bf16.mxu0 %v648_v0  ;;  %615 = vmatprep.subr.bf16.mxu1 %v648_v0 }
  0x13   :  { %560 = vmatpush3.bf16.msra.mxu0 %v633_v5  ;;  %623 = vmatpush3.bf16.msra.mxu1 %v633_v5 }
  0x14   :  { %561 = vmatprep.subr.bf16.mxu0 %v648_v0  ;;  %616 = vmatprep.subr.bf16.mxu1 %v648_v0 }
  0x17   :  { %562 = vmatpush3.bf16.msra.mxu0 %v634_v6  ;;  %624 = vmatpush3.bf16.msra.mxu1 %v634_v6 }
  0x18   :  { %563 = vmatprep.subr.bf16.mxu0 %v648_v0  ;;  %617 = vmatprep.subr.bf16.mxu1 %v648_v0 }
  0x1b   :  { %564 = vmatpush3.bf16.msra.mxu0 %v635_v7  ;;  %625 = vmatpush3.bf16.msra.mxu1 %v635_v7 }
  0x1c   :  { %565 = vmatprep.subr.bf16.mxu0 %v648_v0  ;;  %618 = vmatprep.subr.bf16.mxu1 %v648_v0 }
  0x1f   :  { %566 = vmatpush3.bf16.msra.mxu0 %v636_v8  ;;  %626 = vmatpush3.bf16.msra.mxu1 %v636_v8 }
  0x22   :  { %568 = vmatmul.mubr.bf16.vlgmr.msra.gmra.mxu0 %v637_v9  ;;  %592 = vmatmul.mubr.bf16.vlgmr.msra.gmra.mxu1 %v638_v10 }
  0x23   :  { %571 = vmatprep.mubr.msk.bf16.mxu0 %vm649_vm0, %v648_v0  ;;  %595 = vmatprep.mubr.msk.bf16.mxu1 %vm649_vm0, %v648_v0 }
  0x2a   :  { %572 = vmatmul.mubr.bf16.gmra.mxu0 %v639_v11  ;;  %596 = vmatmul.mubr.bf16.gmra.mxu1 %v640_v12 }
  0x2b   :  { %575 = vmatprep.mubr.msk.bf16.mxu0 %vm649_vm0, %v648_v0  ;;  %599 = vmatprep.mubr.msk.bf16.mxu1 %vm649_vm0, %v648_v0 }
  0x32   :  { %576 = vmatmul.mubr.bf16.gmra.mxu0 %v641_v13  ;;  %600 = vmatmul.mubr.bf16.gmra.mxu1 %v642_v14 }
  0x33   :  { %579 = vmatprep.mubr.msk.bf16.mxu0 %vm649_vm0, %v648_v0  ;;  %603 = vmatprep.mubr.msk.bf16.mxu1 %vm649_vm0, %v648_v0 }
  0x3a   :  { %580 = vmatmul.mubr.bf16.gmra.mxu0 %v643_v15  ;;  %604 = vmatmul.mubr.bf16.gmra.mxu1 %v644_v16 }
  0x3b   :  { %583 = vmatprep.mubr.msk.bf16.mxu0 %vm649_vm0, %v648_v0  ;;  %607 = vmatprep.mubr.msk.bf16.mxu1 %vm649_vm0, %v648_v0 }
  0x42   :  { %584 = vmatmul.mubr.bf16.gmra.mxu0 %v645_v17  ;;  %608 = vmatmul.mubr.bf16.gmra.mxu1 %v646_v18 }
  0x43   :  { %587 = vmatprep.mubr.msk.bf16.mxu0 %vm649_vm0, %v648_v0 }
  0x4a   :  { %588 = vmatmul.mubr.bf16.gmra.mxu0 %v647_v19 }
  0xe2   :  { %v244_v21 = vpop.f32.mrf.mxu0  ;;  %v292_v22 = vpop.f32.mrf.mxu1 }
  0xe3   :  { %v403_v23 = vadd.f32 %v768_v20, %v244_v21  ;;  %v415_v24 = vadd.f32 %v768_v20, %v292_v22 }
  0xe4   :  { %v569_v25 = vpop.f32.mrf.mxu0  ;;  %v593_v26 = vpop.f32.mrf.mxu1 }
  0xe5   :  { %vm424_vm1 = vcmp.ge.f32.partialorder %v403_v23, 0.0  ;;  %v445_v27 = vmul.f32 0.2, %v403_v23  ;;  %vm436_vm2 = vcmp.ge.f32.partialorder %v415_v24, 0.0  ;;  %v457_v28 = vmul.f32 0.2, %v415_v24 }
  0xe6   :  { %v247_v29 = vpop.f32.mrf.mxu0  ;;  %v295_v30 = vpop.f32.mrf.mxu1 }
  0xe7   :  { %v466_v31 = vsel %vm424_vm1, %v403_v23, %v445_v27  ;;  %v404_v32 = vadd.f32 %v768_v20, %v247_v29  ;;  %v478_v33 = vsel %vm436_vm2, %v415_v24, %v457_v28  ;;  %v416_v34 = vadd.f32 %v768_v20, %v295_v30 }
  0xe8   :  { %487 = vst [vmem:[%s857_s3] sm:$0xff] %v466_v31  ;;  %v570_v35 = vpop.f32.mrf.mxu0  ;;  %499 = vst [vmem:[%s857_s3 + $0x60] sm:$0xff] %v478_v33  ;;  %v594_v36 = vpop.f32.mrf.mxu1 }
  0xe9   :  { %vm425_vm3 = vcmp.ge.f32.partialorder %v404_v32, 0.0  ;;  %v446_v37 = vmul.f32 0.2, %v404_v32  ;;  %vm437_vm4 = vcmp.ge.f32.partialorder %v416_v34, 0.0  ;;  %v458_v38 = vmul.f32 0.2, %v416_v34 }
  0xea   :  { %v252_v39 = vpop.f32.mrf.mxu0  ;;  %v300_v40 = vpop.f32.mrf.mxu1 }
  0xeb   :  { %v467_v41 = vsel %vm425_vm3, %v404_v32, %v446_v37  ;;  %v405_v42 = vadd.f32 %v768_v20, %v252_v39  ;;  %v479_v43 = vsel %vm437_vm4, %v416_v34, %v458_v38  ;;  %v417_v44 = vadd.f32 %v768_v20, %v300_v40 }
  0xec   :  { %488 = vst [vmem:[%s857_s3 + $0x8] sm:$0xff] %v467_v41  ;;  %v573_v45 = vpop.f32.mrf.mxu0  ;;  %500 = vst [vmem:[%s857_s3 + $0x68] sm:$0xff] %v479_v43  ;;  %v597_v46 = vpop.f32.mrf.mxu1 }
  0xed   :  { %vm426_vm5 = vcmp.ge.f32.partialorder %v405_v42, 0.0  ;;  %v447_v47 = vmul.f32 0.2, %v405_v42  ;;  %vm438_vm6 = vcmp.ge.f32.partialorder %v417_v44, 0.0  ;;  %v459_v48 = vmul.f32 0.2, %v417_v44 }
  0xee   :  { %v255_v49 = vpop.f32.mrf.mxu0  ;;  %v303_v50 = vpop.f32.mrf.mxu1 }
  0xef   :  { %v468_v51 = vsel %vm426_vm5, %v405_v42, %v447_v47  ;;  %v406_v52 = vadd.f32 %v768_v20, %v255_v49  ;;  %v480_v53 = vsel %vm438_vm6, %v417_v44, %v459_v48  ;;  %v418_v54 = vadd.f32 %v768_v20, %v303_v50 }
  0xf0   :  { %489 = vst [vmem:[%s857_s3 + $0x10] sm:$0xff] %v468_v51  ;;  %v574_v55 = vpop.f32.mrf.mxu0  ;;  %501 = vst [vmem:[%s857_s3 + $0x70] sm:$0xff] %v480_v53  ;;  %v598_v56 = vpop.f32.mrf.mxu1 }
  0xf1   :  { %vm427_vm7 = vcmp.ge.f32.partialorder %v406_v52, 0.0  ;;  %v448_v57 = vmul.f32 0.2, %v406_v52  ;;  %vm439_vm8 = vcmp.ge.f32.partialorder %v418_v54, 0.0  ;;  %v460_v58 = vmul.f32 0.2, %v418_v54 }
  0xf2   :  { %v260_v59 = vpop.f32.mrf.mxu0  ;;  %v308_v60 = vpop.f32.mrf.mxu1 }
  0xf3   :  { %v469_v61 = vsel %vm427_vm7, %v406_v52, %v448_v57  ;;  %v407_v62 = vadd.f32 %v768_v20, %v260_v59  ;;  %v481_v63 = vsel %vm439_vm8, %v418_v54, %v460_v58  ;;  %v419_v0 = vadd.f32 %v768_v20, %v308_v60 }
  0xf4   :  { %490 = vst [vmem:[%s857_s3 + $0x18] sm:$0xff] %v469_v61  ;;  %v577_v1 = vpop.f32.mrf.mxu0  ;;  %502 = vst [vmem:[%s857_s3 + $0x78] sm:$0xff] %v481_v63  ;;  %v601_v2 = vpop.f32.mrf.mxu1 }
  0xf5   :  { %vm428_vm9 = vcmp.ge.f32.partialorder %v407_v62, 0.0  ;;  %v449_v3 = vmul.f32 0.2, %v407_v62  ;;  %vm440_vm10 = vcmp.ge.f32.partialorder %v419_v0, 0.0  ;;  %v461_v4 = vmul.f32 0.2, %v419_v0 }
  0xf6   :  { %v263_v5 = vpop.f32.mrf.mxu0  ;;  %v311_v6 = vpop.f32.mrf.mxu1 }
  0xf7   :  { %v470_v7 = vsel %vm428_vm9, %v407_v62, %v449_v3  ;;  %v408_v8 = vadd.f32 %v768_v20, %v263_v5  ;;  %v482_v9 = vsel %vm440_vm10, %v419_v0, %v461_v4  ;;  %v420_v10 = vadd.f32 %v768_v20, %v311_v6 }
  0xf8   :  { %491 = vst [vmem:[%s857_s3 + $0x20] sm:$0xff] %v470_v7  ;;  %v578_v11 = vpop.f32.mrf.mxu0  ;;  %503 = vst [vmem:[%s857_s3 + $0x80] sm:$0xff] %v482_v9  ;;  %v602_v12 = vpop.f32.mrf.mxu1 }
  0xf9   :  { %vm429_vm11 = vcmp.ge.f32.partialorder %v408_v8, 0.0  ;;  %v450_v13 = vmul.f32 0.2, %v408_v8  ;;  %vm441_vm12 = vcmp.ge.f32.partialorder %v420_v10, 0.0  ;;  %v462_v14 = vmul.f32 0.2, %v420_v10 }
  0xfa   :  { %v268_v15 = vpop.f32.mrf.mxu0  ;;  %v316_v16 = vpop.f32.mrf.mxu1 }
  0xfb   :  { %v471_v17 = vsel %vm429_vm11, %v408_v8, %v450_v13  ;;  %v409_v18 = vadd.f32 %v768_v20, %v268_v15  ;;  %v483_v19 = vsel %vm441_vm12, %v420_v10, %v462_v14  ;;  %v421_v21 = vadd.f32 %v768_v20, %v316_v16 }
  0xfc   :  { %492 = vst [vmem:[%s857_s3 + $0x28] sm:$0xff] %v471_v17  ;;  %v581_v22 = vpop.f32.mrf.mxu0  ;;  %504 = vst [vmem:[%s857_s3 + $0x88] sm:$0xff] %v483_v19  ;;  %v605_v23 = vpop.f32.mrf.mxu1 }
  0xfd   :  { %vm430_vm13 = vcmp.ge.f32.partialorder %v409_v18, 0.0  ;;  %v451_v24 = vmul.f32 0.2, %v409_v18  ;;  %vm442_vm14 = vcmp.ge.f32.partialorder %v421_v21, 0.0  ;;  %v463_v25 = vmul.f32 0.2, %v421_v21 }
  0xfe   :  { %v271_v26 = vpop.f32.mrf.mxu0  ;;  %v319_v27 = vpop.f32.mrf.mxu1 }
  0xff   :  { %v472_v28 = vsel %vm430_vm13, %v409_v18, %v451_v24  ;;  %v410_v29 = vadd.f32 %v768_v20, %v271_v26  ;;  %v484_v30 = vsel %vm442_vm14, %v421_v21, %v463_v25  ;;  %v422_v31 = vadd.f32 %v768_v20, %v319_v27 }
 0x100   :  { %493 = vst [vmem:[%s857_s3 + $0x30] sm:$0xff] %v472_v28  ;;  %v582_v32 = vpop.f32.mrf.mxu0  ;;  %505 = vst [vmem:[%s857_s3 + $0x90] sm:$0xff] %v484_v30  ;;  %v606_v33 = vpop.f32.mrf.mxu1 }
 0x101   :  { %vm431_vm15 = vcmp.ge.f32.partialorder %v410_v29, 0.0  ;;  %v452_v34 = vmul.f32 0.2, %v410_v29  ;;  %vm443_vm0 = vcmp.ge.f32.partialorder %v422_v31, 0.0  ;;  %v464_v35 = vmul.f32 0.2, %v422_v31 }
 0x102   :  { %v276_v36 = vpop.f32.mrf.mxu0  ;;  %v324_v37 = vpop.f32.mrf.mxu1 }
 0x103   :  { %v473_v38 = vsel %vm431_vm15, %v410_v29, %v452_v34  ;;  %v411_v39 = vadd.f32 %v768_v20, %v276_v36  ;;  %v485_v40 = vsel %vm443_vm0, %v422_v31, %v464_v35  ;;  %v423_v41 = vadd.f32 %v768_v20, %v324_v37 }
 0x104   :  { %494 = vst [vmem:[%s857_s3 + $0x38] sm:$0xff] %v473_v38  ;;  %v585_v42 = vpop.f32.mrf.mxu0  ;;  %506 = vst [vmem:[%s857_s3 + $0x98] sm:$0xff] %v485_v40  ;;  %v609_v43 = vpop.f32.mrf.mxu1 }
 0x105   :  { %vm432_vm1 = vcmp.ge.f32.partialorder %v411_v39, 0.0  ;;  %v453_v44 = vmul.f32 0.2, %v411_v39  ;;  %vm444_vm2 = vcmp.ge.f32.partialorder %v423_v41, 0.0  ;;  %v465_v45 = vmul.f32 0.2, %v423_v41 }
 0x106   :  { %v279_v46 = vpop.f32.mrf.mxu0  ;;  %v327_v47 = vpop.f32.mrf.mxu1 }
 0x107   :  { %v474_v48 = vsel %vm432_vm1, %v411_v39, %v453_v44  ;;  %v412_v49 = vadd.f32 %v768_v20, %v279_v46  ;;  %v486_v50 = vsel %vm444_vm2, %v423_v41, %v465_v45 }
 0x108   :  { %495 = vst [vmem:[%s857_s3 + $0x40] sm:$0xff] %v474_v48  ;;  %v586_v51 = vpop.f32.mrf.mxu0  ;;  %507 = vst [vmem:[%s857_s3 + $0xa0] sm:$0xff] %v486_v50  ;;  %v610_v52 = vpop.f32.mrf.mxu1 }
 0x109   :  { %vm433_vm3 = vcmp.ge.f32.partialorder %v412_v49, 0.0  ;;  %v454_v53 = vmul.f32 0.2, %v412_v49 }
 0x10a   :  { %v284_v54 = vpop.f32.mrf.mxu0 }
 0x10b   :  { %v475_v55 = vsel %vm433_vm3, %v412_v49, %v454_v53  ;;  %v413_v56 = vadd.f32 %v768_v20, %v284_v54 }
 0x10c   :  { %496 = vst [vmem:[%s857_s3 + $0x48] sm:$0xff] %v475_v55  ;;  %v589_v57 = vpop.f32.mrf.mxu0 }
 0x10d   :  { %vm434_vm4 = vcmp.ge.f32.partialorder %v413_v56, 0.0  ;;  %v455_v58 = vmul.f32 0.2, %v413_v56 }
 0x10e   :  { %v287_v59 = vpop.f32.mrf.mxu0 }
 0x10f   :  { %v476_v60 = vsel %vm434_vm4, %v413_v56, %v455_v58  ;;  %v414_v61 = vadd.f32 %v768_v20, %v287_v59 }
 0x110   :  { %497 = vst [vmem:[%s857_s3 + $0x50] sm:$0xff] %v476_v60  ;;  %v590_v62 = vpop.f32.mrf.mxu0 }
 0x111   :  { %vm435_vm5 = vcmp.ge.f32.partialorder %v414_v61, 0.0  ;;  %v456_v63 = vmul.f32 0.2, %v414_v61 }
 0x113   :  { %v477_v0 = vsel %vm435_vm5, %v414_v61, %v456_v63 }
 0x114   :  { %498 = vst [vmem:[%s857_s3 + $0x58] sm:$0xff] %v477_v0 }

// kernel: multiscale_discriminator_forward.38
= control target key start
LH: loop header
LB: loop body
LE: loop exit
PB: predicated region body
PF: predicated region fallthrough
CT: control target
= control target key end

     0   :  { %s476_s12 = smov 0   ;;  %s478_s13 = smov 0   ;;  %s524_s0 = inlined_call_operand.vmem [shape: f32[2,32,32], index: 0, kind: input, shape index: {}]   ;;  %s525_s1 = inlined_call_operand.vmem [shape: f32[2,1,32], index: 1, kind: input, shape index: {}]   ;;  %s526_s2 = inlined_call_operand.vmem [shape: f32[2,1,32], index: 2, kind: input, shape index: {}]   ;;  %s527_s3 = inlined_call_operand.vmem [shape: f32[2,32,32], index: 3, kind: output, shape index: {}]  }
   0x1   :  { %s480_s14 = smov 0  }
   0x2 LB: > { %s25_s15 = sadd.s32 1, %s450_s13  ;;  %p397_p0 = scmp.ge.s32.totalorder %s454_s14, 1  ;;  %s454_s14 = sphi %s480_s14, %s13_s14   ;;  %s450_s13 = sphi %s478_s13, %s529_s13   ;;  %s446_s12 = sphi %s476_s12, %s528_s12  }
   0x3   : > { %p27_p1 = scmp.ge.s32.totalorder %s25_s15, 2  ;;  %p174_p2 = scmp.lt.s32.totalorder %s454_s14, 3 }
   0x5   : > { %s531_s15 = smov (%p27_p1, %s25_s15), 0  ;;  %p175_p3 = pnand %p397_p0, %p174_p2 }
   0x6   : > { %p213_p4 = scmp.lt.s32.totalorder (!%p175_p3), %s446_s12, 1 }
   0x7   : > { %178 = sbr.rel (%p175_p3) target bundleno = 48 (0x30), region = 32 }
   0xc   : > { %s533_s12 = smov (!%p213_p4, %s446_s12), 1  ;;  %v252_v7 = vlaneseq  ;;  %vm283_vm0 = vcmask 261120  }
   0xd   : > { %s224_s18 = scalar_lea.vmem %s525_s1, %s533_s12  ;;  %s227_s21 = scalar_lea.vmem %s526_s2, %s533_s12 }
   0xe   : > { %v238_v0 = vld [vmem:[%s224_s18] sm:$0x1]  ;;  %v253_v9 = vshrl.u32 %v252_v7, 7  ;;  %s404_s22 = sshll.u32 %s533_s12, 5 }
   0xf   : > { %v239_v1 = vmul.f32 0.04, %v238_v0  ;;  %v240_v2 = vld [vmem:[%s227_s21] sm:$0x1]  ;;  %s220_s25 = scalar_lea.vmem %s524_s0, %s404_s22  ;;  %s236_s28 = scalar_lea.vmem %s527_s3, %s404_s22 }
  0x10   : > { %v241_v3 = vmul.f32 0.04, %v240_v2  ;;  %v254_v10 = vsub.s32 0, %v253_v9  ;;  %v247_v11 = vld [vmem:[%s220_s25] sm:$0xff]  ;;  %v248_v13 = vld [vmem:[%s220_s25 + $0x8] sm:$0xff]  ;;  %v249_v14 = vld [vmem:[%s220_s25 + $0x10] sm:$0xff] }
  0x11   : > { %v242_v4 = vmul.f32 %v239_v1, %v239_v1  ;;  %v250_v15 = vld [vmem:[%s220_s25 + $0x18] sm:$0xff] }
  0x12   : > { %v255_v12 = vrot.slane %v239_v1, %v254_v10 }
  0x13   : > { %v243_v5 = vsub.f32 %v241_v3, %v242_v4 }
  0x14   : > { %v257_v16 = vsub.f32 %v247_v11, %v255_v12  ;;  %v258_v17 = vsub.f32 %v248_v13, %v255_v12  ;;  %v259_v18 = vsub.f32 %v249_v14, %v255_v12  ;;  %v260_v19 = vsub.f32 %v250_v15, %v255_v12 }
  0x15   : > { %v244_v6 = vmax.f32 %v243_v5, 0.0 }
  0x17   : > { %v245_v8 = vadd.f32 1e-05, %v244_v6 }
  0x19   : > { %430 = vrsqrt.f32 %v245_v8 }
  0x26   : > { %v431_v20 = vpop.eup %430 }
  0x27   : > { %v265_v21 = vrot.slane %v431_v20, %v254_v10 }
  0x29   : > { %v267_v22 = vmul.f32 %v265_v21, %v257_v16  ;;  %v268_v23 = vmul.f32 %v265_v21, %v258_v17  ;;  %v269_v24 = vmul.f32 %v265_v21, %v259_v18  ;;  %v270_v25 = vmul.f32 %v265_v21, %v260_v19 }
  0x2b   : > { %vm271_vm1 = vcmp.ge.f32.partialorder %v267_v22, 0.0  ;;  %v275_v26 = vmul.f32 0.2, %v267_v22  ;;  %vm272_vm2 = vcmp.ge.f32.partialorder %v268_v23, 0.0  ;;  %v276_v27 = vmul.f32 0.2, %v268_v23 }
  0x2c   : > { %vm273_vm3 = vcmp.ge.f32.partialorder %v269_v24, 0.0  ;;  %v277_v28 = vmul.f32 0.2, %v269_v24  ;;  %vm274_vm4 = vcmp.ge.f32.partialorder %v270_v25, 0.0  ;;  %v278_v29 = vmul.f32 0.2, %v270_v25 }
  0x2d   : > { %v279_v30 = vsel %vm271_vm1, %v267_v22, %v275_v26  ;;  %v280_v31 = vsel %vm272_vm2, %v268_v23, %v276_v27 }
  0x2e   : > { %284 = vst.msk [vmem:[%s236_s28] sm:$0xff] %vm283_vm0, %v279_v30  ;;  %285 = vst.msk [vmem:[%s236_s28 + $0x8] sm:$0xff] %vm283_vm0, %v280_v31  ;;  %v281_v32 = vsel %vm273_vm3, %v269_v24, %v277_v28  ;;  %v282_v33 = vsel %vm274_vm4, %v270_v25, %v278_v29 }
  0x2f   : > { %286 = vst.msk [vmem:[%s236_s28 + $0x10] sm:$0xff] %vm283_vm0, %v281_v32  ;;  %287 = vst.msk [vmem:[%s236_s28 + $0x18] sm:$0xff] %vm283_vm0, %v282_v33 }
  0x30 PF: > { %s13_s14 = sadd.s32 1, %s454_s14   ;;  %s528_s12 = smov %s450_s13 }
  0x31   : > { %p10_p5 = scmp.ge.s32.totalorder %s13_s14, 4   ;;  %s529_s13 = smov %s531_s15 }
  0x33   :  { %12 = sbr.rel (!%p10_p5) target bundleno = 2 (0x2), region = 68 }

// kernel: multiscale_discriminator_forward.37
= control target key start
LH: loop header
LB: loop body
LE: loop exit
PB: predicated region body
PF: predicated region fallthrough
CT: control target
= control target key end

     0   :  { %s387_s9 = smov 0   ;;  %s389_s10 = smov 0   ;;  %s445_s0 = inlined_call_operand.vmem [shape: f32[2,32,32], index: 0, kind: input, shape index: {}]   ;;  %s446_s1 = inlined_call_operand.vmem [shape: f32[2,1,32], index: 1, kind: output, shape index: {0}]   ;;  %s447_s2 = inlined_call_operand.vmem [shape: f32[2,1,32], index: 2, kind: output, shape index: {1}]  }
   0x1   :  { %s391_s11 = smov 0  }
   0x2 LB: > { %s25_s12 = sadd.s32 1, %s365_s10  ;;  %p316_p0 = scmp.ge.s32.totalorder %s369_s11, 1  ;;  %s369_s11 = sphi %s391_s11, %s13_s11   ;;  %s365_s10 = sphi %s389_s10, %s449_s10   ;;  %s361_s9 = sphi %s387_s9, %s448_s9  }
   0x3   : > { %p27_p1 = scmp.ge.s32.totalorder %s25_s12, 2  ;;  %p134_p2 = scmp.lt.s32.totalorder %s369_s11, 3 }
   0x5   : > { %s451_s12 = smov (%p27_p1, %s25_s12), 0  ;;  %p135_p3 = pnand %p316_p0, %p134_p2 }
   0x6   : > { %p162_p4 = scmp.lt.s32.totalorder (!%p135_p3), %s361_s9, 1 }
   0x7   : > { %138 = sbr.rel (%p135_p3) target bundleno = 41 (0x29), region = 24 }
   0xc   : > { %s453_s9 = smov (!%p162_p4, %s361_s9), 1  ;;  %vm181_vm0 = vcmask 253952   ;;  %vm189_vm1 = vcmask 261120   ;;  %v371_v0 = vmov 0.0  }
   0xd   : > { %s321_s13 = sshll.u32 %s453_s9, 5  ;;  %s408_s16 = scalar_lea.vmem %s446_s1, %s453_s9 }
   0xe   : > { %s169_s19 = scalar_lea.vmem %s445_s0, %s321_s13  ;;  %182 = vst.msk [vmem:[%s408_s16] sm:$0x1] %vm181_vm0, %v371_v0  ;;  %s418_s22 = scalar_lea.vmem %s447_s2, %s453_s9 }
   0xf   : > { %v184_v1 = vld [vmem:[%s169_s19] sm:$0xff]  ;;  %v185_v2 = vld [vmem:[%s169_s19 + $0x8] sm:$0xff]  ;;  %v186_v3 = vld [vmem:[%s169_s19 + $0x10] sm:$0xff]  ;;  %183 = vst.msk [vmem:[%s418_s22] sm:$0x1] %vm181_vm0, %v371_v0 }
  0x10   : > { %v187_v4 = vld [vmem:[%s169_s19 + $0x18] sm:$0xff]  ;;  %v190_v5 = vsel %vm189_vm1, %v184_v1, 0.0  ;;  %v191_v6 = vsel %vm189_vm1, %v185_v2, 0.0  ;;  %v193_v7 = vsel %vm189_vm1, %v186_v3, 0.0  ;;  %v207_v8 = vmul.f32 %v184_v1, %v184_v1 }
  0x11   : > { %v192_v9 = vadd.f32 %v191_v6, %v190_v5  ;;  %v208_v10 = vmul.f32 %v185_v2, %v185_v2  ;;  %v209_v11 = vmul.f32 %v186_v3, %v186_v3  ;;  %v195_v12 = vsel %vm189_vm1, %v187_v4, 0.0 }
  0x12   : > { %v210_v13 = vmul.f32 %v187_v4, %v187_v4  ;;  %v211_v14 = vsel %vm189_vm1, %v207_v8, 0.0 }
  0x13   : > { %v194_v15 = vadd.f32 %v193_v7, %v192_v9  ;;  %v212_v16 = vsel %vm189_vm1, %v208_v10, 0.0  ;;  %v214_v17 = vsel %vm189_vm1, %v209_v11, 0.0 }
  0x14   : > { %v213_v18 = vadd.f32 %v212_v16, %v211_v14  ;;  %v216_v20 = vsel %vm189_vm1, %v210_v13, 0.0 }
  0x15   : > { %v196_v19 = vadd.f32 %v195_v12, %v194_v15  ;;  %v188_v31 = vld [vmem:[%s408_s16] sm:$0x1] }
  0x16   : > { %v215_v21 = vadd.f32 %v214_v17, %v213_v18  ;;  %v206_v36 = vld [vmem:[%s418_s22] sm:$0x1] }
  0x17   : > { %v197_v22 = vrot.slane %v196_v19, 4 }
  0x18   : > { %v217_v23 = vadd.f32 %v216_v20, %v215_v21 }
  0x19   : > { %v198_v24 = vadd.f32 %v197_v22, %v196_v19 }
  0x1a   : > { %v218_v25 = vrot.slane %v217_v23, 4 }
  0x1b   : > { %v199_v26 = vrot.slane %v198_v24, 2 }
  0x1c   : > { %v219_v27 = vadd.f32 %v218_v25, %v217_v23 }
  0x1d   : > { %v200_v28 = vadd.f32 %v199_v26, %v198_v24 }
  0x1e   : > { %v220_v29 = vrot.slane %v219_v27, 2 }
  0x1f   : > { %v201_v30 = vrot.slane %v200_v28, 1 }
  0x20   : > { %v221_v32 = vadd.f32 %v220_v29, %v219_v27 }
  0x21   : > { %v202_v33 = vadd.f32 %v201_v30, %v200_v28 }
  0x22   : > { %v222_v34 = vrot.slane %v221_v32, 1 }
  0x23   : > { %v203_v35 = vadd.f32 %v202_v33, %v188_v31 }
  0x24   : > { %v223_v37 = vadd.f32 %v222_v34, %v221_v32 }
  0x25   : > { %205 = vst.msk [vmem:[%s408_s16] sm:$0x1] %vm181_vm0, %v203_v35 }
  0x26   : > { %v224_v38 = vadd.f32 %v223_v37, %v206_v36 }
  0x28   : > { %225 = vst.msk [vmem:[%s418_s22] sm:$0x1] %vm181_vm0, %v224_v38 }
  0x29 PF: > { %s13_s11 = sadd.s32 1, %s369_s11   ;;  %s448_s9 = smov %s365_s10 }
  0x2a   : > { %p10_p5 = scmp.ge.s32.totalorder %s13_s11, 4   ;;  %s449_s10 = smov %s451_s12 }
  0x2c   :  { %12 = sbr.rel (!%p10_p5) target bundleno = 2 (0x2), region = 70 }

// kernel: multiscale_discriminator_forward.36
= control target key start
LH: loop header
LB: loop body
LE: loop exit
PB: predicated region body
PF: predicated region fallthrough
CT: control target
= control target key end

     0   :  { %s539_s1 = inlined_call_operand.vmem [shape: bf16[256,128], index: 1, kind: input, shape index: {}]   ;;  %s540_s0 = inlined_call_operand.vmem [shape: bf16[56,256], index: 0, kind: input, shape index: {}]   ;;  %s541_s2 = inlined_call_operand.vmem [shape: f32[1,128], index: 2, kind: input, shape index: {}]   ;;  %s542_s3 = inlined_call_operand.vmem [shape: f32[56,128], index: 3, kind: output, shape index: {}]  }
   0x1   :  { %v399_v0 = vld [vmem:[%s539_s1 + $0x78] sm:$0xff]   ;;  %v401_v2 = vld [vmem:[%s539_s1 + $0x70] sm:$0xff]   ;;  %v403_v4 = vld [vmem:[%s539_s1 + $0x68] sm:$0xff]  }
   0x2   :  { %v400_v1 = vld [vmem:[%s539_s1 + $0x38] sm:$0xff]   ;;  %343 = vmatprep.subr.bf16.mxu0 %v399_v0  ;;  %383 = vmatprep.subr.bf16.mxu1 %v399_v0  ;;  %v402_v3 = vld [vmem:[%s539_s1 + $0x30] sm:$0xff]   ;;  %v404_v5 = vld [vmem:[%s539_s1 + $0x28] sm:$0xff]  }
   0x3   :  { %344 = vmatpush3.bf16.msra.mxu0 %v400_v1  ;;  %391 = vmatpush3.bf16.msra.mxu1 %v400_v1  ;;  %v405_v6 = vld [vmem:[%s539_s1 + $0x60] sm:$0xff]   ;;  %v407_v8 = vld [vmem:[%s539_s1 + $0x58] sm:$0xff]   ;;  %v409_v10 = vld [vmem:[%s539_s1 + $0x50] sm:$0xff]  }
   0x4   :  { %345 = vmatprep.subr.bf16.mxu0 %v401_v2  ;;  %384 = vmatprep.subr.bf16.mxu1 %v401_v2  ;;  %v406_v7 = vld [vmem:[%s539_s1 + $0x20] sm:$0xff]   ;;  %v408_v9 = vld [vmem:[%s539_s1 + $0x18] sm:$0xff]   ;;  %v410_v13 = vld [vmem:[%s539_s1 + $0x10] sm:$0xff]  }
   0x5   :  { %v417_v11 = vld [vmem:[%s540_s0 + $0x4] ss:$8 sps:$4 sm:$0xff]   ;;  %v39_v18 = vld [vmem:[%s540_s0 + $0x30] sm:$0xff]  ;;  %v415_v19 = vld [vmem:[%s540_s0] ss:$8 sps:$4 sm:$0xff]  }
   0x6   :  { %v420_v12 = vld [vmem:[%s540_s0 + $0x24] ss:$8 sps:$4 sm:$0xff]   ;;  %237 = vmatprep.mubr.bf16.mxu0 %v417_v11  ;;  %v418_v20 = vld [vmem:[%s540_s0 + $0x20] ss:$8 sps:$4 sm:$0xff]   ;;  %v421_v21 = vld [vmem:[%s540_s0 + $0x14] ss:$8 sps:$4 sm:$0xff]   ;;  %v325_v22 = vcombine.high %v39_v18, %v39_v18  ;;  %v324_v24 = vcombine.low %v39_v18, %v39_v18 }
   0x7   :  { %346 = vmatpush3.bf16.msra.mxu0 %v402_v3  ;;  %392 = vmatpush3.bf16.msra.mxu1 %v402_v3  ;;  %v411_v14 = vld [vmem:[%s539_s1 + $0x48] sm:$0xff]   ;;  %v413_v16 = vld [vmem:[%s539_s1 + $0x40] sm:$0xff]   ;;  %v424_v23 = vld [vmem:[%s540_s0 + $0x10] ss:$8 sps:$4 sm:$0xff]  }
   0x8   :  { %347 = vmatprep.subr.bf16.mxu0 %v403_v4  ;;  %385 = vmatprep.subr.bf16.mxu1 %v403_v4  ;;  %v412_v15 = vld [vmem:[%s539_s1 + $0x8] sm:$0xff]   ;;  %v414_v17 = vld [vmem:[%s539_s1] sm:$0xff]  }
   0x9   :  { %253 = vmatprep.mubr.bf16.mxu1 %v420_v12  ;;  %v342_v28 = vld [vmem:[%s541_s2] ss:$0 sm:$0xff] }
   0xb   :  { %348 = vmatpush3.bf16.msra.mxu0 %v404_v5  ;;  %393 = vmatpush3.bf16.msra.mxu1 %v404_v5 }
   0xc   :  { %349 = vmatprep.subr.bf16.mxu0 %v405_v6  ;;  %386 = vmatprep.subr.bf16.mxu1 %v405_v6 }
   0xf   :  { %350 = vmatpush3.bf16.msra.mxu0 %v406_v7  ;;  %394 = vmatpush3.bf16.msra.mxu1 %v406_v7 }
  0x10   :  { %351 = vmatprep.subr.bf16.mxu0 %v407_v8  ;;  %387 = vmatprep.subr.bf16.mxu1 %v407_v8 }
  0x13   :  { %352 = vmatpush3.bf16.msra.mxu0 %v408_v9  ;;  %395 = vmatpush3.bf16.msra.mxu1 %v408_v9 }
  0x14   :  { %353 = vmatprep.subr.bf16.mxu0 %v409_v10  ;;  %388 = vmatprep.subr.bf16.mxu1 %v409_v10 }
  0x17   :  { %354 = vmatpush3.bf16.msra.mxu0 %v410_v13  ;;  %396 = vmatpush3.bf16.msra.mxu1 %v410_v13 }
  0x18   :  { %355 = vmatprep.subr.bf16.mxu0 %v411_v14  ;;  %389 = vmatprep.subr.bf16.mxu1 %v411_v14 }
  0x1b   :  { %356 = vmatpush3.bf16.msra.mxu0 %v412_v15  ;;  %397 = vmatpush3.bf16.msra.mxu1 %v412_v15 }
  0x1c   :  { %357 = vmatprep.subr.bf16.mxu0 %v413_v16  ;;  %390 = vmatprep.subr.bf16.mxu1 %v413_v16 }
  0x1f   :  { %358 = vmatpush3.bf16.msra.mxu0 %v414_v17  ;;  %398 = vmatpush3.bf16.msra.mxu1 %v414_v17 }
  0x22   :  { %238 = vmatmul.mubr.bf16.vlgmr.msra.gmra.mxu0 %v415_v19  ;;  %254 = vmatmul.mubr.bf16.vlgmr.msra.gmra.mxu1 %v418_v20 }
  0x23   :  { %245 = vmatprep.mubr.bf16.mxu0 %v421_v21  ;;  %261 = vmatprep.mubr.bf16.mxu1 %v325_v22 }
  0x2a   :  { %246 = vmatmul.mubr.bf16.gmra.mxu0 %v424_v23  ;;  %262 = vmatmul.mubr.bf16.gmra.mxu1 %v324_v24 }
  0xe2   :  { %v359_v25 = vpop.f32.mrf.mxu0  ;;  %v371_v26 = vpop.f32.mrf.mxu1 }
  0xe4   :  { %v360_v27 = vpop.f32.mrf.mxu0  ;;  %v372_v29 = vpop.f32.mrf.mxu1 }
  0xe5   :  { %v361_v30 = vadd.f32 %v360_v27, %v359_v25  ;;  %v373_v31 = vadd.f32 %v372_v29, %v371_v26 }
  0xe6   :  { %v362_v32 = vpop.f32.mrf.mxu0  ;;  %v374_v33 = vpop.f32.mrf.mxu1 }
  0xe7   :  { %v300_v34 = vadd.f32 %v361_v30, %v342_v28  ;;  %v304_v35 = vadd.f32 %v373_v31, %v342_v28 }
  0xe8   :  { %v363_v36 = vpop.f32.mrf.mxu0  ;;  %v375_v37 = vpop.f32.mrf.mxu1 }
  0xe9   :  { %307 = vst [vmem:[%s542_s3] sm:$0xff] %v300_v34  ;;  %311 = vst [vmem:[%s542_s3 + $0x20] sm:$0xff] %v304_v35  ;;  %v364_v38 = vadd.f32 %v363_v36, %v362_v32  ;;  %v376_v39 = vadd.f32 %v375_v37, %v374_v33 }
  0xea   :  { %v365_v40 = vpop.f32.mrf.mxu0  ;;  %v377_v41 = vpop.f32.mrf.mxu1 }
  0xeb   :  { %v301_v42 = vadd.f32 %v364_v38, %v342_v28  ;;  %v305_v43 = vadd.f32 %v376_v39, %v342_v28 }
  0xec   :  { %v366_v44 = vpop.f32.mrf.mxu0  ;;  %v378_v45 = vpop.f32.mrf.mxu1 }
  0xed   :  { %308 = vst [vmem:[%s542_s3 + $0x8] sm:$0xff] %v301_v42  ;;  %312 = vst [vmem:[%s542_s3 + $0x28] sm:$0xff] %v305_v43  ;;  %v367_v46 = vadd.f32 %v366_v44, %v365_v40  ;;  %v379_v47 = vadd.f32 %v378_v45, %v377_v41 }
  0xee   :  { %v368_v48 = vpop.f32.mrf.mxu0  ;;  %v380_v49 = vpop.f32.mrf.mxu1 }
  0xef   :  { %v302_v50 = vadd.f32 %v367_v46, %v342_v28  ;;  %v306_v51 = vadd.f32 %v379_v47, %v342_v28 }
  0xf0   :  { %v369_v52 = vpop.f32.mrf.mxu0  ;;  %v381_v53 = vpop.f32.mrf.mxu1 }
  0xf1   :  { %309 = vst [vmem:[%s542_s3 + $0x10] sm:$0xff] %v302_v50  ;;  %313 = vst [vmem:[%s542_s3 + $0x30] sm:$0xff] %v306_v51  ;;  %v370_v54 = vadd.f32 %v369_v52, %v368_v48 }
  0xf3   :  { %v303_v55 = vadd.f32 %v370_v54, %v342_v28 }
  0xf5   :  { %310 = vst [vmem:[%s542_s3 + $0x18] sm:$0xff] %v303_v55 }

// kernel: multiscale_discriminator_forward.40
= control target key start
LH: loop header
LB: loop body
LE: loop exit
PB: predicated region body
PF: predicated region fallthrough
CT: control target
= control target key end

     0   :  { %s375_s9 = smov 0   ;;  %s377_s10 = smov 0   ;;  %s420_s0 = inlined_call_operand.vmem [shape: f32[2,16,64], index: 0, kind: input, shape index: {}]   ;;  %s421_s1 = inlined_call_operand.vmem [shape: f32[2,1,64], index: 1, kind: output, shape index: {0}]   ;;  %s422_s2 = inlined_call_operand.vmem [shape: f32[2,1,64], index: 2, kind: output, shape index: {1}]  }
   0x1   :  { %s379_s11 = smov 0  }
   0x2 LB: > { %s25_s12 = sadd.s32 1, %s353_s10  ;;  %p304_p0 = scmp.ge.s32.totalorder %s357_s11, 1  ;;  %s357_s11 = sphi %s379_s11, %s13_s11   ;;  %s353_s10 = sphi %s377_s10, %s424_s10   ;;  %s349_s9 = sphi %s375_s9, %s423_s9  }
   0x3   : > { %p27_p1 = scmp.ge.s32.totalorder %s25_s12, 2  ;;  %p134_p2 = scmp.lt.s32.totalorder %s357_s11, 3 }
   0x5   : > { %s426_s12 = smov (%p27_p1, %s25_s12), 0  ;;  %p135_p3 = pnand %p304_p0, %p134_p2 }
   0x6   : > { %p162_p4 = scmp.lt.s32.totalorder (!%p135_p3), %s349_s9, 1 }
   0x7   : > { %138 = sbr.rel (%p135_p3) target bundleno = 36 (0x24), region = 24 }
   0xc   : > { %s428_s9 = smov (!%p162_p4, %s349_s9), 1  ;;  %vm181_vm0 = vcmask 516096   ;;  %vm187_vm1 = vcmask 523264   ;;  %v359_v0 = vmov 0.0  }
   0xd   : > { %s309_s13 = sshll.u32 %s428_s9, 4  ;;  %s396_s16 = scalar_lea.vmem %s421_s1, %s428_s9 }
   0xe   : > { %s169_s19 = scalar_lea.vmem %s420_s0, %s309_s13  ;;  %182 = vst.msk [vmem:[%s396_s16] sm:$0x1] %vm181_vm0, %v359_v0  ;;  %s176_s22 = scalar_lea.vmem %s422_s2, %s428_s9 }
   0xf   : > { %v184_v1 = vld [vmem:[%s169_s19] sm:$0xff]  ;;  %v185_v2 = vld [vmem:[%s169_s19 + $0x8] sm:$0xff]  ;;  %183 = vst.msk [vmem:[%s176_s22] sm:$0x1] %vm181_vm0, %v359_v0 }
  0x10   : > { %v188_v3 = vsel %vm187_vm1, %v184_v1, 0.0  ;;  %v189_v4 = vsel %vm187_vm1, %v185_v2, 0.0  ;;  %v201_v5 = vmul.f32 %v184_v1, %v184_v1  ;;  %v202_v6 = vmul.f32 %v185_v2, %v185_v2 }
  0x11   : > { %v190_v7 = vadd.f32 %v189_v4, %v188_v3 }
  0x12   : > { %v203_v8 = vsel %vm187_vm1, %v201_v5, 0.0  ;;  %v204_v9 = vsel %vm187_vm1, %v202_v6, 0.0 }
  0x13   : > { %v191_v10 = vrot.slane %v190_v7, 4  ;;  %v205_v11 = vadd.f32 %v204_v9, %v203_v8 }
  0x15   : > { %v192_v12 = vadd.f32 %v191_v10, %v190_v7  ;;  %v206_v13 = vrot.slane %v205_v11, 4  ;;  %v186_v20 = vld [vmem:[%s396_s16] sm:$0x1] }
  0x16   : > { %v200_v23 = vld [vmem:[%s176_s22] sm:$0x1] }
  0x17   : > { %v193_v14 = vrot.slane %v192_v12, 2  ;;  %v207_v15 = vadd.f32 %v206_v13, %v205_v11 }
  0x19   : > { %v194_v16 = vadd.f32 %v193_v14, %v192_v12  ;;  %v208_v17 = vrot.slane %v207_v15, 2 }
  0x1b   : > { %v195_v18 = vrot.slane %v194_v16, 1  ;;  %v209_v19 = vadd.f32 %v208_v17, %v207_v15 }
  0x1d   : > { %v196_v21 = vadd.f32 %v195_v18, %v194_v16  ;;  %v210_v22 = vrot.slane %v209_v19, 1 }
  0x1f   : > { %v197_v24 = vadd.f32 %v196_v21, %v186_v20  ;;  %v211_v25 = vadd.f32 %v210_v22, %v209_v19 }
  0x21   : > { %199 = vst.msk [vmem:[%s396_s16] sm:$0x1] %vm181_vm0, %v197_v24  ;;  %v212_v26 = vadd.f32 %v211_v25, %v200_v23 }
  0x23   : > { %213 = vst.msk [vmem:[%s176_s22] sm:$0x1] %vm181_vm0, %v212_v26 }
  0x24 PF: > { %s13_s11 = sadd.s32 1, %s357_s11   ;;  %s423_s9 = smov %s353_s10 }
  0x25   : > { %p10_p5 = scmp.ge.s32.totalorder %s13_s11, 4   ;;  %s424_s10 = smov %s426_s12 }
  0x27   :  { %12 = sbr.rel (!%p10_p5) target bundleno = 2 (0x2), region = 70 }

// kernel: multiscale_discriminator_forward.41
= control target key start
LH: loop header
LB: loop body
LE: loop exit
PB: predicated region body
PF: predicated region fallthrough
CT: control target
= control target key end

     0   :  { %s462_s12 = smov 0   ;;  %s464_s13 = smov 0   ;;  %s501_s0 = inlined_call_operand.vmem [shape: f32[2,16,64], index: 0, kind: input, shape index: {}]   ;;  %s502_s1 = inlined_call_operand.vmem [shape: f32[2,1,64], index: 1, kind: input, shape index: {}]   ;;  %s503_s2 = inlined_call_operand.vmem [shape: f32[2,1,64], index: 2, kind: input, shape index: {}]   ;;  %s504_s3 = inlined_call_operand.vmem [shape: f32[2,16,64], index: 3, kind: output, shape index: {}]  }
   0x1   :  { %s466_s14 = smov 0  }
   0x2 LB: > { %s25_s15 = sadd.s32 1, %s436_s13  ;;  %p383_p0 = scmp.ge.s32.totalorder %s440_s14, 1  ;;  %s440_s14 = sphi %s466_s14, %s13_s14   ;;  %s436_s13 = sphi %s464_s13, %s506_s13   ;;  %s432_s12 = sphi %s462_s12, %s505_s12  }
   0x3   : > { %p27_p1 = scmp.ge.s32.totalorder %s25_s15, 2  ;;  %p174_p2 = scmp.lt.s32.totalorder %s440_s14, 3 }
   0x5   : > { %s508_s15 = smov (%p27_p1, %s25_s15), 0  ;;  %p175_p3 = pnand %p383_p0, %p174_p2 }
   0x6   : > { %p213_p4 = scmp.lt.s32.totalorder (!%p175_p3), %s432_s12, 1 }
   0x7   : > { %178 = sbr.rel (%p175_p3) target bundleno = 47 (0x2f), region = 32 }
   0xc   : > { %s510_s12 = smov (!%p213_p4, %s432_s12), 1  ;;  %v250_v7 = vlaneseq  ;;  %vm271_vm0 = vcmask 523264  }
   0xd   : > { %s224_s18 = scalar_lea.vmem %s502_s1, %s510_s12  ;;  %s227_s21 = scalar_lea.vmem %s503_s2, %s510_s12 }
   0xe   : > { %v238_v0 = vld [vmem:[%s224_s18] sm:$0x1]  ;;  %v251_v9 = vshrl.u32 %v250_v7, 7  ;;  %s390_s22 = sshll.u32 %s510_s12, 4 }
   0xf   : > { %v239_v1 = vmul.f32 0.11111111, %v238_v0  ;;  %v240_v2 = vld [vmem:[%s227_s21] sm:$0x1]  ;;  %s220_s25 = scalar_lea.vmem %s501_s0, %s390_s22  ;;  %s236_s28 = scalar_lea.vmem %s504_s3, %s390_s22 }
  0x10   : > { %v241_v3 = vmul.f32 0.11111111, %v240_v2  ;;  %v252_v10 = vsub.s32 0, %v251_v9  ;;  %v247_v12 = vld [vmem:[%s220_s25] sm:$0xff]  ;;  %v248_v13 = vld [vmem:[%s220_s25 + $0x8] sm:$0xff] }
  0x11   : > { %v242_v4 = vmul.f32 %v239_v1, %v239_v1 }
  0x12   : > { %v253_v11 = vrot.slane %v239_v1, %v252_v10 }
  0x13   : > { %v243_v5 = vsub.f32 %v241_v3, %v242_v4 }
  0x14   : > { %v255_v14 = vsub.f32 %v247_v12, %v253_v11  ;;  %v256_v15 = vsub.f32 %v248_v13, %v253_v11 }
  0x15   : > { %v244_v6 = vmax.f32 %v243_v5, 0.0 }
  0x17   : > { %v245_v8 = vadd.f32 1e-05, %v244_v6 }
  0x19   : > { %416 = vrsqrt.f32 %v245_v8 }
  0x26   : > { %v417_v16 = vpop.eup %416 }
  0x27   : > { %v261_v17 = vrot.slane %v417_v16, %v252_v10 }
  0x29   : > { %v263_v18 = vmul.f32 %v261_v17, %v255_v14  ;;  %v264_v19 = vmul.f32 %v261_v17, %v256_v15 }
  0x2b   : > { %vm265_vm1 = vcmp.ge.f32.partialorder %v263_v18, 0.0  ;;  %v267_v20 = vmul.f32 0.2, %v263_v18  ;;  %vm266_vm2 = vcmp.ge.f32.partialorder %v264_v19, 0.0  ;;  %v268_v21 = vmul.f32 0.2, %v264_v19 }
  0x2d   : > { %v269_v22 = vsel %vm265_vm1, %v263_v18, %v267_v20  ;;  %v270_v23 = vsel %vm266_vm2, %v264_v19, %v268_v21 }
  0x2e   : > { %272 = vst.msk [vmem:[%s236_s28] sm:$0xff] %vm271_vm0, %v269_v22  ;;  %273 = vst.msk [vmem:[%s236_s28 + $0x8] sm:$0xff] %vm271_vm0, %v270_v23 }
  0x2f PF: > { %s13_s14 = sadd.s32 1, %s440_s14   ;;  %s505_s12 = smov %s436_s13 }
  0x30   : > { %p10_p5 = scmp.ge.s32.totalorder %s13_s14, 4   ;;  %s506_s13 = smov %s508_s15 }
  0x32   :  { %12 = sbr.rel (!%p10_p5) target bundleno = 2 (0x2), region = 68 }

// kernel: multiscale_discriminator_forward.39
= control target key start
LH: loop header
LB: loop body
LE: loop exit
PB: predicated region body
PF: predicated region fallthrough
CT: control target
= control target key end

     0   :  { %s731_s1 = inlined_call_operand.vmem [shape: bf16[512,128], index: 1, kind: input, shape index: {}]   ;;  %s732_s0 = inlined_call_operand.vmem [shape: bf16[24,512], index: 0, kind: input, shape index: {}]   ;;  %s733_s2 = inlined_call_operand.vmem [shape: f32[1,128], index: 2, kind: input, shape index: {}]   ;;  %s734_s3 = inlined_call_operand.vmem [shape: f32[24,128], index: 3, kind: output, shape index: {}]  }
   0x1   :  { %v543_v0 = vld [vmem:[%s731_s1 + $0x78] sm:$0xff]   ;;  %v547_v4 = vld [vmem:[%s731_s1 + $0x70] sm:$0xff]   ;;  %v551_v8 = vld [vmem:[%s731_s1 + $0x68] sm:$0xff]  }
   0x2   :  { %v544_v1 = vld [vmem:[%s731_s1 + $0xf8] sm:$0xff]   ;;  %487 = vmatprep.subr.bf16.mxu0 %v543_v0  ;;  %v548_v5 = vld [vmem:[%s731_s1 + $0xf0] sm:$0xff]   ;;  %v552_v9 = vld [vmem:[%s731_s1 + $0xe8] sm:$0xff]  }
   0x3   :  { %v545_v2 = vld [vmem:[%s731_s1 + $0x38] sm:$0xff]   ;;  %515 = vmatprep.subr.bf16.mxu1 %v544_v1  ;;  %v549_v6 = vld [vmem:[%s731_s1 + $0x30] sm:$0xff]   ;;  %v553_v10 = vld [vmem:[%s731_s1 + $0x28] sm:$0xff]  }
   0x4   :  { %v546_v3 = vld [vmem:[%s731_s1 + $0xb8] sm:$0xff]   ;;  %488 = vmatpush3.bf16.msra.mxu0 %v545_v2  ;;  %v550_v7 = vld [vmem:[%s731_s1 + $0xb0] sm:$0xff]   ;;  %v554_v11 = vld [vmem:[%s731_s1 + $0xa8] sm:$0xff]  }
   0x5   :  { %516 = vmatpush3.bf16.msra.mxu1 %v546_v3  ;;  %489 = vmatprep.subr.bf16.mxu0 %v547_v4  ;;  %v555_v12 = vld [vmem:[%s731_s1 + $0x60] sm:$0xff]   ;;  %v559_v16 = vld [vmem:[%s731_s1 + $0x58] sm:$0xff]   ;;  %v563_v20 = vld [vmem:[%s731_s1 + $0x50] sm:$0xff]  }
   0x6   :  { %517 = vmatprep.subr.bf16.mxu1 %v548_v5  ;;  %v556_v13 = vld [vmem:[%s731_s1 + $0xe0] sm:$0xff]   ;;  %v560_v17 = vld [vmem:[%s731_s1 + $0xd8] sm:$0xff]   ;;  %v564_v21 = vld [vmem:[%s731_s1 + $0xd0] sm:$0xff]  }
   0x7   :  { %v557_v14 = vld [vmem:[%s731_s1 + $0x20] sm:$0xff]   ;;  %v561_v18 = vld [vmem:[%s731_s1 + $0x18] sm:$0xff]   ;;  %v565_v22 = vld [vmem:[%s731_s1 + $0x10] sm:$0xff]  }
   0x8   :  { %490 = vmatpush3.bf16.msra.mxu0 %v549_v6  ;;  %v558_v15 = vld [vmem:[%s731_s1 + $0xa0] sm:$0xff]   ;;  %v562_v19 = vld [vmem:[%s731_s1 + $0x98] sm:$0xff]   ;;  %v566_v23 = vld [vmem:[%s731_s1 + $0x90] sm:$0xff]  }
   0x9   :  { %518 = vmatpush3.bf16.msra.mxu1 %v550_v7  ;;  %491 = vmatprep.subr.bf16.mxu0 %v551_v8  ;;  %v567_v24 = vld [vmem:[%s731_s1 + $0x48] sm:$0xff]   ;;  %v571_v28 = vld [vmem:[%s731_s1 + $0x40] sm:$0xff]  }
   0xa   :  { %519 = vmatprep.subr.bf16.mxu1 %v552_v9  ;;  %v568_v25 = vld [vmem:[%s731_s1 + $0xc8] sm:$0xff]   ;;  %v572_v29 = vld [vmem:[%s731_s1 + $0xc0] sm:$0xff]  }
   0xb   :  { %v569_v26 = vld [vmem:[%s731_s1 + $0x8] sm:$0xff]   ;;  %v573_v30 = vld [vmem:[%s731_s1] sm:$0xff]  }
   0xc   :  { %492 = vmatpush3.bf16.msra.mxu0 %v553_v10  ;;  %v570_v27 = vld [vmem:[%s731_s1 + $0x88] sm:$0xff]   ;;  %v574_v31 = vld [vmem:[%s731_s1 + $0x80] sm:$0xff]  }
   0xd   :  { %520 = vmatpush3.bf16.msra.mxu1 %v554_v11  ;;  %493 = vmatprep.subr.bf16.mxu0 %v555_v12  ;;  %v575_v32 = vld [vmem:[%s732_s0] ss:$16 sps:$4 sm:$0xff]   ;;  %v577_v33 = vld [vmem:[%s732_s0 + $0x4] ss:$16 sps:$4 sm:$0xff]   ;;  %v578_v34 = vld [vmem:[%s732_s0 + $0x8] ss:$16 sps:$4 sm:$0xff]  }
   0xe   :  { %521 = vmatprep.subr.bf16.mxu1 %v556_v13  ;;  %v580_v35 = vld [vmem:[%s732_s0 + $0xc] ss:$16 sps:$4 sm:$0xff]   ;;  %v29_v36 = vld [vmem:[%s732_s0 + $0x20] sm:$0xff]  ;;  %353 = vmatprep.mubr.bf16.mxu0 %v577_v33 }
   0xf   :  { %v451_v37 = vcombine.high %v29_v36, %v29_v36  ;;  %v30_v38 = vld [vmem:[%s732_s0 + $0x28] sm:$0xff]  ;;  %401 = vmatprep.mubr.bf16.mxu1 %v580_v35  ;;  %v450_v40 = vcombine.low %v29_v36, %v29_v36  ;;  %v486_v49 = vld [vmem:[%s733_s2] ss:$0 sm:$0xff] }
  0x10   :  { %494 = vmatpush3.bf16.msra.mxu0 %v557_v14  ;;  %v453_v39 = vcombine.high %v30_v38, %v30_v38  ;;  %v452_v41 = vcombine.low %v30_v38, %v30_v38 }
  0x11   :  { %522 = vmatpush3.bf16.msra.mxu1 %v558_v15  ;;  %495 = vmatprep.subr.bf16.mxu0 %v559_v16 }
  0x12   :  { %523 = vmatprep.subr.bf16.mxu1 %v560_v17 }
  0x14   :  { %496 = vmatpush3.bf16.msra.mxu0 %v561_v18 }
  0x15   :  { %524 = vmatpush3.bf16.msra.mxu1 %v562_v19  ;;  %497 = vmatprep.subr.bf16.mxu0 %v563_v20 }
  0x16   :  { %525 = vmatprep.subr.bf16.mxu1 %v564_v21 }
  0x18   :  { %498 = vmatpush3.bf16.msra.mxu0 %v565_v22 }
  0x19   :  { %526 = vmatpush3.bf16.msra.mxu1 %v566_v23  ;;  %499 = vmatprep.subr.bf16.mxu0 %v567_v24 }
  0x1a   :  { %527 = vmatprep.subr.bf16.mxu1 %v568_v25 }
  0x1c   :  { %500 = vmatpush3.bf16.msra.mxu0 %v569_v26 }
  0x1d   :  { %528 = vmatpush3.bf16.msra.mxu1 %v570_v27  ;;  %501 = vmatprep.subr.bf16.mxu0 %v571_v28 }
  0x1e   :  { %529 = vmatprep.subr.bf16.mxu1 %v572_v29 }
  0x20   :  { %502 = vmatpush3.bf16.msra.mxu0 %v573_v30 }
  0x21   :  { %530 = vmatpush3.bf16.msra.mxu1 %v574_v31 }
  0x23   :  { %354 = vmatmul.mubr.bf16.vlgmr.msra.gmra.mxu0 %v575_v32 }
  0x24   :  { %402 = vmatmul.mubr.bf16.vlgmr.msra.gmra.mxu1 %v578_v34  ;;  %361 = vmatprep.mubr.bf16.mxu0 %v451_v37 }
  0x25   :  { %409 = vmatprep.mubr.bf16.mxu1 %v453_v39 }
  0x2b   :  { %362 = vmatmul.mubr.bf16.gmra.mxu0 %v450_v40 }
  0x2c   :  { %410 = vmatmul.mubr.bf16.gmra.mxu1 %v452_v41 }
  0xe3   :  { %v503_v42 = vpop.f32.mrf.mxu0 }
  0xe4   :  { %v531_v43 = vpop.f32.mrf.mxu1 }
  0xe5   :  { %v504_v44 = vpop.f32.mrf.mxu0 }
  0xe6   :  { %v505_v45 = vadd.f32 %v504_v44, %v503_v42  ;;  %v532_v46 = vpop.f32.mrf.mxu1 }
  0xe7   :  { %v533_v47 = vadd.f32 %v532_v46, %v531_v43  ;;  %v506_v48 = vpop.f32.mrf.mxu0 }
  0xe8   :  { %v534_v50 = vpop.f32.mrf.mxu1 }
  0xe9   :  { %v404_v51 = vadd.f32 %v533_v47, %v505_v45  ;;  %v507_v52 = vpop.f32.mrf.mxu0 }
  0xea   :  { %v508_v53 = vadd.f32 %v507_v52, %v506_v48  ;;  %v535_v54 = vpop.f32.mrf.mxu1 }
  0xeb   :  { %v436_v55 = vadd.f32 %v486_v49, %v404_v51  ;;  %v536_v56 = vadd.f32 %v535_v54, %v534_v50  ;;  %v509_v57 = vpop.f32.mrf.mxu0 }
  0xec   :  { %v537_v58 = vpop.f32.mrf.mxu1 }
  0xed   :  { %439 = vst [vmem:[%s734_s3] sm:$0xff] %v436_v55  ;;  %v407_v59 = vadd.f32 %v536_v56, %v508_v53  ;;  %v510_v60 = vpop.f32.mrf.mxu0 }
  0xee   :  { %v511_v61 = vadd.f32 %v510_v60, %v509_v57  ;;  %v538_v62 = vpop.f32.mrf.mxu1 }
  0xef   :  { %v437_v63 = vadd.f32 %v486_v49, %v407_v59  ;;  %v539_v0 = vadd.f32 %v538_v62, %v537_v58  ;;  %v512_v1 = vpop.f32.mrf.mxu0 }
  0xf0   :  { %v540_v2 = vpop.f32.mrf.mxu1 }
  0xf1   :  { %440 = vst [vmem:[%s734_s3 + $0x8] sm:$0xff] %v437_v63  ;;  %v412_v3 = vadd.f32 %v539_v0, %v511_v61  ;;  %v513_v4 = vpop.f32.mrf.mxu0 }
  0xf2   :  { %v541_v5 = vpop.f32.mrf.mxu1 }
  0xf3   :  { %v438_v6 = vadd.f32 %v486_v49, %v412_v3 }
  0xf5   :  { %441 = vst [vmem:[%s734_s3 + $0x10] sm:$0xff] %v438_v6 }

// kernel: multiscale_discriminator_forward.43
= control target key start
LH: loop header
LB: loop body
LE: loop exit
PB: predicated region body
PF: predicated region fallthrough
CT: control target
= control target key end

     0   :  { %s368_s9 = smov 0   ;;  %s370_s10 = smov 0   ;;  %s404_s0 = inlined_call_operand.vmem [shape: f32[2,16,128], index: 0, kind: input, shape index: {}]   ;;  %s405_s1 = inlined_call_operand.vmem [shape: f32[2,1,128], index: 1, kind: output, shape index: {0}]   ;;  %s406_s2 = inlined_call_operand.vmem [shape: f32[2,1,128], index: 2, kind: output, shape index: {1}]  }
   0x1   :  { %s372_s11 = smov 0  }
   0x2 LB: > { %s25_s12 = sadd.s32 1, %s346_s10  ;;  %p297_p0 = scmp.ge.s32.totalorder %s350_s11, 1  ;;  %s350_s11 = sphi %s372_s11, %s13_s11   ;;  %s346_s10 = sphi %s370_s10, %s408_s10   ;;  %s342_s9 = sphi %s368_s9, %s407_s9  }
   0x3   : > { %p27_p1 = scmp.ge.s32.totalorder %s25_s12, 2  ;;  %p134_p2 = scmp.lt.s32.totalorder %s350_s11, 3 }
   0x5   : > { %s410_s12 = smov (%p27_p1, %s25_s12), 0  ;;  %p135_p3 = pnand %p297_p0, %p134_p2 }
   0x6   : > { %p162_p4 = scmp.lt.s32.totalorder (!%p135_p3), %s342_s9, 1 }
   0x7   : > { %138 = sbr.rel (%p135_p3) target bundleno = 35 (0x23), region = 24 }
   0xc   : > { %s412_s9 = smov (!%p162_p4, %s342_s9), 1  ;;  %v352_v0 = vmov 0.0  }
   0xd   : > { %s302_s13 = sshll.u32 %s412_s9, 4  ;;  %s173_s16 = scalar_lea.vmem %s405_s1, %s412_s9 }
   0xe   : > { %s169_s19 = scalar_lea.vmem %s404_s0, %s302_s13  ;;  %181 = vst [vmem:[%s173_s16] sm:$0x1] %v352_v0  ;;  %s176_s22 = scalar_lea.vmem %s406_s2, %s412_s9 }
   0xf   : > { %v183_v1 = vld [vmem:[%s169_s19] sm:$0xff]  ;;  %v184_v2 = vld [vmem:[%s169_s19 + $0x8] sm:$0xff]  ;;  %182 = vst [vmem:[%s176_s22] sm:$0x1] %v352_v0 }
  0x10   : > { %v196_v3 = vmul.f32 %v183_v1, %v183_v1  ;;  %v197_v4 = vmul.f32 %v184_v2, %v184_v2  ;;  %v186_v5 = vadd.f32 %v184_v2, %v183_v1 }
  0x12   : > { %v187_v6 = vrot.slane %v186_v5, 4  ;;  %v198_v7 = vadd.f32 %v197_v4, %v196_v3 }
  0x14   : > { %v188_v8 = vadd.f32 %v187_v6, %v186_v5  ;;  %v199_v9 = vrot.slane %v198_v7, 4 }
  0x15   : > { %v185_v16 = vld [vmem:[%s173_s16] sm:$0x1] }
  0x16   : > { %v189_v10 = vrot.slane %v188_v8, 2  ;;  %v200_v11 = vadd.f32 %v199_v9, %v198_v7  ;;  %v195_v19 = vld [vmem:[%s176_s22] sm:$0x1] }
  0x18   : > { %v190_v12 = vadd.f32 %v189_v10, %v188_v8  ;;  %v201_v13 = vrot.slane %v200_v11, 2 }
  0x1a   : > { %v191_v14 = vrot.slane %v190_v12, 1  ;;  %v202_v15 = vadd.f32 %v201_v13, %v200_v11 }
  0x1c   : > { %v192_v17 = vadd.f32 %v191_v14, %v190_v12  ;;  %v203_v18 = vrot.slane %v202_v15, 1 }
  0x1e   : > { %v193_v20 = vadd.f32 %v192_v17, %v185_v16  ;;  %v204_v21 = vadd.f32 %v203_v18, %v202_v15 }
  0x20   : > { %194 = vst [vmem:[%s173_s16] sm:$0x1] %v193_v20  ;;  %v205_v22 = vadd.f32 %v204_v21, %v195_v19 }
  0x22   : > { %206 = vst [vmem:[%s176_s22] sm:$0x1] %v205_v22 }
  0x23 PF: > { %s13_s11 = sadd.s32 1, %s350_s11   ;;  %s407_s9 = smov %s346_s10 }
  0x24   : > { %p10_p5 = scmp.ge.s32.totalorder %s13_s11, 4   ;;  %s408_s10 = smov %s410_s12 }
  0x26   :  { %12 = sbr.rel (!%p10_p5) target bundleno = 2 (0x2), region = 70 }

// kernel: multiscale_discriminator_forward.42
= control target key start
LH: loop header
LB: loop body
LE: loop exit
PB: predicated region body
PF: predicated region fallthrough
CT: control target
= control target key end

     0   :  { %s1105_s12 = smov 0   ;;  %s1107_s13 = smov 0   ;;  %s1231_s0 = inlined_call_operand.vmem [shape: bf16[32,1024], index: 0, kind: input, shape index: {}]   ;;  %s1232_s1 = inlined_call_operand.vmem [shape: bf16[1024,128], index: 1, kind: input, shape index: {}]   ;;  %s1233_s2 = inlined_call_operand.vmem [shape: f32[1,128], index: 2, kind: input, shape index: {}]   ;;  %s1234_s3 = inlined_call_operand.vmem [shape: f32[32,128], index: 3, kind: output, shape index: {}]  }
   0x1   :  { %s1109_s14 = smov 0   ;;  %s1111_s15 = smov 0  }
   0x2   :  { %s1113_s16 = smov 0  }
   0x3 LB: > { %s25_s17 = sadd.s32 1, %s1078_s15  ;;  %p48_p1 = scmp.ne.s32.totalorder %s1070_s13, %s1066_s12  ;;  %s1082_s16 = sphi %s1113_s16, %s13_s16   ;;  %s1078_s15 = sphi %s1111_s15, %s1238_s15   ;;  %s1074_s14 = sphi %s1109_s14, %s1237_s14   ;;  %s1070_s13 = sphi %s1107_s13, %s1236_s13   ;;  %s1066_s12 = sphi %s1105_s12, %s1235_s12  }
   0x4   : > { %p26_p0 = scmp.ge.s32.totalorder %s25_s17, 2  ;;  %p49_p2 = scmp.eq.s32.totalorder %s1082_s16, 0 }
   0x5   : > { %s41_s19 = sadd.s32 1, %s1070_s13  ;;  %p847_p5 = scmp.ge.s32.totalorder %s1082_s16, 2 }
   0x6   : > { %s1240_s17 = smov (%p26_p0, %s25_s17), 0  ;;  %p50_p3 = por %p49_p2, %p48_p1 }
   0x7   : > { %s37_s18 = ssub.s32 %s1078_s15, %s1240_s17  ;;  %162 = sbr.rel (%p847_p5) target bundleno = 20 (0x14), region = 20 }
   0x8   : > { %p39_p4 = scmp.eq.s32.totalorder %s37_s18, 0 }
   0xa   : > { %s1140_s20 = scalar_select %p39_p4, %s1070_s13, %s41_s19  }
   0xc   : > { %165 = sbr.rel (!%p50_p3) target bundleno = 20 (0x14), region = 24  ;;  %s167_s21 = sand.u32 (%p50_p3), 1, %s1070_s13  }
   0xd   : > { %s902_s22 = sshll.u32 (%p50_p3), %s1078_s15, 4  ;;  %s848_s23 = sshll.u32 (%p50_p3), %s167_s21, 6 }
   0xe   : > { %s175_s26 = scalar_lea.vmem (%p50_p3), %s1231_s0, %s902_s22  ;;  %s169_s27 = scalar_lea.vmem (%p50_p3), [#allocation3], %s848_s23 }
   0xf   : > { %v188_v0 = vld [vmem:[%s175_s26] sm:$0xff] (%p50_p3)  ;;  %v190_v1 = vld [vmem:[%s175_s26 + $0x8] sm:$0xff] (%p50_p3) }
  0x10   : > { %v192_v2 = vld [vmem:[%s175_s26 + $0x20] sm:$0xff] (%p50_p3)  ;;  %189 = vst [vmem:[%s169_s27] sm:$0xff] (%p50_p3), %v188_v0  ;;  %191 = vst [vmem:[%s169_s27 + $0x8] sm:$0xff] (%p50_p3), %v190_v1  ;;  %v194_v3 = vld [vmem:[%s175_s26 + $0x28] sm:$0xff] (%p50_p3) }
  0x11   : > { %193 = vst [vmem:[%s169_s27 + $0x10] sm:$0xff] %v192_v2  ;;  %v196_v4 = vld [vmem:[%s175_s26 + $0x40] sm:$0xff]  ;;  %v198_v5 = vld [vmem:[%s175_s26 + $0x48] sm:$0xff]  ;;  %195 = vst [vmem:[%s169_s27 + $0x18] sm:$0xff] %v194_v3 }
  0x12   : > { %197 = vst [vmem:[%s169_s27 + $0x20] sm:$0xff] %v196_v4  ;;  %199 = vst [vmem:[%s169_s27 + $0x28] sm:$0xff] %v198_v5  ;;  %v200_v6 = vld [vmem:[%s175_s26 + $0x60] sm:$0xff]  ;;  %v202_v7 = vld [vmem:[%s175_s26 + $0x68] sm:$0xff] }
  0x13   : > { %201 = vst [vmem:[%s169_s27 + $0x30] sm:$0xff] %v200_v6  ;;  %203 = vst [vmem:[%s169_s27 + $0x38] sm:$0xff] %v202_v7 }
  0x14 PF: > { %p851_p6 = scmp.ge.s32.totalorder %s1082_s16, 1  ;;  %p220_p7 = scmp.lt.s32.totalorder %s1082_s16, 3 }
  0x16   : > { %p221_p8 = pnand %p851_p6, %p220_p7 }
  0x17   : > { %s227_s28 = sand.u32 (!%p221_p8), 1, %s1066_s12   ;;  %s853_s29 = sshll.u32 (!%p221_p8), %s1074_s14, 6 }
  0x18   : > { %224 = sbr.rel (%p221_p8) target bundleno = 296 (0x128), region = 51  ;;  %s852_s30 = sshll.u32 (!%p221_p8), %s227_s28, 6 }
  0x19   : > { %p267_p9 = scmp.lt.s32.totalorder (!%p221_p8), %s853_s29, 127  ;;  %s1157_s8 = scalar_lea.vmem (!%p221_p8), [#allocation3], %s852_s30 }
  0x1a   : > { %p855_p10 = scmp.ne.s32.totalorder (!%p221_p8), %s1074_s14, 0 }
  0x1d   : > { %s1242_s29 = smov (!%p267_p9, %s853_s29), 127  ;;  %291 = sbr.rel (%p855_p10) target bundleno = 37 (0x25), region = 59 }
  0x1e   : > { %s854_s4 = sshll.u32 %s1242_s29, 2 }
  0x1f   : > { %s1155_s7 = scalar_lea.vmem %s1232_s1, %s854_s4 }
  0x22   : > { %v1084_v8 = vmov 0.0  }
  0x23   : > { %292 = vst [vmem:[#allocation2 + $0x10] sm:$0xff] %v1084_v8  ;;  %293 = vst [vmem:[#allocation2] sm:$0xff] %v1084_v8 }
  0x24   : > { %294 = vst [vmem:[#allocation2 + $0x18] sm:$0xff] %v1084_v8  ;;  %295 = vst [vmem:[#allocation2 + $0x8] sm:$0xff] %v1084_v8 }
  0x25 PF: > { %v1000_v9 = vld [vmem:[%s1155_s7 + $0x78] sm:$0xff]   ;;  %v1004_v13 = vld [vmem:[%s1155_s7 + $0x70] sm:$0xff]   ;;  %v1008_v17 = vld [vmem:[%s1155_s7 + $0x68] sm:$0xff]   ;;  %p896_p11 = scmp.ne.s32.totalorder %s1074_s14, 1 }
  0x26   : > { %v1001_v10 = vld [vmem:[%s1155_s7 + $0xf8] sm:$0xff]   ;;  %903 = vmatprep.subr.bf16.mxu0 %v1000_v9  ;;  %v1005_v14 = vld [vmem:[%s1155_s7 + $0xf0] sm:$0xff]   ;;  %v1009_v18 = vld [vmem:[%s1155_s7 + $0xe8] sm:$0xff]  }
  0x27   : > { %v1002_v11 = vld [vmem:[%s1155_s7 + $0x38] sm:$0xff]   ;;  %931 = vmatprep.subr.bf16.mxu1 %v1001_v10  ;;  %v1006_v15 = vld [vmem:[%s1155_s7 + $0x30] sm:$0xff]   ;;  %v1010_v19 = vld [vmem:[%s1155_s7 + $0x28] sm:$0xff]  }
  0x28   : > { %v1003_v12 = vld [vmem:[%s1155_s7 + $0xb8] sm:$0xff]   ;;  %904 = vmatpush3.bf16.msra.mxu0 %v1002_v11  ;;  %v1007_v16 = vld [vmem:[%s1155_s7 + $0xb0] sm:$0xff]   ;;  %v1011_v20 = vld [vmem:[%s1155_s7 + $0xa8] sm:$0xff]  }
  0x29   : > { %932 = vmatpush3.bf16.msra.mxu1 %v1003_v12  ;;  %905 = vmatprep.subr.bf16.mxu0 %v1004_v13  ;;  %v1012_v21 = vld [vmem:[%s1155_s7 + $0x60] sm:$0xff]   ;;  %v1016_v25 = vld [vmem:[%s1155_s7 + $0x58] sm:$0xff]   ;;  %v1020_v29 = vld [vmem:[%s1155_s7 + $0x50] sm:$0xff]  }
  0x2a   : > { %933 = vmatprep.subr.bf16.mxu1 %v1005_v14  ;;  %v1013_v22 = vld [vmem:[%s1155_s7 + $0xe0] sm:$0xff]   ;;  %v1017_v26 = vld [vmem:[%s1155_s7 + $0xd8] sm:$0xff]   ;;  %v1021_v30 = vld [vmem:[%s1155_s7 + $0xd0] sm:$0xff]  }
  0x2b   : > { %v1014_v23 = vld [vmem:[%s1155_s7 + $0x20] sm:$0xff]   ;;  %v1018_v27 = vld [vmem:[%s1155_s7 + $0x18] sm:$0xff]   ;;  %v1022_v31 = vld [vmem:[%s1155_s7 + $0x10] sm:$0xff]  }
  0x2c   : > { %906 = vmatpush3.bf16.msra.mxu0 %v1006_v15  ;;  %v1015_v24 = vld [vmem:[%s1155_s7 + $0xa0] sm:$0xff]   ;;  %v1019_v28 = vld [vmem:[%s1155_s7 + $0x98] sm:$0xff]   ;;  %v1023_v32 = vld [vmem:[%s1155_s7 + $0x90] sm:$0xff]  }
  0x2d   : > { %934 = vmatpush3.bf16.msra.mxu1 %v1007_v16  ;;  %907 = vmatprep.subr.bf16.mxu0 %v1008_v17  ;;  %v1024_v33 = vld [vmem:[%s1155_s7 + $0x48] sm:$0xff]   ;;  %v1028_v37 = vld [vmem:[%s1155_s7 + $0x40] sm:$0xff]   ;;  %v296_v56 = vld [vmem:[#allocation2 + $0x10] sm:$0xff] }
  0x2e   : > { %935 = vmatprep.subr.bf16.mxu1 %v1009_v18  ;;  %v1025_v34 = vld [vmem:[%s1155_s7 + $0xc8] sm:$0xff]   ;;  %v1029_v38 = vld [vmem:[%s1155_s7 + $0xc0] sm:$0xff]   ;;  %v298_v10 = vld [vmem:[#allocation2 + $0x18] sm:$0xff] }
  0x2f   : > { %v1026_v35 = vld [vmem:[%s1155_s7 + $0x8] sm:$0xff]   ;;  %v1030_v39 = vld [vmem:[%s1155_s7] sm:$0xff]  }
  0x30   : > { %908 = vmatpush3.bf16.msra.mxu0 %v1010_v19  ;;  %v1027_v36 = vld [vmem:[%s1155_s7 + $0x88] sm:$0xff]   ;;  %v1031_v40 = vld [vmem:[%s1155_s7 + $0x80] sm:$0xff]  }
  0x31   : > { %936 = vmatpush3.bf16.msra.mxu1 %v1011_v20  ;;  %909 = vmatprep.subr.bf16.mxu0 %v1012_v21  ;;  %v1032_v41 = vld [vmem:[%s1157_s8] ss:$16 sps:$4 sm:$0xff]   ;;  %v1034_v42 = vld [vmem:[%s1157_s8 + $0x4] ss:$16 sps:$4 sm:$0xff]   ;;  %v1035_v43 = vld [vmem:[%s1157_s8 + $0x8] ss:$16 sps:$4 sm:$0xff]  }
  0x32   : > { %937 = vmatprep.subr.bf16.mxu1 %v1013_v22  ;;  %v1037_v44 = vld [vmem:[%s1157_s8 + $0xc] ss:$16 sps:$4 sm:$0xff]   ;;  %636 = vmatprep.mubr.bf16.mxu0 %v1034_v42  ;;  %v1038_v45 = vld [vmem:[%s1157_s8 + $0x24] ss:$16 sps:$4 sm:$0xff]   ;;  %v1042_v47 = vld [vmem:[%s1157_s8 + $0x20] ss:$16 sps:$4 sm:$0xff]  }
  0x33   : > { %685 = vmatprep.mubr.bf16.mxu1 %v1037_v44  ;;  %v1040_v46 = vld [vmem:[%s1157_s8 + $0x2c] ss:$16 sps:$4 sm:$0xff]   ;;  %v1043_v48 = vld [vmem:[%s1157_s8 + $0x28] ss:$16 sps:$4 sm:$0xff]   ;;  %v297_v1 = vld [vmem:[#allocation2] sm:$0xff] }
  0x34   : > { %910 = vmatpush3.bf16.msra.mxu0 %v1014_v23  ;;  %v299_v18 = vld [vmem:[#allocation2 + $0x8] sm:$0xff] }
  0x35   : > { %938 = vmatpush3.bf16.msra.mxu1 %v1015_v24  ;;  %911 = vmatprep.subr.bf16.mxu0 %v1016_v25 }
  0x36   : > { %939 = vmatprep.subr.bf16.mxu1 %v1017_v26 }
  0x38   : > { %912 = vmatpush3.bf16.msra.mxu0 %v1018_v27 }
  0x39   : > { %940 = vmatpush3.bf16.msra.mxu1 %v1019_v28  ;;  %913 = vmatprep.subr.bf16.mxu0 %v1020_v29 }
  0x3a   : > { %941 = vmatprep.subr.bf16.mxu1 %v1021_v30 }
  0x3c   : > { %914 = vmatpush3.bf16.msra.mxu0 %v1022_v31 }
  0x3d   : > { %942 = vmatpush3.bf16.msra.mxu1 %v1023_v32  ;;  %915 = vmatprep.subr.bf16.mxu0 %v1024_v33 }
  0x3e   : > { %943 = vmatprep.subr.bf16.mxu1 %v1025_v34 }
  0x40   : > { %916 = vmatpush3.bf16.msra.mxu0 %v1026_v35 }
  0x41   : > { %944 = vmatpush3.bf16.msra.mxu1 %v1027_v36  ;;  %917 = vmatprep.subr.bf16.mxu0 %v1028_v37 }
  0x42   : > { %945 = vmatprep.subr.bf16.mxu1 %v1029_v38 }
  0x44   : > { %918 = vmatpush3.bf16.msra.mxu0 %v1030_v39 }
  0x45   : > { %946 = vmatpush3.bf16.msra.mxu1 %v1031_v40 }
  0x47   : > { %637 = vmatmul.mubr.bf16.vlgmr.msra.gmra.mxu0 %v1032_v41 }
  0x48   : > { %686 = vmatmul.mubr.bf16.vlgmr.msra.gmra.mxu1 %v1035_v43  ;;  %644 = vmatprep.mubr.bf16.mxu0 %v1038_v45 }
  0x49   : > { %693 = vmatprep.mubr.bf16.mxu1 %v1040_v46 }
  0x4f   : > { %645 = vmatmul.mubr.bf16.gmra.mxu0 %v1042_v47 }
  0x50   : > { %694 = vmatmul.mubr.bf16.gmra.mxu1 %v1043_v48 }
 0x107   : > { %v919_v49 = vpop.f32.mrf.mxu0 }
 0x108   : > { %v947_v50 = vpop.f32.mrf.mxu1 }
 0x109   : > { %v920_v51 = vpop.f32.mrf.mxu0 }
 0x10a   : > { %v921_v52 = vadd.f32 %v920_v51, %v919_v49  ;;  %v948_v53 = vpop.f32.mrf.mxu1 }
 0x10b   : > { %v949_v54 = vadd.f32 %v948_v53, %v947_v50  ;;  %v922_v55 = vpop.f32.mrf.mxu0 }
 0x10c   : > { %v950_v57 = vpop.f32.mrf.mxu1 }
 0x10d   : > { %v688_v58 = vadd.f32 %v949_v54, %v921_v52  ;;  %v923_v59 = vpop.f32.mrf.mxu0 }
 0x10e   : > { %v924_v60 = vadd.f32 %v923_v59, %v922_v55  ;;  %v951_v61 = vpop.f32.mrf.mxu1 }
 0x10f   : > { %v702_v62 = vadd.f32 %v688_v58, %v296_v56  ;;  %v952_v63 = vadd.f32 %v951_v61, %v950_v57  ;;  %v925_v0 = vpop.f32.mrf.mxu0 }
 0x110   : > { %v953_v2 = vpop.f32.mrf.mxu1 }
 0x111   : > { %706 = vst [vmem:[#allocation2 + $0x10] sm:$0xff] %v702_v62  ;;  %v691_v3 = vadd.f32 %v952_v63, %v924_v60  ;;  %v926_v4 = vpop.f32.mrf.mxu0 }
 0x112   : > { %v927_v5 = vadd.f32 %v926_v4, %v925_v0  ;;  %v954_v6 = vpop.f32.mrf.mxu1 }
 0x113   : > { %v703_v7 = vadd.f32 %v691_v3, %v297_v1  ;;  %v955_v8 = vadd.f32 %v954_v6, %v953_v2  ;;  %v928_v9 = vpop.f32.mrf.mxu0 }
 0x114   : > { %v956_v11 = vpop.f32.mrf.mxu1 }
 0x115   : > { %707 = vst [vmem:[#allocation2] sm:$0xff] %v703_v7  ;;  %v696_v12 = vadd.f32 %v955_v8, %v927_v5  ;;  %v929_v13 = vpop.f32.mrf.mxu0 }
 0x116   : > { %v930_v14 = vadd.f32 %v929_v13, %v928_v9  ;;  %v957_v15 = vpop.f32.mrf.mxu1 }
 0x117   : > { %v704_v16 = vadd.f32 %v696_v12, %v298_v10  ;;  %v958_v17 = vadd.f32 %v957_v15, %v956_v11 }
 0x119   : > { %708 = vst [vmem:[#allocation2 + $0x18] sm:$0xff] %v704_v16  ;;  %v699_v19 = vadd.f32 %v958_v17, %v930_v14  ;;  %713 = sbr.rel (%p896_p11) target bundleno = 296 (0x128), region = 63 }
 0x11b   : > { %v705_v20 = vadd.f32 %v699_v19, %v299_v18 }
 0x11d   : > { %709 = vst [vmem:[#allocation2 + $0x8] sm:$0xff] %v705_v20 }
 0x11e   : > { %v714_v21 = vld [vmem:[#allocation2 + $0x10] sm:$0xff]  ;;  %v897_v22 = vld [vmem:[%s1233_s2] ss:$0 sm:$0xff] }
 0x11f   : > { %v715_v23 = vld [vmem:[#allocation2] sm:$0xff]  ;;  %v725_v24 = vadd.f32 %v897_v22, %v714_v21 }
 0x120   : > { %v726_v25 = vadd.f32 %v897_v22, %v715_v23  ;;  %v716_v26 = vld [vmem:[#allocation2 + $0x18] sm:$0xff] }
 0x121   : > { %v727_v28 = vadd.f32 %v897_v22, %v716_v26  ;;  %729 = vst [vmem:[%s1234_s3] sm:$0xff] %v725_v24 }
 0x122   : > { %730 = vst [vmem:[%s1234_s3 + $0x8] sm:$0xff] %v726_v25 }
 0x123   : > { %731 = vst [vmem:[%s1234_s3 + $0x10] sm:$0xff] %v727_v28 }
 0x124   : > { %v717_v27 = vld [vmem:[#allocation2 + $0x8] sm:$0xff] }
 0x125   : > { %v728_v29 = vadd.f32 %v897_v22, %v717_v27 }
 0x127   : > { %732 = vst [vmem:[%s1234_s3 + $0x18] sm:$0xff] %v728_v29 }
 0x128 PF: > { %s13_s16 = sadd.s32 1, %s1082_s16   ;;  %s1235_s12 = smov %s1070_s13 }
 0x129   : > { %p10_p12 = scmp.ge.s32.totalorder %s13_s16, 4   ;;  %s1236_s13 = smov %s1140_s20 }
 0x12a   : > { %s1237_s14 = smov %s1078_s15  ;;  %s1238_s15 = smov %s1240_s17 }
 0x12b   :  { %12 = sbr.rel (!%p10_p12) target bundleno = 3 (0x3), region = 104 }

// kernel: multiscale_discriminator_forward.44
= control target key start
LH: loop header
LB: loop body
LE: loop exit
PB: predicated region body
PF: predicated region fallthrough
CT: control target
= control target key end

     0   :  { %s461_s12 = smov 0   ;;  %s463_s13 = smov 0   ;;  %s500_s0 = inlined_call_operand.vmem [shape: f32[2,16,128], index: 0, kind: input, shape index: {}]   ;;  %s501_s1 = inlined_call_operand.vmem [shape: f32[2,1,128], index: 1, kind: input, shape index: {}]   ;;  %s502_s2 = inlined_call_operand.vmem [shape: f32[2,1,128], index: 2, kind: input, shape index: {}]   ;;  %s503_s3 = inlined_call_operand.vmem [shape: f32[2,16,128], index: 3, kind: output, shape index: {}]  }
   0x1   :  { %s465_s14 = smov 0  }
   0x2 LB: > { %s25_s15 = sadd.s32 1, %s435_s13  ;;  %p382_p0 = scmp.ge.s32.totalorder %s439_s14, 1  ;;  %s439_s14 = sphi %s465_s14, %s13_s14   ;;  %s435_s13 = sphi %s463_s13, %s505_s13   ;;  %s431_s12 = sphi %s461_s12, %s504_s12  }
   0x3   : > { %p27_p1 = scmp.ge.s32.totalorder %s25_s15, 2  ;;  %p174_p2 = scmp.lt.s32.totalorder %s439_s14, 3 }
   0x5   : > { %s507_s15 = smov (%p27_p1, %s25_s15), 0  ;;  %p175_p3 = pnand %p382_p0, %p174_p2 }
   0x6   : > { %p213_p4 = scmp.lt.s32.totalorder (!%p175_p3), %s431_s12, 1 }
   0x7   : > { %178 = sbr.rel (%p175_p3) target bundleno = 47 (0x2f), region = 32 }
   0xc   : > { %s509_s12 = smov (!%p213_p4, %s431_s12), 1  ;;  %v250_v7 = vlaneseq }
   0xd   : > { %s224_s18 = scalar_lea.vmem %s501_s1, %s509_s12  ;;  %s227_s21 = scalar_lea.vmem %s502_s2, %s509_s12 }
   0xe   : > { %v238_v0 = vld [vmem:[%s224_s18] sm:$0x1]  ;;  %v251_v9 = vshrl.u32 %v250_v7, 7  ;;  %s389_s22 = sshll.u32 %s509_s12, 4 }
   0xf   : > { %v239_v1 = vmul.f32 0.0625, %v238_v0  ;;  %v240_v2 = vld [vmem:[%s227_s21] sm:$0x1]  ;;  %s220_s25 = scalar_lea.vmem %s500_s0, %s389_s22  ;;  %s236_s28 = scalar_lea.vmem %s503_s3, %s389_s22 }
  0x10   : > { %v241_v3 = vmul.f32 0.0625, %v240_v2  ;;  %v252_v10 = vsub.s32 0, %v251_v9  ;;  %v247_v12 = vld [vmem:[%s220_s25] sm:$0xff]  ;;  %v248_v13 = vld [vmem:[%s220_s25 + $0x8] sm:$0xff] }
  0x11   : > { %v242_v4 = vmul.f32 %v239_v1, %v239_v1 }
  0x12   : > { %v253_v11 = vrot.slane %v239_v1, %v252_v10 }
  0x13   : > { %v243_v5 = vsub.f32 %v241_v3, %v242_v4 }
  0x14   : > { %v255_v14 = vsub.f32 %v247_v12, %v253_v11  ;;  %v256_v15 = vsub.f32 %v248_v13, %v253_v11 }
  0x15   : > { %v244_v6 = vmax.f32 %v243_v5, 0.0 }
  0x17   : > { %v245_v8 = vadd.f32 1e-05, %v244_v6 }
  0x19   : > { %415 = vrsqrt.f32 %v245_v8 }
  0x26   : > { %v416_v16 = vpop.eup %415 }
  0x27   : > { %v261_v17 = vrot.slane %v416_v16, %v252_v10 }
  0x29   : > { %v263_v18 = vmul.f32 %v261_v17, %v255_v14  ;;  %v264_v19 = vmul.f32 %v261_v17, %v256_v15 }
  0x2b   : > { %vm265_vm0 = vcmp.ge.f32.partialorder %v263_v18, 0.0  ;;  %v267_v20 = vmul.f32 0.2, %v263_v18  ;;  %vm266_vm1 = vcmp.ge.f32.partialorder %v264_v19, 0.0  ;;  %v268_v21 = vmul.f32 0.2, %v264_v19 }
  0x2d   : > { %v269_v22 = vsel %vm265_vm0, %v263_v18, %v267_v20  ;;  %v270_v23 = vsel %vm266_vm1, %v264_v19, %v268_v21 }
  0x2e   : > { %271 = vst [vmem:[%s236_s28] sm:$0xff] %v269_v22  ;;  %272 = vst [vmem:[%s236_s28 + $0x8] sm:$0xff] %v270_v23 }
  0x2f PF: > { %s13_s14 = sadd.s32 1, %s439_s14   ;;  %s504_s12 = smov %s435_s13 }
  0x30   : > { %p10_p5 = scmp.ge.s32.totalorder %s13_s14, 4   ;;  %s505_s13 = smov %s507_s15 }
  0x32   :  { %12 = sbr.rel (!%p10_p5) target bundleno = 2 (0x2), region = 68 }

// kernel: multiscale_discriminator_forward.45
= control target key start
LH: loop header
LB: loop body
LE: loop exit
PB: predicated region body
PF: predicated region fallthrough
CT: control target
= control target key end

     0   :  { %s1250_s12 = smov 0   ;;  %s1252_s13 = smov 0   ;;  %s1391_s0 = inlined_call_operand.vmem [shape: bf16[56,2048], index: 0, kind: input, shape index: {}]   ;;  %s1392_s1 = inlined_call_operand.vmem [shape: bf16[2048,128], index: 1, kind: input, shape index: {}]   ;;  %s1393_s2 = inlined_call_operand.vmem [shape: f32[1,128], index: 2, kind: input, shape index: {}]   ;;  %s1394_s3 = inlined_call_operand.vmem [shape: f32[56,128], index: 3, kind: output, shape index: {}]  }
   0x1   :  { %s1254_s14 = smov 0   ;;  %s1256_s15 = smov 0  }
   0x2   :  { %s1258_s16 = smov 0  }
   0x3 LB: > { %s25_s17 = sadd.s32 1, %s1223_s15  ;;  %p48_p1 = scmp.ne.s32.totalorder %s1215_s13, %s1211_s12  ;;  %s1227_s16 = sphi %s1258_s16, %s13_s16   ;;  %s1223_s15 = sphi %s1256_s15, %s1398_s15   ;;  %s1219_s14 = sphi %s1254_s14, %s1397_s14   ;;  %s1215_s13 = sphi %s1252_s13, %s1396_s13   ;;  %s1211_s12 = sphi %s1250_s12, %s1395_s12  }
   0x4   : > { %p26_p0 = scmp.ge.s32.totalorder %s25_s17, 4  ;;  %p49_p2 = scmp.eq.s32.totalorder %s1227_s16, 0 }
   0x5   : > { %s41_s19 = sadd.s32 1, %s1215_s13  ;;  %p950_p5 = scmp.ge.s32.totalorder %s1227_s16, 4 }
   0x6   : > { %s1400_s17 = smov (%p26_p0, %s25_s17), 0  ;;  %p50_p3 = por %p49_p2, %p48_p1 }
   0x7   : > { %s37_s18 = ssub.s32 %s1223_s15, %s1400_s17  ;;  %162 = sbr.rel (%p950_p5) target bundleno = 23 (0x17), region = 20 }
   0x8   : > { %p39_p4 = scmp.eq.s32.totalorder %s37_s18, 0 }
   0xa   : > { %s1285_s20 = scalar_select %p39_p4, %s1215_s13, %s41_s19  }
   0xc   : > { %165 = sbr.rel (!%p50_p3) target bundleno = 23 (0x17), region = 24  ;;  %s167_s21 = sand.u32 (%p50_p3), 1, %s1215_s13  }
   0xd   : > { %s1011_s22 = sshll.u32 (%p50_p3), %s1223_s15, 4  ;;  %s1092_s23 = smul.u32 (%p50_p3), 112, %s167_s21 }
   0xe   : > { %s175_s26 = scalar_lea.vmem (%p50_p3), %s1391_s0, %s1011_s22 }
   0xf   : > { %v188_v0 = vld [vmem:[%s175_s26] sm:$0xff] (%p50_p3)  ;;  %v190_v1 = vld [vmem:[%s175_s26 + $0x8] sm:$0xff] (%p50_p3)  ;;  %s169_s27 = scalar_lea.vmem (%p50_p3), [#allocation3], %s1092_s23 }
  0x10   : > { %v192_v2 = vld [vmem:[%s175_s26 + $0x40] sm:$0xff] (%p50_p3)  ;;  %v194_v3 = vld [vmem:[%s175_s26 + $0x48] sm:$0xff] (%p50_p3)  ;;  %189 = vst [vmem:[%s169_s27] sm:$0xff] (%p50_p3), %v188_v0  ;;  %191 = vst [vmem:[%s169_s27 + $0x8] sm:$0xff] (%p50_p3), %v190_v1 }
  0x11   : > { %v196_v4 = vld [vmem:[%s175_s26 + $0x80] sm:$0xff]  ;;  %v198_v5 = vld [vmem:[%s175_s26 + $0x88] sm:$0xff]  ;;  %193 = vst [vmem:[%s169_s27 + $0x10] sm:$0xff] %v192_v2  ;;  %195 = vst [vmem:[%s169_s27 + $0x18] sm:$0xff] %v194_v3 }
  0x12   : > { %197 = vst [vmem:[%s169_s27 + $0x20] sm:$0xff] %v196_v4  ;;  %199 = vst [vmem:[%s169_s27 + $0x28] sm:$0xff] %v198_v5  ;;  %v200_v6 = vld [vmem:[%s175_s26 + $0xc0] sm:$0xff]  ;;  %v202_v7 = vld [vmem:[%s175_s26 + $0xc8] sm:$0xff] }
  0x13   : > { %v204_v8 = vld [vmem:[%s175_s26 + $0x100] sm:$0xff]  ;;  %201 = vst [vmem:[%s169_s27 + $0x30] sm:$0xff] %v200_v6  ;;  %203 = vst [vmem:[%s169_s27 + $0x38] sm:$0xff] %v202_v7  ;;  %v206_v9 = vld [vmem:[%s175_s26 + $0x108] sm:$0xff] }
  0x14   : > { %205 = vst [vmem:[%s169_s27 + $0x40] sm:$0xff] %v204_v8  ;;  %v208_v10 = vld [vmem:[%s175_s26 + $0x140] sm:$0xff]  ;;  %v210_v11 = vld [vmem:[%s175_s26 + $0x148] sm:$0xff]  ;;  %207 = vst [vmem:[%s169_s27 + $0x48] sm:$0xff] %v206_v9 }
  0x15   : > { %209 = vst [vmem:[%s169_s27 + $0x50] sm:$0xff] %v208_v10  ;;  %211 = vst [vmem:[%s169_s27 + $0x58] sm:$0xff] %v210_v11  ;;  %v212_v12 = vld [vmem:[%s175_s26 + $0x180] sm:$0xff]  ;;  %v214_v13 = vld [vmem:[%s175_s26 + $0x188] sm:$0xff] }
  0x16   : > { %213 = vst [vmem:[%s169_s27 + $0x60] sm:$0xff] %v212_v12  ;;  %215 = vst [vmem:[%s169_s27 + $0x68] sm:$0xff] %v214_v13 }
  0x17 PF: > { %p953_p6 = scmp.ge.s32.totalorder %s1227_s16, 1  ;;  %p232_p7 = scmp.lt.s32.totalorder %s1227_s16, 5 }
  0x19   : > { %p233_p8 = pnand %p953_p6, %p232_p7 }
  0x1a   : > { %s239_s28 = sand.u32 (!%p233_p8), 1, %s1211_s12   ;;  %s954_s29 = sshll.u32 (!%p233_p8), %s1219_s14, 6 }
  0x1b   : > { %236 = sbr.rel (%p233_p8) target bundleno = 313 (0x139), region = 51  ;;  %p279_p9 = scmp.lt.s32.totalorder (!%p233_p8), %s954_s29, 255 }
  0x1c   : > { %s1093_s30 = smul.u32 (!%p233_p8), 112, %s239_s28  ;;  %p956_p10 = scmp.ne.s32.totalorder (!%p233_p8), %s1219_s14, 0 }
  0x1e   : > { %s1302_s8 = scalar_lea.vmem (!%p233_p8), [#allocation3], %s1093_s30 }
  0x20   : > { %s1402_s29 = smov (!%p279_p9, %s954_s29), 255  ;;  %303 = sbr.rel (%p956_p10) target bundleno = 42 (0x2a), region = 59 }
  0x21   : > { %s955_s4 = sshll.u32 %s1402_s29, 2 }
  0x22   : > { %s1300_s7 = scalar_lea.vmem %s1392_s1, %s955_s4 }
  0x25   : > { %v1229_v14 = vmov 0.0  }
  0x26   : > { %304 = vst [vmem:[#allocation2 + $0x30] sm:$0xff] %v1229_v14  ;;  %305 = vst [vmem:[#allocation2] sm:$0xff] %v1229_v14 }
  0x27   : > { %306 = vst [vmem:[#allocation2 + $0x18] sm:$0xff] %v1229_v14  ;;  %307 = vst [vmem:[#allocation2 + $0x10] sm:$0xff] %v1229_v14 }
  0x28   : > { %308 = vst [vmem:[#allocation2 + $0x8] sm:$0xff] %v1229_v14  ;;  %309 = vst [vmem:[#allocation2 + $0x20] sm:$0xff] %v1229_v14 }
  0x29   : > { %310 = vst [vmem:[#allocation2 + $0x28] sm:$0xff] %v1229_v14 }
  0x2a PF: > { %v1135_v15 = vld [vmem:[%s1300_s7 + $0x78] sm:$0xff]   ;;  %v1139_v19 = vld [vmem:[%s1300_s7 + $0x70] sm:$0xff]   ;;  %v1143_v23 = vld [vmem:[%s1300_s7 + $0x68] sm:$0xff]   ;;  %p1005_p11 = scmp.ne.s32.totalorder %s1219_s14, 3 }
  0x2b   : > { %v1136_v16 = vld [vmem:[%s1300_s7 + $0xf8] sm:$0xff]   ;;  %1012 = vmatprep.subr.bf16.mxu0 %v1135_v15  ;;  %v1140_v20 = vld [vmem:[%s1300_s7 + $0xf0] sm:$0xff]   ;;  %v1144_v24 = vld [vmem:[%s1300_s7 + $0xe8] sm:$0xff]  }
  0x2c   : > { %v1137_v17 = vld [vmem:[%s1300_s7 + $0x38] sm:$0xff]   ;;  %1052 = vmatprep.subr.bf16.mxu1 %v1136_v16  ;;  %v1141_v21 = vld [vmem:[%s1300_s7 + $0x30] sm:$0xff]   ;;  %v1145_v25 = vld [vmem:[%s1300_s7 + $0x28] sm:$0xff]  }
  0x2d   : > { %v1138_v18 = vld [vmem:[%s1300_s7 + $0xb8] sm:$0xff]   ;;  %1013 = vmatpush3.bf16.msra.mxu0 %v1137_v17  ;;  %v1142_v22 = vld [vmem:[%s1300_s7 + $0xb0] sm:$0xff]   ;;  %v1146_v26 = vld [vmem:[%s1300_s7 + $0xa8] sm:$0xff]  }
  0x2e   : > { %1053 = vmatpush3.bf16.msra.mxu1 %v1138_v18  ;;  %1014 = vmatprep.subr.bf16.mxu0 %v1139_v19  ;;  %v1147_v27 = vld [vmem:[%s1300_s7 + $0x60] sm:$0xff]   ;;  %v1151_v31 = vld [vmem:[%s1300_s7 + $0x58] sm:$0xff]   ;;  %v1155_v35 = vld [vmem:[%s1300_s7 + $0x50] sm:$0xff]  }
  0x2f   : > { %1054 = vmatprep.subr.bf16.mxu1 %v1140_v20  ;;  %v1148_v28 = vld [vmem:[%s1300_s7 + $0xe0] sm:$0xff]   ;;  %v1152_v32 = vld [vmem:[%s1300_s7 + $0xd8] sm:$0xff]   ;;  %v1156_v36 = vld [vmem:[%s1300_s7 + $0xd0] sm:$0xff]  }
  0x30   : > { %v1149_v29 = vld [vmem:[%s1300_s7 + $0x20] sm:$0xff]   ;;  %v1153_v33 = vld [vmem:[%s1300_s7 + $0x18] sm:$0xff]   ;;  %v1157_v37 = vld [vmem:[%s1300_s7 + $0x10] sm:$0xff]  }
  0x31   : > { %1015 = vmatpush3.bf16.msra.mxu0 %v1141_v21  ;;  %v1150_v30 = vld [vmem:[%s1300_s7 + $0xa0] sm:$0xff]   ;;  %v1154_v34 = vld [vmem:[%s1300_s7 + $0x98] sm:$0xff]   ;;  %v1158_v38 = vld [vmem:[%s1300_s7 + $0x90] sm:$0xff]  }
  0x32   : > { %1055 = vmatpush3.bf16.msra.mxu1 %v1142_v22  ;;  %1016 = vmatprep.subr.bf16.mxu0 %v1143_v23  ;;  %v1159_v39 = vld [vmem:[%s1300_s7 + $0x48] sm:$0xff]   ;;  %v1163_v43 = vld [vmem:[%s1300_s7 + $0x40] sm:$0xff]   ;;  %v311_v8 = vld [vmem:[#allocation2 + $0x30] sm:$0xff] }
  0x33   : > { %1056 = vmatprep.subr.bf16.mxu1 %v1144_v24  ;;  %v1160_v40 = vld [vmem:[%s1300_s7 + $0xc8] sm:$0xff]   ;;  %v1164_v44 = vld [vmem:[%s1300_s7 + $0xc0] sm:$0xff]  }
  0x34   : > { %v1161_v41 = vld [vmem:[%s1300_s7 + $0x8] sm:$0xff]   ;;  %v1165_v45 = vld [vmem:[%s1300_s7] sm:$0xff]  }
  0x35   : > { %1017 = vmatpush3.bf16.msra.mxu0 %v1145_v25  ;;  %v1162_v42 = vld [vmem:[%s1300_s7 + $0x88] sm:$0xff]   ;;  %v1166_v46 = vld [vmem:[%s1300_s7 + $0x80] sm:$0xff]  }
  0x36   : > { %1057 = vmatpush3.bf16.msra.mxu1 %v1146_v26  ;;  %1018 = vmatprep.subr.bf16.mxu0 %v1147_v27  ;;  %v1167_v47 = vld [vmem:[%s1302_s8] ss:$16 sps:$4 sm:$0xff]   ;;  %v1169_v48 = vld [vmem:[%s1302_s8 + $0x4] ss:$16 sps:$4 sm:$0xff]   ;;  %v1170_v49 = vld [vmem:[%s1302_s8 + $0x8] ss:$16 sps:$4 sm:$0xff]  }
  0x37   : > { %1058 = vmatprep.subr.bf16.mxu1 %v1148_v28  ;;  %v1172_v50 = vld [vmem:[%s1302_s8 + $0xc] ss:$16 sps:$4 sm:$0xff]   ;;  %694 = vmatprep.mubr.bf16.mxu0 %v1169_v48  ;;  %v1173_v51 = vld [vmem:[%s1302_s8 + $0x24] ss:$16 sps:$4 sm:$0xff]   ;;  %v1177_v53 = vld [vmem:[%s1302_s8 + $0x20] ss:$16 sps:$4 sm:$0xff]  }
  0x38   : > { %758 = vmatprep.mubr.bf16.mxu1 %v1172_v50  ;;  %v1175_v52 = vld [vmem:[%s1302_s8 + $0x2c] ss:$16 sps:$4 sm:$0xff]   ;;  %v1178_v54 = vld [vmem:[%s1302_s8 + $0x28] ss:$16 sps:$4 sm:$0xff]   ;;  %v1179_v55 = vld [vmem:[%s1302_s8 + $0x44] ss:$16 sps:$4 sm:$0xff]  }
  0x39   : > { %1019 = vmatpush3.bf16.msra.mxu0 %v1149_v29  ;;  %v1181_v56 = vld [vmem:[%s1302_s8 + $0x4c] ss:$16 sps:$4 sm:$0xff]   ;;  %v330_v57 = vld [vmem:[%s1302_s8 + $0x60] sm:$0xff]  ;;  %v1184_v60 = vld [vmem:[%s1302_s8 + $0x48] ss:$16 sps:$4 sm:$0xff]  }
  0x3a   : > { %1059 = vmatpush3.bf16.msra.mxu1 %v1150_v30  ;;  %1020 = vmatprep.subr.bf16.mxu0 %v1151_v31  ;;  %v331_v58 = vld [vmem:[%s1302_s8 + $0x68] sm:$0xff]  ;;  %v1183_v59 = vld [vmem:[%s1302_s8 + $0x40] ss:$16 sps:$4 sm:$0xff]   ;;  %v970_v61 = vcombine.high %v330_v57, %v330_v57  ;;  %v969_v63 = vcombine.low %v330_v57, %v330_v57 }
  0x3b   : > { %1060 = vmatprep.subr.bf16.mxu1 %v1152_v32  ;;  %v972_v62 = vcombine.high %v331_v58, %v331_v58  ;;  %v971_v0 = vcombine.low %v331_v58, %v331_v58  ;;  %v312_v17 = vld [vmem:[#allocation2] sm:$0xff]  ;;  %v313_v26 = vld [vmem:[#allocation2 + $0x18] sm:$0xff] }
  0x3d   : > { %1021 = vmatpush3.bf16.msra.mxu0 %v1153_v33 }
  0x3e   : > { %1061 = vmatpush3.bf16.msra.mxu1 %v1154_v34  ;;  %1022 = vmatprep.subr.bf16.mxu0 %v1155_v35  ;;  %v314_v35 = vld [vmem:[#allocation2 + $0x10] sm:$0xff] }
  0x3f   : > { %1062 = vmatprep.subr.bf16.mxu1 %v1156_v36 }
  0x41   : > { %1023 = vmatpush3.bf16.msra.mxu0 %v1157_v37 }
  0x42   : > { %1063 = vmatpush3.bf16.msra.mxu1 %v1158_v38  ;;  %1024 = vmatprep.subr.bf16.mxu0 %v1159_v39 }
  0x43   : > { %1064 = vmatprep.subr.bf16.mxu1 %v1160_v40 }
  0x45   : > { %1025 = vmatpush3.bf16.msra.mxu0 %v1161_v41 }
  0x46   : > { %1065 = vmatpush3.bf16.msra.mxu1 %v1162_v42  ;;  %1026 = vmatprep.subr.bf16.mxu0 %v1163_v43 }
  0x47   : > { %1066 = vmatprep.subr.bf16.mxu1 %v1164_v44  ;;  %v315_v44 = vld [vmem:[#allocation2 + $0x8] sm:$0xff] }
  0x49   : > { %1027 = vmatpush3.bf16.msra.mxu0 %v1165_v45 }
  0x4a   : > { %1067 = vmatpush3.bf16.msra.mxu1 %v1166_v46 }
  0x4c   : > { %695 = vmatmul.mubr.bf16.vlgmr.msra.gmra.mxu0 %v1167_v47 }
  0x4d   : > { %759 = vmatmul.mubr.bf16.vlgmr.msra.gmra.mxu1 %v1170_v49  ;;  %702 = vmatprep.mubr.bf16.mxu0 %v1173_v51 }
  0x4e   : > { %766 = vmatprep.mubr.bf16.mxu1 %v1175_v52 }
  0x54   : > { %703 = vmatmul.mubr.bf16.gmra.mxu0 %v1177_v53  ;;  %v316_v53 = vld [vmem:[#allocation2 + $0x20] sm:$0xff] }
  0x55   : > { %767 = vmatmul.mubr.bf16.gmra.mxu1 %v1178_v54  ;;  %710 = vmatprep.mubr.bf16.mxu0 %v1179_v55 }
  0x56   : > { %774 = vmatprep.mubr.bf16.mxu1 %v1181_v56 }
  0x5c   : > { %711 = vmatmul.mubr.bf16.gmra.mxu0 %v1183_v59 }
  0x5d   : > { %775 = vmatmul.mubr.bf16.gmra.mxu1 %v1184_v60  ;;  %718 = vmatprep.mubr.bf16.mxu0 %v970_v61 }
  0x5e   : > { %782 = vmatprep.mubr.bf16.mxu1 %v972_v62  ;;  %v317_v62 = vld [vmem:[#allocation2 + $0x28] sm:$0xff] }
  0x64   : > { %719 = vmatmul.mubr.bf16.gmra.mxu0 %v969_v63 }
  0x65   : > { %783 = vmatmul.mubr.bf16.gmra.mxu1 %v971_v0 }
 0x10c   : > { %v1028_v1 = vpop.f32.mrf.mxu0 }
 0x10d   : > { %v1068_v2 = vpop.f32.mrf.mxu1 }
 0x10e   : > { %v1029_v3 = vpop.f32.mrf.mxu0 }
 0x10f   : > { %v1030_v4 = vadd.f32 %v1029_v3, %v1028_v1  ;;  %v1069_v5 = vpop.f32.mrf.mxu1 }
 0x110   : > { %v1070_v6 = vadd.f32 %v1069_v5, %v1068_v2  ;;  %v1031_v7 = vpop.f32.mrf.mxu0 }
 0x111   : > { %v1071_v9 = vpop.f32.mrf.mxu1 }
 0x112   : > { %v761_v10 = vadd.f32 %v1070_v6, %v1030_v4  ;;  %v1032_v11 = vpop.f32.mrf.mxu0 }
 0x113   : > { %v1033_v12 = vadd.f32 %v1032_v11, %v1031_v7  ;;  %v1072_v13 = vpop.f32.mrf.mxu1 }
 0x114   : > { %v790_v14 = vadd.f32 %v761_v10, %v311_v8  ;;  %v1073_v15 = vadd.f32 %v1072_v13, %v1071_v9  ;;  %v1034_v16 = vpop.f32.mrf.mxu0 }
 0x115   : > { %v1074_v18 = vpop.f32.mrf.mxu1 }
 0x116   : > { %797 = vst [vmem:[#allocation2 + $0x30] sm:$0xff] %v790_v14  ;;  %v764_v19 = vadd.f32 %v1073_v15, %v1033_v12  ;;  %v1035_v20 = vpop.f32.mrf.mxu0 }
 0x117   : > { %v1036_v21 = vadd.f32 %v1035_v20, %v1034_v16  ;;  %v1075_v22 = vpop.f32.mrf.mxu1 }
 0x118   : > { %v791_v23 = vadd.f32 %v764_v19, %v312_v17  ;;  %v1076_v24 = vadd.f32 %v1075_v22, %v1074_v18  ;;  %v1037_v25 = vpop.f32.mrf.mxu0 }
 0x119   : > { %v1077_v27 = vpop.f32.mrf.mxu1 }
 0x11a   : > { %798 = vst [vmem:[#allocation2] sm:$0xff] %v791_v23  ;;  %v769_v28 = vadd.f32 %v1076_v24, %v1036_v21  ;;  %v1038_v29 = vpop.f32.mrf.mxu0 }
 0x11b   : > { %v1039_v30 = vadd.f32 %v1038_v29, %v1037_v25  ;;  %v1078_v31 = vpop.f32.mrf.mxu1 }
 0x11c   : > { %v792_v32 = vadd.f32 %v769_v28, %v313_v26  ;;  %v1079_v33 = vadd.f32 %v1078_v31, %v1077_v27  ;;  %v1040_v34 = vpop.f32.mrf.mxu0 }
 0x11d   : > { %v1080_v36 = vpop.f32.mrf.mxu1 }
 0x11e   : > { %799 = vst [vmem:[#allocation2 + $0x18] sm:$0xff] %v792_v32  ;;  %v772_v37 = vadd.f32 %v1079_v33, %v1039_v30  ;;  %v1041_v38 = vpop.f32.mrf.mxu0 }
 0x11f   : > { %v1042_v39 = vadd.f32 %v1041_v38, %v1040_v34  ;;  %v1081_v40 = vpop.f32.mrf.mxu1 }
 0x120   : > { %v793_v41 = vadd.f32 %v772_v37, %v314_v35  ;;  %v1082_v42 = vadd.f32 %v1081_v40, %v1080_v36  ;;  %v1043_v43 = vpop.f32.mrf.mxu0 }
 0x121   : > { %v1083_v45 = vpop.f32.mrf.mxu1 }
 0x122   : > { %800 = vst [vmem:[#allocation2 + $0x10] sm:$0xff] %v793_v41  ;;  %v777_v46 = vadd.f32 %v1082_v42, %v1042_v39  ;;  %v1044_v47 = vpop.f32.mrf.mxu0 }
 0x123   : > { %v1045_v48 = vadd.f32 %v1044_v47, %v1043_v43  ;;  %v1084_v49 = vpop.f32.mrf.mxu1 }
 0x124   : > { %v794_v50 = vadd.f32 %v777_v46, %v315_v44  ;;  %v1085_v51 = vadd.f32 %v1084_v49, %v1083_v45  ;;  %v1046_v52 = vpop.f32.mrf.mxu0 }
 0x125   : > { %v1086_v54 = vpop.f32.mrf.mxu1 }
 0x126   : > { %801 = vst [vmem:[#allocation2 + $0x8] sm:$0xff] %v794_v50  ;;  %v780_v55 = vadd.f32 %v1085_v51, %v1045_v48  ;;  %v1047_v56 = vpop.f32.mrf.mxu0 }
 0x127   : > { %v1048_v57 = vadd.f32 %v1047_v56, %v1046_v52  ;;  %v1087_v58 = vpop.f32.mrf.mxu1 }
 0x128   : > { %v795_v59 = vadd.f32 %v780_v55, %v316_v53  ;;  %v1088_v60 = vadd.f32 %v1087_v58, %v1086_v54  ;;  %v1049_v61 = vpop.f32.mrf.mxu0 }
 0x129   : > { %v1089_v63 = vpop.f32.mrf.mxu1 }
 0x12a   : > { %802 = vst [vmem:[#allocation2 + $0x20] sm:$0xff] %v795_v59  ;;  %v785_v0 = vadd.f32 %v1088_v60, %v1048_v57  ;;  %v1050_v1 = vpop.f32.mrf.mxu0  ;;  %807 = sbr.rel (%p1005_p11) target bundleno = 313 (0x139), region = 63 }
 0x12b   : > { %v1090_v2 = vpop.f32.mrf.mxu1 }
 0x12c   : > { %v796_v3 = vadd.f32 %v785_v0, %v317_v62 }
 0x12e   : > { %803 = vst [vmem:[#allocation2 + $0x28] sm:$0xff] %v796_v3 }
 0x12f   : > { %v808_v4 = vld [vmem:[#allocation2 + $0x30] sm:$0xff]  ;;  %v1006_v5 = vld [vmem:[%s1393_s2] ss:$0 sm:$0xff]  ;;  %v810_v9 = vld [vmem:[#allocation2 + $0x18] sm:$0xff] }
 0x130   : > { %v809_v6 = vld [vmem:[#allocation2] sm:$0xff]  ;;  %v822_v7 = vadd.f32 %v1006_v5, %v808_v4  ;;  %v811_v10 = vld [vmem:[#allocation2 + $0x10] sm:$0xff]  ;;  %v812_v11 = vld [vmem:[#allocation2 + $0x8] sm:$0xff]  ;;  %v824_v12 = vadd.f32 %v1006_v5, %v810_v9 }
 0x131   : > { %v823_v8 = vadd.f32 %v1006_v5, %v809_v6  ;;  %v825_v13 = vadd.f32 %v1006_v5, %v811_v10  ;;  %v826_v14 = vadd.f32 %v1006_v5, %v812_v11  ;;  %v813_v15 = vld [vmem:[#allocation2 + $0x20] sm:$0xff] }
 0x132   : > { %829 = vst [vmem:[%s1394_s3] sm:$0xff] %v822_v7  ;;  %v827_v17 = vadd.f32 %v1006_v5, %v813_v15  ;;  %831 = vst [vmem:[%s1394_s3 + $0x10] sm:$0xff] %v824_v12 }
 0x133   : > { %830 = vst [vmem:[%s1394_s3 + $0x8] sm:$0xff] %v823_v8  ;;  %832 = vst [vmem:[%s1394_s3 + $0x18] sm:$0xff] %v825_v13 }
 0x134   : > { %833 = vst [vmem:[%s1394_s3 + $0x20] sm:$0xff] %v826_v14  ;;  %834 = vst [vmem:[%s1394_s3 + $0x28] sm:$0xff] %v827_v17 }
 0x135   : > { %v814_v16 = vld [vmem:[#allocation2 + $0x28] sm:$0xff] }
 0x136   : > { %v828_v18 = vadd.f32 %v1006_v5, %v814_v16 }
 0x138   : > { %835 = vst [vmem:[%s1394_s3 + $0x30] sm:$0xff] %v828_v18 }
 0x139 PF: > { %s13_s16 = sadd.s32 1, %s1227_s16   ;;  %s1395_s12 = smov %s1215_s13 }
 0x13a   : > { %p10_p12 = scmp.ge.s32.totalorder %s13_s16, 6   ;;  %s1396_s13 = smov %s1285_s20 }
 0x13b   : > { %s1397_s14 = smov %s1223_s15  ;;  %s1398_s15 = smov %s1400_s17 }
 0x13c   :  { %12 = sbr.rel (!%p10_p12) target bundleno = 3 (0x3), region = 104 }

// kernel: multiscale_discriminator_forward.46
= control target key start
LH: loop header
LB: loop body
LE: loop exit
PB: predicated region body
PF: predicated region fallthrough
CT: control target
= control target key end

     0   :  { %s485_s9 = smov 0   ;;  %s630_s0 = inlined_call_operand.vmem [shape: f32[2,4,9,9,3], index: 0, kind: input, shape index: {}]   ;;  %s631_s1 = inlined_call_operand.vmem [shape: f32[8,8,3], index: 1, kind: input, shape index: {}]   ;;  %s632_s2 = inlined_call_operand.vmem [shape: f32[2,8,8,3], index: 2, kind: output, shape index: {}]  }
   0x1 LB: > { %s442_s10 = sadd.s32 4294967295, %s468_s9   ;;  %p446_p0 = scmp.ge.s32.totalorder %s468_s9, 1  ;;  %s468_s9 = sphi %s485_s9, %s12_s9  }
   0x2   : > { %p112_p1 = scmp.lt.s32.totalorder %s468_s9, 3 }
   0x4   : > { %p113_p2 = pnand %p446_p0, %p112_p1 }
   0x5   : > { %p134_p3 = scmp.lt.s32.totalorder (!%p113_p2), %s442_s10, 1 }
   0x6   : > { %116 = sbr.rel (%p113_p2) target bundleno = 59 (0x3b), region = 28 }
   0xb   : > { %s634_s10 = smov (!%p134_p3, %s442_s10), 1  ;;  %vm211_vm0 = vcmask 1046528   ;;  %vm378_vm1 = vcmask 23552  }
   0xc   : > { %s453_s11 = smul.u32 576, %s634_s10  ;;  %s452_s15 = sshll.u32 %s634_s10, 6 }
   0xd   : > { %s565_s22 = scalar_lea.vmem %s632_s2, %s452_s15 }
   0xe   : > { %s499_s14 = scalar_lea.vmem %s630_s0, %s453_s11 }
   0xf   : > { %v144_v0 = vld [vmem:[%s499_s14] sm:$0xff]  ;;  %v145_v1 = vld [vmem:[%s499_s14 + $0x8] sm:$0x1]  ;;  %v146_v2 = vld [vmem:[%s499_s14 + $0x10] sm:$0xff] }
  0x10   : > { %v147_v3 = vld [vmem:[%s499_s14 + $0x18] sm:$0x1]  ;;  %v212_v4 = vrot.slane %v144_v0, 1  ;;  %v213_v5 = vrot.slane %v145_v1, 1  ;;  %v506_v6 = vld [vmem:[%s499_s14 + $0x120] sm:$0xff]  ;;  %v215_v8 = vrot.slane %v146_v2, 1 }
  0x11   : > { %v172_v7 = vld [vmem:[%s499_s14 + $0x128] sm:$0x1]  ;;  %v216_v9 = vrot.slane %v147_v3, 1  ;;  %v314_v11 = vrot.slane %v506_v6, 1  ;;  %v148_v13 = vld [vmem:[%s499_s14 + $0x20] sm:$0xff]  ;;  %v173_v17 = vld [vmem:[%s499_s14 + $0x130] sm:$0xff] }
  0x12   : > { %v214_v10 = vsel %vm211_vm0, %v212_v4, %v213_v5  ;;  %v315_v12 = vrot.slane %v172_v7, 1  ;;  %v149_v14 = vld [vmem:[%s499_s14 + $0x28] sm:$0x1]  ;;  %v174_v18 = vld [vmem:[%s499_s14 + $0x138] sm:$0x1]  ;;  %v218_v19 = vrot.slane %v148_v13, 1 }
  0x13   : > { %v217_v15 = vsel %vm211_vm0, %v215_v8, %v216_v9  ;;  %v244_v16 = vadd.f32 %v214_v10, %v144_v0  ;;  %v219_v20 = vrot.slane %v149_v14, 1  ;;  %v317_v22 = vrot.slane %v173_v17, 1  ;;  %v150_v24 = vld [vmem:[%s499_s14 + $0x30] sm:$0xff]  ;;  %v151_v25 = vld [vmem:[%s499_s14 + $0x38] sm:$0x1]  ;;  %v520_v28 = vld [vmem:[%s499_s14 + $0x140] sm:$0xff] }
  0x14   : > { %v245_v21 = vadd.f32 %v217_v15, %v146_v2  ;;  %v318_v23 = vrot.slane %v174_v18, 1  ;;  %v176_v29 = vld [vmem:[%s499_s14 + $0x148] sm:$0x1]  ;;  %v221_v30 = vrot.slane %v150_v24, 1  ;;  %v222_v31 = vrot.slane %v151_v25, 1  ;;  %v162_v32 = vld [vmem:[%s499_s14 + $0x90] sm:$0xff] }
  0x15   : > { %v252_v26 = vadd.f32 %v244_v16, %v146_v2  ;;  %v220_v27 = vsel %vm211_vm0, %v218_v19, %v219_v20  ;;  %v316_v33 = vsel %vm211_vm0, %v314_v11, %v315_v12  ;;  %v320_v36 = vrot.slane %v520_v28, 1  ;;  %v152_v37 = vld [vmem:[%s499_s14 + $0x40] sm:$0xff]  ;;  %v153_v38 = vld [vmem:[%s499_s14 + $0x48] sm:$0x1]  ;;  %v531_v43 = vld [vmem:[%s499_s14 + $0x150] sm:$0xff] }
  0x16   : > { %v246_v34 = vadd.f32 %v220_v27, %v148_v13  ;;  %v253_v35 = vadd.f32 %v245_v21, %v148_v13  ;;  %v163_v39 = vld [vmem:[%s499_s14 + $0xa0] sm:$0xff]  ;;  %v223_v41 = vsel %vm211_vm0, %v221_v30, %v222_v31  ;;  %v321_v42 = vrot.slane %v176_v29, 1  ;;  %v178_v48 = vld [vmem:[%s499_s14 + $0x158] sm:$0x1]  ;;  %v154_v50 = vld [vmem:[%s499_s14 + $0x50] sm:$0xff] }
  0x17   : > { %v266_v40 = vadd.f32 %v252_v26, %v217_v15  ;;  %v224_v44 = vrot.slane %v152_v37, 1  ;;  %v247_v46 = vadd.f32 %v223_v41, %v150_v24  ;;  %v225_v49 = vrot.slane %v153_v38, 1  ;;  %v164_v52 = vld [vmem:[%s499_s14 + $0xb0] sm:$0xff]  ;;  %v155_v56 = vld [vmem:[%s499_s14 + $0x58] sm:$0x1]  ;;  %v179_v61 = vld [vmem:[%s499_s14 + $0x160] sm:$0xff] }
  0x18   : > { %v267_v45 = vadd.f32 %v253_v35, %v220_v27  ;;  %v254_v47 = vadd.f32 %v246_v34, %v150_v24  ;;  %v319_v53 = vsel %vm211_vm0, %v317_v22, %v318_v23  ;;  %v322_v54 = vsel %vm211_vm0, %v320_v36, %v321_v42  ;;  %v180_v62 = vld [vmem:[%s499_s14 + $0x168] sm:$0x1]  ;;  %v165_v0 = vld [vmem:[%s499_s14 + $0xc0] sm:$0xff]  ;;  %v187_v14 = vld [vmem:[%s499_s14 + $0x1b0] sm:$0xff] }
  0x19   : > { %v274_v51 = vadd.f32 %v266_v40, %v162_v32  ;;  %v323_v55 = vrot.slane %v531_v43, 1  ;;  %v226_v59 = vsel %vm211_vm0, %v224_v44, %v225_v49  ;;  %v255_v60 = vadd.f32 %v247_v46, %v152_v37  ;;  %v156_v13 = vld [vmem:[%s499_s14 + $0x60] sm:$0xff]  ;;  %v166_v18 = vld [vmem:[%s499_s14 + $0xd0] sm:$0xff]  ;;  %v157_v21 = vld [vmem:[%s499_s14 + $0x68] sm:$0x1] }
  0x1a   : > { %v275_v57 = vadd.f32 %v267_v45, %v163_v39  ;;  %v268_v58 = vadd.f32 %v254_v47, %v223_v41  ;;  %v248_v1 = vadd.f32 %v226_v59, %v152_v37  ;;  %v324_v2 = vrot.slane %v178_v48, 1  ;;  %v188_v23 = vld [vmem:[%s499_s14 + $0x1c0] sm:$0xff]  ;;  %v181_v30 = vld [vmem:[%s499_s14 + $0x170] sm:$0xff]  ;;  %v182_v42 = vld [vmem:[%s499_s14 + $0x178] sm:$0x1] }
  0x1b   : > { %v282_v63 = vadd.f32 %v274_v51, %v163_v39  ;;  %v227_v3 = vrot.slane %v154_v50, 1  ;;  %v269_v7 = vadd.f32 %v255_v60, %v226_v59  ;;  %v228_v8 = vrot.slane %v155_v56, 1  ;;  %v362_v26 = vld [vmem:[%s631_s1] sm:$0xff]  ;;  %v189_v34 = vld [vmem:[%s499_s14 + $0x1d0] sm:$0xff] }
  0x1c   : > { %v283_v4 = vadd.f32 %v275_v57, %v164_v52  ;;  %v276_v5 = vadd.f32 %v268_v58, %v164_v52  ;;  %v256_v10 = vadd.f32 %v248_v1, %v154_v50  ;;  %v326_v11 = vrot.slane %v179_v61, 1  ;;  %v167_v40 = vld [vmem:[%s499_s14 + $0xe0] sm:$0xff]  ;;  %v158_v44 = vld [vmem:[%s499_s14 + $0x70] sm:$0xff] }
  0x1d   : > { %v290_v9 = vadd.f32 %v282_v63, %v506_v6  ;;  %v327_v12 = vrot.slane %v180_v62, 1  ;;  %v277_v19 = vadd.f32 %v269_v7, %v165_v0  ;;  %v229_v20 = vsel %vm211_vm0, %v227_v3, %v228_v8  ;;  %v364_v46 = vld [vmem:[%s631_s1 + $0x10] sm:$0xff]  ;;  %v190_v47 = vld [vmem:[%s499_s14 + $0x1e0] sm:$0xff]  ;;  %v161_v62 = vld [vmem:[%s499_s14 + $0x88] sm:$0x1] }
  0x1e   : > { %v291_v15 = vadd.f32 %v283_v4, %v173_v17  ;;  %v284_v16 = vadd.f32 %v276_v5, %v165_v0  ;;  %v325_v24 = vsel %vm211_vm0, %v323_v55, %v324_v2  ;;  %v249_v6 = vadd.f32 %v229_v20, %v154_v50  ;;  %v365_v55 = vld [vmem:[%s631_s1 + $0x18] sm:$0xff]  ;;  %v160_v60 = vld [vmem:[%s499_s14 + $0x80] sm:$0xff]  ;;  %v191_v1 = vld [vmem:[%s499_s14 + $0x1f0] sm:$0xff] }
  0x1f   : > { %v346_v22 = vadd.f32 %v316_v33, %v290_v9  ;;  %v270_v25 = vadd.f32 %v256_v10, %v229_v20  ;;  %v285_v29 = vadd.f32 %v277_v19, %v166_v18  ;;  %v230_v31 = vrot.slane %v156_v13, 1  ;;  %v363_v33 = vld [vmem:[%s631_s1 + $0x8] sm:$0xff]  ;;  %v183_v7 = vld [vmem:[%s499_s14 + $0x180] sm:$0xff]  ;;  %v168_v10 = vld [vmem:[%s499_s14 + $0xf0] sm:$0xff] }
  0x20   : > { %v347_v17 = vadd.f32 %v319_v53, %v291_v15  ;;  %v292_v27 = vadd.f32 %v284_v16, %v520_v28  ;;  %v231_v36 = vrot.slane %v157_v21, 1  ;;  %v257_v37 = vadd.f32 %v249_v6, %v156_v13  ;;  %v184_v8 = vld [vmem:[%s499_s14 + $0x188] sm:$0x1]  ;;  %v366_v9 = vld [vmem:[%s631_s1 + $0x20] sm:$0xff] }
  0x21   : > { %v354_v32 = vadd.f32 %v346_v22, %v187_v14  ;;  %v278_v35 = vadd.f32 %v270_v25, %v166_v18  ;;  %v293_v39 = vadd.f32 %v285_v29, %v531_v43  ;;  %v328_v41 = vsel %vm211_vm0, %v326_v11, %v327_v12  ;;  %v159_v43 = vld [vmem:[%s499_s14 + $0x78] sm:$0x1]  ;;  %v185_v25 = vld [vmem:[%s499_s14 + $0x190] sm:$0xff]  ;;  %v169_v29 = vld [vmem:[%s499_s14 + $0x100] sm:$0xff] }
  0x22   : > { %v355_v28 = vadd.f32 %v347_v17, %v188_v23  ;;  %v348_v38 = vadd.f32 %v322_v54, %v292_v27  ;;  %v232_v49 = vsel %vm211_vm0, %v230_v31, %v231_v36  ;;  %v329_v50 = vrot.slane %v181_v30, 1  ;;  %v192_v27 = vld [vmem:[%s499_s14 + $0x200] sm:$0xff] }
  0x23   : > { %v370_v45 = vmul.f32 %v362_v26, %v354_v32  ;;  %v286_v48 = vadd.f32 %v278_v35, %v167_v40  ;;  %v349_v53 = vadd.f32 %v325_v24, %v293_v39  ;;  %v250_v54 = vadd.f32 %v232_v49, %v156_v13  ;;  %v186_v26 = vld [vmem:[%s499_s14 + $0x198] sm:$0x1] }
  0x24   : > { %v371_v51 = vmul.f32 %v363_v33, %v355_v28  ;;  %v356_v52 = vadd.f32 %v348_v38, %v189_v34  ;;  %v271_v57 = vadd.f32 %v257_v37, %v232_v49  ;;  %v330_v58 = vrot.slane %v182_v42, 1  ;;  %v367_v34 = vld [vmem:[%s631_s1 + $0x28] sm:$0xff]  ;;  %v194_v49 = vld [vmem:[%s499_s14 + $0x220] sm:$0xff] }
  0x25   : > { %379 = vst.msk [vmem:[%s565_s22] sm:$0xff] %vm378_vm1, %v370_v45  ;;  %v294_v56 = vadd.f32 %v286_v48, %v179_v61  ;;  %v233_v59 = vrot.slane %v158_v44, 1  ;;  %v357_v0 = vadd.f32 %v349_v53, %v190_v47  ;;  %v234_v2 = vrot.slane %v159_v43, 1  ;;  %v368_v45 = vld [vmem:[%s631_s1 + $0x30] sm:$0xff] }
  0x26   : > { %380 = vst.msk [vmem:[%s565_s22 + $0x8] sm:$0xff] %vm378_vm1, %v371_v51  ;;  %v372_v63 = vmul.f32 %v364_v46, %v356_v52  ;;  %v258_v3 = vadd.f32 %v250_v54, %v158_v44  ;;  %v279_v5 = vadd.f32 %v271_v57, %v167_v40  ;;  %v262_v12 = vrot.slane %v160_v60, 1  ;;  %v193_v40 = vld [vmem:[%s499_s14 + $0x210] sm:$0xff]  ;;  %v369_v51 = vld [vmem:[%s631_s1 + $0x38] sm:$0xff] }
  0x27   : > { %v350_v4 = vadd.f32 %v328_v41, %v294_v56  ;;  %v373_v61 = vmul.f32 %v365_v55, %v357_v0  ;;  %v235_v11 = vsel %vm211_vm0, %v233_v59, %v234_v2  ;;  %v263_v13 = vrot.slane %v161_v62, 1 }
  0x28   : > { %381 = vst.msk [vmem:[%s565_s22 + $0x10] sm:$0xff] %vm378_vm1, %v372_v63  ;;  %v287_v15 = vadd.f32 %v279_v5, %v168_v10  ;;  %v251_v16 = vadd.f32 %v235_v11, %v158_v44  ;;  %v272_v18 = vadd.f32 %v258_v3, %v235_v11  ;;  %v331_v19 = vsel %vm211_vm0, %v329_v50, %v330_v58 }
  0x29   : > { %v358_v14 = vadd.f32 %v350_v4, %v191_v1  ;;  %382 = vst.msk [vmem:[%s565_s22 + $0x18] sm:$0xff] %vm378_vm1, %v373_v61  ;;  %v332_v20 = vrot.slane %v183_v7, 1  ;;  %v333_v21 = vrot.slane %v184_v8, 1  ;;  %v264_v22 = vsel %vm211_vm0, %v262_v12, %v263_v13 }
  0x2a   : > { %v295_v24 = vadd.f32 %v287_v15, %v181_v30  ;;  %v280_v6 = vadd.f32 %v272_v18, %v168_v10  ;;  %v259_v17 = vadd.f32 %v251_v16, %v160_v60  ;;  %v170_v30 = vld [vmem:[%s499_s14 + $0x110] sm:$0xff]  ;;  %v335_v36 = vrot.slane %v185_v25, 1 }
  0x2b   : > { %v374_v23 = vmul.f32 %v366_v9, %v358_v14  ;;  %v334_v35 = vsel %vm211_vm0, %v332_v20, %v333_v21  ;;  %v336_v37 = vrot.slane %v186_v26, 1 }
  0x2c   : > { %v351_v31 = vadd.f32 %v331_v19, %v295_v24  ;;  %v288_v32 = vadd.f32 %v280_v6, %v169_v29  ;;  %v273_v33 = vadd.f32 %v264_v22, %v259_v17 }
  0x2d   : > { %383 = vst.msk [vmem:[%s565_s22 + $0x20] sm:$0xff] %vm378_vm1, %v374_v23  ;;  %v337_v46 = vsel %vm211_vm0, %v335_v36, %v336_v37 }
  0x2e   : > { %v359_v28 = vadd.f32 %v351_v31, %v192_v27  ;;  %v296_v38 = vadd.f32 %v288_v32, %v183_v7  ;;  %v281_v39 = vadd.f32 %v273_v33, %v169_v29 }
  0x30   : > { %v375_v41 = vmul.f32 %v367_v34, %v359_v28  ;;  %v352_v42 = vadd.f32 %v334_v35, %v296_v38  ;;  %v289_v44 = vadd.f32 %v281_v39, %v170_v30 }
  0x32   : > { %384 = vst.msk [vmem:[%s565_s22 + $0x28] sm:$0xff] %vm378_vm1, %v375_v41  ;;  %v360_v47 = vadd.f32 %v352_v42, %v193_v40  ;;  %v297_v48 = vadd.f32 %v289_v44, %v185_v25 }
  0x34   : > { %v376_v50 = vmul.f32 %v368_v45, %v360_v47  ;;  %v353_v43 = vadd.f32 %v337_v46, %v297_v48 }
  0x36   : > { %385 = vst.msk [vmem:[%s565_s22 + $0x30] sm:$0xff] %vm378_vm1, %v376_v50  ;;  %v361_v52 = vadd.f32 %v353_v43, %v194_v49 }
  0x38   : > { %v377_v53 = vmul.f32 %v369_v51, %v361_v52 }
  0x3a   : > { %386 = vst.msk [vmem:[%s565_s22 + $0x38] sm:$0xff] %vm378_vm1, %v377_v53 }
  0x3b PF: > { %s12_s9 = sadd.s32 1, %s468_s9  }
  0x3c   : > { %p9_p4 = scmp.ge.s32.totalorder %s12_s9, 4  }
  0x3e   :  { %11 = sbr.rel (!%p9_p4) target bundleno = 1 (0x1), region = 58 }

// kernel: multiscale_discriminator_forward.47
= control target key start
LH: loop header
LB: loop body
LE: loop exit
PB: predicated region body
PF: predicated region fallthrough
CT: control target
= control target key end

     0   :  { %s417_s1 = inlined_call_operand.vmem [shape: bf16[128,128], index: 1, kind: input, shape index: {}]   ;;  %s418_s0 = inlined_call_operand.vmem [shape: bf16[56,128], index: 0, kind: input, shape index: {}]   ;;  %s419_s2 = inlined_call_operand.vmem [shape: f32[1,128], index: 2, kind: input, shape index: {}]   ;;  %s420_s3 = inlined_call_operand.vmem [shape: f32[56,128], index: 3, kind: output, shape index: {}]  }
   0x1   :  { %v325_v0 = vld [vmem:[%s417_s1 + $0x38] sm:$0xff]   ;;  %v326_v1 = vld [vmem:[%s417_s1 + $0x30] sm:$0xff]   ;;  %v327_v2 = vld [vmem:[%s417_s1 + $0x28] sm:$0xff]  }
   0x2   :  { %285 = vmatprep.subr.bf16.mxu0 %v325_v0  ;;  %309 = vmatprep.subr.bf16.mxu1 %v325_v0  ;;  %v328_v3 = vld [vmem:[%s417_s1 + $0x20] sm:$0xff]   ;;  %v334_v5 = vld [vmem:[%s418_s0 + $0x10] sm:$0xff]   ;;  %v329_v6 = vld [vmem:[%s417_s1 + $0x18] sm:$0xff]  }
   0x3   :  { %286 = vmatpush3.bf16.msra.mxu0 %v325_v0  ;;  %317 = vmatpush3.bf16.msra.mxu1 %v325_v0  ;;  %v333_v4 = vld [vmem:[%s418_s0] sm:$0xff]   ;;  %v330_v7 = vld [vmem:[%s417_s1 + $0x10] sm:$0xff]   ;;  %v331_v8 = vld [vmem:[%s417_s1 + $0x8] sm:$0xff]  }
   0x4   :  { %287 = vmatprep.subr.bf16.mxu0 %v326_v1  ;;  %310 = vmatprep.subr.bf16.mxu1 %v326_v1  ;;  %v332_v9 = vld [vmem:[%s417_s1] sm:$0xff]   ;;  %v335_v10 = vld [vmem:[%s418_s0 + $0x8] sm:$0xff]   ;;  %v336_v11 = vld [vmem:[%s418_s0 + $0x18] ss:$0 sps:$4 sm:$0xff]  }
   0x5   :  { %301 = vmatprep.mubr.bf16.mxu0 %v333_v4  ;;  %305 = vmatprep.mubr.bf16.mxu1 %v334_v5  ;;  %v272_v12 = vld [vmem:[%s419_s2] ss:$0 sm:$0xff] }
   0x7   :  { %288 = vmatpush3.bf16.msra.mxu0 %v326_v1  ;;  %318 = vmatpush3.bf16.msra.mxu1 %v326_v1 }
   0x8   :  { %289 = vmatprep.subr.bf16.mxu0 %v327_v2  ;;  %311 = vmatprep.subr.bf16.mxu1 %v327_v2 }
   0xb   :  { %290 = vmatpush3.bf16.msra.mxu0 %v327_v2  ;;  %319 = vmatpush3.bf16.msra.mxu1 %v327_v2 }
   0xc   :  { %291 = vmatprep.subr.bf16.mxu0 %v328_v3  ;;  %312 = vmatprep.subr.bf16.mxu1 %v328_v3 }
   0xf   :  { %292 = vmatpush3.bf16.msra.mxu0 %v328_v3  ;;  %320 = vmatpush3.bf16.msra.mxu1 %v328_v3 }
  0x10   :  { %293 = vmatprep.subr.bf16.mxu0 %v329_v6  ;;  %313 = vmatprep.subr.bf16.mxu1 %v329_v6 }
  0x13   :  { %294 = vmatpush3.bf16.msra.mxu0 %v329_v6  ;;  %321 = vmatpush3.bf16.msra.mxu1 %v329_v6 }
  0x14   :  { %295 = vmatprep.subr.bf16.mxu0 %v330_v7  ;;  %314 = vmatprep.subr.bf16.mxu1 %v330_v7 }
  0x17   :  { %296 = vmatpush3.bf16.msra.mxu0 %v330_v7  ;;  %322 = vmatpush3.bf16.msra.mxu1 %v330_v7 }
  0x18   :  { %297 = vmatprep.subr.bf16.mxu0 %v331_v8  ;;  %315 = vmatprep.subr.bf16.mxu1 %v331_v8 }
  0x1b   :  { %298 = vmatpush3.bf16.msra.mxu0 %v331_v8  ;;  %323 = vmatpush3.bf16.msra.mxu1 %v331_v8 }
  0x1c   :  { %299 = vmatprep.subr.bf16.mxu0 %v332_v9  ;;  %316 = vmatprep.subr.bf16.mxu1 %v332_v9 }
  0x1f   :  { %300 = vmatpush3.bf16.msra.mxu0 %v332_v9  ;;  %324 = vmatpush3.bf16.msra.mxu1 %v332_v9 }
  0x22   :  { %302 = vmatmul.mubr.bf16.vlgmr.msra.gmra.mxu0 %v335_v10  ;;  %306 = vmatmul.mubr.bf16.vlgmr.msra.gmra.mxu1 %v336_v11 }
  0xe2   :  { %v303_v13 = vpop.f32.mrf.mxu0  ;;  %v307_v14 = vpop.f32.mrf.mxu1 }
  0xe3   :  { %v223_v15 = vadd.f32 %v303_v13, %v272_v12  ;;  %v227_v16 = vadd.f32 %v307_v14, %v272_v12 }
  0xe4   :  { %v160_v17 = vpop.f32.mrf.mxu0  ;;  %v176_v18 = vpop.f32.mrf.mxu1 }
  0xe5   :  { %vm230_vm0 = vcmp.ge.f32.partialorder %v223_v15, 0.0  ;;  %v237_v19 = vmul.f32 0.2, %v223_v15  ;;  %vm234_vm1 = vcmp.ge.f32.partialorder %v227_v16, 0.0  ;;  %v241_v20 = vmul.f32 0.2, %v227_v16 }
  0xe6   :  { %v221_v21 = vadd.f32 %v272_v12, %v160_v17  ;;  %v225_v22 = vadd.f32 %v272_v12, %v176_v18  ;;  %v304_v23 = vpop.f32.mrf.mxu0  ;;  %v308_v24 = vpop.f32.mrf.mxu1 }
  0xe7   :  { %v244_v25 = vsel %vm230_vm0, %v223_v15, %v237_v19  ;;  %v248_v26 = vsel %vm234_vm1, %v227_v16, %v241_v20  ;;  %v224_v27 = vadd.f32 %v304_v23, %v272_v12 }
  0xe8   :  { %251 = vst [vmem:[%s420_s3 + $0x10] sm:$0xff] %v244_v25  ;;  %255 = vst [vmem:[%s420_s3 + $0x30] sm:$0xff] %v248_v26  ;;  %vm228_vm2 = vcmp.ge.f32.partialorder %v221_v21, 0.0  ;;  %v235_v28 = vmul.f32 0.2, %v221_v21  ;;  %vm232_vm3 = vcmp.ge.f32.partialorder %v225_v22, 0.0  ;;  %v163_v30 = vpop.f32.mrf.mxu0  ;;  %v179_v31 = vpop.f32.mrf.mxu1 }
  0xe9   :  { %v239_v29 = vmul.f32 0.2, %v225_v22  ;;  %vm231_vm4 = vcmp.ge.f32.partialorder %v224_v27, 0.0  ;;  %v238_v32 = vmul.f32 0.2, %v224_v27  ;;  %v222_v33 = vadd.f32 %v272_v12, %v163_v30 }
  0xea   :  { %v226_v34 = vadd.f32 %v272_v12, %v179_v31  ;;  %v242_v35 = vsel %vm228_vm2, %v221_v21, %v235_v28 }
  0xeb   :  { %v246_v36 = vsel %vm232_vm3, %v225_v22, %v239_v29  ;;  %249 = vst [vmem:[%s420_s3] sm:$0xff] %v242_v35  ;;  %v245_v37 = vsel %vm231_vm4, %v224_v27, %v238_v32  ;;  %vm229_vm5 = vcmp.ge.f32.partialorder %v222_v33, 0.0  ;;  %v236_v38 = vmul.f32 0.2, %v222_v33 }
  0xec   :  { %253 = vst [vmem:[%s420_s3 + $0x20] sm:$0xff] %v246_v36  ;;  %vm233_vm6 = vcmp.ge.f32.partialorder %v226_v34, 0.0  ;;  %252 = vst [vmem:[%s420_s3 + $0x18] sm:$0xff] %v245_v37  ;;  %v240_v39 = vmul.f32 0.2, %v226_v34 }
  0xed   :  { %v243_v40 = vsel %vm229_vm5, %v222_v33, %v236_v38 }
  0xee   :  { %250 = vst [vmem:[%s420_s3 + $0x8] sm:$0xff] %v243_v40  ;;  %v247_v41 = vsel %vm233_vm6, %v226_v34, %v240_v39 }
  0xef   :  { %254 = vst [vmem:[%s420_s3 + $0x28] sm:$0xff] %v247_v41 }

// kernel: multiscale_discriminator_forward.49
= control target key start
LH: loop header
LB: loop body
LE: loop exit
PB: predicated region body
PF: predicated region fallthrough
CT: control target
= control target key end

     0   :  { %s375_s9 = smov 0   ;;  %s377_s10 = smov 0   ;;  %s420_s0 = inlined_call_operand.vmem [shape: f32[2,16,32], index: 0, kind: input, shape index: {}]   ;;  %s421_s1 = inlined_call_operand.vmem [shape: f32[2,1,32], index: 1, kind: output, shape index: {0}]   ;;  %s422_s2 = inlined_call_operand.vmem [shape: f32[2,1,32], index: 2, kind: output, shape index: {1}]  }
   0x1   :  { %s379_s11 = smov 0  }
   0x2 LB: > { %s25_s12 = sadd.s32 1, %s353_s10  ;;  %p304_p0 = scmp.ge.s32.totalorder %s357_s11, 1  ;;  %s357_s11 = sphi %s379_s11, %s13_s11   ;;  %s353_s10 = sphi %s377_s10, %s424_s10   ;;  %s349_s9 = sphi %s375_s9, %s423_s9  }
   0x3   : > { %p27_p1 = scmp.ge.s32.totalorder %s25_s12, 2  ;;  %p134_p2 = scmp.lt.s32.totalorder %s357_s11, 3 }
   0x5   : > { %s426_s12 = smov (%p27_p1, %s25_s12), 0  ;;  %p135_p3 = pnand %p304_p0, %p134_p2 }
   0x6   : > { %p162_p4 = scmp.lt.s32.totalorder (!%p135_p3), %s349_s9, 1 }
   0x7   : > { %138 = sbr.rel (%p135_p3) target bundleno = 36 (0x24), region = 24 }
   0xc   : > { %s428_s9 = smov (!%p162_p4, %s349_s9), 1  ;;  %vm181_vm0 = vcmask 253952   ;;  %vm187_vm1 = vcmask 261120   ;;  %v359_v0 = vmov 0.0  }
   0xd   : > { %s309_s13 = sshll.u32 %s428_s9, 4  ;;  %s396_s16 = scalar_lea.vmem %s421_s1, %s428_s9 }
   0xe   : > { %s169_s19 = scalar_lea.vmem %s420_s0, %s309_s13  ;;  %182 = vst.msk [vmem:[%s396_s16] sm:$0x1] %vm181_vm0, %v359_v0  ;;  %s176_s22 = scalar_lea.vmem %s422_s2, %s428_s9 }
   0xf   : > { %v184_v1 = vld [vmem:[%s169_s19] sm:$0xff]  ;;  %v185_v2 = vld [vmem:[%s169_s19 + $0x8] sm:$0xff]  ;;  %183 = vst.msk [vmem:[%s176_s22] sm:$0x1] %vm181_vm0, %v359_v0 }
  0x10   : > { %v188_v3 = vsel %vm187_vm1, %v184_v1, 0.0  ;;  %v189_v4 = vsel %vm187_vm1, %v185_v2, 0.0  ;;  %v201_v5 = vmul.f32 %v184_v1, %v184_v1  ;;  %v202_v6 = vmul.f32 %v185_v2, %v185_v2 }
  0x11   : > { %v190_v7 = vadd.f32 %v189_v4, %v188_v3 }
  0x12   : > { %v203_v8 = vsel %vm187_vm1, %v201_v5, 0.0  ;;  %v204_v9 = vsel %vm187_vm1, %v202_v6, 0.0 }
  0x13   : > { %v191_v10 = vrot.slane %v190_v7, 4  ;;  %v205_v11 = vadd.f32 %v204_v9, %v203_v8 }
  0x15   : > { %v192_v12 = vadd.f32 %v191_v10, %v190_v7  ;;  %v206_v13 = vrot.slane %v205_v11, 4  ;;  %v186_v20 = vld [vmem:[%s396_s16] sm:$0x1] }
  0x16   : > { %v200_v23 = vld [vmem:[%s176_s22] sm:$0x1] }
  0x17   : > { %v193_v14 = vrot.slane %v192_v12, 2  ;;  %v207_v15 = vadd.f32 %v206_v13, %v205_v11 }
  0x19   : > { %v194_v16 = vadd.f32 %v193_v14, %v192_v12  ;;  %v208_v17 = vrot.slane %v207_v15, 2 }
  0x1b   : > { %v195_v18 = vrot.slane %v194_v16, 1  ;;  %v209_v19 = vadd.f32 %v208_v17, %v207_v15 }
  0x1d   : > { %v196_v21 = vadd.f32 %v195_v18, %v194_v16  ;;  %v210_v22 = vrot.slane %v209_v19, 1 }
  0x1f   : > { %v197_v24 = vadd.f32 %v196_v21, %v186_v20  ;;  %v211_v25 = vadd.f32 %v210_v22, %v209_v19 }
  0x21   : > { %199 = vst.msk [vmem:[%s396_s16] sm:$0x1] %vm181_vm0, %v197_v24  ;;  %v212_v26 = vadd.f32 %v211_v25, %v200_v23 }
  0x23   : > { %213 = vst.msk [vmem:[%s176_s22] sm:$0x1] %vm181_vm0, %v212_v26 }
  0x24 PF: > { %s13_s11 = sadd.s32 1, %s357_s11   ;;  %s423_s9 = smov %s353_s10 }
  0x25   : > { %p10_p5 = scmp.ge.s32.totalorder %s13_s11, 4   ;;  %s424_s10 = smov %s426_s12 }
  0x27   :  { %12 = sbr.rel (!%p10_p5) target bundleno = 2 (0x2), region = 70 }

// kernel: multiscale_discriminator_forward.48
= control target key start
LH: loop header
LB: loop body
LE: loop exit
PB: predicated region body
PF: predicated region fallthrough
CT: control target
= control target key end

     0   :  { %s425_s1 = inlined_call_operand.vmem [shape: bf16[256,128], index: 1, kind: input, shape index: {}]   ;;  %s426_s0 = inlined_call_operand.vmem [shape: bf16[24,256], index: 0, kind: input, shape index: {}]   ;;  %s427_s2 = inlined_call_operand.vmem [shape: f32[1,128], index: 2, kind: input, shape index: {}]   ;;  %s428_s3 = inlined_call_operand.vmem [shape: f32[24,128], index: 3, kind: output, shape index: {}]  }
   0x1   :  { %v315_v0 = vld [vmem:[%s425_s1 + $0x78] sm:$0xff]   ;;  %v317_v2 = vld [vmem:[%s425_s1 + $0x70] sm:$0xff]   ;;  %v319_v4 = vld [vmem:[%s425_s1 + $0x68] sm:$0xff]  }
   0x2   :  { %v316_v1 = vld [vmem:[%s425_s1 + $0x38] sm:$0xff]   ;;  %271 = vmatprep.subr.bf16.mxu0 %v315_v0  ;;  %299 = vmatprep.subr.bf16.mxu1 %v315_v0  ;;  %v318_v3 = vld [vmem:[%s425_s1 + $0x30] sm:$0xff]   ;;  %v320_v5 = vld [vmem:[%s425_s1 + $0x28] sm:$0xff]  }
   0x3   :  { %272 = vmatpush3.bf16.msra.mxu0 %v316_v1  ;;  %307 = vmatpush3.bf16.msra.mxu1 %v316_v1  ;;  %v321_v6 = vld [vmem:[%s425_s1 + $0x60] sm:$0xff]   ;;  %v323_v8 = vld [vmem:[%s425_s1 + $0x58] sm:$0xff]   ;;  %v325_v10 = vld [vmem:[%s425_s1 + $0x50] sm:$0xff]  }
   0x4   :  { %273 = vmatprep.subr.bf16.mxu0 %v317_v2  ;;  %300 = vmatprep.subr.bf16.mxu1 %v317_v2  ;;  %v322_v7 = vld [vmem:[%s425_s1 + $0x20] sm:$0xff]   ;;  %v324_v9 = vld [vmem:[%s425_s1 + $0x18] sm:$0xff]   ;;  %v27_v12 = vld [vmem:[%s426_s0 + $0x10] sm:$0xff] }
   0x5   :  { %v333_v11 = vld [vmem:[%s426_s0 + $0x4] ss:$8 sps:$4 sm:$0xff]   ;;  %v253_v13 = vcombine.high %v27_v12, %v27_v12  ;;  %v326_v14 = vld [vmem:[%s425_s1 + $0x10] sm:$0xff]   ;;  %v331_v19 = vld [vmem:[%s426_s0] ss:$8 sps:$4 sm:$0xff]   ;;  %v252_v20 = vcombine.low %v27_v12, %v27_v12 }
   0x6   :  { %v327_v15 = vld [vmem:[%s425_s1 + $0x48] sm:$0xff]   ;;  %205 = vmatprep.mubr.bf16.mxu0 %v333_v11  ;;  %v329_v17 = vld [vmem:[%s425_s1 + $0x40] sm:$0xff]  }
   0x7   :  { %274 = vmatpush3.bf16.msra.mxu0 %v318_v3  ;;  %308 = vmatpush3.bf16.msra.mxu1 %v318_v3  ;;  %v328_v16 = vld [vmem:[%s425_s1 + $0x8] sm:$0xff]   ;;  %v330_v18 = vld [vmem:[%s425_s1] sm:$0xff]  }
   0x8   :  { %275 = vmatprep.subr.bf16.mxu0 %v319_v4  ;;  %301 = vmatprep.subr.bf16.mxu1 %v319_v4  ;;  %v270_v24 = vld [vmem:[%s427_s2] ss:$0 sm:$0xff] }
   0x9   :  { %213 = vmatprep.mubr.bf16.mxu1 %v253_v13 }
   0xb   :  { %276 = vmatpush3.bf16.msra.mxu0 %v320_v5  ;;  %309 = vmatpush3.bf16.msra.mxu1 %v320_v5 }
   0xc   :  { %277 = vmatprep.subr.bf16.mxu0 %v321_v6  ;;  %302 = vmatprep.subr.bf16.mxu1 %v321_v6 }
   0xf   :  { %278 = vmatpush3.bf16.msra.mxu0 %v322_v7  ;;  %310 = vmatpush3.bf16.msra.mxu1 %v322_v7 }
  0x10   :  { %279 = vmatprep.subr.bf16.mxu0 %v323_v8  ;;  %303 = vmatprep.subr.bf16.mxu1 %v323_v8 }
  0x13   :  { %280 = vmatpush3.bf16.msra.mxu0 %v324_v9  ;;  %311 = vmatpush3.bf16.msra.mxu1 %v324_v9 }
  0x14   :  { %281 = vmatprep.subr.bf16.mxu0 %v325_v10  ;;  %304 = vmatprep.subr.bf16.mxu1 %v325_v10 }
  0x17   :  { %282 = vmatpush3.bf16.msra.mxu0 %v326_v14  ;;  %312 = vmatpush3.bf16.msra.mxu1 %v326_v14 }
  0x18   :  { %283 = vmatprep.subr.bf16.mxu0 %v327_v15  ;;  %305 = vmatprep.subr.bf16.mxu1 %v327_v15 }
  0x1b   :  { %284 = vmatpush3.bf16.msra.mxu0 %v328_v16  ;;  %313 = vmatpush3.bf16.msra.mxu1 %v328_v16 }
  0x1c   :  { %285 = vmatprep.subr.bf16.mxu0 %v329_v17  ;;  %306 = vmatprep.subr.bf16.mxu1 %v329_v17 }
  0x1f   :  { %286 = vmatpush3.bf16.msra.mxu0 %v330_v18  ;;  %314 = vmatpush3.bf16.msra.mxu1 %v330_v18 }
  0x22   :  { %206 = vmatmul.mubr.bf16.vlgmr.msra.gmra.mxu0 %v331_v19  ;;  %214 = vmatmul.mubr.bf16.vlgmr.msra.gmra.mxu1 %v252_v20 }
  0xe2   :  { %v287_v21 = vpop.f32.mrf.mxu0  ;;  %v293_v22 = vpop.f32.mrf.mxu1 }
  0xe4   :  { %v288_v23 = vpop.f32.mrf.mxu0  ;;  %v294_v25 = vpop.f32.mrf.mxu1 }
  0xe5   :  { %v289_v26 = vadd.f32 %v288_v23, %v287_v21  ;;  %v295_v27 = vadd.f32 %v294_v25, %v293_v22 }
  0xe6   :  { %v290_v28 = vpop.f32.mrf.mxu0  ;;  %v296_v29 = vpop.f32.mrf.mxu1 }
  0xe7   :  { %v240_v30 = vadd.f32 %v289_v26, %v270_v24  ;;  %v242_v31 = vadd.f32 %v295_v27, %v270_v24 }
  0xe8   :  { %v291_v32 = vpop.f32.mrf.mxu0  ;;  %v297_v33 = vpop.f32.mrf.mxu1 }
  0xe9   :  { %243 = vst [vmem:[%s428_s3] sm:$0xff] %v240_v30  ;;  %245 = vst [vmem:[%s428_s3 + $0x10] sm:$0xff] %v242_v31  ;;  %v292_v34 = vadd.f32 %v291_v32, %v290_v28 }
  0xeb   :  { %v241_v35 = vadd.f32 %v292_v34, %v270_v24 }
  0xed   :  { %244 = vst [vmem:[%s428_s3 + $0x8] sm:$0xff] %v241_v35 }

// kernel: multiscale_discriminator_forward.50
= control target key start
LH: loop header
LB: loop body
LE: loop exit
PB: predicated region body
PF: predicated region fallthrough
CT: control target
= control target key end

     0   :  { %s462_s12 = smov 0   ;;  %s464_s13 = smov 0   ;;  %s501_s0 = inlined_call_operand.vmem [shape: f32[2,16,32], index: 0, kind: input, shape index: {}]   ;;  %s502_s1 = inlined_call_operand.vmem [shape: f32[2,1,32], index: 1, kind: input, shape index: {}]   ;;  %s503_s2 = inlined_call_operand.vmem [shape: f32[2,1,32], index: 2, kind: input, shape index: {}]   ;;  %s504_s3 = inlined_call_operand.vmem [shape: f32[2,16,32], index: 3, kind: output, shape index: {}]  }
   0x1   :  { %s466_s14 = smov 0  }
   0x2 LB: > { %s25_s15 = sadd.s32 1, %s436_s13  ;;  %p383_p0 = scmp.ge.s32.totalorder %s440_s14, 1  ;;  %s440_s14 = sphi %s466_s14, %s13_s14   ;;  %s436_s13 = sphi %s464_s13, %s506_s13   ;;  %s432_s12 = sphi %s462_s12, %s505_s12  }
   0x3   : > { %p27_p1 = scmp.ge.s32.totalorder %s25_s15, 2  ;;  %p174_p2 = scmp.lt.s32.totalorder %s440_s14, 3 }
   0x5   : > { %s508_s15 = smov (%p27_p1, %s25_s15), 0  ;;  %p175_p3 = pnand %p383_p0, %p174_p2 }
   0x6   : > { %p213_p4 = scmp.lt.s32.totalorder (!%p175_p3), %s432_s12, 1 }
   0x7   : > { %178 = sbr.rel (%p175_p3) target bundleno = 47 (0x2f), region = 32 }
   0xc   : > { %s510_s12 = smov (!%p213_p4, %s432_s12), 1  ;;  %v250_v7 = vlaneseq  ;;  %vm271_vm0 = vcmask 261120  }
   0xd   : > { %s224_s18 = scalar_lea.vmem %s502_s1, %s510_s12  ;;  %s227_s21 = scalar_lea.vmem %s503_s2, %s510_s12 }
   0xe   : > { %v238_v0 = vld [vmem:[%s224_s18] sm:$0x1]  ;;  %v251_v9 = vshrl.u32 %v250_v7, 7  ;;  %s390_s22 = sshll.u32 %s510_s12, 4 }
   0xf   : > { %v239_v1 = vmul.f32 0.11111111, %v238_v0  ;;  %v240_v2 = vld [vmem:[%s227_s21] sm:$0x1]  ;;  %s220_s25 = scalar_lea.vmem %s501_s0, %s390_s22  ;;  %s236_s28 = scalar_lea.vmem %s504_s3, %s390_s22 }
  0x10   : > { %v241_v3 = vmul.f32 0.11111111, %v240_v2  ;;  %v252_v10 = vsub.s32 0, %v251_v9  ;;  %v247_v12 = vld [vmem:[%s220_s25] sm:$0xff]  ;;  %v248_v13 = vld [vmem:[%s220_s25 + $0x8] sm:$0xff] }
  0x11   : > { %v242_v4 = vmul.f32 %v239_v1, %v239_v1 }
  0x12   : > { %v253_v11 = vrot.slane %v239_v1, %v252_v10 }
  0x13   : > { %v243_v5 = vsub.f32 %v241_v3, %v242_v4 }
  0x14   : > { %v255_v14 = vsub.f32 %v247_v12, %v253_v11  ;;  %v256_v15 = vsub.f32 %v248_v13, %v253_v11 }
  0x15   : > { %v244_v6 = vmax.f32 %v243_v5, 0.0 }
  0x17   : > { %v245_v8 = vadd.f32 1e-05, %v244_v6 }
  0x19   : > { %416 = vrsqrt.f32 %v245_v8 }
  0x26   : > { %v417_v16 = vpop.eup %416 }
  0x27   : > { %v261_v17 = vrot.slane %v417_v16, %v252_v10 }
  0x29   : > { %v263_v18 = vmul.f32 %v261_v17, %v255_v14  ;;  %v264_v19 = vmul.f32 %v261_v17, %v256_v15 }
  0x2b   : > { %vm265_vm1 = vcmp.ge.f32.partialorder %v263_v18, 0.0  ;;  %v267_v20 = vmul.f32 0.2, %v263_v18  ;;  %vm266_vm2 = vcmp.ge.f32.partialorder %v264_v19, 0.0  ;;  %v268_v21 = vmul.f32 0.2, %v264_v19 }
  0x2d   : > { %v269_v22 = vsel %vm265_vm1, %v263_v18, %v267_v20  ;;  %v270_v23 = vsel %vm266_vm2, %v264_v19, %v268_v21 }
  0x2e   : > { %272 = vst.msk [vmem:[%s236_s28] sm:$0xff] %vm271_vm0, %v269_v22  ;;  %273 = vst.msk [vmem:[%s236_s28 + $0x8] sm:$0xff] %vm271_vm0, %v270_v23 }
  0x2f PF: > { %s13_s14 = sadd.s32 1, %s440_s14   ;;  %s505_s12 = smov %s436_s13 }
  0x30   : > { %p10_p5 = scmp.ge.s32.totalorder %s13_s14, 4   ;;  %s506_s13 = smov %s508_s15 }
  0x32   :  { %12 = sbr.rel (!%p10_p5) target bundleno = 2 (0x2), region = 68 }

// kernel: multiscale_discriminator_forward.52
= control target key start
LH: loop header
LB: loop body
LE: loop exit
PB: predicated region body
PF: predicated region fallthrough
CT: control target
= control target key end

     0   :  { %s356_s9 = smov 0   ;;  %s358_s10 = smov 0   ;;  %s396_s0 = inlined_call_operand.vmem [shape: f32[2,8,64], index: 0, kind: input, shape index: {}]   ;;  %s397_s1 = inlined_call_operand.vmem [shape: f32[2,1,64], index: 1, kind: output, shape index: {0}]   ;;  %s398_s2 = inlined_call_operand.vmem [shape: f32[2,1,64], index: 2, kind: output, shape index: {1}]  }
   0x1   :  { %s360_s11 = smov 0  }
   0x2 LB: > { %s25_s12 = sadd.s32 1, %s334_s10  ;;  %p287_p0 = scmp.ge.s32.totalorder %s338_s11, 1  ;;  %s338_s11 = sphi %s360_s11, %s13_s11   ;;  %s334_s10 = sphi %s358_s10, %s400_s10   ;;  %s330_s9 = sphi %s356_s9, %s399_s9  }
   0x3   : > { %p27_p1 = scmp.ge.s32.totalorder %s25_s12, 2  ;;  %p131_p2 = scmp.lt.s32.totalorder %s338_s11, 3 }
   0x5   : > { %s402_s12 = smov (%p27_p1, %s25_s12), 0  ;;  %p132_p3 = pnand %p287_p0, %p131_p2 }
   0x6   : > { %p156_p4 = scmp.lt.s32.totalorder (!%p132_p3), %s330_s9, 1 }
   0x7   : > { %135 = sbr.rel (%p132_p3) target bundleno = 34 (0x22), region = 24 }
   0xc   : > { %s404_s9 = smov (!%p156_p4, %s330_s9), 1  ;;  %vm173_vm0 = vcmask 516096   ;;  %vm178_vm1 = vcmask 523264   ;;  %v340_v0 = vmov 0.0  }
   0xd   : > { %s288_s13 = sshll.u32 %s404_s9, 3  ;;  %s165_s16 = scalar_lea.vmem %s397_s1, %s404_s9 }
   0xe   : > { %s162_s19 = scalar_lea.vmem %s396_s0, %s288_s13  ;;  %174 = vst.msk [vmem:[%s165_s16] sm:$0x1] %vm173_vm0, %v340_v0  ;;  %s168_s22 = scalar_lea.vmem %s398_s2, %s404_s9 }
   0xf   : > { %v176_v1 = vld [vmem:[%s162_s19] sm:$0xff]  ;;  %175 = vst.msk [vmem:[%s168_s22] sm:$0x1] %vm173_vm0, %v340_v0 }
  0x10   : > { %v179_v2 = vsel %vm178_vm1, %v176_v1, 0.0  ;;  %v190_v3 = vmul.f32 %v176_v1, %v176_v1 }
  0x11   : > { %v180_v4 = vrot.slane %v179_v2, 4 }
  0x12   : > { %v191_v5 = vsel %vm178_vm1, %v190_v3, 0.0 }
  0x13   : > { %v181_v6 = vadd.f32 %v180_v4, %v179_v2  ;;  %v192_v7 = vrot.slane %v191_v5, 4 }
  0x15   : > { %v182_v8 = vrot.slane %v181_v6, 2  ;;  %v193_v9 = vadd.f32 %v192_v7, %v191_v5  ;;  %v177_v14 = vld [vmem:[%s165_s16] sm:$0x1] }
  0x16   : > { %v189_v17 = vld [vmem:[%s168_s22] sm:$0x1] }
  0x17   : > { %v183_v10 = vadd.f32 %v182_v8, %v181_v6  ;;  %v194_v11 = vrot.slane %v193_v9, 2 }
  0x19   : > { %v184_v12 = vrot.slane %v183_v10, 1  ;;  %v195_v13 = vadd.f32 %v194_v11, %v193_v9 }
  0x1b   : > { %v185_v15 = vadd.f32 %v184_v12, %v183_v10  ;;  %v196_v16 = vrot.slane %v195_v13, 1 }
  0x1d   : > { %v186_v18 = vadd.f32 %v185_v15, %v177_v14  ;;  %v197_v19 = vadd.f32 %v196_v16, %v195_v13 }
  0x1f   : > { %188 = vst.msk [vmem:[%s165_s16] sm:$0x1] %vm173_vm0, %v186_v18  ;;  %v198_v20 = vadd.f32 %v197_v19, %v189_v17 }
  0x21   : > { %199 = vst.msk [vmem:[%s168_s22] sm:$0x1] %vm173_vm0, %v198_v20 }
  0x22 PF: > { %s13_s11 = sadd.s32 1, %s338_s11   ;;  %s399_s9 = smov %s334_s10 }
  0x23   : > { %p10_p5 = scmp.ge.s32.totalorder %s13_s11, 4   ;;  %s400_s10 = smov %s402_s12 }
  0x25   :  { %12 = sbr.rel (!%p10_p5) target bundleno = 2 (0x2), region = 70 }

// kernel: multiscale_discriminator_forward.51
= control target key start
LH: loop header
LB: loop body
LE: loop exit
PB: predicated region body
PF: predicated region fallthrough
CT: control target
= control target key end

     0   :  { %s637_s1 = inlined_call_operand.vmem [shape: bf16[512,128], index: 1, kind: input, shape index: {}]   ;;  %s638_s0 = inlined_call_operand.vmem [shape: bf16[8,512], index: 0, kind: input, shape index: {}]   ;;  %s639_s2 = inlined_call_operand.vmem [shape: f32[1,128], index: 2, kind: input, shape index: {}]   ;;  %s640_s3 = inlined_call_operand.vmem [shape: f32[8,128], index: 3, kind: output, shape index: {}]  }
   0x1   :  { %v473_v0 = vld [vmem:[%s637_s1 + $0x78] sm:$0xff]   ;;  %v477_v4 = vld [vmem:[%s637_s1 + $0x70] sm:$0xff]   ;;  %v481_v8 = vld [vmem:[%s637_s1 + $0x68] sm:$0xff]  }
   0x2   :  { %v474_v1 = vld [vmem:[%s637_s1 + $0xf8] sm:$0xff]   ;;  %429 = vmatprep.subr.bf16.mxu0 %v473_v0  ;;  %v478_v5 = vld [vmem:[%s637_s1 + $0xf0] sm:$0xff]   ;;  %v482_v9 = vld [vmem:[%s637_s1 + $0xe8] sm:$0xff]  }
   0x3   :  { %v475_v2 = vld [vmem:[%s637_s1 + $0x38] sm:$0xff]   ;;  %451 = vmatprep.subr.bf16.mxu1 %v474_v1  ;;  %v479_v6 = vld [vmem:[%s637_s1 + $0x30] sm:$0xff]   ;;  %v483_v10 = vld [vmem:[%s637_s1 + $0x28] sm:$0xff]  }
   0x4   :  { %v476_v3 = vld [vmem:[%s637_s1 + $0xb8] sm:$0xff]   ;;  %430 = vmatpush3.bf16.msra.mxu0 %v475_v2  ;;  %v480_v7 = vld [vmem:[%s637_s1 + $0xb0] sm:$0xff]   ;;  %v484_v11 = vld [vmem:[%s637_s1 + $0xa8] sm:$0xff]  }
   0x5   :  { %452 = vmatpush3.bf16.msra.mxu1 %v476_v3  ;;  %431 = vmatprep.subr.bf16.mxu0 %v477_v4  ;;  %v485_v12 = vld [vmem:[%s637_s1 + $0x60] sm:$0xff]   ;;  %v489_v16 = vld [vmem:[%s637_s1 + $0x58] sm:$0xff]   ;;  %v493_v20 = vld [vmem:[%s637_s1 + $0x50] sm:$0xff]  }
   0x6   :  { %453 = vmatprep.subr.bf16.mxu1 %v478_v5  ;;  %v486_v13 = vld [vmem:[%s637_s1 + $0xe0] sm:$0xff]   ;;  %v490_v17 = vld [vmem:[%s637_s1 + $0xd8] sm:$0xff]   ;;  %v494_v21 = vld [vmem:[%s637_s1 + $0xd0] sm:$0xff]  }
   0x7   :  { %v487_v14 = vld [vmem:[%s637_s1 + $0x20] sm:$0xff]   ;;  %v491_v18 = vld [vmem:[%s637_s1 + $0x18] sm:$0xff]   ;;  %v495_v22 = vld [vmem:[%s637_s1 + $0x10] sm:$0xff]  }
   0x8   :  { %432 = vmatpush3.bf16.msra.mxu0 %v479_v6  ;;  %v488_v15 = vld [vmem:[%s637_s1 + $0xa0] sm:$0xff]   ;;  %v492_v19 = vld [vmem:[%s637_s1 + $0x98] sm:$0xff]   ;;  %v496_v23 = vld [vmem:[%s637_s1 + $0x90] sm:$0xff]  }
   0x9   :  { %454 = vmatpush3.bf16.msra.mxu1 %v480_v7  ;;  %433 = vmatprep.subr.bf16.mxu0 %v481_v8  ;;  %v497_v24 = vld [vmem:[%s637_s1 + $0x48] sm:$0xff]   ;;  %v501_v28 = vld [vmem:[%s637_s1 + $0x40] sm:$0xff]  }
   0xa   :  { %455 = vmatprep.subr.bf16.mxu1 %v482_v9  ;;  %v498_v25 = vld [vmem:[%s637_s1 + $0xc8] sm:$0xff]   ;;  %v502_v29 = vld [vmem:[%s637_s1 + $0xc0] sm:$0xff]  }
   0xb   :  { %v499_v26 = vld [vmem:[%s637_s1 + $0x8] sm:$0xff]   ;;  %v503_v30 = vld [vmem:[%s637_s1] sm:$0xff]  }
   0xc   :  { %434 = vmatpush3.bf16.msra.mxu0 %v483_v10  ;;  %v500_v27 = vld [vmem:[%s637_s1 + $0x88] sm:$0xff]   ;;  %v504_v31 = vld [vmem:[%s637_s1 + $0x80] sm:$0xff]  }
   0xd   :  { %456 = vmatpush3.bf16.msra.mxu1 %v484_v11  ;;  %435 = vmatprep.subr.bf16.mxu0 %v485_v12  ;;  %v21_v32 = vld [vmem:[%s638_s0] sm:$0xff]  ;;  %v22_v33 = vld [vmem:[%s638_s0 + $0x8] sm:$0xff] }
   0xe   :  { %457 = vmatprep.subr.bf16.mxu1 %v486_v13  ;;  %v392_v34 = vcombine.low %v21_v32, %v21_v32  ;;  %v393_v35 = vcombine.high %v21_v32, %v21_v32  ;;  %v394_v36 = vcombine.low %v22_v33, %v22_v33  ;;  %v395_v37 = vcombine.high %v22_v33, %v22_v33  ;;  %v428_v44 = vld [vmem:[%s639_s2] ss:$0 sm:$0xff] }
  0x10   :  { %436 = vmatpush3.bf16.msra.mxu0 %v487_v14  ;;  %325 = vmatprep.mubr.bf16.mxu0 %v393_v35 }
  0x11   :  { %458 = vmatpush3.bf16.msra.mxu1 %v488_v15  ;;  %437 = vmatprep.subr.bf16.mxu0 %v489_v16 }
  0x12   :  { %459 = vmatprep.subr.bf16.mxu1 %v490_v17  ;;  %365 = vmatprep.mubr.bf16.mxu1 %v395_v37 }
  0x14   :  { %438 = vmatpush3.bf16.msra.mxu0 %v491_v18 }
  0x15   :  { %460 = vmatpush3.bf16.msra.mxu1 %v492_v19  ;;  %439 = vmatprep.subr.bf16.mxu0 %v493_v20 }
  0x16   :  { %461 = vmatprep.subr.bf16.mxu1 %v494_v21 }
  0x18   :  { %440 = vmatpush3.bf16.msra.mxu0 %v495_v22 }
  0x19   :  { %462 = vmatpush3.bf16.msra.mxu1 %v496_v23  ;;  %441 = vmatprep.subr.bf16.mxu0 %v497_v24 }
  0x1a   :  { %463 = vmatprep.subr.bf16.mxu1 %v498_v25 }
  0x1c   :  { %442 = vmatpush3.bf16.msra.mxu0 %v499_v26 }
  0x1d   :  { %464 = vmatpush3.bf16.msra.mxu1 %v500_v27  ;;  %443 = vmatprep.subr.bf16.mxu0 %v501_v28 }
  0x1e   :  { %465 = vmatprep.subr.bf16.mxu1 %v502_v29 }
  0x20   :  { %444 = vmatpush3.bf16.msra.mxu0 %v503_v30 }
  0x21   :  { %466 = vmatpush3.bf16.msra.mxu1 %v504_v31 }
  0x23   :  { %326 = vmatmul.mubr.bf16.vlgmr.msra.gmra.mxu0 %v392_v34 }
  0x24   :  { %366 = vmatmul.mubr.bf16.vlgmr.msra.gmra.mxu1 %v394_v36 }
  0xe3   :  { %v445_v38 = vpop.f32.mrf.mxu0 }
  0xe4   :  { %v467_v39 = vpop.f32.mrf.mxu1 }
  0xe5   :  { %v446_v40 = vpop.f32.mrf.mxu0 }
  0xe6   :  { %v468_v41 = vpop.f32.mrf.mxu1  ;;  %v447_v42 = vadd.f32 %v446_v40, %v445_v38 }
  0xe7   :  { %v469_v43 = vadd.f32 %v468_v41, %v467_v39  ;;  %v448_v45 = vpop.f32.mrf.mxu0 }
  0xe8   :  { %v470_v46 = vpop.f32.mrf.mxu1 }
  0xe9   :  { %v368_v47 = vadd.f32 %v469_v43, %v447_v42  ;;  %v449_v48 = vpop.f32.mrf.mxu0 }
  0xea   :  { %v471_v49 = vpop.f32.mrf.mxu1 }
  0xeb   :  { %v386_v50 = vadd.f32 %v428_v44, %v368_v47 }
  0xed   :  { %387 = vst [vmem:[%s640_s3] sm:$0xff] %v386_v50 }

// kernel: multiscale_discriminator_forward.53
= control target key start
LH: loop header
LB: loop body
LE: loop exit
PB: predicated region body
PF: predicated region fallthrough
CT: control target
= control target key end

     0   :  { %s425_s12 = smov 0   ;;  %s427_s13 = smov 0   ;;  %s464_s0 = inlined_call_operand.vmem [shape: f32[2,8,64], index: 0, kind: input, shape index: {}]   ;;  %s465_s1 = inlined_call_operand.vmem [shape: f32[2,1,64], index: 1, kind: input, shape index: {}]   ;;  %s466_s2 = inlined_call_operand.vmem [shape: f32[2,1,64], index: 2, kind: input, shape index: {}]   ;;  %s467_s3 = inlined_call_operand.vmem [shape: f32[2,8,64], index: 3, kind: output, shape index: {}]  }
   0x1   :  { %s429_s14 = smov 0  }
   0x2 LB: > { %s25_s15 = sadd.s32 1, %s399_s13  ;;  %p350_p0 = scmp.ge.s32.totalorder %s403_s14, 1  ;;  %s403_s14 = sphi %s429_s14, %s13_s14   ;;  %s399_s13 = sphi %s427_s13, %s469_s13   ;;  %s395_s12 = sphi %s425_s12, %s468_s12  }
   0x3   : > { %p27_p1 = scmp.ge.s32.totalorder %s25_s15, 2  ;;  %p171_p2 = scmp.lt.s32.totalorder %s403_s14, 3 }
   0x5   : > { %s471_s15 = smov (%p27_p1, %s25_s15), 0  ;;  %p172_p3 = pnand %p350_p0, %p171_p2 }
   0x6   : > { %p205_p4 = scmp.lt.s32.totalorder (!%p172_p3), %s395_s12, 1 }
   0x7   : > { %175 = sbr.rel (%p172_p3) target bundleno = 47 (0x2f), region = 32 }
   0xc   : > { %s473_s12 = smov (!%p205_p4, %s395_s12), 1  ;;  %v236_v7 = vlaneseq  ;;  %vm252_vm1 = vcmask 523264  }
   0xd   : > { %s214_s18 = scalar_lea.vmem %s465_s1, %s473_s12  ;;  %s217_s21 = scalar_lea.vmem %s466_s2, %s473_s12 }
   0xe   : > { %v225_v0 = vld [vmem:[%s214_s18] sm:$0x1]  ;;  %v237_v9 = vshrl.u32 %v236_v7, 7  ;;  %s351_s22 = sshll.u32 %s473_s12, 3 }
   0xf   : > { %v226_v1 = vmul.f32 0.25, %v225_v0  ;;  %v227_v2 = vld [vmem:[%s217_s21] sm:$0x1]  ;;  %s211_s25 = scalar_lea.vmem %s464_s0, %s351_s22  ;;  %s224_s28 = scalar_lea.vmem %s467_s3, %s351_s22 }
  0x10   : > { %v228_v3 = vmul.f32 0.25, %v227_v2  ;;  %v238_v10 = vsub.s32 0, %v237_v9  ;;  %v234_v12 = vld [vmem:[%s211_s25] sm:$0xff] }
  0x11   : > { %v229_v4 = vmul.f32 %v226_v1, %v226_v1 }
  0x12   : > { %v239_v11 = vrot.slane %v226_v1, %v238_v10 }
  0x13   : > { %v230_v5 = vsub.f32 %v228_v3, %v229_v4 }
  0x14   : > { %v241_v13 = vsub.f32 %v234_v12, %v239_v11 }
  0x15   : > { %v231_v6 = vmax.f32 %v230_v5, 0.0 }
  0x17   : > { %v232_v8 = vadd.f32 1e-05, %v231_v6 }
  0x19   : > { %379 = vrsqrt.f32 %v232_v8 }
  0x26   : > { %v380_v14 = vpop.eup %379 }
  0x27   : > { %v246_v15 = vrot.slane %v380_v14, %v238_v10 }
  0x29   : > { %v248_v16 = vmul.f32 %v246_v15, %v241_v13 }
  0x2b   : > { %vm249_vm0 = vcmp.ge.f32.partialorder %v248_v16, 0.0  ;;  %v250_v17 = vmul.f32 0.2, %v248_v16 }
  0x2d   : > { %v251_v18 = vsel %vm249_vm0, %v248_v16, %v250_v17 }
  0x2e   : > { %253 = vst.msk [vmem:[%s224_s28] sm:$0xff] %vm252_vm1, %v251_v18 }
  0x2f PF: > { %s13_s14 = sadd.s32 1, %s403_s14   ;;  %s468_s12 = smov %s399_s13 }
  0x30   : > { %p10_p5 = scmp.ge.s32.totalorder %s13_s14, 4   ;;  %s469_s13 = smov %s471_s15 }
  0x32   :  { %12 = sbr.rel (!%p10_p5) target bundleno = 2 (0x2), region = 68 }

// kernel: multiscale_discriminator_forward.54
= control target key start
LH: loop header
LB: loop body
LE: loop exit
PB: predicated region body
PF: predicated region fallthrough
CT: control target
= control target key end

     0   :  { %s1082_s12 = smov 0   ;;  %s1084_s13 = smov 0   ;;  %s1203_s0 = inlined_call_operand.vmem [shape: bf16[24,1024], index: 0, kind: input, shape index: {}]   ;;  %s1204_s1 = inlined_call_operand.vmem [shape: bf16[1024,128], index: 1, kind: input, shape index: {}]   ;;  %s1205_s2 = inlined_call_operand.vmem [shape: f32[1,128], index: 2, kind: input, shape index: {}]   ;;  %s1206_s3 = inlined_call_operand.vmem [shape: f32[24,128], index: 3, kind: output, shape index: {}]  }
   0x1   :  { %s1086_s14 = smov 0   ;;  %s1088_s15 = smov 0  }
   0x2   :  { %s1090_s16 = smov 0  }
   0x3 LB: > { %s25_s17 = sadd.s32 1, %s1055_s15  ;;  %p48_p1 = scmp.ne.s32.totalorder %s1047_s13, %s1043_s12  ;;  %s1059_s16 = sphi %s1090_s16, %s13_s16   ;;  %s1055_s15 = sphi %s1088_s15, %s1210_s15   ;;  %s1051_s14 = sphi %s1086_s14, %s1209_s14   ;;  %s1047_s13 = sphi %s1084_s13, %s1208_s13   ;;  %s1043_s12 = sphi %s1082_s12, %s1207_s12  }
   0x4   : > { %p26_p0 = scmp.ge.s32.totalorder %s25_s17, 2  ;;  %p49_p2 = scmp.eq.s32.totalorder %s1059_s16, 0 }
   0x5   : > { %s41_s19 = sadd.s32 1, %s1047_s13  ;;  %p826_p5 = scmp.ge.s32.totalorder %s1059_s16, 2 }
   0x6   : > { %s1212_s17 = smov (%p26_p0, %s25_s17), 0  ;;  %p50_p3 = por %p49_p2, %p48_p1 }
   0x7   : > { %s37_s18 = ssub.s32 %s1055_s15, %s1212_s17  ;;  %162 = sbr.rel (%p826_p5) target bundleno = 19 (0x13), region = 20 }
   0x8   : > { %p39_p4 = scmp.eq.s32.totalorder %s37_s18, 0 }
   0xa   : > { %s1117_s20 = scalar_select %p39_p4, %s1047_s13, %s41_s19  }
   0xc   : > { %165 = sbr.rel (!%p50_p3) target bundleno = 19 (0x13), region = 24  ;;  %s167_s21 = sand.u32 (%p50_p3), 1, %s1047_s13  }
   0xd   : > { %s879_s22 = sshll.u32 (%p50_p3), %s1055_s15, 4  ;;  %s936_s23 = smul.u32 (%p50_p3), 48, %s167_s21 }
   0xe   : > { %s175_s26 = scalar_lea.vmem (%p50_p3), %s1203_s0, %s879_s22 }
   0xf   : > { %v188_v0 = vld [vmem:[%s175_s26] sm:$0xff] (%p50_p3)  ;;  %v190_v1 = vld [vmem:[%s175_s26 + $0x8] sm:$0xff] (%p50_p3)  ;;  %s169_s27 = scalar_lea.vmem (%p50_p3), [#allocation3], %s936_s23 }
  0x10   : > { %v192_v2 = vld [vmem:[%s175_s26 + $0x20] sm:$0xff] (%p50_p3)  ;;  %v194_v3 = vld [vmem:[%s175_s26 + $0x28] sm:$0xff] (%p50_p3)  ;;  %189 = vst [vmem:[%s169_s27] sm:$0xff] (%p50_p3), %v188_v0  ;;  %191 = vst [vmem:[%s169_s27 + $0x8] sm:$0xff] (%p50_p3), %v190_v1 }
  0x11   : > { %v196_v4 = vld [vmem:[%s175_s26 + $0x40] sm:$0xff]  ;;  %v198_v5 = vld [vmem:[%s175_s26 + $0x48] sm:$0xff]  ;;  %193 = vst [vmem:[%s169_s27 + $0x10] sm:$0xff] %v192_v2  ;;  %195 = vst [vmem:[%s169_s27 + $0x18] sm:$0xff] %v194_v3 }
  0x12   : > { %197 = vst [vmem:[%s169_s27 + $0x20] sm:$0xff] %v196_v4  ;;  %199 = vst [vmem:[%s169_s27 + $0x28] sm:$0xff] %v198_v5 }
  0x13 PF: > { %p829_p6 = scmp.ge.s32.totalorder %s1059_s16, 1  ;;  %p216_p7 = scmp.lt.s32.totalorder %s1059_s16, 3 }
  0x15   : > { %p217_p8 = pnand %p829_p6, %p216_p7 }
  0x16   : > { %s223_s28 = sand.u32 (!%p217_p8), 1, %s1043_s12   ;;  %s830_s29 = sshll.u32 (!%p217_p8), %s1051_s14, 6 }
  0x17   : > { %220 = sbr.rel (%p217_p8) target bundleno = 291 (0x123), region = 51  ;;  %p263_p9 = scmp.lt.s32.totalorder (!%p217_p8), %s830_s29, 127 }
  0x18   : > { %s937_s30 = smul.u32 (!%p217_p8), 48, %s223_s28  ;;  %p832_p10 = scmp.ne.s32.totalorder (!%p217_p8), %s1051_s14, 0 }
  0x1a   : > { %s1134_s8 = scalar_lea.vmem (!%p217_p8), [#allocation3], %s937_s30 }
  0x1c   : > { %s1214_s29 = smov (!%p263_p9, %s830_s29), 127  ;;  %287 = sbr.rel (%p832_p10) target bundleno = 36 (0x24), region = 59 }
  0x1d   : > { %s831_s4 = sshll.u32 %s1214_s29, 2 }
  0x1e   : > { %s1132_s7 = scalar_lea.vmem %s1204_s1, %s831_s4 }
  0x21   : > { %v1061_v6 = vmov 0.0  }
  0x22   : > { %288 = vst [vmem:[#allocation2 + $0x10] sm:$0xff] %v1061_v6  ;;  %289 = vst [vmem:[#allocation2] sm:$0xff] %v1061_v6 }
  0x23   : > { %290 = vst [vmem:[#allocation2 + $0x8] sm:$0xff] %v1061_v6 }
  0x24 PF: > { %v979_v7 = vld [vmem:[%s1132_s7 + $0x78] sm:$0xff]   ;;  %v983_v11 = vld [vmem:[%s1132_s7 + $0x70] sm:$0xff]   ;;  %v987_v15 = vld [vmem:[%s1132_s7 + $0x68] sm:$0xff]   ;;  %p873_p11 = scmp.ne.s32.totalorder %s1051_s14, 1 }
  0x25   : > { %v980_v8 = vld [vmem:[%s1132_s7 + $0xf8] sm:$0xff]   ;;  %880 = vmatprep.subr.bf16.mxu0 %v979_v7  ;;  %v984_v12 = vld [vmem:[%s1132_s7 + $0xf0] sm:$0xff]   ;;  %v988_v16 = vld [vmem:[%s1132_s7 + $0xe8] sm:$0xff]  }
  0x26   : > { %v981_v9 = vld [vmem:[%s1132_s7 + $0x38] sm:$0xff]   ;;  %908 = vmatprep.subr.bf16.mxu1 %v980_v8  ;;  %v985_v13 = vld [vmem:[%s1132_s7 + $0x30] sm:$0xff]   ;;  %v989_v17 = vld [vmem:[%s1132_s7 + $0x28] sm:$0xff]  }
  0x27   : > { %v982_v10 = vld [vmem:[%s1132_s7 + $0xb8] sm:$0xff]   ;;  %881 = vmatpush3.bf16.msra.mxu0 %v981_v9  ;;  %v986_v14 = vld [vmem:[%s1132_s7 + $0xb0] sm:$0xff]   ;;  %v990_v18 = vld [vmem:[%s1132_s7 + $0xa8] sm:$0xff]  }
  0x28   : > { %909 = vmatpush3.bf16.msra.mxu1 %v982_v10  ;;  %882 = vmatprep.subr.bf16.mxu0 %v983_v11  ;;  %v991_v19 = vld [vmem:[%s1132_s7 + $0x60] sm:$0xff]   ;;  %v995_v23 = vld [vmem:[%s1132_s7 + $0x58] sm:$0xff]   ;;  %v999_v27 = vld [vmem:[%s1132_s7 + $0x50] sm:$0xff]  }
  0x29   : > { %910 = vmatprep.subr.bf16.mxu1 %v984_v12  ;;  %v992_v20 = vld [vmem:[%s1132_s7 + $0xe0] sm:$0xff]   ;;  %v996_v24 = vld [vmem:[%s1132_s7 + $0xd8] sm:$0xff]   ;;  %v1000_v28 = vld [vmem:[%s1132_s7 + $0xd0] sm:$0xff]  }
  0x2a   : > { %v993_v21 = vld [vmem:[%s1132_s7 + $0x20] sm:$0xff]   ;;  %v997_v25 = vld [vmem:[%s1132_s7 + $0x18] sm:$0xff]   ;;  %v1001_v29 = vld [vmem:[%s1132_s7 + $0x10] sm:$0xff]  }
  0x2b   : > { %883 = vmatpush3.bf16.msra.mxu0 %v985_v13  ;;  %v994_v22 = vld [vmem:[%s1132_s7 + $0xa0] sm:$0xff]   ;;  %v998_v26 = vld [vmem:[%s1132_s7 + $0x98] sm:$0xff]   ;;  %v1002_v30 = vld [vmem:[%s1132_s7 + $0x90] sm:$0xff]  }
  0x2c   : > { %911 = vmatpush3.bf16.msra.mxu1 %v986_v14  ;;  %884 = vmatprep.subr.bf16.mxu0 %v987_v15  ;;  %v1003_v31 = vld [vmem:[%s1132_s7 + $0x48] sm:$0xff]   ;;  %v1007_v35 = vld [vmem:[%s1132_s7 + $0x40] sm:$0xff]   ;;  %v291_v56 = vld [vmem:[#allocation2 + $0x10] sm:$0xff] }
  0x2d   : > { %912 = vmatprep.subr.bf16.mxu1 %v988_v16  ;;  %v1004_v32 = vld [vmem:[%s1132_s7 + $0xc8] sm:$0xff]   ;;  %v1008_v36 = vld [vmem:[%s1132_s7 + $0xc0] sm:$0xff]  }
  0x2e   : > { %v1005_v33 = vld [vmem:[%s1132_s7 + $0x8] sm:$0xff]   ;;  %v1009_v37 = vld [vmem:[%s1132_s7] sm:$0xff]  }
  0x2f   : > { %885 = vmatpush3.bf16.msra.mxu0 %v989_v17  ;;  %v1006_v34 = vld [vmem:[%s1132_s7 + $0x88] sm:$0xff]   ;;  %v1010_v38 = vld [vmem:[%s1132_s7 + $0x80] sm:$0xff]  }
  0x30   : > { %913 = vmatpush3.bf16.msra.mxu1 %v990_v18  ;;  %886 = vmatprep.subr.bf16.mxu0 %v991_v19  ;;  %v1011_v39 = vld [vmem:[%s1134_s8] ss:$16 sps:$4 sm:$0xff]   ;;  %v1013_v40 = vld [vmem:[%s1134_s8 + $0x4] ss:$16 sps:$4 sm:$0xff]   ;;  %v1014_v41 = vld [vmem:[%s1134_s8 + $0x8] ss:$16 sps:$4 sm:$0xff]  }
  0x31   : > { %914 = vmatprep.subr.bf16.mxu1 %v992_v20  ;;  %v1016_v42 = vld [vmem:[%s1134_s8 + $0xc] ss:$16 sps:$4 sm:$0xff]   ;;  %v298_v43 = vld [vmem:[%s1134_s8 + $0x20] sm:$0xff]  ;;  %622 = vmatprep.mubr.bf16.mxu0 %v1013_v40 }
  0x32   : > { %v838_v44 = vcombine.high %v298_v43, %v298_v43  ;;  %v299_v45 = vld [vmem:[%s1134_s8 + $0x28] sm:$0xff]  ;;  %670 = vmatprep.mubr.bf16.mxu1 %v1016_v42  ;;  %v837_v47 = vcombine.low %v298_v43, %v298_v43  ;;  %v293_v10 = vld [vmem:[#allocation2 + $0x8] sm:$0xff] }
  0x33   : > { %887 = vmatpush3.bf16.msra.mxu0 %v993_v21  ;;  %v840_v46 = vcombine.high %v299_v45, %v299_v45  ;;  %v839_v48 = vcombine.low %v299_v45, %v299_v45  ;;  %v292_v1 = vld [vmem:[#allocation2] sm:$0xff] }
  0x34   : > { %915 = vmatpush3.bf16.msra.mxu1 %v994_v22  ;;  %888 = vmatprep.subr.bf16.mxu0 %v995_v23 }
  0x35   : > { %916 = vmatprep.subr.bf16.mxu1 %v996_v24 }
  0x37   : > { %889 = vmatpush3.bf16.msra.mxu0 %v997_v25 }
  0x38   : > { %917 = vmatpush3.bf16.msra.mxu1 %v998_v26  ;;  %890 = vmatprep.subr.bf16.mxu0 %v999_v27 }
  0x39   : > { %918 = vmatprep.subr.bf16.mxu1 %v1000_v28 }
  0x3b   : > { %891 = vmatpush3.bf16.msra.mxu0 %v1001_v29 }
  0x3c   : > { %919 = vmatpush3.bf16.msra.mxu1 %v1002_v30  ;;  %892 = vmatprep.subr.bf16.mxu0 %v1003_v31 }
  0x3d   : > { %920 = vmatprep.subr.bf16.mxu1 %v1004_v32 }
  0x3f   : > { %893 = vmatpush3.bf16.msra.mxu0 %v1005_v33 }
  0x40   : > { %921 = vmatpush3.bf16.msra.mxu1 %v1006_v34  ;;  %894 = vmatprep.subr.bf16.mxu0 %v1007_v35 }
  0x41   : > { %922 = vmatprep.subr.bf16.mxu1 %v1008_v36 }
  0x43   : > { %895 = vmatpush3.bf16.msra.mxu0 %v1009_v37 }
  0x44   : > { %923 = vmatpush3.bf16.msra.mxu1 %v1010_v38 }
  0x46   : > { %623 = vmatmul.mubr.bf16.vlgmr.msra.gmra.mxu0 %v1011_v39 }
  0x47   : > { %671 = vmatmul.mubr.bf16.vlgmr.msra.gmra.mxu1 %v1014_v41  ;;  %630 = vmatprep.mubr.bf16.mxu0 %v838_v44 }
  0x48   : > { %678 = vmatprep.mubr.bf16.mxu1 %v840_v46 }
  0x4e   : > { %631 = vmatmul.mubr.bf16.gmra.mxu0 %v837_v47 }
  0x4f   : > { %679 = vmatmul.mubr.bf16.gmra.mxu1 %v839_v48 }
 0x106   : > { %v896_v49 = vpop.f32.mrf.mxu0 }
 0x107   : > { %v924_v50 = vpop.f32.mrf.mxu1 }
 0x108   : > { %v897_v51 = vpop.f32.mrf.mxu0 }
 0x109   : > { %v898_v52 = vadd.f32 %v897_v51, %v896_v49  ;;  %v925_v53 = vpop.f32.mrf.mxu1 }
 0x10a   : > { %v926_v54 = vadd.f32 %v925_v53, %v924_v50  ;;  %v899_v55 = vpop.f32.mrf.mxu0 }
 0x10b   : > { %v927_v57 = vpop.f32.mrf.mxu1 }
 0x10c   : > { %v673_v58 = vadd.f32 %v926_v54, %v898_v52  ;;  %v900_v59 = vpop.f32.mrf.mxu0 }
 0x10d   : > { %v901_v60 = vadd.f32 %v900_v59, %v899_v55  ;;  %v928_v61 = vpop.f32.mrf.mxu1 }
 0x10e   : > { %v686_v62 = vadd.f32 %v673_v58, %v291_v56  ;;  %v929_v63 = vadd.f32 %v928_v61, %v927_v57  ;;  %v902_v0 = vpop.f32.mrf.mxu0 }
 0x10f   : > { %v930_v2 = vpop.f32.mrf.mxu1 }
 0x110   : > { %689 = vst [vmem:[#allocation2 + $0x10] sm:$0xff] %v686_v62  ;;  %v676_v3 = vadd.f32 %v929_v63, %v901_v60  ;;  %v903_v4 = vpop.f32.mrf.mxu0 }
 0x111   : > { %v904_v5 = vadd.f32 %v903_v4, %v902_v0  ;;  %v931_v6 = vpop.f32.mrf.mxu1 }
 0x112   : > { %v687_v7 = vadd.f32 %v676_v3, %v292_v1  ;;  %v932_v8 = vadd.f32 %v931_v6, %v930_v2  ;;  %v905_v9 = vpop.f32.mrf.mxu0 }
 0x113   : > { %v933_v11 = vpop.f32.mrf.mxu1 }
 0x114   : > { %690 = vst [vmem:[#allocation2] sm:$0xff] %v687_v7  ;;  %v681_v12 = vadd.f32 %v932_v8, %v904_v5  ;;  %v906_v13 = vpop.f32.mrf.mxu0  ;;  %695 = sbr.rel (%p873_p11) target bundleno = 291 (0x123), region = 63 }
 0x115   : > { %v934_v14 = vpop.f32.mrf.mxu1 }
 0x116   : > { %v688_v15 = vadd.f32 %v681_v12, %v293_v10 }
 0x118   : > { %691 = vst [vmem:[#allocation2 + $0x8] sm:$0xff] %v688_v15 }
 0x119   : > { %v696_v16 = vld [vmem:[#allocation2 + $0x10] sm:$0xff]  ;;  %v874_v17 = vld [vmem:[%s1205_s2] ss:$0 sm:$0xff] }
 0x11a   : > { %v706_v19 = vadd.f32 %v874_v17, %v696_v16 }
 0x11b   : > { %v697_v18 = vld [vmem:[#allocation2] sm:$0xff] }
 0x11c   : > { %v707_v20 = vadd.f32 %v874_v17, %v697_v18  ;;  %709 = vst [vmem:[%s1206_s3] sm:$0xff] %v706_v19 }
 0x11e   : > { %710 = vst [vmem:[%s1206_s3 + $0x8] sm:$0xff] %v707_v20 }
 0x11f   : > { %v698_v21 = vld [vmem:[#allocation2 + $0x8] sm:$0xff] }
 0x120   : > { %v708_v22 = vadd.f32 %v874_v17, %v698_v21 }
 0x122   : > { %711 = vst [vmem:[%s1206_s3 + $0x10] sm:$0xff] %v708_v22 }
 0x123 PF: > { %s13_s16 = sadd.s32 1, %s1059_s16   ;;  %s1207_s12 = smov %s1047_s13 }
 0x124   : > { %p10_p12 = scmp.ge.s32.totalorder %s13_s16, 4   ;;  %s1208_s13 = smov %s1117_s20 }
 0x125   : > { %s1209_s14 = smov %s1055_s15  ;;  %s1210_s15 = smov %s1212_s17 }
 0x126   :  { %12 = sbr.rel (!%p10_p12) target bundleno = 3 (0x3), region = 104 }

// kernel: multiscale_discriminator_forward.56
= control target key start
LH: loop header
LB: loop body
LE: loop exit
PB: predicated region body
PF: predicated region fallthrough
CT: control target
= control target key end

     0   :  { %s461_s12 = smov 0   ;;  %s463_s13 = smov 0   ;;  %s500_s0 = inlined_call_operand.vmem [shape: f32[2,16,128], index: 0, kind: input, shape index: {}]   ;;  %s501_s1 = inlined_call_operand.vmem [shape: f32[2,1,128], index: 1, kind: input, shape index: {}]   ;;  %s502_s2 = inlined_call_operand.vmem [shape: f32[2,1,128], index: 2, kind: input, shape index: {}]   ;;  %s503_s3 = inlined_call_operand.vmem [shape: f32[2,16,128], index: 3, kind: output, shape index: {}]  }
   0x1   :  { %s465_s14 = smov 0  }
   0x2 LB: > { %s25_s15 = sadd.s32 1, %s435_s13  ;;  %p382_p0 = scmp.ge.s32.totalorder %s439_s14, 1  ;;  %s439_s14 = sphi %s465_s14, %s13_s14   ;;  %s435_s13 = sphi %s463_s13, %s505_s13   ;;  %s431_s12 = sphi %s461_s12, %s504_s12  }
   0x3   : > { %p27_p1 = scmp.ge.s32.totalorder %s25_s15, 2  ;;  %p174_p2 = scmp.lt.s32.totalorder %s439_s14, 3 }
   0x5   : > { %s507_s15 = smov (%p27_p1, %s25_s15), 0  ;;  %p175_p3 = pnand %p382_p0, %p174_p2 }
   0x6   : > { %p213_p4 = scmp.lt.s32.totalorder (!%p175_p3), %s431_s12, 1 }
   0x7   : > { %178 = sbr.rel (%p175_p3) target bundleno = 47 (0x2f), region = 32 }
   0xc   : > { %s509_s12 = smov (!%p213_p4, %s431_s12), 1  ;;  %v250_v7 = vlaneseq }
   0xd   : > { %s224_s18 = scalar_lea.vmem %s501_s1, %s509_s12  ;;  %s227_s21 = scalar_lea.vmem %s502_s2, %s509_s12 }
   0xe   : > { %v238_v0 = vld [vmem:[%s224_s18] sm:$0x1]  ;;  %v251_v9 = vshrl.u32 %v250_v7, 7  ;;  %s389_s22 = sshll.u32 %s509_s12, 4 }
   0xf   : > { %v239_v1 = vmul.f32 0.11111111, %v238_v0  ;;  %v240_v2 = vld [vmem:[%s227_s21] sm:$0x1]  ;;  %s220_s25 = scalar_lea.vmem %s500_s0, %s389_s22  ;;  %s236_s28 = scalar_lea.vmem %s503_s3, %s389_s22 }
  0x10   : > { %v241_v3 = vmul.f32 0.11111111, %v240_v2  ;;  %v252_v10 = vsub.s32 0, %v251_v9  ;;  %v247_v12 = vld [vmem:[%s220_s25] sm:$0xff]  ;;  %v248_v13 = vld [vmem:[%s220_s25 + $0x8] sm:$0xff] }
  0x11   : > { %v242_v4 = vmul.f32 %v239_v1, %v239_v1 }
  0x12   : > { %v253_v11 = vrot.slane %v239_v1, %v252_v10 }
  0x13   : > { %v243_v5 = vsub.f32 %v241_v3, %v242_v4 }
  0x14   : > { %v255_v14 = vsub.f32 %v247_v12, %v253_v11  ;;  %v256_v15 = vsub.f32 %v248_v13, %v253_v11 }
  0x15   : > { %v244_v6 = vmax.f32 %v243_v5, 0.0 }
  0x17   : > { %v245_v8 = vadd.f32 1e-05, %v244_v6 }
  0x19   : > { %415 = vrsqrt.f32 %v245_v8 }
  0x26   : > { %v416_v16 = vpop.eup %415 }
  0x27   : > { %v261_v17 = vrot.slane %v416_v16, %v252_v10 }
  0x29   : > { %v263_v18 = vmul.f32 %v261_v17, %v255_v14  ;;  %v264_v19 = vmul.f32 %v261_v17, %v256_v15 }
  0x2b   : > { %vm265_vm0 = vcmp.ge.f32.partialorder %v263_v18, 0.0  ;;  %v267_v20 = vmul.f32 0.2, %v263_v18  ;;  %vm266_vm1 = vcmp.ge.f32.partialorder %v264_v19, 0.0  ;;  %v268_v21 = vmul.f32 0.2, %v264_v19 }
  0x2d   : > { %v269_v22 = vsel %vm265_vm0, %v263_v18, %v267_v20  ;;  %v270_v23 = vsel %vm266_vm1, %v264_v19, %v268_v21 }
  0x2e   : > { %271 = vst [vmem:[%s236_s28] sm:$0xff] %v269_v22  ;;  %272 = vst [vmem:[%s236_s28 + $0x8] sm:$0xff] %v270_v23 }
  0x2f PF: > { %s13_s14 = sadd.s32 1, %s439_s14   ;;  %s504_s12 = smov %s435_s13 }
  0x30   : > { %p10_p5 = scmp.ge.s32.totalorder %s13_s14, 4   ;;  %s505_s13 = smov %s507_s15 }
  0x32   :  { %12 = sbr.rel (!%p10_p5) target bundleno = 2 (0x2), region = 68 }

// kernel: multiscale_discriminator_forward.57
= control target key start
LH: loop header
LB: loop body
LE: loop exit
PB: predicated region body
PF: predicated region fallthrough
CT: control target
= control target key end

     0   :  { %s1105_s12 = smov 0   ;;  %s1107_s13 = smov 0   ;;  %s1231_s0 = inlined_call_operand.vmem [shape: bf16[32,2048], index: 0, kind: input, shape index: {}]   ;;  %s1232_s1 = inlined_call_operand.vmem [shape: bf16[2048,128], index: 1, kind: input, shape index: {}]   ;;  %s1233_s2 = inlined_call_operand.vmem [shape: f32[1,128], index: 2, kind: input, shape index: {}]   ;;  %s1234_s3 = inlined_call_operand.vmem [shape: f32[32,128], index: 3, kind: output, shape index: {}]  }
   0x1   :  { %s1109_s14 = smov 0   ;;  %s1111_s15 = smov 0  }
   0x2   :  { %s1113_s16 = smov 0  }
   0x3 LB: > { %s25_s17 = sadd.s32 1, %s1078_s15  ;;  %p48_p1 = scmp.ne.s32.totalorder %s1070_s13, %s1066_s12  ;;  %s1082_s16 = sphi %s1113_s16, %s13_s16   ;;  %s1078_s15 = sphi %s1111_s15, %s1238_s15   ;;  %s1074_s14 = sphi %s1109_s14, %s1237_s14   ;;  %s1070_s13 = sphi %s1107_s13, %s1236_s13   ;;  %s1066_s12 = sphi %s1105_s12, %s1235_s12  }
   0x4   : > { %p26_p0 = scmp.ge.s32.totalorder %s25_s17, 4  ;;  %p49_p2 = scmp.eq.s32.totalorder %s1082_s16, 0 }
   0x5   : > { %s41_s19 = sadd.s32 1, %s1070_s13  ;;  %p847_p5 = scmp.ge.s32.totalorder %s1082_s16, 4 }
   0x6   : > { %s1240_s17 = smov (%p26_p0, %s25_s17), 0  ;;  %p50_p3 = por %p49_p2, %p48_p1 }
   0x7   : > { %s37_s18 = ssub.s32 %s1078_s15, %s1240_s17  ;;  %162 = sbr.rel (%p847_p5) target bundleno = 20 (0x14), region = 20 }
   0x8   : > { %p39_p4 = scmp.eq.s32.totalorder %s37_s18, 0 }
   0xa   : > { %s1140_s20 = scalar_select %p39_p4, %s1070_s13, %s41_s19  }
   0xc   : > { %165 = sbr.rel (!%p50_p3) target bundleno = 20 (0x14), region = 24  ;;  %s167_s21 = sand.u32 (%p50_p3), 1, %s1070_s13  }
   0xd   : > { %s902_s22 = sshll.u32 (%p50_p3), %s1078_s15, 4  ;;  %s848_s23 = sshll.u32 (%p50_p3), %s167_s21, 6 }
   0xe   : > { %s175_s26 = scalar_lea.vmem (%p50_p3), %s1231_s0, %s902_s22  ;;  %s169_s27 = scalar_lea.vmem (%p50_p3), [#allocation3], %s848_s23 }
   0xf   : > { %v188_v0 = vld [vmem:[%s175_s26] sm:$0xff] (%p50_p3)  ;;  %v190_v1 = vld [vmem:[%s175_s26 + $0x8] sm:$0xff] (%p50_p3) }
  0x10   : > { %v192_v2 = vld [vmem:[%s175_s26 + $0x40] sm:$0xff] (%p50_p3)  ;;  %189 = vst [vmem:[%s169_s27] sm:$0xff] (%p50_p3), %v188_v0  ;;  %191 = vst [vmem:[%s169_s27 + $0x8] sm:$0xff] (%p50_p3), %v190_v1  ;;  %v194_v3 = vld [vmem:[%s175_s26 + $0x48] sm:$0xff] (%p50_p3) }
  0x11   : > { %193 = vst [vmem:[%s169_s27 + $0x10] sm:$0xff] %v192_v2  ;;  %v196_v4 = vld [vmem:[%s175_s26 + $0x80] sm:$0xff]  ;;  %v198_v5 = vld [vmem:[%s175_s26 + $0x88] sm:$0xff]  ;;  %195 = vst [vmem:[%s169_s27 + $0x18] sm:$0xff] %v194_v3 }
  0x12   : > { %197 = vst [vmem:[%s169_s27 + $0x20] sm:$0xff] %v196_v4  ;;  %199 = vst [vmem:[%s169_s27 + $0x28] sm:$0xff] %v198_v5  ;;  %v200_v6 = vld [vmem:[%s175_s26 + $0xc0] sm:$0xff]  ;;  %v202_v7 = vld [vmem:[%s175_s26 + $0xc8] sm:$0xff] }
  0x13   : > { %201 = vst [vmem:[%s169_s27 + $0x30] sm:$0xff] %v200_v6  ;;  %203 = vst [vmem:[%s169_s27 + $0x38] sm:$0xff] %v202_v7 }
  0x14 PF: > { %p851_p6 = scmp.ge.s32.totalorder %s1082_s16, 1  ;;  %p220_p7 = scmp.lt.s32.totalorder %s1082_s16, 5 }
  0x16   : > { %p221_p8 = pnand %p851_p6, %p220_p7 }
  0x17   : > { %s227_s28 = sand.u32 (!%p221_p8), 1, %s1066_s12   ;;  %s853_s29 = sshll.u32 (!%p221_p8), %s1074_s14, 6 }
  0x18   : > { %224 = sbr.rel (%p221_p8) target bundleno = 296 (0x128), region = 51  ;;  %s852_s30 = sshll.u32 (!%p221_p8), %s227_s28, 6 }
  0x19   : > { %p267_p9 = scmp.lt.s32.totalorder (!%p221_p8), %s853_s29, 255  ;;  %s1157_s8 = scalar_lea.vmem (!%p221_p8), [#allocation3], %s852_s30 }
  0x1a   : > { %p855_p10 = scmp.ne.s32.totalorder (!%p221_p8), %s1074_s14, 0 }
  0x1d   : > { %s1242_s29 = smov (!%p267_p9, %s853_s29), 255  ;;  %291 = sbr.rel (%p855_p10) target bundleno = 37 (0x25), region = 59 }
  0x1e   : > { %s854_s4 = sshll.u32 %s1242_s29, 2 }
  0x1f   : > { %s1155_s7 = scalar_lea.vmem %s1232_s1, %s854_s4 }
  0x22   : > { %v1084_v8 = vmov 0.0  }
  0x23   : > { %292 = vst [vmem:[#allocation2 + $0x10] sm:$0xff] %v1084_v8  ;;  %293 = vst [vmem:[#allocation2] sm:$0xff] %v1084_v8 }
  0x24   : > { %294 = vst [vmem:[#allocation2 + $0x18] sm:$0xff] %v1084_v8  ;;  %295 = vst [vmem:[#allocation2 + $0x8] sm:$0xff] %v1084_v8 }
  0x25 PF: > { %v1000_v9 = vld [vmem:[%s1155_s7 + $0x78] sm:$0xff]   ;;  %v1004_v13 = vld [vmem:[%s1155_s7 + $0x70] sm:$0xff]   ;;  %v1008_v17 = vld [vmem:[%s1155_s7 + $0x68] sm:$0xff]   ;;  %p896_p11 = scmp.ne.s32.totalorder %s1074_s14, 3 }
  0x26   : > { %v1001_v10 = vld [vmem:[%s1155_s7 + $0xf8] sm:$0xff]   ;;  %903 = vmatprep.subr.bf16.mxu0 %v1000_v9  ;;  %v1005_v14 = vld [vmem:[%s1155_s7 + $0xf0] sm:$0xff]   ;;  %v1009_v18 = vld [vmem:[%s1155_s7 + $0xe8] sm:$0xff]  }
  0x27   : > { %v1002_v11 = vld [vmem:[%s1155_s7 + $0x38] sm:$0xff]   ;;  %931 = vmatprep.subr.bf16.mxu1 %v1001_v10  ;;  %v1006_v15 = vld [vmem:[%s1155_s7 + $0x30] sm:$0xff]   ;;  %v1010_v19 = vld [vmem:[%s1155_s7 + $0x28] sm:$0xff]  }
  0x28   : > { %v1003_v12 = vld [vmem:[%s1155_s7 + $0xb8] sm:$0xff]   ;;  %904 = vmatpush3.bf16.msra.mxu0 %v1002_v11  ;;  %v1007_v16 = vld [vmem:[%s1155_s7 + $0xb0] sm:$0xff]   ;;  %v1011_v20 = vld [vmem:[%s1155_s7 + $0xa8] sm:$0xff]  }
  0x29   : > { %932 = vmatpush3.bf16.msra.mxu1 %v1003_v12  ;;  %905 = vmatprep.subr.bf16.mxu0 %v1004_v13  ;;  %v1012_v21 = vld [vmem:[%s1155_s7 + $0x60] sm:$0xff]   ;;  %v1016_v25 = vld [vmem:[%s1155_s7 + $0x58] sm:$0xff]   ;;  %v1020_v29 = vld [vmem:[%s1155_s7 + $0x50] sm:$0xff]  }
  0x2a   : > { %933 = vmatprep.subr.bf16.mxu1 %v1005_v14  ;;  %v1013_v22 = vld [vmem:[%s1155_s7 + $0xe0] sm:$0xff]   ;;  %v1017_v26 = vld [vmem:[%s1155_s7 + $0xd8] sm:$0xff]   ;;  %v1021_v30 = vld [vmem:[%s1155_s7 + $0xd0] sm:$0xff]  }
  0x2b   : > { %v1014_v23 = vld [vmem:[%s1155_s7 + $0x20] sm:$0xff]   ;;  %v1018_v27 = vld [vmem:[%s1155_s7 + $0x18] sm:$0xff]   ;;  %v1022_v31 = vld [vmem:[%s1155_s7 + $0x10] sm:$0xff]  }
  0x2c   : > { %906 = vmatpush3.bf16.msra.mxu0 %v1006_v15  ;;  %v1015_v24 = vld [vmem:[%s1155_s7 + $0xa0] sm:$0xff]   ;;  %v1019_v28 = vld [vmem:[%s1155_s7 + $0x98] sm:$0xff]   ;;  %v1023_v32 = vld [vmem:[%s1155_s7 + $0x90] sm:$0xff]  }
  0x2d   : > { %934 = vmatpush3.bf16.msra.mxu1 %v1007_v16  ;;  %907 = vmatprep.subr.bf16.mxu0 %v1008_v17  ;;  %v1024_v33 = vld [vmem:[%s1155_s7 + $0x48] sm:$0xff]   ;;  %v1028_v37 = vld [vmem:[%s1155_s7 + $0x40] sm:$0xff]   ;;  %v296_v56 = vld [vmem:[#allocation2 + $0x10] sm:$0xff] }
  0x2e   : > { %935 = vmatprep.subr.bf16.mxu1 %v1009_v18  ;;  %v1025_v34 = vld [vmem:[%s1155_s7 + $0xc8] sm:$0xff]   ;;  %v1029_v38 = vld [vmem:[%s1155_s7 + $0xc0] sm:$0xff]   ;;  %v298_v10 = vld [vmem:[#allocation2 + $0x18] sm:$0xff] }
  0x2f   : > { %v1026_v35 = vld [vmem:[%s1155_s7 + $0x8] sm:$0xff]   ;;  %v1030_v39 = vld [vmem:[%s1155_s7] sm:$0xff]  }
  0x30   : > { %908 = vmatpush3.bf16.msra.mxu0 %v1010_v19  ;;  %v1027_v36 = vld [vmem:[%s1155_s7 + $0x88] sm:$0xff]   ;;  %v1031_v40 = vld [vmem:[%s1155_s7 + $0x80] sm:$0xff]  }
  0x31   : > { %936 = vmatpush3.bf16.msra.mxu1 %v1011_v20  ;;  %909 = vmatprep.subr.bf16.mxu0 %v1012_v21  ;;  %v1032_v41 = vld [vmem:[%s1157_s8] ss:$16 sps:$4 sm:$0xff]   ;;  %v1034_v42 = vld [vmem:[%s1157_s8 + $0x4] ss:$16 sps:$4 sm:$0xff]   ;;  %v1035_v43 = vld [vmem:[%s1157_s8 + $0x8] ss:$16 sps:$4 sm:$0xff]  }
  0x32   : > { %937 = vmatprep.subr.bf16.mxu1 %v1013_v22  ;;  %v1037_v44 = vld [vmem:[%s1157_s8 + $0xc] ss:$16 sps:$4 sm:$0xff]   ;;  %636 = vmatprep.mubr.bf16.mxu0 %v1034_v42  ;;  %v1038_v45 = vld [vmem:[%s1157_s8 + $0x24] ss:$16 sps:$4 sm:$0xff]   ;;  %v1042_v47 = vld [vmem:[%s1157_s8 + $0x20] ss:$16 sps:$4 sm:$0xff]  }
  0x33   : > { %685 = vmatprep.mubr.bf16.mxu1 %v1037_v44  ;;  %v1040_v46 = vld [vmem:[%s1157_s8 + $0x2c] ss:$16 sps:$4 sm:$0xff]   ;;  %v1043_v48 = vld [vmem:[%s1157_s8 + $0x28] ss:$16 sps:$4 sm:$0xff]   ;;  %v297_v1 = vld [vmem:[#allocation2] sm:$0xff] }
  0x34   : > { %910 = vmatpush3.bf16.msra.mxu0 %v1014_v23  ;;  %v299_v18 = vld [vmem:[#allocation2 + $0x8] sm:$0xff] }
  0x35   : > { %938 = vmatpush3.bf16.msra.mxu1 %v1015_v24  ;;  %911 = vmatprep.subr.bf16.mxu0 %v1016_v25 }
  0x36   : > { %939 = vmatprep.subr.bf16.mxu1 %v1017_v26 }
  0x38   : > { %912 = vmatpush3.bf16.msra.mxu0 %v1018_v27 }
  0x39   : > { %940 = vmatpush3.bf16.msra.mxu1 %v1019_v28  ;;  %913 = vmatprep.subr.bf16.mxu0 %v1020_v29 }
  0x3a   : > { %941 = vmatprep.subr.bf16.mxu1 %v1021_v30 }
  0x3c   : > { %914 = vmatpush3.bf16.msra.mxu0 %v1022_v31 }
  0x3d   : > { %942 = vmatpush3.bf16.msra.mxu1 %v1023_v32  ;;  %915 = vmatprep.subr.bf16.mxu0 %v1024_v33 }
  0x3e   : > { %943 = vmatprep.subr.bf16.mxu1 %v1025_v34 }
  0x40   : > { %916 = vmatpush3.bf16.msra.mxu0 %v1026_v35 }
  0x41   : > { %944 = vmatpush3.bf16.msra.mxu1 %v1027_v36  ;;  %917 = vmatprep.subr.bf16.mxu0 %v1028_v37 }
  0x42   : > { %945 = vmatprep.subr.bf16.mxu1 %v1029_v38 }
  0x44   : > { %918 = vmatpush3.bf16.msra.mxu0 %v1030_v39 }
  0x45   : > { %946 = vmatpush3.bf16.msra.mxu1 %v1031_v40 }
  0x47   : > { %637 = vmatmul.mubr.bf16.vlgmr.msra.gmra.mxu0 %v1032_v41 }
  0x48   : > { %686 = vmatmul.mubr.bf16.vlgmr.msra.gmra.mxu1 %v1035_v43  ;;  %644 = vmatprep.mubr.bf16.mxu0 %v1038_v45 }
  0x49   : > { %693 = vmatprep.mubr.bf16.mxu1 %v1040_v46 }
  0x4f   : > { %645 = vmatmul.mubr.bf16.gmra.mxu0 %v1042_v47 }
  0x50   : > { %694 = vmatmul.mubr.bf16.gmra.mxu1 %v1043_v48 }
 0x107   : > { %v919_v49 = vpop.f32.mrf.mxu0 }
 0x108   : > { %v947_v50 = vpop.f32.mrf.mxu1 }
 0x109   : > { %v920_v51 = vpop.f32.mrf.mxu0 }
 0x10a   : > { %v921_v52 = vadd.f32 %v920_v51, %v919_v49  ;;  %v948_v53 = vpop.f32.mrf.mxu1 }
 0x10b   : > { %v949_v54 = vadd.f32 %v948_v53, %v947_v50  ;;  %v922_v55 = vpop.f32.mrf.mxu0 }
 0x10c   : > { %v950_v57 = vpop.f32.mrf.mxu1 }
 0x10d   : > { %v688_v58 = vadd.f32 %v949_v54, %v921_v52  ;;  %v923_v59 = vpop.f32.mrf.mxu0 }
 0x10e   : > { %v924_v60 = vadd.f32 %v923_v59, %v922_v55  ;;  %v951_v61 = vpop.f32.mrf.mxu1 }
 0x10f   : > { %v702_v62 = vadd.f32 %v688_v58, %v296_v56  ;;  %v952_v63 = vadd.f32 %v951_v61, %v950_v57  ;;  %v925_v0 = vpop.f32.mrf.mxu0 }
 0x110   : > { %v953_v2 = vpop.f32.mrf.mxu1 }
 0x111   : > { %706 = vst [vmem:[#allocation2 + $0x10] sm:$0xff] %v702_v62  ;;  %v691_v3 = vadd.f32 %v952_v63, %v924_v60  ;;  %v926_v4 = vpop.f32.mrf.mxu0 }
 0x112   : > { %v927_v5 = vadd.f32 %v926_v4, %v925_v0  ;;  %v954_v6 = vpop.f32.mrf.mxu1 }
 0x113   : > { %v703_v7 = vadd.f32 %v691_v3, %v297_v1  ;;  %v955_v8 = vadd.f32 %v954_v6, %v953_v2  ;;  %v928_v9 = vpop.f32.mrf.mxu0 }
 0x114   : > { %v956_v11 = vpop.f32.mrf.mxu1 }
 0x115   : > { %707 = vst [vmem:[#allocation2] sm:$0xff] %v703_v7  ;;  %v696_v12 = vadd.f32 %v955_v8, %v927_v5  ;;  %v929_v13 = vpop.f32.mrf.mxu0 }
 0x116   : > { %v930_v14 = vadd.f32 %v929_v13, %v928_v9  ;;  %v957_v15 = vpop.f32.mrf.mxu1 }
 0x117   : > { %v704_v16 = vadd.f32 %v696_v12, %v298_v10  ;;  %v958_v17 = vadd.f32 %v957_v15, %v956_v11 }
 0x119   : > { %708 = vst [vmem:[#allocation2 + $0x18] sm:$0xff] %v704_v16  ;;  %v699_v19 = vadd.f32 %v958_v17, %v930_v14  ;;  %713 = sbr.rel (%p896_p11) target bundleno = 296 (0x128), region = 63 }
 0x11b   : > { %v705_v20 = vadd.f32 %v699_v19, %v299_v18 }
 0x11d   : > { %709 = vst [vmem:[#allocation2 + $0x8] sm:$0xff] %v705_v20 }
 0x11e   : > { %v714_v21 = vld [vmem:[#allocation2 + $0x10] sm:$0xff]  ;;  %v897_v22 = vld [vmem:[%s1233_s2] ss:$0 sm:$0xff] }
 0x11f   : > { %v715_v23 = vld [vmem:[#allocation2] sm:$0xff]  ;;  %v725_v24 = vadd.f32 %v897_v22, %v714_v21 }
 0x120   : > { %v726_v25 = vadd.f32 %v897_v22, %v715_v23  ;;  %v716_v26 = vld [vmem:[#allocation2 + $0x18] sm:$0xff] }
 0x121   : > { %v727_v28 = vadd.f32 %v897_v22, %v716_v26  ;;  %729 = vst [vmem:[%s1234_s3] sm:$0xff] %v725_v24 }
 0x122   : > { %730 = vst [vmem:[%s1234_s3 + $0x8] sm:$0xff] %v726_v25 }
 0x123   : > { %731 = vst [vmem:[%s1234_s3 + $0x10] sm:$0xff] %v727_v28 }
 0x124   : > { %v717_v27 = vld [vmem:[#allocation2 + $0x8] sm:$0xff] }
 0x125   : > { %v728_v29 = vadd.f32 %v897_v22, %v717_v27 }
 0x127   : > { %732 = vst [vmem:[%s1234_s3 + $0x18] sm:$0xff] %v728_v29 }
 0x128 PF: > { %s13_s16 = sadd.s32 1, %s1082_s16   ;;  %s1235_s12 = smov %s1070_s13 }
 0x129   : > { %p10_p12 = scmp.ge.s32.totalorder %s13_s16, 6   ;;  %s1236_s13 = smov %s1140_s20 }
 0x12a   : > { %s1237_s14 = smov %s1078_s15  ;;  %s1238_s15 = smov %s1240_s17 }
 0x12b   :  { %12 = sbr.rel (!%p10_p12) target bundleno = 3 (0x3), region = 104 }

// kernel: multiscale_discriminator_forward.58
= control target key start
LH: loop header
LB: loop body
LE: loop exit
PB: predicated region body
PF: predicated region fallthrough
CT: control target
= control target key end

     0   :  { %s332_s9 = smov 0   ;;  %s385_s0 = inlined_call_operand.vmem [shape: f32[2,4,5,5,3], index: 0, kind: input, shape index: {}]   ;;  %s386_s1 = inlined_call_operand.vmem [shape: f32[4,4,3], index: 1, kind: input, shape index: {}]   ;;  %s387_s2 = inlined_call_operand.vmem [shape: f32[2,4,4,3], index: 2, kind: output, shape index: {}]  }
   0x1 LB: > { %s289_s10 = sadd.s32 4294967295, %s315_s9   ;;  %p293_p0 = scmp.ge.s32.totalorder %s315_s9, 1  ;;  %s315_s9 = sphi %s332_s9, %s12_s9  }
   0x2   : > { %p112_p1 = scmp.lt.s32.totalorder %s315_s9, 3 }
   0x4   : > { %p113_p2 = pnand %p293_p0, %p112_p1 }
   0x5   : > { %p134_p3 = scmp.lt.s32.totalorder (!%p113_p2), %s289_s10, 1 }
   0x6   : > { %116 = sbr.rel (%p113_p2) target bundleno = 38 (0x26), region = 28 }
   0xb   : > { %s389_s10 = smov (!%p134_p3, %s289_s10), 1  ;;  %v221_v50 = vld [vmem:[%s386_s1] sm:$0xf]  ;;  %v222_v51 = vld [vmem:[%s386_s1 + $0x4] sm:$0xf]  ;;  %vm229_vm0 = vcmask 19456  }
   0xc   : > { %s300_s11 = smul.u32 160, %s389_s10  ;;  %s299_s15 = sshll.u32 %s389_s10, 4  ;;  %v223_v58 = vld [vmem:[%s386_s1 + $0x8] sm:$0xf]  ;;  %v224_v63 = vld [vmem:[%s386_s1 + $0xc] sm:$0xf] }
   0xd   : > { %s143_s22 = scalar_lea.vmem %s387_s2, %s299_s15 }
   0xe   : > { %s346_s14 = scalar_lea.vmem %s385_s0, %s300_s11 }
   0xf   : > { %v144_v0 = vld [vmem:[%s346_s14] sm:$0x1f]  ;;  %v145_v1 = vld [vmem:[%s346_s14 + $0x8] sm:$0x1f]  ;;  %v146_v4 = vld [vmem:[%s346_s14 + $0x10] sm:$0x1f] }
  0x10   : > { %v166_v2 = vrot.slane %v144_v0, 1  ;;  %v167_v3 = vrot.slane %v145_v1, 1  ;;  %v168_v6 = vrot.slane %v146_v4, 1  ;;  %v147_v8 = vld [vmem:[%s346_s14 + $0x18] sm:$0x1f] }
  0x11   : > { %v169_v9 = vrot.slane %v147_v8, 1  ;;  %v148_v13 = vld [vmem:[%s346_s14 + $0x20] sm:$0x1f]  ;;  %v149_v14 = vld [vmem:[%s346_s14 + $0x28] sm:$0x1f] }
  0x12   : > { %v174_v5 = vadd.f32 %v166_v2, %v144_v0  ;;  %v175_v7 = vadd.f32 %v167_v3, %v145_v1  ;;  %v176_v12 = vadd.f32 %v168_v6, %v146_v4  ;;  %v150_v15 = vld [vmem:[%s346_s14 + $0x30] sm:$0x1f]  ;;  %v183_v17 = vrot.slane %v148_v13, 1  ;;  %v151_v22 = vld [vmem:[%s346_s14 + $0x38] sm:$0x1f] }
  0x13   : > { %v177_v16 = vadd.f32 %v169_v9, %v147_v8  ;;  %v154_v18 = vld [vmem:[%s346_s14 + $0x50] sm:$0x1f]  ;;  %v155_v23 = vld [vmem:[%s346_s14 + $0x58] sm:$0x1f]  ;;  %v152_v27 = vld [vmem:[%s346_s14 + $0x40] sm:$0x1f] }
  0x14   : > { %v178_v10 = vadd.f32 %v174_v5, %v145_v1  ;;  %v179_v11 = vadd.f32 %v175_v7, %v146_v4  ;;  %v180_v21 = vadd.f32 %v176_v12, %v147_v8  ;;  %v205_v29 = vrot.slane %v154_v18, 1  ;;  %v156_v30 = vld [vmem:[%s346_s14 + $0x60] sm:$0x1f]  ;;  %v153_v36 = vld [vmem:[%s346_s14 + $0x48] sm:$0x1f] }
  0x15   : > { %v181_v24 = vadd.f32 %v177_v16, %v148_v13  ;;  %v206_v34 = vrot.slane %v155_v23, 1  ;;  %v157_v37 = vld [vmem:[%s346_s14 + $0x68] sm:$0x1f]  ;;  %v207_v42 = vrot.slane %v156_v30, 1  ;;  %v158_v43 = vld [vmem:[%s346_s14 + $0x78] sm:$0x1f] }
  0x16   : > { %v185_v19 = vadd.f32 %v178_v10, %v167_v3  ;;  %v186_v20 = vadd.f32 %v179_v11, %v168_v6  ;;  %v187_v28 = vadd.f32 %v180_v21, %v169_v9  ;;  %v159_v44 = vld [vmem:[%s346_s14 + $0x80] sm:$0x1f]  ;;  %v208_v46 = vrot.slane %v157_v37, 1  ;;  %v160_v52 = vld [vmem:[%s346_s14 + $0x88] sm:$0x1f] }
  0x17   : > { %v188_v31 = vadd.f32 %v183_v17, %v181_v24  ;;  %v161_v57 = vld [vmem:[%s346_s14 + $0x90] sm:$0x1f] }
  0x18   : > { %v189_v25 = vadd.f32 %v185_v19, %v149_v14  ;;  %v190_v26 = vadd.f32 %v186_v20, %v150_v15  ;;  %v191_v35 = vadd.f32 %v187_v28, %v151_v22 }
  0x19   : > { %v192_v38 = vadd.f32 %v188_v31, %v152_v27 }
  0x1a   : > { %v193_v32 = vadd.f32 %v189_v25, %v150_v15  ;;  %v194_v33 = vadd.f32 %v190_v26, %v151_v22  ;;  %v195_v41 = vadd.f32 %v191_v35, %v152_v27 }
  0x1b   : > { %v196_v45 = vadd.f32 %v192_v38, %v153_v36 }
  0x1c   : > { %v197_v39 = vadd.f32 %v193_v32, %v154_v18  ;;  %v198_v40 = vadd.f32 %v194_v33, %v155_v23  ;;  %v199_v49 = vadd.f32 %v195_v41, %v156_v30 }
  0x1d   : > { %v200_v53 = vadd.f32 %v196_v45, %v157_v37 }
  0x1e   : > { %v213_v47 = vadd.f32 %v205_v29, %v197_v39  ;;  %v214_v48 = vadd.f32 %v206_v34, %v198_v40  ;;  %v215_v56 = vadd.f32 %v207_v42, %v199_v49 }
  0x1f   : > { %v216_v59 = vadd.f32 %v208_v46, %v200_v53 }
  0x20   : > { %v217_v54 = vadd.f32 %v213_v47, %v158_v43  ;;  %v218_v55 = vadd.f32 %v214_v48, %v159_v44  ;;  %v219_v62 = vadd.f32 %v215_v56, %v160_v52 }
  0x21   : > { %v220_v0 = vadd.f32 %v216_v59, %v161_v57 }
  0x22   : > { %v225_v60 = vmul.f32 %v221_v50, %v217_v54  ;;  %v226_v61 = vmul.f32 %v222_v51, %v218_v55  ;;  %v227_v1 = vmul.f32 %v223_v58, %v219_v62 }
  0x23   : > { %v228_v2 = vmul.f32 %v224_v63, %v220_v0 }
  0x24   : > { %230 = vst.msk [vmem:[%s143_s22] sm:$0xf] %vm229_vm0, %v225_v60  ;;  %231 = vst.msk [vmem:[%s143_s22 + $0x4] sm:$0xf] %vm229_vm0, %v226_v61 }
  0x25   : > { %232 = vst.msk [vmem:[%s143_s22 + $0x8] sm:$0xf] %vm229_vm0, %v227_v1  ;;  %233 = vst.msk [vmem:[%s143_s22 + $0xc] sm:$0xf] %vm229_vm0, %v228_v2 }
  0x26 PF: > { %s12_s9 = sadd.s32 1, %s315_s9  }
  0x27   : > { %p9_p4 = scmp.ge.s32.totalorder %s12_s9, 4  }
  0x29   :  { %11 = sbr.rel (!%p9_p4) target bundleno = 1 (0x1), region = 58 }

// kernel: multiscale_discriminator_forward.59
= control target key start
LH: loop header
LB: loop body
LE: loop exit
PB: predicated region body
PF: predicated region fallthrough
CT: control target
= control target key end

     0   :  { %s301_s1 = inlined_call_operand.vmem [shape: bf16[128,128], index: 1, kind: input, shape index: {}]   ;;  %s302_s0 = inlined_call_operand.vmem [shape: bf16[24,128], index: 0, kind: input, shape index: {}]   ;;  %s303_s2 = inlined_call_operand.vmem [shape: f32[1,128], index: 2, kind: input, shape index: {}]   ;;  %s304_s3 = inlined_call_operand.vmem [shape: f32[24,128], index: 3, kind: output, shape index: {}]  }
   0x1   :  { %v229_v0 = vld [vmem:[%s301_s1 + $0x38] sm:$0xff]   ;;  %v230_v1 = vld [vmem:[%s301_s1 + $0x30] sm:$0xff]   ;;  %v231_v2 = vld [vmem:[%s301_s1 + $0x28] sm:$0xff]  }
   0x2   :  { %209 = vmatprep.subr.bf16.mxu0 %v229_v0  ;;  %v232_v3 = vld [vmem:[%s301_s1 + $0x20] sm:$0xff]   ;;  %v233_v5 = vld [vmem:[%s301_s1 + $0x18] sm:$0xff]   ;;  %v234_v6 = vld [vmem:[%s301_s1 + $0x10] sm:$0xff]  }
   0x3   :  { %210 = vmatpush3.bf16.msra.mxu0 %v229_v0  ;;  %v237_v4 = vld [vmem:[%s302_s0] sm:$0xff]   ;;  %v235_v7 = vld [vmem:[%s301_s1 + $0x8] sm:$0xff]  }
   0x4   :  { %211 = vmatprep.subr.bf16.mxu0 %v230_v1  ;;  %225 = vmatprep.mubr.bf16.mxu0 %v237_v4  ;;  %v236_v8 = vld [vmem:[%s301_s1] sm:$0xff]   ;;  %v238_v9 = vld [vmem:[%s302_s0 + $0x8] ss:$0 sps:$4 sm:$0xff]  }
   0x5   :  { %v198_v10 = vld [vmem:[%s303_s2] ss:$0 sm:$0xff] }
   0x7   :  { %212 = vmatpush3.bf16.msra.mxu0 %v230_v1 }
   0x8   :  { %213 = vmatprep.subr.bf16.mxu0 %v231_v2 }
   0xb   :  { %214 = vmatpush3.bf16.msra.mxu0 %v231_v2 }
   0xc   :  { %215 = vmatprep.subr.bf16.mxu0 %v232_v3 }
   0xf   :  { %216 = vmatpush3.bf16.msra.mxu0 %v232_v3 }
  0x10   :  { %217 = vmatprep.subr.bf16.mxu0 %v233_v5 }
  0x13   :  { %218 = vmatpush3.bf16.msra.mxu0 %v233_v5 }
  0x14   :  { %219 = vmatprep.subr.bf16.mxu0 %v234_v6 }
  0x17   :  { %220 = vmatpush3.bf16.msra.mxu0 %v234_v6 }
  0x18   :  { %221 = vmatprep.subr.bf16.mxu0 %v235_v7 }
  0x1b   :  { %222 = vmatpush3.bf16.msra.mxu0 %v235_v7 }
  0x1c   :  { %223 = vmatprep.subr.bf16.mxu0 %v236_v8 }
  0x1f   :  { %224 = vmatpush3.bf16.msra.mxu0 %v236_v8 }
  0x22   :  { %226 = vmatmul.mubr.bf16.vlgmr.msra.gmra.mxu0 %v238_v9 }
  0xe2   :  { %v227_v11 = vpop.f32.mrf.mxu0 }
  0xe3   :  { %v171_v12 = vadd.f32 %v227_v11, %v198_v10 }
  0xe4   :  { %v136_v13 = vpop.f32.mrf.mxu0 }
  0xe5   :  { %vm174_vm0 = vcmp.ge.f32.partialorder %v171_v12, 0.0  ;;  %v177_v14 = vmul.f32 0.2, %v171_v12  ;;  %v169_v15 = vadd.f32 %v198_v10, %v136_v13 }
  0xe6   :  { %v228_v16 = vpop.f32.mrf.mxu0 }
  0xe7   :  { %v180_v17 = vsel %vm174_vm0, %v171_v12, %v177_v14  ;;  %vm172_vm1 = vcmp.ge.f32.partialorder %v169_v15, 0.0  ;;  %v175_v18 = vmul.f32 0.2, %v169_v15 }
  0xe8   :  { %183 = vst [vmem:[%s304_s3 + $0x10] sm:$0xff] %v180_v17  ;;  %v139_v19 = vpop.f32.mrf.mxu0 }
  0xe9   :  { %v178_v20 = vsel %vm172_vm1, %v169_v15, %v175_v18  ;;  %v170_v21 = vadd.f32 %v198_v10, %v139_v19 }
  0xea   :  { %181 = vst [vmem:[%s304_s3] sm:$0xff] %v178_v20 }
  0xeb   :  { %vm173_vm2 = vcmp.ge.f32.partialorder %v170_v21, 0.0  ;;  %v176_v22 = vmul.f32 0.2, %v170_v21 }
  0xed   :  { %v179_v23 = vsel %vm173_vm2, %v170_v21, %v176_v22 }
  0xee   :  { %182 = vst [vmem:[%s304_s3 + $0x8] sm:$0xff] %v179_v23 }

// kernel: multiscale_discriminator_forward.62
= control target key start
LH: loop header
LB: loop body
LE: loop exit
PB: predicated region body
PF: predicated region fallthrough
CT: control target
= control target key end

     0   :  { %s425_s12 = smov 0   ;;  %s427_s13 = smov 0   ;;  %s464_s0 = inlined_call_operand.vmem [shape: f32[2,8,32], index: 0, kind: input, shape index: {}]   ;;  %s465_s1 = inlined_call_operand.vmem [shape: f32[2,1,32], index: 1, kind: input, shape index: {}]   ;;  %s466_s2 = inlined_call_operand.vmem [shape: f32[2,1,32], index: 2, kind: input, shape index: {}]   ;;  %s467_s3 = inlined_call_operand.vmem [shape: f32[2,8,32], index: 3, kind: output, shape index: {}]  }
   0x1   :  { %s429_s14 = smov 0  }
   0x2 LB: > { %s25_s15 = sadd.s32 1, %s399_s13  ;;  %p350_p0 = scmp.ge.s32.totalorder %s403_s14, 1  ;;  %s403_s14 = sphi %s429_s14, %s13_s14   ;;  %s399_s13 = sphi %s427_s13, %s469_s13   ;;  %s395_s12 = sphi %s425_s12, %s468_s12  }
   0x3   : > { %p27_p1 = scmp.ge.s32.totalorder %s25_s15, 2  ;;  %p171_p2 = scmp.lt.s32.totalorder %s403_s14, 3 }
   0x5   : > { %s471_s15 = smov (%p27_p1, %s25_s15), 0  ;;  %p172_p3 = pnand %p350_p0, %p171_p2 }
   0x6   : > { %p205_p4 = scmp.lt.s32.totalorder (!%p172_p3), %s395_s12, 1 }
   0x7   : > { %175 = sbr.rel (%p172_p3) target bundleno = 47 (0x2f), region = 32 }
   0xc   : > { %s473_s12 = smov (!%p205_p4, %s395_s12), 1  ;;  %v236_v7 = vlaneseq  ;;  %vm252_vm1 = vcmask 261120  }
   0xd   : > { %s214_s18 = scalar_lea.vmem %s465_s1, %s473_s12  ;;  %s217_s21 = scalar_lea.vmem %s466_s2, %s473_s12 }
   0xe   : > { %v225_v0 = vld [vmem:[%s214_s18] sm:$0x1]  ;;  %v237_v9 = vshrl.u32 %v236_v7, 7  ;;  %s351_s22 = sshll.u32 %s473_s12, 3 }
   0xf   : > { %v226_v1 = vmul.f32 0.25, %v225_v0  ;;  %v227_v2 = vld [vmem:[%s217_s21] sm:$0x1]  ;;  %s211_s25 = scalar_lea.vmem %s464_s0, %s351_s22  ;;  %s224_s28 = scalar_lea.vmem %s467_s3, %s351_s22 }
  0x10   : > { %v228_v3 = vmul.f32 0.25, %v227_v2  ;;  %v238_v10 = vsub.s32 0, %v237_v9  ;;  %v234_v12 = vld [vmem:[%s211_s25] sm:$0xff] }
  0x11   : > { %v229_v4 = vmul.f32 %v226_v1, %v226_v1 }
  0x12   : > { %v239_v11 = vrot.slane %v226_v1, %v238_v10 }
  0x13   : > { %v230_v5 = vsub.f32 %v228_v3, %v229_v4 }
  0x14   : > { %v241_v13 = vsub.f32 %v234_v12, %v239_v11 }
  0x15   : > { %v231_v6 = vmax.f32 %v230_v5, 0.0 }
  0x17   : > { %v232_v8 = vadd.f32 1e-05, %v231_v6 }
  0x19   : > { %379 = vrsqrt.f32 %v232_v8 }
  0x26   : > { %v380_v14 = vpop.eup %379 }
  0x27   : > { %v246_v15 = vrot.slane %v380_v14, %v238_v10 }
  0x29   : > { %v248_v16 = vmul.f32 %v246_v15, %v241_v13 }
  0x2b   : > { %vm249_vm0 = vcmp.ge.f32.partialorder %v248_v16, 0.0  ;;  %v250_v17 = vmul.f32 0.2, %v248_v16 }
  0x2d   : > { %v251_v18 = vsel %vm249_vm0, %v248_v16, %v250_v17 }
  0x2e   : > { %253 = vst.msk [vmem:[%s224_s28] sm:$0xff] %vm252_vm1, %v251_v18 }
  0x2f PF: > { %s13_s14 = sadd.s32 1, %s403_s14   ;;  %s468_s12 = smov %s399_s13 }
  0x30   : > { %p10_p5 = scmp.ge.s32.totalorder %s13_s14, 4   ;;  %s469_s13 = smov %s471_s15 }
  0x32   :  { %12 = sbr.rel (!%p10_p5) target bundleno = 2 (0x2), region = 68 }

// kernel: multiscale_discriminator_forward.61
= control target key start
LH: loop header
LB: loop body
LE: loop exit
PB: predicated region body
PF: predicated region fallthrough
CT: control target
= control target key end

     0   :  { %s356_s9 = smov 0   ;;  %s358_s10 = smov 0   ;;  %s396_s0 = inlined_call_operand.vmem [shape: f32[2,8,32], index: 0, kind: input, shape index: {}]   ;;  %s397_s1 = inlined_call_operand.vmem [shape: f32[2,1,32], index: 1, kind: output, shape index: {0}]   ;;  %s398_s2 = inlined_call_operand.vmem [shape: f32[2,1,32], index: 2, kind: output, shape index: {1}]  }
   0x1   :  { %s360_s11 = smov 0  }
   0x2 LB: > { %s25_s12 = sadd.s32 1, %s334_s10  ;;  %p287_p0 = scmp.ge.s32.totalorder %s338_s11, 1  ;;  %s338_s11 = sphi %s360_s11, %s13_s11   ;;  %s334_s10 = sphi %s358_s10, %s400_s10   ;;  %s330_s9 = sphi %s356_s9, %s399_s9  }
   0x3   : > { %p27_p1 = scmp.ge.s32.totalorder %s25_s12, 2  ;;  %p131_p2 = scmp.lt.s32.totalorder %s338_s11, 3 }
   0x5   : > { %s402_s12 = smov (%p27_p1, %s25_s12), 0  ;;  %p132_p3 = pnand %p287_p0, %p131_p2 }
   0x6   : > { %p156_p4 = scmp.lt.s32.totalorder (!%p132_p3), %s330_s9, 1 }
   0x7   : > { %135 = sbr.rel (%p132_p3) target bundleno = 34 (0x22), region = 24 }
   0xc   : > { %s404_s9 = smov (!%p156_p4, %s330_s9), 1  ;;  %vm173_vm0 = vcmask 253952   ;;  %vm178_vm1 = vcmask 261120   ;;  %v340_v0 = vmov 0.0  }
   0xd   : > { %s288_s13 = sshll.u32 %s404_s9, 3  ;;  %s165_s16 = scalar_lea.vmem %s397_s1, %s404_s9 }
   0xe   : > { %s162_s19 = scalar_lea.vmem %s396_s0, %s288_s13  ;;  %174 = vst.msk [vmem:[%s165_s16] sm:$0x1] %vm173_vm0, %v340_v0  ;;  %s168_s22 = scalar_lea.vmem %s398_s2, %s404_s9 }
   0xf   : > { %v176_v1 = vld [vmem:[%s162_s19] sm:$0xff]  ;;  %175 = vst.msk [vmem:[%s168_s22] sm:$0x1] %vm173_vm0, %v340_v0 }
  0x10   : > { %v179_v2 = vsel %vm178_vm1, %v176_v1, 0.0  ;;  %v190_v3 = vmul.f32 %v176_v1, %v176_v1 }
  0x11   : > { %v180_v4 = vrot.slane %v179_v2, 4 }
  0x12   : > { %v191_v5 = vsel %vm178_vm1, %v190_v3, 0.0 }
  0x13   : > { %v181_v6 = vadd.f32 %v180_v4, %v179_v2  ;;  %v192_v7 = vrot.slane %v191_v5, 4 }
  0x15   : > { %v182_v8 = vrot.slane %v181_v6, 2  ;;  %v193_v9 = vadd.f32 %v192_v7, %v191_v5  ;;  %v177_v14 = vld [vmem:[%s165_s16] sm:$0x1] }
  0x16   : > { %v189_v17 = vld [vmem:[%s168_s22] sm:$0x1] }
  0x17   : > { %v183_v10 = vadd.f32 %v182_v8, %v181_v6  ;;  %v194_v11 = vrot.slane %v193_v9, 2 }
  0x19   : > { %v184_v12 = vrot.slane %v183_v10, 1  ;;  %v195_v13 = vadd.f32 %v194_v11, %v193_v9 }
  0x1b   : > { %v185_v15 = vadd.f32 %v184_v12, %v183_v10  ;;  %v196_v16 = vrot.slane %v195_v13, 1 }
  0x1d   : > { %v186_v18 = vadd.f32 %v185_v15, %v177_v14  ;;  %v197_v19 = vadd.f32 %v196_v16, %v195_v13 }
  0x1f   : > { %188 = vst.msk [vmem:[%s165_s16] sm:$0x1] %vm173_vm0, %v186_v18  ;;  %v198_v20 = vadd.f32 %v197_v19, %v189_v17 }
  0x21   : > { %199 = vst.msk [vmem:[%s168_s22] sm:$0x1] %vm173_vm0, %v198_v20 }
  0x22 PF: > { %s13_s11 = sadd.s32 1, %s338_s11   ;;  %s399_s9 = smov %s334_s10 }
  0x23   : > { %p10_p5 = scmp.ge.s32.totalorder %s13_s11, 4   ;;  %s400_s10 = smov %s402_s12 }
  0x25   :  { %12 = sbr.rel (!%p10_p5) target bundleno = 2 (0x2), region = 70 }

// kernel: multiscale_discriminator_forward.60
= control target key start
LH: loop header
LB: loop body
LE: loop exit
PB: predicated region body
PF: predicated region fallthrough
CT: control target
= control target key end

     0   :  { %s352_s1 = inlined_call_operand.vmem [shape: bf16[256,128], index: 1, kind: input, shape index: {}]   ;;  %s353_s0 = inlined_call_operand.vmem [shape: bf16[8,256], index: 0, kind: input, shape index: {}]   ;;  %s354_s2 = inlined_call_operand.vmem [shape: f32[1,128], index: 2, kind: input, shape index: {}]   ;;  %s355_s3 = inlined_call_operand.vmem [shape: f32[8,128], index: 3, kind: output, shape index: {}]  }
   0x1   :  { %v257_v0 = vld [vmem:[%s352_s1 + $0x78] sm:$0xff]   ;;  %v259_v2 = vld [vmem:[%s352_s1 + $0x70] sm:$0xff]   ;;  %v261_v4 = vld [vmem:[%s352_s1 + $0x68] sm:$0xff]  }
   0x2   :  { %v258_v1 = vld [vmem:[%s352_s1 + $0x38] sm:$0xff]   ;;  %235 = vmatprep.subr.bf16.mxu0 %v257_v0  ;;  %v260_v3 = vld [vmem:[%s352_s1 + $0x30] sm:$0xff]   ;;  %v262_v5 = vld [vmem:[%s352_s1 + $0x28] sm:$0xff]  }
   0x3   :  { %236 = vmatpush3.bf16.msra.mxu0 %v258_v1  ;;  %v263_v6 = vld [vmem:[%s352_s1 + $0x60] sm:$0xff]   ;;  %v265_v8 = vld [vmem:[%s352_s1 + $0x58] sm:$0xff]   ;;  %v267_v10 = vld [vmem:[%s352_s1 + $0x50] sm:$0xff]  }
   0x4   :  { %237 = vmatprep.subr.bf16.mxu0 %v259_v2  ;;  %v264_v7 = vld [vmem:[%s352_s1 + $0x20] sm:$0xff]   ;;  %v266_v9 = vld [vmem:[%s352_s1 + $0x18] sm:$0xff]   ;;  %v268_v13 = vld [vmem:[%s352_s1 + $0x10] sm:$0xff]  }
   0x5   :  { %v21_v11 = vld [vmem:[%s353_s0] sm:$0xff]  ;;  %v269_v14 = vld [vmem:[%s352_s1 + $0x48] sm:$0xff]  }
   0x6   :  { %v217_v12 = vcombine.high %v21_v11, %v21_v11  ;;  %v270_v15 = vld [vmem:[%s352_s1 + $0x8] sm:$0xff]   ;;  %v271_v16 = vld [vmem:[%s352_s1 + $0x40] sm:$0xff]   ;;  %v216_v18 = vcombine.low %v21_v11, %v21_v11 }
   0x7   :  { %238 = vmatpush3.bf16.msra.mxu0 %v260_v3  ;;  %v272_v17 = vld [vmem:[%s352_s1] sm:$0xff]  }
   0x8   :  { %239 = vmatprep.subr.bf16.mxu0 %v261_v4  ;;  %189 = vmatprep.mubr.bf16.mxu0 %v217_v12  ;;  %v234_v21 = vld [vmem:[%s354_s2] ss:$0 sm:$0xff] }
   0xb   :  { %240 = vmatpush3.bf16.msra.mxu0 %v262_v5 }
   0xc   :  { %241 = vmatprep.subr.bf16.mxu0 %v263_v6 }
   0xf   :  { %242 = vmatpush3.bf16.msra.mxu0 %v264_v7 }
  0x10   :  { %243 = vmatprep.subr.bf16.mxu0 %v265_v8 }
  0x13   :  { %244 = vmatpush3.bf16.msra.mxu0 %v266_v9 }
  0x14   :  { %245 = vmatprep.subr.bf16.mxu0 %v267_v10 }
  0x17   :  { %246 = vmatpush3.bf16.msra.mxu0 %v268_v13 }
  0x18   :  { %247 = vmatprep.subr.bf16.mxu0 %v269_v14 }
  0x1b   :  { %248 = vmatpush3.bf16.msra.mxu0 %v270_v15 }
  0x1c   :  { %249 = vmatprep.subr.bf16.mxu0 %v271_v16 }
  0x1f   :  { %250 = vmatpush3.bf16.msra.mxu0 %v272_v17 }
  0x22   :  { %190 = vmatmul.mubr.bf16.vlgmr.msra.gmra.mxu0 %v216_v18 }
  0xe2   :  { %v251_v19 = vpop.f32.mrf.mxu0 }
  0xe4   :  { %v252_v20 = vpop.f32.mrf.mxu0 }
  0xe5   :  { %v253_v22 = vadd.f32 %v252_v20, %v251_v19 }
  0xe6   :  { %v254_v23 = vpop.f32.mrf.mxu0 }
  0xe7   :  { %v210_v24 = vadd.f32 %v253_v22, %v234_v21 }
  0xe8   :  { %v255_v25 = vpop.f32.mrf.mxu0 }
  0xe9   :  { %211 = vst [vmem:[%s355_s3] sm:$0xff] %v210_v24 }

</bundles_post_ra>
